<compile_context>
chip_gen: v6e
topology: v6e:2x2x1
jax: 0.10.0
libtpu: 0.0.40
codegen_flags: <defaults>
</compile_context>

<pallas_src>
import math

import jax
import jax.numpy as jnp
from jax.experimental import pallas as pl
from jax.experimental.pallas import tpu as pltpu

# ----------------------------- config ---------------------------------------
CHANNELS    = 4          # image channels
SAMPLE_SIZE = 16         # image H = W
PATCH       = 4          # patch size
LATENT_CH   = 8          # latent channels
LATENT_SIZE = 4          # latent H = W
D_MODEL     = 64
N_HEADS     = 2
N_LAYERS    = 2
T_FREQ_DIM  = 256        # sinusoidal timestep feature dim
LN_EPS      = 1e-6

N_P         = SAMPLE_SIZE // PATCH
N_PATCH_TOK = N_P * N_P                  # 16 image tokens
N_Z_TOK     = LATENT_SIZE * LATENT_SIZE  # 16 latent tokens
PATCH_DIM   = PATCH * PATCH * CHANNELS   # 64
HEAD_DIM    = D_MODEL // N_HEADS         # 32
SEQ_LEN     = N_PATCH_TOK + 2 * N_Z_TOK  # 48 tokens per branch
ROWS        = 2 * SEQ_LEN                # 96 rows per grid step (both branches)
SM_SCALE    = 1.0 / math.sqrt(HEAD_DIM)
NEG_BIG     = -1e30


# ----------------------------- in-kernel helpers ------------------------------
def _layernorm(x):
    # single-pass: var = E[x^2] - mean^2 (two independent lane reductions).
    inv_d = 1.0 / x.shape[-1]
    s1 = jnp.sum(x, axis=-1, keepdims=True)
    s2 = jnp.sum(x * x, axis=-1, keepdims=True)
    mu = s1 * inv_d
    var = s2 * inv_d - mu * mu
    return (x - mu) * jax.lax.rsqrt(var + LN_EPS)


def _gelu_tanh(x):
    # tanh-form GELU (1 EUP op + few VALU ops); keeps the big (96, 4D)
    # activation off the VALU-heavy erf path.  ~1e-3 deviation from exact-erf.
    c = math.sqrt(2.0 / math.pi)
    return 0.5 * x * (1.0 + jnp.tanh(c * (x + 0.044715 * x * x * x)))


def _silu(x):
    return x * jax.nn.sigmoid(x)


# ----------------------------- fused core kernel ------------------------------
def _fused_core_kernel(tfeat_ref, tok_ref, z_ref,
                       ts_w1_ref, ts_w2_ref, proj_w_ref, projz_w_ref,
                       emb_b_ref, pos_ref,
                       ada_w_ref, ada_b_ref, qkv_w_ref, qkv_b_ref,
                       ow_ref, ob_ref, m1w_ref, m1b_ref, m2w_ref, m2b_ref,
                       fada_w_ref, fada_b_ref, fin_w_ref, fin_b_ref,
                       sq_ref, seq_ref):
    D = D_MODEL
    bf16 = jnp.bfloat16

    # ---- adaLN conditioning: computed ONCE per batch item (shared by both
    #      branches). Rows replicated to 8 so every matmul has M >= 8. ----
    tf = jnp.broadcast_to(tfeat_ref[0], (8, T_FREQ_DIM))              # (8, 256)
    c = jnp.dot(tf.astype(bf16), ts_w1_ref[...],
                preferred_element_type=jnp.float32) + emb_b_ref[0:1]
    c = _silu(c)
    c = jnp.dot(c.astype(bf16), ts_w2_ref[...],
                preferred_element_type=jnp.float32) + emb_b_ref[1:2]
    cond = _silu(c)                                                   # (8, D)

    # ---- token / latent embedding (both branches share the same matmul) ----
    pos_x  = pos_ref[0:N_PATCH_TOK]
    pos_z  = pos_ref[N_PATCH_TOK:N_PATCH_TOK + N_Z_TOK]
    pos_pz = pos_ref[N_PATCH_TOK + N_Z_TOK:N_PATCH_TOK + 2 * N_Z_TOK]

    img_tok = tok_ref[0, 0:2 * N_PATCH_TOK, :]                        # (32, 64)
    img_emb = jnp.dot(img_tok.astype(bf16), proj_w_ref[...],
                      preferred_element_type=jnp.float32) + emb_b_ref[2:3]
    z_all = z_ref[0]                                                  # (32, 8)
    z_emb = jnp.dot(z_all.astype(bf16), projz_w_ref[...],
                    preferred_element_type=jnp.float32) + emb_b_ref[3:4]
    zx_p = z_emb[0:N_Z_TOK] + pos_z                                   # z_x + pos_z
    zy_p = z_emb[N_Z_TOK:2 * N_Z_TOK] + pos_z                         # z_y + pos_z

    # sequence assembled by row-writes into VMEM scratch (no concatenate):
    #   item 0 (x-branch): [lerpd_x tokens | z_x | z_y(+prev)]   rows 0:48
    #   item 1 (y-branch): [y tokens       | z_y | z_x(+prev)]   rows 48:96
    seq_ref[0:N_PATCH_TOK]                 = img_emb[0:N_PATCH_TOK] + pos_x
    seq_ref[N_PATCH_TOK:32]                = zx_p
    seq_ref[32:SEQ_LEN]                    = zy_p + pos_pz
    seq_ref[SEQ_LEN:SEQ_LEN + N_PATCH_TOK] = img_emb[N_PATCH_TOK:2 * N_PATCH_TOK] + pos_x
    seq_ref[SEQ_LEN + N_PATCH_TOK:80]      = zy_p
    seq_ref[80:ROWS]                       = zx_p + pos_pz
    seq = seq_ref[...]                                                # (96, D)

    # ---- block-diagonal additive attention mask (2 stacked items) ----
    ri = jax.lax.broadcasted_iota(jnp.int32, (ROWS, ROWS), 0)
    ci = jax.lax.broadcasted_iota(jnp.int32, (ROWS, ROWS), 1)
    same_item = (ri < SEQ_LEN) == (ci < SEQ_LEN)
    neg = jnp.where(same_item, jnp.float32(0.0), jnp.float32(NEG_BIG))

    # ---- DiT blocks (weights resident in VMEM, statically unrolled) ----
    for l in range(N_LAYERS):
        mod = jnp.dot(cond.astype(bf16), ada_w_ref[l],
                      preferred_element_type=jnp.float32) + ada_b_ref[l]  # (8, 6D)
        sh_a, sc_a, g_a = mod[0:1, 0:D], mod[0:1, D:2 * D], mod[0:1, 2 * D:3 * D]
        sh_m, sc_m, g_m = (mod[0:1, 3 * D:4 * D], mod[0:1, 4 * D:5 * D],
                           mod[0:1, 5 * D:6 * D])

        # --- attention (96 rows, block-diagonal over the 2 items) ---
        h = _layernorm(seq) * (1.0 + sc_a) + sh_a
        qkv = jnp.dot(h.astype(bf16), qkv_w_ref[l],
                      preferred_element_type=jnp.float32) + qkv_b_ref[l]  # (96, 3D)
        attn_out = None
        for hd in range(N_HEADS):
            lo = hd * HEAD_DIM
            qh = qkv[:, lo:lo + HEAD_DIM]
            kh = qkv[:, D + lo:D + lo + HEAD_DIM]
            vh = qkv[:, 2 * D + lo:2 * D + lo + HEAD_DIM]
            # q @ k^T without an explicit transpose (contract last axes).
            s = jax.lax.dot_general(qh.astype(bf16), kh.astype(bf16),
                                    (((1,), (1,)), ((), ())),
                                    preferred_element_type=jnp.float32)
            s = s * SM_SCALE + neg
            s = s - jnp.max(s, axis=-1, keepdims=True)
            p = jnp.exp(s)
            p = p * pl.reciprocal(jnp.sum(p, axis=-1, keepdims=True), approx=False)
            hv = jnp.dot(p.astype(bf16), vh.astype(bf16),
                         preferred_element_type=jnp.float32)              # (96, 32)
            # fold head into output projection: sublane-sliced o_w, no lane concat.
            contrib = jnp.dot(hv.astype(bf16), ow_ref[l, lo:lo + HEAD_DIM, :],
                              preferred_element_type=jnp.float32)
            attn_out = contrib if attn_out is None else attn_out + contrib
        attn_out = attn_out + ob_ref[l]
        seq = seq + g_a * attn_out

        # --- MLP ---
        h = _layernorm(seq) * (1.0 + sc_m) + sh_m
        h = jnp.dot(h.astype(bf16), m1w_ref[l],
                    preferred_element_type=jnp.float32) + m1b_ref[l]      # (96, 4D)
        h = _gelu_tanh(h)
        h = jnp.dot(h.astype(bf16), m2w_ref[l],
                    preferred_element_type=jnp.float32) + m2b_ref[l]      # (96, D)
        seq = seq + g_m * h

    # ---- final adaLN layer on the image tokens of each item + fused SSE ----
    fmod = jnp.dot(cond.astype(bf16), fada_w_ref[...],
                   preferred_element_type=jnp.float32) + fada_b_ref[...]  # (8, 2D)
    f_sh, f_sc = fmod[0:1, 0:D], fmod[0:1, D:2 * D]
    fin_w = fin_w_ref[...]
    fin_b = fin_b_ref[...]
    partial = None
    for it in range(2):
        img = seq[it * SEQ_LEN:it * SEQ_LEN + N_PATCH_TOK]                # (16, D)
        g = _layernorm(img) * (1.0 + f_sc) + f_sh
        pred = jnp.dot(g.astype(bf16), fin_w,
                       preferred_element_type=jnp.float32) + fin_b        # (16, 64)
        tgt = tok_ref[0, (2 + it) * N_PATCH_TOK:(3 + it) * N_PATCH_TOK, :]
        d = pred - tgt
        ssq = jnp.sum(d * d, axis=0, keepdims=True)                       # (1, 64)
        partial = ssq if partial is None else partial + ssq
    # lane-partial squared error (no scalar broadcast / cross-lane reduce);
    # the final sum over 64 lanes + B steps happens in XLA.
    sq_ref[0] = partial


# ----------------------------- pallas_call wrapper ----------------------------
def _const_spec(shape):
    """Whole-array block, constant index -> DMA'd once, resident in VMEM."""
    nd = len(shape)
    return pl.BlockSpec(tuple(shape), lambda i, _z=(0,) * nd: _z)


def _batch_spec(shape):
    """Per-grid-step block along the leading batch axis."""
    nd = len(shape)
    blk = (1,) + tuple(shape[1:])
    return pl.BlockSpec(blk, lambda i, _n=nd: (i,) + (0,) * (_n - 1))


def fused_core(params, t_feat, tok_slab, z_slab):
    b = tok_slab.shape[0]
    p = params
    operands = [
        t_feat, tok_slab, z_slab,
        p["ts_w1"], p["ts_w2"], p["proj_in_w"], p["proj_in_z_w"],
        p["emb_b"], p["pos"],
        p["blk_ada_w"], p["blk_ada_b"], p["blk_qkv_w"], p["blk_qkv_b"],
        p["blk_o_w"], p["blk_o_b"], p["blk_mlp_w1"], p["blk_mlp_b1"],
        p["blk_mlp_w2"], p["blk_mlp_b2"],
        p["final_ada_w"], p["final_ada_b"], p["final_w"], p["final_b"],
    ]
    in_specs = ([_batch_spec(o.shape) for o in operands[:3]]
                + [_const_spec(o.shape) for o in operands[3:]])
    return pl.pallas_call(
        _fused_core_kernel,
        grid=(b,),
        in_specs=in_specs,
        out_specs=_batch_spec((b, 1, PATCH_DIM)),
        out_shape=jax.ShapeDtypeStruct((b, 1, PATCH_DIM), jnp.float32),
        scratch_shapes=[pltpu.VMEM((ROWS, D_MODEL), jnp.float32)],
        compiler_params=pltpu.CompilerParams(
            dimension_semantics=("parallel",)),   # grid=(B,)>=2 keeps v7x's 2 TCs busy
    )(*operands)


# ----------------------------- XLA-side layout glue ---------------------------
def flatten_patches(x):
    # x.view(b,c,npy,p,npx,p).permute(0,2,4,3,5,1).view(b, npy*npx, p*p*c)
    b, c, h, w = x.shape
    x = x.reshape(b, c, N_P, PATCH, N_P, PATCH)
    x = x.transpose(0, 2, 4, 3, 5, 1)
    return x.reshape(b, N_P * N_P, PATCH * PATCH * c)


def flatten_latent(z):
    b, c, h, w = z.shape
    return z.transpose(0, 2, 3, 1).reshape(b, h * w, c)


def timestep_features(t, dim=T_FREQ_DIM, max_period=10000.0):
    half = dim // 2
    freqs = jnp.exp(-math.log(max_period) *
                    jnp.arange(half, dtype=jnp.float32) / half)
    args = t[:, None].astype(jnp.float32) * freqs[None, :]
    return jnp.concatenate([jnp.cos(args), jnp.sin(args)], axis=-1)


# ----------------------------- params -----------------------------------------
def init_params(key):
    keys = iter(jax.random.split(key, 64))

    def w(shape, scale=0.02):
        # MXU weight matrices stored bf16 (f32 accumulation in-kernel).
        return (scale * jax.random.normal(next(keys), shape,
                                          dtype=jnp.float32)).astype(jnp.bfloat16)

    def wf32(shape, scale=0.02):
        return scale * jax.random.normal(next(keys), shape, dtype=jnp.float32)

    def zeros(shape):
        return jnp.zeros(shape, jnp.float32)

    L, D = N_LAYERS, D_MODEL
    return {
        "ts_w1": w((T_FREQ_DIM, D)),
        "ts_w2": w((D, D)),
        "proj_in_w":   w((PATCH_DIM, D)),
        "proj_in_z_w": w((LATENT_CH, D)),
        # combined bias slab: rows = [ts_b1, ts_b2, proj_in_b, proj_in_z_b]
        "emb_b": zeros((4, D)),
        # combined positional encodings: [pos_x | pos_z | pos_prev_z]
        "pos": wf32((N_PATCH_TOK + 2 * N_Z_TOK, D)),
        # per-layer weights stacked along a leading layer axis (VMEM-resident)
        "blk_ada_w":  w((L, D, 6 * D)),     "blk_ada_b":  zeros((L, 1, 6 * D)),
        "blk_qkv_w":  w((L, D, 3 * D)),     "blk_qkv_b":  zeros((L, 1, 3 * D)),
        "blk_o_w":    w((L, D, D)),         "blk_o_b":    zeros((L, 1, D)),
        "blk_mlp_w1": w((L, D, 4 * D)),     "blk_mlp_b1": zeros((L, 1, 4 * D)),
        "blk_mlp_w2": w((L, 4 * D, D)),     "blk_mlp_b2": zeros((L, 1, D)),
        "final_ada_w": w((D, 2 * D)),       "final_ada_b": zeros((1, 2 * D)),
        "final_w":     w((D, PATCH_DIM)),   "final_b":     zeros((1, PATCH_DIM)),
    }


# ----------------------------- forward ----------------------------------------
def pair_diff_dec_forward(params, x, y, z_x, z_y, rng):
    b = x.shape[0]
    k_ts, k_ex, k_ey = jax.random.split(rng, 3)
    ts = jax.nn.sigmoid(jax.random.normal(k_ts, (b,), dtype=x.dtype))
    eps_x = jax.random.normal(k_ex, x.shape, dtype=x.dtype)
    eps_y = jax.random.normal(k_ey, y.shape, dtype=y.dtype)

    t4 = ts.reshape(b, 1, 1, 1).astype(jnp.float32)
    lerpd_x = x * (1.0 - t4) + t4 * eps_x
    # NOTE: reference also builds lerpd_y but never feeds it to the core;
    # the y-branch gets CLEAN y, matching the PyTorch code.
    target_x = eps_x - x
    target_y = eps_y - y

    # Per-step packed slabs (one grid step = both branches of one batch item):
    #   tok_slab rows: [0:16]=lerpd_x tokens, [16:32]=y tokens,
    #                  [32:48]=target_x tokens, [48:64]=target_y tokens
    tok_slab = jnp.concatenate(
        [flatten_patches(lerpd_x), flatten_patches(y),
         flatten_patches(target_x), flatten_patches(target_y)],
        axis=1).astype(jnp.float32)                                    # (B, 64, 64)
    #   z_slab rows: [0:16]=z_x, [16:32]=z_y
    z_slab = jnp.concatenate(
        [flatten_latent(z_x), flatten_latent(z_y)], axis=1).astype(jnp.float32)

    t_feat = timestep_features(ts)[:, None, :].astype(jnp.float32)    # (B, 1, 256)

    sq = fused_core(params, t_feat, tok_slab, z_slab)                 # (B, 1, 64)

    # 0.5 * (mse_x + mse_y) == (sum_x + sum_y) / (2 * x.size)
    return jnp.sum(sq) / (2.0 * x.size)


# ----------------------------- main --------------------------------------------
if __name__ == "__main__":
    key = jax.random.PRNGKey(0)
    kp, kx, ky, kzx, kzy, krng = jax.random.split(key, 6)
    params = init_params(kp)

    B = 2
    x = jax.random.normal(kx, (B, CHANNELS, SAMPLE_SIZE, SAMPLE_SIZE), jnp.float32)
    y = jax.random.normal(ky, (B, CHANNELS, SAMPLE_SIZE, SAMPLE_SIZE), jnp.float32)
    z_x = jax.random.normal(kzx, (B, LATENT_CH, LATENT_SIZE, LATENT_SIZE), jnp.float32)
    z_y = jax.random.normal(kzy, (B, LATENT_CH, LATENT_SIZE, LATENT_SIZE), jnp.float32)

    loss_fn = jax.jit(pair_diff_dec_forward)
    loss = jax.block_until_ready(loss_fn(params, x, y, z_x, z_y, krng))
    assert jnp.isfinite(loss), "non-finite loss"
    print("KERNEL_OK")
</pallas_src>

<mosaic_0001>
module attributes {stable_mosaic.version = 11 : i64} {
  func.func @_fused_core_kernel(%arg0: i32, %arg1: memref<1x1x256xf32, #tpu.memory_space<vmem>>, %arg2: memref<1x64x64xf32, #tpu.memory_space<vmem>>, %arg3: memref<1x32x8xf32, #tpu.memory_space<vmem>>, %arg4: memref<256x64xbf16, #tpu.memory_space<vmem>>, %arg5: memref<64x64xbf16, #tpu.memory_space<vmem>>, %arg6: memref<64x64xbf16, #tpu.memory_space<vmem>>, %arg7: memref<8x64xbf16, #tpu.memory_space<vmem>>, %arg8: memref<4x64xf32, #tpu.memory_space<vmem>>, %arg9: memref<48x64xf32, #tpu.memory_space<vmem>>, %arg10: memref<2x64x384xbf16, #tpu.memory_space<vmem>>, %arg11: memref<2x1x384xf32, #tpu.memory_space<vmem>>, %arg12: memref<2x64x192xbf16, #tpu.memory_space<vmem>>, %arg13: memref<2x1x192xf32, #tpu.memory_space<vmem>>, %arg14: memref<2x64x64xbf16, #tpu.memory_space<vmem>>, %arg15: memref<2x1x64xf32, #tpu.memory_space<vmem>>, %arg16: memref<2x64x256xbf16, #tpu.memory_space<vmem>>, %arg17: memref<2x1x256xf32, #tpu.memory_space<vmem>>, %arg18: memref<2x256x64xbf16, #tpu.memory_space<vmem>>, %arg19: memref<2x1x64xf32, #tpu.memory_space<vmem>>, %arg20: memref<64x128xbf16, #tpu.memory_space<vmem>>, %arg21: memref<1x128xf32, #tpu.memory_space<vmem>>, %arg22: memref<64x64xbf16, #tpu.memory_space<vmem>>, %arg23: memref<1x64xf32, #tpu.memory_space<vmem>>, %arg24: memref<1x1x64xf32, #tpu.memory_space<vmem>>, %arg25: memref<96x64xf32, #tpu.memory_space<vmem>>) attributes {dimension_semantics = [#tpu.dimension_semantics<parallel>], iteration_bounds = array<i64: 2>, scalar_prefetch = 0 : i64, scratch_operands = 1 : i64, tpu.core_type = #tpu.core_type<tc>, window_params = [{transform_indices = @transform_0, window_bounds = array<i64: 1, 1, 256>}, {transform_indices = @transform_1, window_bounds = array<i64: 1, 64, 64>}, {transform_indices = @transform_2, window_bounds = array<i64: 1, 32, 8>}, {pipeline_mode = #tpu.pipeline_mode<synchronous>, transform_indices = @transform_3, window_bounds = array<i64: 256, 64>}, {pipeline_mode = #tpu.pipeline_mode<synchronous>, transform_indices = @transform_4, window_bounds = array<i64: 64, 64>}, {pipeline_mode = #tpu.pipeline_mode<synchronous>, transform_indices = @transform_5, window_bounds = array<i64: 64, 64>}, {pipeline_mode = #tpu.pipeline_mode<synchronous>, transform_indices = @transform_6, window_bounds = array<i64: 8, 64>}, {pipeline_mode = #tpu.pipeline_mode<synchronous>, transform_indices = @transform_7, window_bounds = array<i64: 4, 64>}, {pipeline_mode = #tpu.pipeline_mode<synchronous>, transform_indices = @transform_8, window_bounds = array<i64: 48, 64>}, {pipeline_mode = #tpu.pipeline_mode<synchronous>, transform_indices = @transform_9, window_bounds = array<i64: 2, 64, 384>}, {pipeline_mode = #tpu.pipeline_mode<synchronous>, transform_indices = @transform_10, window_bounds = array<i64: 2, 1, 384>}, {pipeline_mode = #tpu.pipeline_mode<synchronous>, transform_indices = @transform_11, window_bounds = array<i64: 2, 64, 192>}, {pipeline_mode = #tpu.pipeline_mode<synchronous>, transform_indices = @transform_12, window_bounds = array<i64: 2, 1, 192>}, {pipeline_mode = #tpu.pipeline_mode<synchronous>, transform_indices = @transform_13, window_bounds = array<i64: 2, 64, 64>}, {pipeline_mode = #tpu.pipeline_mode<synchronous>, transform_indices = @transform_14, window_bounds = array<i64: 2, 1, 64>}, {pipeline_mode = #tpu.pipeline_mode<synchronous>, transform_indices = @transform_15, window_bounds = array<i64: 2, 64, 256>}, {pipeline_mode = #tpu.pipeline_mode<synchronous>, transform_indices = @transform_16, window_bounds = array<i64: 2, 1, 256>}, {pipeline_mode = #tpu.pipeline_mode<synchronous>, transform_indices = @transform_17, window_bounds = array<i64: 2, 256, 64>}, {pipeline_mode = #tpu.pipeline_mode<synchronous>, transform_indices = @transform_18, window_bounds = array<i64: 2, 1, 64>}, {pipeline_mode = #tpu.pipeline_mode<synchronous>, transform_indices = @transform_19, window_bounds = array<i64: 64, 128>}, {pipeline_mode = #tpu.pipeline_mode<synchronous>, transform_indices = @transform_20, window_bounds = array<i64: 1, 128>}, {pipeline_mode = #tpu.pipeline_mode<synchronous>, transform_indices = @transform_21, window_bounds = array<i64: 64, 64>}, {pipeline_mode = #tpu.pipeline_mode<synchronous>, transform_indices = @transform_22, window_bounds = array<i64: 1, 64>}, {transform_indices = @transform_23, window_bounds = array<i64: 1, 1, 64>}]} {
    %c0 = arith.constant 0 : index
    %c0_0 = arith.constant 0 : index
    %c0_1 = arith.constant 0 : index
    %0 = vector.load %arg1[%c0, %c0_0, %c0_1] : memref<1x1x256xf32, #tpu.memory_space<vmem>>, vector<1x1x256xf32>
    %1 = vector.shape_cast %0 : vector<1x1x256xf32> to vector<1x256xf32>
    %2 = vector.shape_cast %1 : vector<1x256xf32> to vector<1x256xf32>
    %3 = vector.broadcast %2 : vector<1x256xf32> to vector<8x256xf32>
    %4 = arith.truncf %3 : vector<8x256xf32> to vector<8x256xbf16>
    %c0_2 = arith.constant 0 : index
    %c0_3 = arith.constant 0 : index
    %5 = vector.load %arg4[%c0_2, %c0_3] : memref<256x64xbf16, #tpu.memory_space<vmem>>, vector<256x64xbf16>
    %cst = arith.constant dense<0.000000e+00> : vector<8x64xf32>
    %6 = tpu.matmul %4, %5, %cst {dimension_numbers = #tpu.dot_dimension_numbers<[1], [0], [0], [1], [0, 0, 1, 1], [], []>} : vector<8x256xbf16>, vector<256x64xbf16>, vector<8x64xf32> -> vector<8x64xf32>
    %c0_4 = arith.constant 0 : index
    %c0_5 = arith.constant 0 : index
    %7 = vector.load %arg8[%c0_4, %c0_5] : memref<4x64xf32, #tpu.memory_space<vmem>>, vector<1x64xf32>
    %8 = vector.broadcast %7 : vector<1x64xf32> to vector<8x64xf32>
    %9 = arith.addf %6, %8 : vector<8x64xf32>
    %10 = arith.negf %9 : vector<8x64xf32>
    %11 = math.exp %10 : vector<8x64xf32>
    %cst_6 = arith.constant 1.000000e+00 : f32
    %12 = vector.broadcast %cst_6 : f32 to vector<8x64xf32>
    %13 = arith.addf %12, %11 : vector<8x64xf32>
    %14 = arith.divf %12, %13 : vector<8x64xf32>
    %15 = arith.mulf %9, %14 : vector<8x64xf32>
    %16 = arith.truncf %15 : vector<8x64xf32> to vector<8x64xbf16>
    %c0_7 = arith.constant 0 : index
    %c0_8 = arith.constant 0 : index
    %17 = vector.load %arg5[%c0_7, %c0_8] : memref<64x64xbf16, #tpu.memory_space<vmem>>, vector<64x64xbf16>
    %cst_9 = arith.constant dense<0.000000e+00> : vector<8x64xf32>
    %18 = tpu.matmul %16, %17, %cst_9 {dimension_numbers = #tpu.dot_dimension_numbers<[1], [0], [0], [1], [0, 0, 1, 1], [], []>} : vector<8x64xbf16>, vector<64x64xbf16>, vector<8x64xf32> -> vector<8x64xf32>
    %c1 = arith.constant 1 : index
    %c0_10 = arith.constant 0 : index
    %19 = vector.load %arg8[%c1, %c0_10] : memref<4x64xf32, #tpu.memory_space<vmem>>, vector<1x64xf32>
    %20 = vector.broadcast %19 : vector<1x64xf32> to vector<8x64xf32>
    %21 = arith.addf %18, %20 : vector<8x64xf32>
    %22 = arith.negf %21 : vector<8x64xf32>
    %23 = math.exp %22 : vector<8x64xf32>
    %cst_11 = arith.constant 1.000000e+00 : f32
    %24 = vector.broadcast %cst_11 : f32 to vector<8x64xf32>
    %25 = arith.addf %24, %23 : vector<8x64xf32>
    %26 = arith.divf %24, %25 : vector<8x64xf32>
    %27 = arith.mulf %21, %26 : vector<8x64xf32>
    %c0_12 = arith.constant 0 : index
    %c0_13 = arith.constant 0 : index
    %28 = vector.load %arg9[%c0_12, %c0_13] : memref<48x64xf32, #tpu.memory_space<vmem>>, vector<16x64xf32>
    %c16 = arith.constant 16 : index
    %c0_14 = arith.constant 0 : index
    %29 = vector.load %arg9[%c16, %c0_14] : memref<48x64xf32, #tpu.memory_space<vmem>>, vector<16x64xf32>
    %c32 = arith.constant 32 : index
    %c0_15 = arith.constant 0 : index
    %30 = vector.load %arg9[%c32, %c0_15] : memref<48x64xf32, #tpu.memory_space<vmem>>, vector<16x64xf32>
    %c0_16 = arith.constant 0 : index
    %c0_17 = arith.constant 0 : index
    %c0_18 = arith.constant 0 : index
    %31 = vector.load %arg2[%c0_16, %c0_17, %c0_18] : memref<1x64x64xf32, #tpu.memory_space<vmem>>, vector<1x32x64xf32>
    %32 = vector.shape_cast %31 : vector<1x32x64xf32> to vector<32x64xf32>
    %33 = arith.truncf %32 : vector<32x64xf32> to vector<32x64xbf16>
    %c0_19 = arith.constant 0 : index
    %c0_20 = arith.constant 0 : index
    %34 = vector.load %arg6[%c0_19, %c0_20] : memref<64x64xbf16, #tpu.memory_space<vmem>>, vector<64x64xbf16>
    %cst_21 = arith.constant dense<0.000000e+00> : vector<32x64xf32>
    %35 = tpu.matmul %33, %34, %cst_21 {dimension_numbers = #tpu.dot_dimension_numbers<[1], [0], [0], [1], [0, 0, 1, 1], [], []>} : vector<32x64xbf16>, vector<64x64xbf16>, vector<32x64xf32> -> vector<32x64xf32>
    %c2 = arith.constant 2 : index
    %c0_22 = arith.constant 0 : index
    %36 = vector.load %arg8[%c2, %c0_22] : memref<4x64xf32, #tpu.memory_space<vmem>>, vector<1x64xf32>
    %37 = vector.broadcast %36 : vector<1x64xf32> to vector<32x64xf32>
    %38 = arith.addf %35, %37 : vector<32x64xf32>
    %c0_23 = arith.constant 0 : index
    %c0_24 = arith.constant 0 : index
    %c0_25 = arith.constant 0 : index
    %39 = vector.load %arg3[%c0_23, %c0_24, %c0_25] : memref<1x32x8xf32, #tpu.memory_space<vmem>>, vector<1x32x8xf32>
    %40 = vector.shape_cast %39 : vector<1x32x8xf32> to vector<32x8xf32>
    %41 = arith.truncf %40 : vector<32x8xf32> to vector<32x8xbf16>
    %c0_26 = arith.constant 0 : index
    %c0_27 = arith.constant 0 : index
    %42 = vector.load %arg7[%c0_26, %c0_27] : memref<8x64xbf16, #tpu.memory_space<vmem>>, vector<8x64xbf16>
    %cst_28 = arith.constant dense<0.000000e+00> : vector<32x64xf32>
    %43 = tpu.matmul %41, %42, %cst_28 {dimension_numbers = #tpu.dot_dimension_numbers<[1], [0], [0], [1], [0, 0, 1, 1], [], []>} : vector<32x8xbf16>, vector<8x64xbf16>, vector<32x64xf32> -> vector<32x64xf32>
    %c3 = arith.constant 3 : index
    %c0_29 = arith.constant 0 : index
    %44 = vector.load %arg8[%c3, %c0_29] : memref<4x64xf32, #tpu.memory_space<vmem>>, vector<1x64xf32>
    %45 = vector.broadcast %44 : vector<1x64xf32> to vector<32x64xf32>
    %46 = arith.addf %43, %45 : vector<32x64xf32>
    %47 = vector.extract_strided_slice %46 {offsets = [0, 0], sizes = [16, 64], strides = [1, 1]} : vector<32x64xf32> to vector<16x64xf32>
    %48 = arith.addf %47, %29 : vector<16x64xf32>
    %49 = vector.extract_strided_slice %46 {offsets = [16, 0], sizes = [16, 64], strides = [1, 1]} : vector<32x64xf32> to vector<16x64xf32>
    %50 = arith.addf %49, %29 : vector<16x64xf32>
    %51 = vector.extract_strided_slice %38 {offsets = [0, 0], sizes = [16, 64], strides = [1, 1]} : vector<32x64xf32> to vector<16x64xf32>
    %52 = arith.addf %51, %28 : vector<16x64xf32>
    %c0_30 = arith.constant 0 : index
    %c0_31 = arith.constant 0 : index
    %53 = vector.load %arg25[%c0_30, %c0_31] : memref<96x64xf32, #tpu.memory_space<vmem>>, vector<16x64xf32>
    tpu.vector_store %arg25[%c0_30, %c0_31], %52 {strides = array<i32>} : memref<96x64xf32, #tpu.memory_space<vmem>>, vector<16x64xf32>,
    %c16_32 = arith.constant 16 : index
    %c0_33 = arith.constant 0 : index
    %54 = vector.load %arg25[%c16_32, %c0_33] : memref<96x64xf32, #tpu.memory_space<vmem>>, vector<16x64xf32>
    tpu.vector_store %arg25[%c16_32, %c0_33], %48 {strides = array<i32>} : memref<96x64xf32, #tpu.memory_space<vmem>>, vector<16x64xf32>,
    %55 = arith.addf %50, %30 : vector<16x64xf32>
    %c32_34 = arith.constant 32 : index
    %c0_35 = arith.constant 0 : index
    %56 = vector.load %arg25[%c32_34, %c0_35] : memref<96x64xf32, #tpu.memory_space<vmem>>, vector<16x64xf32>
    tpu.vector_store %arg25[%c32_34, %c0_35], %55 {strides = array<i32>} : memref<96x64xf32, #tpu.memory_space<vmem>>, vector<16x64xf32>,
    %57 = vector.extract_strided_slice %38 {offsets = [16, 0], sizes = [16, 64], strides = [1, 1]} : vector<32x64xf32> to vector<16x64xf32>
    %58 = arith.addf %57, %28 : vector<16x64xf32>
    %c48 = arith.constant 48 : index
    %c0_36 = arith.constant 0 : index
    %59 = vector.load %arg25[%c48, %c0_36] : memref<96x64xf32, #tpu.memory_space<vmem>>, vector<16x64xf32>
    tpu.vector_store %arg25[%c48, %c0_36], %58 {strides = array<i32>} : memref<96x64xf32, #tpu.memory_space<vmem>>, vector<16x64xf32>,
    %c64 = arith.constant 64 : index
    %c0_37 = arith.constant 0 : index
    %60 = vector.load %arg25[%c64, %c0_37] : memref<96x64xf32, #tpu.memory_space<vmem>>, vector<16x64xf32>
    tpu.vector_store %arg25[%c64, %c0_37], %50 {strides = array<i32>} : memref<96x64xf32, #tpu.memory_space<vmem>>, vector<16x64xf32>,
    %61 = arith.addf %48, %30 : vector<16x64xf32>
    %c80 = arith.constant 80 : index
    %c0_38 = arith.constant 0 : index
    %62 = vector.load %arg25[%c80, %c0_38] : memref<96x64xf32, #tpu.memory_space<vmem>>, vector<16x64xf32>
    tpu.vector_store %arg25[%c80, %c0_38], %61 {strides = array<i32>} : memref<96x64xf32, #tpu.memory_space<vmem>>, vector<16x64xf32>,
    %c0_39 = arith.constant 0 : index
    %c0_40 = arith.constant 0 : index
    %63 = vector.load %arg25[%c0_39, %c0_40] : memref<96x64xf32, #tpu.memory_space<vmem>>, vector<96x64xf32>
    %64 = tpu.iota {dimensions = array<i32: 0>} : vector<96x96xi32>
    %65 = tpu.iota {dimensions = array<i32: 1>} : vector<96x96xi32>
    %c48_i32 = arith.constant 48 : i32
    %66 = vector.broadcast %c48_i32 : i32 to vector<96x96xi32>
    %67 = arith.cmpi slt, %64, %66 : vector<96x96xi32>
    %c48_i32_41 = arith.constant 48 : i32
    %68 = vector.broadcast %c48_i32_41 : i32 to vector<96x96xi32>
    %69 = arith.cmpi slt, %65, %68 : vector<96x96xi32>
    %70 = arith.xori %67, %69 : vector<96x96xi1>
    %cst_42 = arith.constant dense<true> : vector<96x96xi1>
    %71 = arith.xori %70, %cst_42 : vector<96x96xi1>
    %cst_43 = arith.constant 0.000000e+00 : f32
    %cst_44 = arith.constant -1.000000e+30 : f32
    %72 = vector.broadcast %cst_43 : f32 to vector<96x96xf32>
    %73 = vector.broadcast %cst_44 : f32 to vector<96x96xf32>
    %74 = arith.select %71, %72, %73 : vector<96x96xi1>, vector<96x96xf32>
    %75 = arith.truncf %27 : vector<8x64xf32> to vector<8x64xbf16>
    %c0_45 = arith.constant 0 : index
    %c0_46 = arith.constant 0 : index
    %c0_47 = arith.constant 0 : index
    %76 = vector.load %arg10[%c0_45, %c0_46, %c0_47] : memref<2x64x384xbf16, #tpu.memory_space<vmem>>, vector<1x64x384xbf16>
    %77 = vector.shape_cast %76 : vector<1x64x384xbf16> to vector<64x384xbf16>
    %cst_48 = arith.constant dense<0.000000e+00> : vector<8x384xf32>
    %78 = tpu.matmul %75, %77, %cst_48 {dimension_numbers = #tpu.dot_dimension_numbers<[1], [0], [0], [1], [0, 0, 1, 1], [], []>} : vector<8x64xbf16>, vector<64x384xbf16>, vector<8x384xf32> -> vector<8x384xf32>
    %c0_49 = arith.constant 0 : index
    %c0_50 = arith.constant 0 : index
    %c0_51 = arith.constant 0 : index
    %79 = vector.load %arg11[%c0_49, %c0_50, %c0_51] : memref<2x1x384xf32, #tpu.memory_space<vmem>>, vector<1x1x384xf32>
    %80 = vector.shape_cast %79 : vector<1x1x384xf32> to vector<1x384xf32>
    %81 = vector.broadcast %80 : vector<1x384xf32> to vector<8x384xf32>
    %82 = arith.addf %78, %81 : vector<8x384xf32>
    %83 = vector.extract_strided_slice %82 {offsets = [0, 0], sizes = [1, 64], strides = [1, 1]} : vector<8x384xf32> to vector<1x64xf32>
    %84 = vector.extract_strided_slice %82 {offsets = [0, 64], sizes = [1, 64], strides = [1, 1]} : vector<8x384xf32> to vector<1x64xf32>
    %85 = vector.extract_strided_slice %82 {offsets = [0, 128], sizes = [1, 64], strides = [1, 1]} : vector<8x384xf32> to vector<1x64xf32>
    %86 = vector.extract_strided_slice %82 {offsets = [0, 192], sizes = [1, 64], strides = [1, 1]} : vector<8x384xf32> to vector<1x64xf32>
    %87 = vector.extract_strided_slice %82 {offsets = [0, 256], sizes = [1, 64], strides = [1, 1]} : vector<8x384xf32> to vector<1x64xf32>
    %88 = vector.extract_strided_slice %82 {offsets = [0, 320], sizes = [1, 64], strides = [1, 1]} : vector<8x384xf32> to vector<1x64xf32>
    %cst_52 = arith.constant dense<0.000000e+00> : vector<96xf32>
    %89 = vector.multi_reduction <add>, %63, %cst_52 [1] : vector<96x64xf32> to vector<96xf32>
    %90 = vector.shape_cast %89 : vector<96xf32> to vector<96x1xf32>
    %91 = arith.mulf %63, %63 : vector<96x64xf32>
    %cst_53 = arith.constant dense<0.000000e+00> : vector<96xf32>
    %92 = vector.multi_reduction <add>, %91, %cst_53 [1] : vector<96x64xf32> to vector<96xf32>
    %93 = vector.shape_cast %92 : vector<96xf32> to vector<96x1xf32>
    %cst_54 = arith.constant 1.562500e-02 : f32
    %94 = vector.broadcast %cst_54 : f32 to vector<96x1xf32>
    %95 = arith.mulf %90, %94 : vector<96x1xf32>
    %cst_55 = arith.constant 1.562500e-02 : f32
    %96 = vector.broadcast %cst_55 : f32 to vector<96x1xf32>
    %97 = arith.mulf %93, %96 : vector<96x1xf32>
    %98 = arith.mulf %95, %95 : vector<96x1xf32>
    %99 = arith.subf %97, %98 : vector<96x1xf32>
    %100 = vector.broadcast %95 : vector<96x1xf32> to vector<96x64xf32>
    %101 = arith.subf %63, %100 : vector<96x64xf32>
    %cst_56 = arith.constant 9.99999997E-7 : f32
    %102 = vector.broadcast %cst_56 : f32 to vector<96x1xf32>
    %103 = arith.addf %99, %102 : vector<96x1xf32>
    %104 = math.rsqrt %103 : vector<96x1xf32>
    %105 = vector.broadcast %104 : vector<96x1xf32> to vector<96x64xf32>
    %106 = arith.mulf %101, %105 : vector<96x64xf32>
    %cst_57 = arith.constant 1.000000e+00 : f32
    %107 = vector.broadcast %cst_57 : f32 to vector<1x64xf32>
    %108 = arith.addf %107, %84 : vector<1x64xf32>
    %109 = vector.broadcast %108 : vector<1x64xf32> to vector<96x64xf32>
    %110 = arith.mulf %106, %109 : vector<96x64xf32>
    %111 = vector.broadcast %83 : vector<1x64xf32> to vector<96x64xf32>
    %112 = arith.addf %110, %111 : vector<96x64xf32>
    %113 = arith.truncf %112 : vector<96x64xf32> to vector<96x64xbf16>
    %c0_58 = arith.constant 0 : index
    %c0_59 = arith.constant 0 : index
    %c0_60 = arith.constant 0 : index
    %114 = vector.load %arg12[%c0_58, %c0_59, %c0_60] : memref<2x64x192xbf16, #tpu.memory_space<vmem>>, vector<1x64x192xbf16>
    %115 = vector.shape_cast %114 : vector<1x64x192xbf16> to vector<64x192xbf16>
    %cst_61 = arith.constant dense<0.000000e+00> : vector<96x192xf32>
    %116 = tpu.matmul %113, %115, %cst_61 {dimension_numbers = #tpu.dot_dimension_numbers<[1], [0], [0], [1], [0, 0, 1, 1], [], []>} : vector<96x64xbf16>, vector<64x192xbf16>, vector<96x192xf32> -> vector<96x192xf32>
    %c0_62 = arith.constant 0 : index
    %c0_63 = arith.constant 0 : index
    %c0_64 = arith.constant 0 : index
    %117 = vector.load %arg13[%c0_62, %c0_63, %c0_64] : memref<2x1x192xf32, #tpu.memory_space<vmem>>, vector<1x1x192xf32>
    %118 = vector.shape_cast %117 : vector<1x1x192xf32> to vector<1x192xf32>
    %119 = vector.broadcast %118 : vector<1x192xf32> to vector<96x192xf32>
    %120 = arith.addf %116, %119 : vector<96x192xf32>
    %121 = vector.extract_strided_slice %120 {offsets = [0, 0], sizes = [96, 32], strides = [1, 1]} : vector<96x192xf32> to vector<96x32xf32>
    %122 = vector.extract_strided_slice %120 {offsets = [0, 64], sizes = [96, 32], strides = [1, 1]} : vector<96x192xf32> to vector<96x32xf32>
    %123 = vector.extract_strided_slice %120 {offsets = [0, 128], sizes = [96, 32], strides = [1, 1]} : vector<96x192xf32> to vector<96x32xf32>
    %124 = arith.truncf %121 : vector<96x32xf32> to vector<96x32xbf16>
    %125 = arith.truncf %122 : vector<96x32xf32> to vector<96x32xbf16>
    %cst_65 = arith.constant dense<0.000000e+00> : vector<96x96xf32>
    %126 = tpu.matmul %124, %125, %cst_65 {dimension_numbers = #tpu.dot_dimension_numbers<[1], [1], [0], [0], [0, 0, 1, 0], [], []>} : vector<96x32xbf16>, vector<96x32xbf16>, vector<96x96xf32> -> vector<96x96xf32>
    %cst_66 = arith.constant 0.176776692 : f32
    %127 = vector.broadcast %cst_66 : f32 to vector<96x96xf32>
    %128 = arith.mulf %126, %127 : vector<96x96xf32>
    %129 = arith.addf %128, %74 : vector<96x96xf32>
    %cst_67 = arith.constant dense<0xFF800000> : vector<96xf32>
    %130 = vector.multi_reduction <maximumf>, %129, %cst_67 [1] : vector<96x96xf32> to vector<96xf32>
    %131 = vector.shape_cast %130 : vector<96xf32> to vector<96x1xf32>
    %132 = vector.broadcast %131 : vector<96x1xf32> to vector<96x96xf32>
    %133 = arith.subf %129, %132 : vector<96x96xf32>
    %134 = math.exp %133 : vector<96x96xf32>
    %cst_68 = arith.constant dense<0.000000e+00> : vector<96xf32>
    %135 = vector.multi_reduction <add>, %134, %cst_68 [1] : vector<96x96xf32> to vector<96xf32>
    %136 = vector.shape_cast %135 : vector<96xf32> to vector<96x1xf32>
    %137 = tpu.reciprocal %136 : vector<96x1xf32> -> vector<96x1xf32>
    %138 = vector.broadcast %137 : vector<96x1xf32> to vector<96x96xf32>
    %139 = arith.mulf %134, %138 : vector<96x96xf32>
    %140 = arith.truncf %139 : vector<96x96xf32> to vector<96x96xbf16>
    %141 = arith.truncf %123 : vector<96x32xf32> to vector<96x32xbf16>
    %cst_69 = arith.constant dense<0.000000e+00> : vector<96x32xf32>
    %142 = tpu.matmul %140, %141, %cst_69 {dimension_numbers = #tpu.dot_dimension_numbers<[1], [0], [0], [1], [0, 0, 1, 1], [], []>} : vector<96x96xbf16>, vector<96x32xbf16>, vector<96x32xf32> -> vector<96x32xf32>
    %143 = arith.truncf %142 : vector<96x32xf32> to vector<96x32xbf16>
    %c0_70 = arith.constant 0 : index
    %c0_71 = arith.constant 0 : index
    %c0_72 = arith.constant 0 : index
    %144 = vector.load %arg14[%c0_70, %c0_71, %c0_72] : memref<2x64x64xbf16, #tpu.memory_space<vmem>>, vector<1x32x64xbf16>
    %145 = vector.shape_cast %144 : vector<1x32x64xbf16> to vector<32x64xbf16>
    %cst_73 = arith.constant dense<0.000000e+00> : vector<96x64xf32>
    %146 = tpu.matmul %143, %145, %cst_73 {dimension_numbers = #tpu.dot_dimension_numbers<[1], [0], [0], [1], [0, 0, 1, 1], [], []>} : vector<96x32xbf16>, vector<32x64xbf16>, vector<96x64xf32> -> vector<96x64xf32>
    %147 = vector.extract_strided_slice %120 {offsets = [0, 32], sizes = [96, 32], strides = [1, 1]} : vector<96x192xf32> to vector<96x32xf32>
    %148 = vector.extract_strided_slice %120 {offsets = [0, 96], sizes = [96, 32], strides = [1, 1]} : vector<96x192xf32> to vector<96x32xf32>
    %149 = vector.extract_strided_slice %120 {offsets = [0, 160], sizes = [96, 32], strides = [1, 1]} : vector<96x192xf32> to vector<96x32xf32>
    %150 = arith.truncf %147 : vector<96x32xf32> to vector<96x32xbf16>
    %151 = arith.truncf %148 : vector<96x32xf32> to vector<96x32xbf16>
    %cst_74 = arith.constant dense<0.000000e+00> : vector<96x96xf32>
    %152 = tpu.matmul %150, %151, %cst_74 {dimension_numbers = #tpu.dot_dimension_numbers<[1], [1], [0], [0], [0, 0, 1, 0], [], []>} : vector<96x32xbf16>, vector<96x32xbf16>, vector<96x96xf32> -> vector<96x96xf32>
    %cst_75 = arith.constant 0.176776692 : f32
    %153 = vector.broadcast %cst_75 : f32 to vector<96x96xf32>
    %154 = arith.mulf %152, %153 : vector<96x96xf32>
    %155 = arith.addf %154, %74 : vector<96x96xf32>
    %cst_76 = arith.constant dense<0xFF800000> : vector<96xf32>
    %156 = vector.multi_reduction <maximumf>, %155, %cst_76 [1] : vector<96x96xf32> to vector<96xf32>
    %157 = vector.shape_cast %156 : vector<96xf32> to vector<96x1xf32>
    %158 = vector.broadcast %157 : vector<96x1xf32> to vector<96x96xf32>
    %159 = arith.subf %155, %158 : vector<96x96xf32>
    %160 = math.exp %159 : vector<96x96xf32>
    %cst_77 = arith.constant dense<0.000000e+00> : vector<96xf32>
    %161 = vector.multi_reduction <add>, %160, %cst_77 [1] : vector<96x96xf32> to vector<96xf32>
    %162 = vector.shape_cast %161 : vector<96xf32> to vector<96x1xf32>
    %163 = tpu.reciprocal %162 : vector<96x1xf32> -> vector<96x1xf32>
    %164 = vector.broadcast %163 : vector<96x1xf32> to vector<96x96xf32>
    %165 = arith.mulf %160, %164 : vector<96x96xf32>
    %166 = arith.truncf %165 : vector<96x96xf32> to vector<96x96xbf16>
    %167 = arith.truncf %149 : vector<96x32xf32> to vector<96x32xbf16>
    %cst_78 = arith.constant dense<0.000000e+00> : vector<96x32xf32>
    %168 = tpu.matmul %166, %167, %cst_78 {dimension_numbers = #tpu.dot_dimension_numbers<[1], [0], [0], [1], [0, 0, 1, 1], [], []>} : vector<96x96xbf16>, vector<96x32xbf16>, vector<96x32xf32> -> vector<96x32xf32>
    %169 = arith.truncf %168 : vector<96x32xf32> to vector<96x32xbf16>
    %c0_79 = arith.constant 0 : index
    %c32_80 = arith.constant 32 : index
    %c0_81 = arith.constant 0 : index
    %170 = vector.load %arg14[%c0_79, %c32_80, %c0_81] : memref<2x64x64xbf16, #tpu.memory_space<vmem>>, vector<1x32x64xbf16>
    %171 = vector.shape_cast %170 : vector<1x32x64xbf16> to vector<32x64xbf16>
    %cst_82 = arith.constant dense<0.000000e+00> : vector<96x64xf32>
    %172 = tpu.matmul %169, %171, %cst_82 {dimension_numbers = #tpu.dot_dimension_numbers<[1], [0], [0], [1], [0, 0, 1, 1], [], []>} : vector<96x32xbf16>, vector<32x64xbf16>, vector<96x64xf32> -> vector<96x64xf32>
    %173 = arith.addf %146, %172 : vector<96x64xf32>
    %c0_83 = arith.constant 0 : index
    %c0_84 = arith.constant 0 : index
    %c0_85 = arith.constant 0 : index
    %174 = vector.load %arg15[%c0_83, %c0_84, %c0_85] : memref<2x1x64xf32, #tpu.memory_space<vmem>>, vector<1x1x64xf32>
    %175 = vector.shape_cast %174 : vector<1x1x64xf32> to vector<1x64xf32>
    %176 = vector.broadcast %175 : vector<1x64xf32> to vector<96x64xf32>
    %177 = arith.addf %173, %176 : vector<96x64xf32>
    %178 = vector.broadcast %85 : vector<1x64xf32> to vector<96x64xf32>
    %179 = arith.mulf %178, %177 : vector<96x64xf32>
    %180 = arith.addf %63, %179 : vector<96x64xf32>
    %cst_86 = arith.constant dense<0.000000e+00> : vector<96xf32>
    %181 = vector.multi_reduction <add>, %180, %cst_86 [1] : vector<96x64xf32> to vector<96xf32>
    %182 = vector.shape_cast %181 : vector<96xf32> to vector<96x1xf32>
    %183 = arith.mulf %180, %180 : vector<96x64xf32>
    %cst_87 = arith.constant dense<0.000000e+00> : vector<96xf32>
    %184 = vector.multi_reduction <add>, %183, %cst_87 [1] : vector<96x64xf32> to vector<96xf32>
    %185 = vector.shape_cast %184 : vector<96xf32> to vector<96x1xf32>
    %cst_88 = arith.constant 1.562500e-02 : f32
    %186 = vector.broadcast %cst_88 : f32 to vector<96x1xf32>
    %187 = arith.mulf %182, %186 : vector<96x1xf32>
    %cst_89 = arith.constant 1.562500e-02 : f32
    %188 = vector.broadcast %cst_89 : f32 to vector<96x1xf32>
    %189 = arith.mulf %185, %188 : vector<96x1xf32>
    %190 = arith.mulf %187, %187 : vector<96x1xf32>
    %191 = arith.subf %189, %190 : vector<96x1xf32>
    %192 = vector.broadcast %187 : vector<96x1xf32> to vector<96x64xf32>
    %193 = arith.subf %180, %192 : vector<96x64xf32>
    %cst_90 = arith.constant 9.99999997E-7 : f32
    %194 = vector.broadcast %cst_90 : f32 to vector<96x1xf32>
    %195 = arith.addf %191, %194 : vector<96x1xf32>
    %196 = math.rsqrt %195 : vector<96x1xf32>
    %197 = vector.broadcast %196 : vector<96x1xf32> to vector<96x64xf32>
    %198 = arith.mulf %193, %197 : vector<96x64xf32>
    %cst_91 = arith.constant 1.000000e+00 : f32
    %199 = vector.broadcast %cst_91 : f32 to vector<1x64xf32>
    %200 = arith.addf %199, %87 : vector<1x64xf32>
    %201 = vector.broadcast %200 : vector<1x64xf32> to vector<96x64xf32>
    %202 = arith.mulf %198, %201 : vector<96x64xf32>
    %203 = vector.broadcast %86 : vector<1x64xf32> to vector<96x64xf32>
    %204 = arith.addf %202, %203 : vector<96x64xf32>
    %205 = arith.truncf %204 : vector<96x64xf32> to vector<96x64xbf16>
    %c0_92 = arith.constant 0 : index
    %c0_93 = arith.constant 0 : index
    %c0_94 = arith.constant 0 : index
    %206 = vector.load %arg16[%c0_92, %c0_93, %c0_94] : memref<2x64x256xbf16, #tpu.memory_space<vmem>>, vector<1x64x256xbf16>
    %207 = vector.shape_cast %206 : vector<1x64x256xbf16> to vector<64x256xbf16>
    %cst_95 = arith.constant dense<0.000000e+00> : vector<96x256xf32>
    %208 = tpu.matmul %205, %207, %cst_95 {dimension_numbers = #tpu.dot_dimension_numbers<[1], [0], [0], [1], [0, 0, 1, 1], [], []>} : vector<96x64xbf16>, vector<64x256xbf16>, vector<96x256xf32> -> vector<96x256xf32>
    %c0_96 = arith.constant 0 : index
    %c0_97 = arith.constant 0 : index
    %c0_98 = arith.constant 0 : index
    %209 = vector.load %arg17[%c0_96, %c0_97, %c0_98] : memref<2x1x256xf32, #tpu.memory_space<vmem>>, vector<1x1x256xf32>
    %210 = vector.shape_cast %209 : vector<1x1x256xf32> to vector<1x256xf32>
    %211 = vector.broadcast %210 : vector<1x256xf32> to vector<96x256xf32>
    %212 = arith.addf %208, %211 : vector<96x256xf32>
    %cst_99 = arith.constant 5.000000e-01 : f32
    %213 = vector.broadcast %cst_99 : f32 to vector<96x256xf32>
    %214 = arith.mulf %213, %212 : vector<96x256xf32>
    %cst_100 = arith.constant 4.471500e-02 : f32
    %215 = vector.broadcast %cst_100 : f32 to vector<96x256xf32>
    %216 = arith.mulf %215, %212 : vector<96x256xf32>
    %217 = arith.mulf %216, %212 : vector<96x256xf32>
    %218 = arith.mulf %217, %212 : vector<96x256xf32>
    %219 = arith.addf %212, %218 : vector<96x256xf32>
    %cst_101 = arith.constant 0.797884583 : f32
    %220 = vector.broadcast %cst_101 : f32 to vector<96x256xf32>
    %221 = arith.mulf %220, %219 : vector<96x256xf32>
    %222 = math.tanh %221 : vector<96x256xf32>
    %cst_102 = arith.constant 1.000000e+00 : f32
    %223 = vector.broadcast %cst_102 : f32 to vector<96x256xf32>
    %224 = arith.addf %223, %222 : vector<96x256xf32>
    %225 = arith.mulf %214, %224 : vector<96x256xf32>
    %226 = arith.truncf %225 : vector<96x256xf32> to vector<96x256xbf16>
    %c0_103 = arith.constant 0 : index
    %c0_104 = arith.constant 0 : index
    %c0_105 = arith.constant 0 : index
    %227 = vector.load %arg18[%c0_103, %c0_104, %c0_105] : memref<2x256x64xbf16, #tpu.memory_space<vmem>>, vector<1x256x64xbf16>
    %228 = vector.shape_cast %227 : vector<1x256x64xbf16> to vector<256x64xbf16>
    %cst_106 = arith.constant dense<0.000000e+00> : vector<96x64xf32>
    %229 = tpu.matmul %226, %228, %cst_106 {dimension_numbers = #tpu.dot_dimension_numbers<[1], [0], [0], [1], [0, 0, 1, 1], [], []>} : vector<96x256xbf16>, vector<256x64xbf16>, vector<96x64xf32> -> vector<96x64xf32>
    %c0_107 = arith.constant 0 : index
    %c0_108 = arith.constant 0 : index
    %c0_109 = arith.constant 0 : index
    %230 = vector.load %arg19[%c0_107, %c0_108, %c0_109] : memref<2x1x64xf32, #tpu.memory_space<vmem>>, vector<1x1x64xf32>
    %231 = vector.shape_cast %230 : vector<1x1x64xf32> to vector<1x64xf32>
    %232 = vector.broadcast %231 : vector<1x64xf32> to vector<96x64xf32>
    %233 = arith.addf %229, %232 : vector<96x64xf32>
    %234 = vector.broadcast %88 : vector<1x64xf32> to vector<96x64xf32>
    %235 = arith.mulf %234, %233 : vector<96x64xf32>
    %236 = arith.addf %180, %235 : vector<96x64xf32>
    %237 = arith.truncf %27 : vector<8x64xf32> to vector<8x64xbf16>
    %c1_110 = arith.constant 1 : index
    %c0_111 = arith.constant 0 : index
    %c0_112 = arith.constant 0 : index
    %238 = vector.load %arg10[%c1_110, %c0_111, %c0_112] : memref<2x64x384xbf16, #tpu.memory_space<vmem>>, vector<1x64x384xbf16>
    %239 = vector.shape_cast %238 : vector<1x64x384xbf16> to vector<64x384xbf16>
    %cst_113 = arith.constant dense<0.000000e+00> : vector<8x384xf32>
    %240 = tpu.matmul %237, %239, %cst_113 {dimension_numbers = #tpu.dot_dimension_numbers<[1], [0], [0], [1], [0, 0, 1, 1], [], []>} : vector<8x64xbf16>, vector<64x384xbf16>, vector<8x384xf32> -> vector<8x384xf32>
    %c1_114 = arith.constant 1 : index
    %c0_115 = arith.constant 0 : index
    %c0_116 = arith.constant 0 : index
    %241 = vector.load %arg11[%c1_114, %c0_115, %c0_116] : memref<2x1x384xf32, #tpu.memory_space<vmem>>, vector<1x1x384xf32>
    %242 = vector.shape_cast %241 : vector<1x1x384xf32> to vector<1x384xf32>
    %243 = vector.broadcast %242 : vector<1x384xf32> to vector<8x384xf32>
    %244 = arith.addf %240, %243 : vector<8x384xf32>
    %245 = vector.extract_strided_slice %244 {offsets = [0, 0], sizes = [1, 64], strides = [1, 1]} : vector<8x384xf32> to vector<1x64xf32>
    %246 = vector.extract_strided_slice %244 {offsets = [0, 64], sizes = [1, 64], strides = [1, 1]} : vector<8x384xf32> to vector<1x64xf32>
    %247 = vector.extract_strided_slice %244 {offsets = [0, 128], sizes = [1, 64], strides = [1, 1]} : vector<8x384xf32> to vector<1x64xf32>
    %248 = vector.extract_strided_slice %244 {offsets = [0, 192], sizes = [1, 64], strides = [1, 1]} : vector<8x384xf32> to vector<1x64xf32>
    %249 = vector.extract_strided_slice %244 {offsets = [0, 256], sizes = [1, 64], strides = [1, 1]} : vector<8x384xf32> to vector<1x64xf32>
    %250 = vector.extract_strided_slice %244 {offsets = [0, 320], sizes = [1, 64], strides = [1, 1]} : vector<8x384xf32> to vector<1x64xf32>
    %cst_117 = arith.constant dense<0.000000e+00> : vector<96xf32>
    %251 = vector.multi_reduction <add>, %236, %cst_117 [1] : vector<96x64xf32> to vector<96xf32>
    %252 = vector.shape_cast %251 : vector<96xf32> to vector<96x1xf32>
    %253 = arith.mulf %236, %236 : vector<96x64xf32>
    %cst_118 = arith.constant dense<0.000000e+00> : vector<96xf32>
    %254 = vector.multi_reduction <add>, %253, %cst_118 [1] : vector<96x64xf32> to vector<96xf32>
    %255 = vector.shape_cast %254 : vector<96xf32> to vector<96x1xf32>
    %cst_119 = arith.constant 1.562500e-02 : f32
    %256 = vector.broadcast %cst_119 : f32 to vector<96x1xf32>
    %257 = arith.mulf %252, %256 : vector<96x1xf32>
    %cst_120 = arith.constant 1.562500e-02 : f32
    %258 = vector.broadcast %cst_120 : f32 to vector<96x1xf32>
    %259 = arith.mulf %255, %258 : vector<96x1xf32>
    %260 = arith.mulf %257, %257 : vector<96x1xf32>
    %261 = arith.subf %259, %260 : vector<96x1xf32>
    %262 = vector.broadcast %257 : vector<96x1xf32> to vector<96x64xf32>
    %263 = arith.subf %236, %262 : vector<96x64xf32>
    %cst_121 = arith.constant 9.99999997E-7 : f32
    %264 = vector.broadcast %cst_121 : f32 to vector<96x1xf32>
    %265 = arith.addf %261, %264 : vector<96x1xf32>
    %266 = math.rsqrt %265 : vector<96x1xf32>
    %267 = vector.broadcast %266 : vector<96x1xf32> to vector<96x64xf32>
    %268 = arith.mulf %263, %267 : vector<96x64xf32>
    %cst_122 = arith.constant 1.000000e+00 : f32
    %269 = vector.broadcast %cst_122 : f32 to vector<1x64xf32>
    %270 = arith.addf %269, %246 : vector<1x64xf32>
    %271 = vector.broadcast %270 : vector<1x64xf32> to vector<96x64xf32>
    %272 = arith.mulf %268, %271 : vector<96x64xf32>
    %273 = vector.broadcast %245 : vector<1x64xf32> to vector<96x64xf32>
    %274 = arith.addf %272, %273 : vector<96x64xf32>
    %275 = arith.truncf %274 : vector<96x64xf32> to vector<96x64xbf16>
    %c1_123 = arith.constant 1 : index
    %c0_124 = arith.constant 0 : index
    %c0_125 = arith.constant 0 : index
    %276 = vector.load %arg12[%c1_123, %c0_124, %c0_125] : memref<2x64x192xbf16, #tpu.memory_space<vmem>>, vector<1x64x192xbf16>
    %277 = vector.shape_cast %276 : vector<1x64x192xbf16> to vector<64x192xbf16>
    %cst_126 = arith.constant dense<0.000000e+00> : vector<96x192xf32>
    %278 = tpu.matmul %275, %277, %cst_126 {dimension_numbers = #tpu.dot_dimension_numbers<[1], [0], [0], [1], [0, 0, 1, 1], [], []>} : vector<96x64xbf16>, vector<64x192xbf16>, vector<96x192xf32> -> vector<96x192xf32>
    %c1_127 = arith.constant 1 : index
    %c0_128 = arith.constant 0 : index
    %c0_129 = arith.constant 0 : index
    %279 = vector.load %arg13[%c1_127, %c0_128, %c0_129] : memref<2x1x192xf32, #tpu.memory_space<vmem>>, vector<1x1x192xf32>
    %280 = vector.shape_cast %279 : vector<1x1x192xf32> to vector<1x192xf32>
    %281 = vector.broadcast %280 : vector<1x192xf32> to vector<96x192xf32>
    %282 = arith.addf %278, %281 : vector<96x192xf32>
    %283 = vector.extract_strided_slice %282 {offsets = [0, 0], sizes = [96, 32], strides = [1, 1]} : vector<96x192xf32> to vector<96x32xf32>
    %284 = vector.extract_strided_slice %282 {offsets = [0, 64], sizes = [96, 32], strides = [1, 1]} : vector<96x192xf32> to vector<96x32xf32>
    %285 = vector.extract_strided_slice %282 {offsets = [0, 128], sizes = [96, 32], strides = [1, 1]} : vector<96x192xf32> to vector<96x32xf32>
    %286 = arith.truncf %283 : vector<96x32xf32> to vector<96x32xbf16>
    %287 = arith.truncf %284 : vector<96x32xf32> to vector<96x32xbf16>
    %cst_130 = arith.constant dense<0.000000e+00> : vector<96x96xf32>
    %288 = tpu.matmul %286, %287, %cst_130 {dimension_numbers = #tpu.dot_dimension_numbers<[1], [1], [0], [0], [0, 0, 1, 0], [], []>} : vector<96x32xbf16>, vector<96x32xbf16>, vector<96x96xf32> -> vector<96x96xf32>
    %cst_131 = arith.constant 0.176776692 : f32
    %289 = vector.broadcast %cst_131 : f32 to vector<96x96xf32>
    %290 = arith.mulf %288, %289 : vector<96x96xf32>
    %291 = arith.addf %290, %74 : vector<96x96xf32>
    %cst_132 = arith.constant dense<0xFF800000> : vector<96xf32>
    %292 = vector.multi_reduction <maximumf>, %291, %cst_132 [1] : vector<96x96xf32> to vector<96xf32>
    %293 = vector.shape_cast %292 : vector<96xf32> to vector<96x1xf32>
    %294 = vector.broadcast %293 : vector<96x1xf32> to vector<96x96xf32>
    %295 = arith.subf %291, %294 : vector<96x96xf32>
    %296 = math.exp %295 : vector<96x96xf32>
    %cst_133 = arith.constant dense<0.000000e+00> : vector<96xf32>
    %297 = vector.multi_reduction <add>, %296, %cst_133 [1] : vector<96x96xf32> to vector<96xf32>
    %298 = vector.shape_cast %297 : vector<96xf32> to vector<96x1xf32>
    %299 = tpu.reciprocal %298 : vector<96x1xf32> -> vector<96x1xf32>
    %300 = vector.broadcast %299 : vector<96x1xf32> to vector<96x96xf32>
    %301 = arith.mulf %296, %300 : vector<96x96xf32>
    %302 = arith.truncf %301 : vector<96x96xf32> to vector<96x96xbf16>
    %303 = arith.truncf %285 : vector<96x32xf32> to vector<96x32xbf16>
    %cst_134 = arith.constant dense<0.000000e+00> : vector<96x32xf32>
    %304 = tpu.matmul %302, %303, %cst_134 {dimension_numbers = #tpu.dot_dimension_numbers<[1], [0], [0], [1], [0, 0, 1, 1], [], []>} : vector<96x96xbf16>, vector<96x32xbf16>, vector<96x32xf32> -> vector<96x32xf32>
    %305 = arith.truncf %304 : vector<96x32xf32> to vector<96x32xbf16>
    %c1_135 = arith.constant 1 : index
    %c0_136 = arith.constant 0 : index
    %c0_137 = arith.constant 0 : index
    %306 = vector.load %arg14[%c1_135, %c0_136, %c0_137] : memref<2x64x64xbf16, #tpu.memory_space<vmem>>, vector<1x32x64xbf16>
    %307 = vector.shape_cast %306 : vector<1x32x64xbf16> to vector<32x64xbf16>
    %cst_138 = arith.constant dense<0.000000e+00> : vector<96x64xf32>
    %308 = tpu.matmul %305, %307, %cst_138 {dimension_numbers = #tpu.dot_dimension_numbers<[1], [0], [0], [1], [0, 0, 1, 1], [], []>} : vector<96x32xbf16>, vector<32x64xbf16>, vector<96x64xf32> -> vector<96x64xf32>
    %309 = vector.extract_strided_slice %282 {offsets = [0, 32], sizes = [96, 32], strides = [1, 1]} : vector<96x192xf32> to vector<96x32xf32>
    %310 = vector.extract_strided_slice %282 {offsets = [0, 96], sizes = [96, 32], strides = [1, 1]} : vector<96x192xf32> to vector<96x32xf32>
    %311 = vector.extract_strided_slice %282 {offsets = [0, 160], sizes = [96, 32], strides = [1, 1]} : vector<96x192xf32> to vector<96x32xf32>
    %312 = arith.truncf %309 : vector<96x32xf32> to vector<96x32xbf16>
    %313 = arith.truncf %310 : vector<96x32xf32> to vector<96x32xbf16>
    %cst_139 = arith.constant dense<0.000000e+00> : vector<96x96xf32>
    %314 = tpu.matmul %312, %313, %cst_139 {dimension_numbers = #tpu.dot_dimension_numbers<[1], [1], [0], [0], [0, 0, 1, 0], [], []>} : vector<96x32xbf16>, vector<96x32xbf16>, vector<96x96xf32> -> vector<96x96xf32>
    %cst_140 = arith.constant 0.176776692 : f32
    %315 = vector.broadcast %cst_140 : f32 to vector<96x96xf32>
    %316 = arith.mulf %314, %315 : vector<96x96xf32>
    %317 = arith.addf %316, %74 : vector<96x96xf32>
    %cst_141 = arith.constant dense<0xFF800000> : vector<96xf32>
    %318 = vector.multi_reduction <maximumf>, %317, %cst_141 [1] : vector<96x96xf32> to vector<96xf32>
    %319 = vector.shape_cast %318 : vector<96xf32> to vector<96x1xf32>
    %320 = vector.broadcast %319 : vector<96x1xf32> to vector<96x96xf32>
    %321 = arith.subf %317, %320 : vector<96x96xf32>
    %322 = math.exp %321 : vector<96x96xf32>
    %cst_142 = arith.constant dense<0.000000e+00> : vector<96xf32>
    %323 = vector.multi_reduction <add>, %322, %cst_142 [1] : vector<96x96xf32> to vector<96xf32>
    %324 = vector.shape_cast %323 : vector<96xf32> to vector<96x1xf32>
    %325 = tpu.reciprocal %324 : vector<96x1xf32> -> vector<96x1xf32>
    %326 = vector.broadcast %325 : vector<96x1xf32> to vector<96x96xf32>
    %327 = arith.mulf %322, %326 : vector<96x96xf32>
    %328 = arith.truncf %327 : vector<96x96xf32> to vector<96x96xbf16>
    %329 = arith.truncf %311 : vector<96x32xf32> to vector<96x32xbf16>
    %cst_143 = arith.constant dense<0.000000e+00> : vector<96x32xf32>
    %330 = tpu.matmul %328, %329, %cst_143 {dimension_numbers = #tpu.dot_dimension_numbers<[1], [0], [0], [1], [0, 0, 1, 1], [], []>} : vector<96x96xbf16>, vector<96x32xbf16>, vector<96x32xf32> -> vector<96x32xf32>
    %331 = arith.truncf %330 : vector<96x32xf32> to vector<96x32xbf16>
    %c1_144 = arith.constant 1 : index
    %c32_145 = arith.constant 32 : index
    %c0_146 = arith.constant 0 : index
    %332 = vector.load %arg14[%c1_144, %c32_145, %c0_146] : memref<2x64x64xbf16, #tpu.memory_space<vmem>>, vector<1x32x64xbf16>
    %333 = vector.shape_cast %332 : vector<1x32x64xbf16> to vector<32x64xbf16>
    %cst_147 = arith.constant dense<0.000000e+00> : vector<96x64xf32>
    %334 = tpu.matmul %331, %333, %cst_147 {dimension_numbers = #tpu.dot_dimension_numbers<[1], [0], [0], [1], [0, 0, 1, 1], [], []>} : vector<96x32xbf16>, vector<32x64xbf16>, vector<96x64xf32> -> vector<96x64xf32>
    %335 = arith.addf %308, %334 : vector<96x64xf32>
    %c1_148 = arith.constant 1 : index
    %c0_149 = arith.constant 0 : index
    %c0_150 = arith.constant 0 : index
    %336 = vector.load %arg15[%c1_148, %c0_149, %c0_150] : memref<2x1x64xf32, #tpu.memory_space<vmem>>, vector<1x1x64xf32>
    %337 = vector.shape_cast %336 : vector<1x1x64xf32> to vector<1x64xf32>
    %338 = vector.broadcast %337 : vector<1x64xf32> to vector<96x64xf32>
    %339 = arith.addf %335, %338 : vector<96x64xf32>
    %340 = vector.broadcast %247 : vector<1x64xf32> to vector<96x64xf32>
    %341 = arith.mulf %340, %339 : vector<96x64xf32>
    %342 = arith.addf %236, %341 : vector<96x64xf32>
    %cst_151 = arith.constant dense<0.000000e+00> : vector<96xf32>
    %343 = vector.multi_reduction <add>, %342, %cst_151 [1] : vector<96x64xf32> to vector<96xf32>
    %344 = vector.shape_cast %343 : vector<96xf32> to vector<96x1xf32>
    %345 = arith.mulf %342, %342 : vector<96x64xf32>
    %cst_152 = arith.constant dense<0.000000e+00> : vector<96xf32>
    %346 = vector.multi_reduction <add>, %345, %cst_152 [1] : vector<96x64xf32> to vector<96xf32>
    %347 = vector.shape_cast %346 : vector<96xf32> to vector<96x1xf32>
    %cst_153 = arith.constant 1.562500e-02 : f32
    %348 = vector.broadcast %cst_153 : f32 to vector<96x1xf32>
    %349 = arith.mulf %344, %348 : vector<96x1xf32>
    %cst_154 = arith.constant 1.562500e-02 : f32
    %350 = vector.broadcast %cst_154 : f32 to vector<96x1xf32>
    %351 = arith.mulf %347, %350 : vector<96x1xf32>
    %352 = arith.mulf %349, %349 : vector<96x1xf32>
    %353 = arith.subf %351, %352 : vector<96x1xf32>
    %354 = vector.broadcast %349 : vector<96x1xf32> to vector<96x64xf32>
    %355 = arith.subf %342, %354 : vector<96x64xf32>
    %cst_155 = arith.constant 9.99999997E-7 : f32
    %356 = vector.broadcast %cst_155 : f32 to vector<96x1xf32>
    %357 = arith.addf %353, %356 : vector<96x1xf32>
    %358 = math.rsqrt %357 : vector<96x1xf32>
    %359 = vector.broadcast %358 : vector<96x1xf32> to vector<96x64xf32>
    %360 = arith.mulf %355, %359 : vector<96x64xf32>
    %cst_156 = arith.constant 1.000000e+00 : f32
    %361 = vector.broadcast %cst_156 : f32 to vector<1x64xf32>
    %362 = arith.addf %361, %249 : vector<1x64xf32>
    %363 = vector.broadcast %362 : vector<1x64xf32> to vector<96x64xf32>
    %364 = arith.mulf %360, %363 : vector<96x64xf32>
    %365 = vector.broadcast %248 : vector<1x64xf32> to vector<96x64xf32>
    %366 = arith.addf %364, %365 : vector<96x64xf32>
    %367 = arith.truncf %366 : vector<96x64xf32> to vector<96x64xbf16>
    %c1_157 = arith.constant 1 : index
    %c0_158 = arith.constant 0 : index
    %c0_159 = arith.constant 0 : index
    %368 = vector.load %arg16[%c1_157, %c0_158, %c0_159] : memref<2x64x256xbf16, #tpu.memory_space<vmem>>, vector<1x64x256xbf16>
    %369 = vector.shape_cast %368 : vector<1x64x256xbf16> to vector<64x256xbf16>
    %cst_160 = arith.constant dense<0.000000e+00> : vector<96x256xf32>
    %370 = tpu.matmul %367, %369, %cst_160 {dimension_numbers = #tpu.dot_dimension_numbers<[1], [0], [0], [1], [0, 0, 1, 1], [], []>} : vector<96x64xbf16>, vector<64x256xbf16>, vector<96x256xf32> -> vector<96x256xf32>
    %c1_161 = arith.constant 1 : index
    %c0_162 = arith.constant 0 : index
    %c0_163 = arith.constant 0 : index
    %371 = vector.load %arg17[%c1_161, %c0_162, %c0_163] : memref<2x1x256xf32, #tpu.memory_space<vmem>>, vector<1x1x256xf32>
    %372 = vector.shape_cast %371 : vector<1x1x256xf32> to vector<1x256xf32>
    %373 = vector.broadcast %372 : vector<1x256xf32> to vector<96x256xf32>
    %374 = arith.addf %370, %373 : vector<96x256xf32>
    %cst_164 = arith.constant 5.000000e-01 : f32
    %375 = vector.broadcast %cst_164 : f32 to vector<96x256xf32>
    %376 = arith.mulf %375, %374 : vector<96x256xf32>
    %cst_165 = arith.constant 4.471500e-02 : f32
    %377 = vector.broadcast %cst_165 : f32 to vector<96x256xf32>
    %378 = arith.mulf %377, %374 : vector<96x256xf32>
    %379 = arith.mulf %378, %374 : vector<96x256xf32>
    %380 = arith.mulf %379, %374 : vector<96x256xf32>
    %381 = arith.addf %374, %380 : vector<96x256xf32>
    %cst_166 = arith.constant 0.797884583 : f32
    %382 = vector.broadcast %cst_166 : f32 to vector<96x256xf32>
    %383 = arith.mulf %382, %381 : vector<96x256xf32>
    %384 = math.tanh %383 : vector<96x256xf32>
    %cst_167 = arith.constant 1.000000e+00 : f32
    %385 = vector.broadcast %cst_167 : f32 to vector<96x256xf32>
    %386 = arith.addf %385, %384 : vector<96x256xf32>
    %387 = arith.mulf %376, %386 : vector<96x256xf32>
    %388 = arith.truncf %387 : vector<96x256xf32> to vector<96x256xbf16>
    %c1_168 = arith.constant 1 : index
    %c0_169 = arith.constant 0 : index
    %c0_170 = arith.constant 0 : index
    %389 = vector.load %arg18[%c1_168, %c0_169, %c0_170] : memref<2x256x64xbf16, #tpu.memory_space<vmem>>, vector<1x256x64xbf16>
    %390 = vector.shape_cast %389 : vector<1x256x64xbf16> to vector<256x64xbf16>
    %cst_171 = arith.constant dense<0.000000e+00> : vector<96x64xf32>
    %391 = tpu.matmul %388, %390, %cst_171 {dimension_numbers = #tpu.dot_dimension_numbers<[1], [0], [0], [1], [0, 0, 1, 1], [], []>} : vector<96x256xbf16>, vector<256x64xbf16>, vector<96x64xf32> -> vector<96x64xf32>
    %c1_172 = arith.constant 1 : index
    %c0_173 = arith.constant 0 : index
    %c0_174 = arith.constant 0 : index
    %392 = vector.load %arg19[%c1_172, %c0_173, %c0_174] : memref<2x1x64xf32, #tpu.memory_space<vmem>>, vector<1x1x64xf32>
    %393 = vector.shape_cast %392 : vector<1x1x64xf32> to vector<1x64xf32>
    %394 = vector.broadcast %393 : vector<1x64xf32> to vector<96x64xf32>
    %395 = arith.addf %391, %394 : vector<96x64xf32>
    %396 = vector.broadcast %250 : vector<1x64xf32> to vector<96x64xf32>
    %397 = arith.mulf %396, %395 : vector<96x64xf32>
    %398 = arith.addf %342, %397 : vector<96x64xf32>
    %399 = arith.truncf %27 : vector<8x64xf32> to vector<8x64xbf16>
    %c0_175 = arith.constant 0 : index
    %c0_176 = arith.constant 0 : index
    %400 = vector.load %arg20[%c0_175, %c0_176] : memref<64x128xbf16, #tpu.memory_space<vmem>>, vector<64x128xbf16>
    %cst_177 = arith.constant dense<0.000000e+00> : vector<8x128xf32>
    %401 = tpu.matmul %399, %400, %cst_177 {dimension_numbers = #tpu.dot_dimension_numbers<[1], [0], [0], [1], [0, 0, 1, 1], [], []>} : vector<8x64xbf16>, vector<64x128xbf16>, vector<8x128xf32> -> vector<8x128xf32>
    %c0_178 = arith.constant 0 : index
    %c0_179 = arith.constant 0 : index
    %402 = vector.load %arg21[%c0_178, %c0_179] : memref<1x128xf32, #tpu.memory_space<vmem>>, vector<1x128xf32>
    %403 = vector.broadcast %402 : vector<1x128xf32> to vector<8x128xf32>
    %404 = arith.addf %401, %403 : vector<8x128xf32>
    %405 = vector.extract_strided_slice %404 {offsets = [0, 0], sizes = [1, 64], strides = [1, 1]} : vector<8x128xf32> to vector<1x64xf32>
    %406 = vector.extract_strided_slice %404 {offsets = [0, 64], sizes = [1, 64], strides = [1, 1]} : vector<8x128xf32> to vector<1x64xf32>
    %c0_180 = arith.constant 0 : index
    %c0_181 = arith.constant 0 : index
    %407 = vector.load %arg22[%c0_180, %c0_181] : memref<64x64xbf16, #tpu.memory_space<vmem>>, vector<64x64xbf16>
    %c0_182 = arith.constant 0 : index
    %c0_183 = arith.constant 0 : index
    %408 = vector.load %arg23[%c0_182, %c0_183] : memref<1x64xf32, #tpu.memory_space<vmem>>, vector<1x64xf32>
    %409 = vector.extract_strided_slice %398 {offsets = [0, 0], sizes = [16, 64], strides = [1, 1]} : vector<96x64xf32> to vector<16x64xf32>
    %cst_184 = arith.constant dense<0.000000e+00> : vector<16xf32>
    %410 = vector.multi_reduction <add>, %409, %cst_184 [1] : vector<16x64xf32> to vector<16xf32>
    %411 = vector.shape_cast %410 : vector<16xf32> to vector<16x1xf32>
    %412 = arith.mulf %409, %409 : vector<16x64xf32>
    %cst_185 = arith.constant dense<0.000000e+00> : vector<16xf32>
    %413 = vector.multi_reduction <add>, %412, %cst_185 [1] : vector<16x64xf32> to vector<16xf32>
    %414 = vector.shape_cast %413 : vector<16xf32> to vector<16x1xf32>
    %cst_186 = arith.constant 1.562500e-02 : f32
    %415 = vector.broadcast %cst_186 : f32 to vector<16x1xf32>
    %416 = arith.mulf %411, %415 : vector<16x1xf32>
    %cst_187 = arith.constant 1.562500e-02 : f32
    %417 = vector.broadcast %cst_187 : f32 to vector<16x1xf32>
    %418 = arith.mulf %414, %417 : vector<16x1xf32>
    %419 = arith.mulf %416, %416 : vector<16x1xf32>
    %420 = arith.subf %418, %419 : vector<16x1xf32>
    %421 = vector.broadcast %416 : vector<16x1xf32> to vector<16x64xf32>
    %422 = arith.subf %409, %421 : vector<16x64xf32>
    %cst_188 = arith.constant 9.99999997E-7 : f32
    %423 = vector.broadcast %cst_188 : f32 to vector<16x1xf32>
    %424 = arith.addf %420, %423 : vector<16x1xf32>
    %425 = math.rsqrt %424 : vector<16x1xf32>
    %426 = vector.broadcast %425 : vector<16x1xf32> to vector<16x64xf32>
    %427 = arith.mulf %422, %426 : vector<16x64xf32>
    %cst_189 = arith.constant 1.000000e+00 : f32
    %428 = vector.broadcast %cst_189 : f32 to vector<1x64xf32>
    %429 = arith.addf %428, %406 : vector<1x64xf32>
    %430 = vector.broadcast %429 : vector<1x64xf32> to vector<16x64xf32>
    %431 = arith.mulf %427, %430 : vector<16x64xf32>
    %432 = vector.broadcast %405 : vector<1x64xf32> to vector<16x64xf32>
    %433 = arith.addf %431, %432 : vector<16x64xf32>
    %434 = arith.truncf %433 : vector<16x64xf32> to vector<16x64xbf16>
    %cst_190 = arith.constant dense<0.000000e+00> : vector<16x64xf32>
    %435 = tpu.matmul %434, %407, %cst_190 {dimension_numbers = #tpu.dot_dimension_numbers<[1], [0], [0], [1], [0, 0, 1, 1], [], []>} : vector<16x64xbf16>, vector<64x64xbf16>, vector<16x64xf32> -> vector<16x64xf32>
    %436 = vector.broadcast %408 : vector<1x64xf32> to vector<16x64xf32>
    %437 = arith.addf %435, %436 : vector<16x64xf32>
    %c0_191 = arith.constant 0 : index
    %c32_192 = arith.constant 32 : index
    %c0_193 = arith.constant 0 : index
    %438 = vector.load %arg2[%c0_191, %c32_192, %c0_193] : memref<1x64x64xf32, #tpu.memory_space<vmem>>, vector<1x16x64xf32>
    %439 = vector.shape_cast %438 : vector<1x16x64xf32> to vector<16x64xf32>
    %440 = arith.subf %437, %439 : vector<16x64xf32>
    %441 = arith.mulf %440, %440 : vector<16x64xf32>
    %cst_194 = arith.constant dense<0.000000e+00> : vector<64xf32>
    %442 = vector.multi_reduction <add>, %441, %cst_194 [0] : vector<16x64xf32> to vector<64xf32>
    %443 = vector.shape_cast %442 : vector<64xf32> to vector<1x64xf32>
    %444 = vector.extract_strided_slice %398 {offsets = [48, 0], sizes = [16, 64], strides = [1, 1]} : vector<96x64xf32> to vector<16x64xf32>
    %cst_195 = arith.constant dense<0.000000e+00> : vector<16xf32>
    %445 = vector.multi_reduction <add>, %444, %cst_195 [1] : vector<16x64xf32> to vector<16xf32>
    %446 = vector.shape_cast %445 : vector<16xf32> to vector<16x1xf32>
    %447 = arith.mulf %444, %444 : vector<16x64xf32>
    %cst_196 = arith.constant dense<0.000000e+00> : vector<16xf32>
    %448 = vector.multi_reduction <add>, %447, %cst_196 [1] : vector<16x64xf32> to vector<16xf32>
    %449 = vector.shape_cast %448 : vector<16xf32> to vector<16x1xf32>
    %cst_197 = arith.constant 1.562500e-02 : f32
    %450 = vector.broadcast %cst_197 : f32 to vector<16x1xf32>
    %451 = arith.mulf %446, %450 : vector<16x1xf32>
    %cst_198 = arith.constant 1.562500e-02 : f32
    %452 = vector.broadcast %cst_198 : f32 to vector<16x1xf32>
    %453 = arith.mulf %449, %452 : vector<16x1xf32>
    %454 = arith.mulf %451, %451 : vector<16x1xf32>
    %455 = arith.subf %453, %454 : vector<16x1xf32>
    %456 = vector.broadcast %451 : vector<16x1xf32> to vector<16x64xf32>
    %457 = arith.subf %444, %456 : vector<16x64xf32>
    %cst_199 = arith.constant 9.99999997E-7 : f32
    %458 = vector.broadcast %cst_199 : f32 to vector<16x1xf32>
    %459 = arith.addf %455, %458 : vector<16x1xf32>
    %460 = math.rsqrt %459 : vector<16x1xf32>
    %461 = vector.broadcast %460 : vector<16x1xf32> to vector<16x64xf32>
    %462 = arith.mulf %457, %461 : vector<16x64xf32>
    %cst_200 = arith.constant 1.000000e+00 : f32
    %463 = vector.broadcast %cst_200 : f32 to vector<1x64xf32>
    %464 = arith.addf %463, %406 : vector<1x64xf32>
    %465 = vector.broadcast %464 : vector<1x64xf32> to vector<16x64xf32>
    %466 = arith.mulf %462, %465 : vector<16x64xf32>
    %467 = vector.broadcast %405 : vector<1x64xf32> to vector<16x64xf32>
    %468 = arith.addf %466, %467 : vector<16x64xf32>
    %469 = arith.truncf %468 : vector<16x64xf32> to vector<16x64xbf16>
    %cst_201 = arith.constant dense<0.000000e+00> : vector<16x64xf32>
    %470 = tpu.matmul %469, %407, %cst_201 {dimension_numbers = #tpu.dot_dimension_numbers<[1], [0], [0], [1], [0, 0, 1, 1], [], []>} : vector<16x64xbf16>, vector<64x64xbf16>, vector<16x64xf32> -> vector<16x64xf32>
    %471 = vector.broadcast %408 : vector<1x64xf32> to vector<16x64xf32>
    %472 = arith.addf %470, %471 : vector<16x64xf32>
    %c0_202 = arith.constant 0 : index
    %c48_203 = arith.constant 48 : index
    %c0_204 = arith.constant 0 : index
    %473 = vector.load %arg2[%c0_202, %c48_203, %c0_204] : memref<1x64x64xf32, #tpu.memory_space<vmem>>, vector<1x16x64xf32>
    %474 = vector.shape_cast %473 : vector<1x16x64xf32> to vector<16x64xf32>
    %475 = arith.subf %472, %474 : vector<16x64xf32>
    %476 = arith.mulf %475, %475 : vector<16x64xf32>
    %cst_205 = arith.constant dense<0.000000e+00> : vector<64xf32>
    %477 = vector.multi_reduction <add>, %476, %cst_205 [0] : vector<16x64xf32> to vector<64xf32>
    %478 = vector.shape_cast %477 : vector<64xf32> to vector<1x64xf32>
    %479 = arith.addf %443, %478 : vector<1x64xf32>
    %c0_206 = arith.constant 0 : index
    %c0_207 = arith.constant 0 : index
    %c0_208 = arith.constant 0 : index
    %480 = vector.load %arg24[%c0_206, %c0_207, %c0_208] : memref<1x1x64xf32, #tpu.memory_space<vmem>>, vector<1x1x64xf32>
    %481 = vector.shape_cast %480 : vector<1x1x64xf32> to vector<1x64xf32>
    %482 = vector.shape_cast %479 : vector<1x64xf32> to vector<1x1x64xf32>
    tpu.vector_store %arg24[%c0_206, %c0_207, %c0_208], %482 {strides = array<i32>} : memref<1x1x64xf32, #tpu.memory_space<vmem>>, vector<1x1x64xf32>,
    return
  }
  func.func @transform_0(%arg0: i32) -> (i32, i32, i32) {
    %c0_i32 = arith.constant 0 : i32
    %c0_i32_0 = arith.constant 0 : i32
    %c0_i32_1 = arith.constant 0 : i32
    return %arg0, %c0_i32, %c0_i32_0 : i32, i32, i32
  }
  func.func @transform_1(%arg0: i32) -> (i32, i32, i32) {
    %c0_i32 = arith.constant 0 : i32
    %c0_i32_0 = arith.constant 0 : i32
    %c0_i32_1 = arith.constant 0 : i32
    return %arg0, %c0_i32, %c0_i32_0 : i32, i32, i32
  }
  func.func @transform_2(%arg0: i32) -> (i32, i32, i32) {
    %c0_i32 = arith.constant 0 : i32
    %c0_i32_0 = arith.constant 0 : i32
    %c0_i32_1 = arith.constant 0 : i32
    return %arg0, %c0_i32, %c0_i32_0 : i32, i32, i32
  }
  func.func @transform_3(%arg0: i32) -> (i32, i32) {
    %c0_i32 = arith.constant 0 : i32
    %c0_i32_0 = arith.constant 0 : i32
    %c0_i32_1 = arith.constant 0 : i32
    return %c0_i32, %c0_i32_0 : i32, i32
  }
  func.func @transform_4(%arg0: i32) -> (i32, i32) {
    %c0_i32 = arith.constant 0 : i32
    %c0_i32_0 = arith.constant 0 : i32
    %c0_i32_1 = arith.constant 0 : i32
    return %c0_i32, %c0_i32_0 : i32, i32
  }
  func.func @transform_5(%arg0: i32) -> (i32, i32) {
    %c0_i32 = arith.constant 0 : i32
    %c0_i32_0 = arith.constant 0 : i32
    %c0_i32_1 = arith.constant 0 : i32
    return %c0_i32, %c0_i32_0 : i32, i32
  }
  func.func @transform_6(%arg0: i32) -> (i32, i32) {
    %c0_i32 = arith.constant 0 : i32
    %c0_i32_0 = arith.constant 0 : i32
    %c0_i32_1 = arith.constant 0 : i32
    return %c0_i32, %c0_i32_0 : i32, i32
  }
  func.func @transform_7(%arg0: i32) -> (i32, i32) {
    %c0_i32 = arith.constant 0 : i32
    %c0_i32_0 = arith.constant 0 : i32
    %c0_i32_1 = arith.constant 0 : i32
    return %c0_i32, %c0_i32_0 : i32, i32
  }
  func.func @transform_8(%arg0: i32) -> (i32, i32) {
    %c0_i32 = arith.constant 0 : i32
    %c0_i32_0 = arith.constant 0 : i32
    %c0_i32_1 = arith.constant 0 : i32
    return %c0_i32, %c0_i32_0 : i32, i32
  }
  func.func @transform_9(%arg0: i32) -> (i32, i32, i32) {
    %c0_i32 = arith.constant 0 : i32
    %c0_i32_0 = arith.constant 0 : i32
    %c0_i32_1 = arith.constant 0 : i32
    %c0_i32_2 = arith.constant 0 : i32
    return %c0_i32, %c0_i32_0, %c0_i32_1 : i32, i32, i32
  }
  func.func @transform_10(%arg0: i32) -> (i32, i32, i32) {
    %c0_i32 = arith.constant 0 : i32
    %c0_i32_0 = arith.constant 0 : i32
    %c0_i32_1 = arith.constant 0 : i32
    %c0_i32_2 = arith.constant 0 : i32
    return %c0_i32, %c0_i32_0, %c0_i32_1 : i32, i32, i32
  }
  func.func @transform_11(%arg0: i32) -> (i32, i32, i32) {
    %c0_i32 = arith.constant 0 : i32
    %c0_i32_0 = arith.constant 0 : i32
    %c0_i32_1 = arith.constant 0 : i32
    %c0_i32_2 = arith.constant 0 : i32
    return %c0_i32, %c0_i32_0, %c0_i32_1 : i32, i32, i32
  }
  func.func @transform_12(%arg0: i32) -> (i32, i32, i32) {
    %c0_i32 = arith.constant 0 : i32
    %c0_i32_0 = arith.constant 0 : i32
    %c0_i32_1 = arith.constant 0 : i32
    %c0_i32_2 = arith.constant 0 : i32
    return %c0_i32, %c0_i32_0, %c0_i32_1 : i32, i32, i32
  }
  func.func @transform_13(%arg0: i32) -> (i32, i32, i32) {
    %c0_i32 = arith.constant 0 : i32
    %c0_i32_0 = arith.constant 0 : i32
    %c0_i32_1 = arith.constant 0 : i32
    %c0_i32_2 = arith.constant 0 : i32
    return %c0_i32, %c0_i32_0, %c0_i32_1 : i32, i32, i32
  }
  func.func @transform_14(%arg0: i32) -> (i32, i32, i32) {
    %c0_i32 = arith.constant 0 : i32
    %c0_i32_0 = arith.constant 0 : i32
    %c0_i32_1 = arith.constant 0 : i32
    %c0_i32_2 = arith.constant 0 : i32
    return %c0_i32, %c0_i32_0, %c0_i32_1 : i32, i32, i32
  }
  func.func @transform_15(%arg0: i32) -> (i32, i32, i32) {
    %c0_i32 = arith.constant 0 : i32
    %c0_i32_0 = arith.constant 0 : i32
    %c0_i32_1 = arith.constant 0 : i32
    %c0_i32_2 = arith.constant 0 : i32
    return %c0_i32, %c0_i32_0, %c0_i32_1 : i32, i32, i32
  }
  func.func @transform_16(%arg0: i32) -> (i32, i32, i32) {
    %c0_i32 = arith.constant 0 : i32
    %c0_i32_0 = arith.constant 0 : i32
    %c0_i32_1 = arith.constant 0 : i32
    %c0_i32_2 = arith.constant 0 : i32
    return %c0_i32, %c0_i32_0, %c0_i32_1 : i32, i32, i32
  }
  func.func @transform_17(%arg0: i32) -> (i32, i32, i32) {
    %c0_i32 = arith.constant 0 : i32
    %c0_i32_0 = arith.constant 0 : i32
    %c0_i32_1 = arith.constant 0 : i32
    %c0_i32_2 = arith.constant 0 : i32
    return %c0_i32, %c0_i32_0, %c0_i32_1 : i32, i32, i32
  }
  func.func @transform_18(%arg0: i32) -> (i32, i32, i32) {
    %c0_i32 = arith.constant 0 : i32
    %c0_i32_0 = arith.constant 0 : i32
    %c0_i32_1 = arith.constant 0 : i32
    %c0_i32_2 = arith.constant 0 : i32
    return %c0_i32, %c0_i32_0, %c0_i32_1 : i32, i32, i32
  }
  func.func @transform_19(%arg0: i32) -> (i32, i32) {
    %c0_i32 = arith.constant 0 : i32
    %c0_i32_0 = arith.constant 0 : i32
    %c0_i32_1 = arith.constant 0 : i32
    return %c0_i32, %c0_i32_0 : i32, i32
  }
  func.func @transform_20(%arg0: i32) -> (i32, i32) {
    %c0_i32 = arith.constant 0 : i32
    %c0_i32_0 = arith.constant 0 : i32
    %c0_i32_1 = arith.constant 0 : i32
    return %c0_i32, %c0_i32_0 : i32, i32
  }
  func.func @transform_21(%arg0: i32) -> (i32, i32) {
    %c0_i32 = arith.constant 0 : i32
    %c0_i32_0 = arith.constant 0 : i32
    %c0_i32_1 = arith.constant 0 : i32
    return %c0_i32, %c0_i32_0 : i32, i32
  }
  func.func @transform_22(%arg0: i32) -> (i32, i32) {
    %c0_i32 = arith.constant 0 : i32
    %c0_i32_0 = arith.constant 0 : i32
    %c0_i32_1 = arith.constant 0 : i32
    return %c0_i32, %c0_i32_0 : i32, i32
  }
  func.func @transform_23(%arg0: i32) -> (i32, i32, i32) {
    %c0_i32 = arith.constant 0 : i32
    %c0_i32_0 = arith.constant 0 : i32
    %c0_i32_1 = arith.constant 0 : i32
    return %arg0, %c0_i32, %c0_i32_0 : i32, i32, i32
  }
}

</mosaic_0001>

<bundles_post_ra>
// kernel: pair_diff_dec_forward.3
= control target key start
LH: loop header
LB: loop body
LE: loop exit
PB: predicated region body
PF: predicated region fallthrough
CT: control target
= control target key end

     0   :  { %s11417_s0 = inlined_call_operand.vmem [shape: f32[2,1,256], index: 0, kind: input, shape index: {}]   ;;  %s11418_s1 = inlined_call_operand.vmem [shape: f32[2,64,64], index: 1, kind: input, shape index: {}]   ;;  %s11419_s2 = inlined_call_operand.vmem [shape: f32[2,32,8], index: 2, kind: input, shape index: {}]   ;;  %s11420_s3 = inlined_call_operand.vmem [shape: bf16[256,64], index: 3, kind: input, shape index: {}]   ;;  %s11421_s4 = inlined_call_operand.vmem [shape: bf16[64,64], index: 4, kind: input, shape index: {}]   ;;  %s11422_s5 = inlined_call_operand.vmem [shape: bf16[64,64], index: 5, kind: input, shape index: {}]   ;;  %s11423_s6 = inlined_call_operand.vmem [shape: bf16[8,64], index: 6, kind: input, shape index: {}]   ;;  %s11424_s7 = inlined_call_operand.vmem [shape: f32[4,64], index: 7, kind: input, shape index: {}]   ;;  %s11425_s8 = inlined_call_operand.vmem [shape: f32[48,64], index: 8, kind: input, shape index: {}]   ;;  %s11426_s9 = inlined_call_operand.vmem [shape: bf16[2,64,384], index: 9, kind: input, shape index: {}]   ;;  %s11427_s10 = inlined_call_operand.vmem [shape: f32[2,1,384], index: 10, kind: input, shape index: {}]   ;;  %s11428_s11 = inlined_call_operand.vmem [shape: bf16[2,64,192], index: 11, kind: input, shape index: {}]   ;;  %s11429_s12 = inlined_call_operand.vmem [shape: f32[2,1,192], index: 12, kind: input, shape index: {}]   ;;  %s11430_s13 = inlined_call_operand.vmem [shape: bf16[2,64,64], index: 13, kind: input, shape index: {}]   ;;  %s11431_s14 = inlined_call_operand.vmem [shape: f32[2,1,64], index: 14, kind: input, shape index: {}]   ;;  %s11432_s15 = inlined_call_operand.vmem [shape: bf16[2,64,256], index: 15, kind: input, shape index: {}]   ;;  %s11433_s16 = inlined_call_operand.vmem [shape: f32[2,1,256], index: 16, kind: input, shape index: {}]   ;;  %s11434_s17 = inlined_call_operand.vmem [shape: bf16[2,256,64], index: 17, kind: input, shape index: {}]   ;;  %s11435_s18 = inlined_call_operand.vmem [shape: f32[2,1,64], index: 18, kind: input, shape index: {}]   ;;  %s11436_s19 = inlined_call_operand.vmem [shape: bf16[64,128], index: 19, kind: input, shape index: {}]   ;;  %s11437_s20 = inlined_call_operand.vmem [shape: f32[1,128], index: 20, kind: input, shape index: {}]   ;;  %s11438_s21 = inlined_call_operand.vmem [shape: bf16[64,64], index: 21, kind: input, shape index: {}]   ;;  %s11439_s22 = inlined_call_operand.vmem [shape: f32[1,64], index: 22, kind: input, shape index: {}]   ;;  %s11440_s23 = inlined_call_operand.vmem [shape: f32[2,1,64], index: 23, kind: output, shape index: {}]  }
   0x1   :  { %11459 = sst [smem:[#allocation4_spill]] %s11417_s0 }
   0x2   :  { %11460 = sst [smem:[#allocation5_spill]] %s11418_s1 }
   0x3   :  { %11461 = sst [smem:[#allocation6_spill]] %s11419_s2 }
   0x4   :  { %11462 = sst [smem:[#allocation7_spill]] %s11420_s3 }
   0x5   :  { %11463 = sst [smem:[#allocation8_spill]] %s11421_s4  ;;  %s8650_s4 = smov 0  }
   0x6   :  { %11464 = sst [smem:[#allocation9_spill]] %s11422_s5 }
   0x7   :  { %11465 = sst [smem:[#allocation10_spill]] %s11423_s6 }
   0x8   :  { %11466 = sst [smem:[#allocation11_spill]] %s11424_s7 }
   0x9   :  { %11467 = sst [smem:[#allocation12_spill]] %s11425_s8 }
   0xa LB: > { %s6931_s30 = sadd.s32 4294967295, %s8520_s4   ;;  %p6935_p0 = scmp.ge.s32.totalorder %s8520_s4, 1  ;;  %s8520_s4 = sphi %s8650_s4, %s33_s4  }
   0xb   : > { %p656_p1 = scmp.lt.s32.totalorder %s8520_s4, 3 }
   0xd   : > { %p657_p2 = pnand %p6935_p0, %p656_p1 }
   0xf   : > { %660 = sbr.rel (%p657_p2) target bundleno = 6023 (0x1787), region = 112 }
  0x14   : > { %s11468_s5 = sld [smem:[#allocation7_spill]]  ;;  %p727_p3 = scmp.lt.s32.totalorder %s6931_s30, 1  ;;  %v747_v5 = vlaneseq  ;;  %v11453_v26 = vmov 0.0   ;;  %vm1151_vm0 = vcmask 1043456   ;;  %vm1144_vm1 = vcmask 64512  }
  0x15   : > { %s11469_s29 = sld [smem:[#allocation4_spill]]  ;;  %7563 = vmatprep.subr.bf16.mxu1 %v11453_v26  ;;  %vm8523_vm2 = vmmov 0   ;;  %vm977_vm3 = vcmask 523264   ;;  %s11451_s0 = smov 64   ;;  %vm1904_vm4 = vcmask 261120   ;;  %vm8528_vm6 = vmmov 1  }
  0x16   : > { %s11487_s30 = smov (!%p727_p3, %s6931_s30), 1  ;;  %v8682_v8 = vshrl.u32 %v747_v5, 7  ;;  %s11470_s2 = sld [smem:[#allocation8_spill]]  ;;  %7571 = vmatprep.mubr.msk.bf16.mxu1 %vm8523_vm2, %v11453_v26  ;;  %vm2046_vm9 = vcmask 785408   ;;  %vm6858_vm11 = vcmask 516096  }
  0x17   : > { %s6936_s1 = sshll.u32 %s11487_s30, 1  ;;  %s7269_s27 = sshll.u32 %s11487_s30, 5 }
  0x18   : > { %v8695_v11 = vsub.s32 1, %v8682_v8  ;;  %v8711_v18 = vsub.s32 0, %v8682_v8  ;;  %s11472_s24 = sld [smem:[#allocation6_spill]]  ;;  %s11449_s6 = smov 32  }
  0x19   : > { %s11476_s8 = sld [smem:[#allocation12_spill]]  ;;  %s743_s26 = scalar_lea.vmem %s11440_s23, %s11487_s30 }
  0x1a   : > { %v7950_v0 = vld [vmem:[%s11468_s5 + $0x78] sm:$0xff]   ;;  %v7952_v2 = vld [vmem:[%s11468_s5 + $0x70] sm:$0xff]   ;;  %v7954_v4 = vld [vmem:[%s11468_s5 + $0x68] sm:$0xff]  }
  0x1b   : > { %v7951_v1 = vld [vmem:[%s11468_s5 + $0x38] sm:$0xff]   ;;  %7270 = vmatprep.subr.bf16.mxu0 %v7950_v0  ;;  %v7953_v3 = vld [vmem:[%s11468_s5 + $0x30] sm:$0xff]   ;;  %v7955_v6 = vld [vmem:[%s11468_s5 + $0x28] sm:$0xff]   ;;  %s730_s3 = scalar_lea.vmem %s11469_s29, %s6936_s1  ;;  %s11471_s29 = sld [smem:[#allocation10_spill]] }
  0x1c   : > { %7271 = vmatpush3.bf16.msra.mxu0 %v7951_v1  ;;  %v7956_v7 = vld [vmem:[%s11468_s5 + $0x60] sm:$0xff]   ;;  %v7958_v10 = vld [vmem:[%s11468_s5 + $0x58] sm:$0xff]   ;;  %v7960_v13 = vld [vmem:[%s11468_s5 + $0x50] sm:$0xff]   ;;  %s11475_s1 = sld [smem:[#allocation5_spill]] }
  0x1d   : > { %7272 = vmatprep.subr.bf16.mxu0 %v7952_v2  ;;  %v7957_v9 = vld [vmem:[%s11468_s5 + $0x20] sm:$0xff]   ;;  %v7959_v12 = vld [vmem:[%s11468_s5 + $0x18] sm:$0xff]   ;;  %v7961_v15 = vld [vmem:[%s11468_s5 + $0x10] sm:$0xff]  }
  0x1e   : > { %v745_v14 = vld [vmem:[%s730_s3] sm:$0x3]  ;;  %v7962_v17 = vld [vmem:[%s11468_s5 + $0x48] sm:$0xff]   ;;  %v7966_v25 = vld [vmem:[%s11470_s2 + $0x18] sm:$0xff]   ;;  %s740_s25 = scalar_lea.vmem %s11472_s24, %s7269_s27  ;;  %s11474_s24 = sld [smem:[#allocation11_spill]] }
  0x1f   : > { %v754_v16 = vrot.slane %v745_v14, %v8695_v11  ;;  %v7963_v20 = vld [vmem:[%s11468_s5 + $0x8] sm:$0xff]   ;;  %v7964_v21 = vld [vmem:[%s11468_s5 + $0x40] sm:$0xff]   ;;  %v750_v23 = vrot.slane %v745_v14, %v8711_v18  ;;  %7564 = vmatpush3.bf16.msra.mxu1 %v7966_v25  ;;  %v7967_v27 = vld [vmem:[%s11470_s2 + $0x10] sm:$0xff]  }
  0x20   : > { %7273 = vmatpush3.bf16.msra.mxu0 %v7953_v3  ;;  %v7965_v22 = vld [vmem:[%s11468_s5] sm:$0xff]   ;;  %7565 = vmatprep.subr.bf16.mxu1 %v11453_v26  ;;  %v1133_v31 = vld [vmem:[%s740_s25 + $0x8] sm:$0xff]  ;;  %v1134_v33 = vld [vmem:[%s740_s25 + $0x10] sm:$0xff] }
  0x21   : > { %7274 = vmatprep.subr.bf16.mxu0 %v7954_v4  ;;  %v758_v19 = vpack.c.bf16 %v754_v16, %v754_v16  ;;  %v757_v24 = vpack.c.bf16 %v750_v23, %v750_v23  ;;  %v1138_v28 = vld [vmem:[%s11471_s29] sm:$0xf]  ;;  %v1135_v34 = vld [vmem:[%s740_s25 + $0x18] sm:$0xff]  ;;  %v7968_v35 = vld [vmem:[%s11470_s2 + $0x8] sm:$0xff]   ;;  %s11473_s29 = sld [smem:[#allocation9_spill]] }
  0x22   : > { %v1153_v29 = vsel %vm1151_vm0, %v1138_v28, 0  ;;  %v1132_v30 = vld [vmem:[%s740_s25] sm:$0xff]  ;;  %v1137_v36 = vpack.c.bf16 %v1135_v34, %v1134_v33  ;;  %s7268_s25 = sshll.u32 %s11487_s30, 6  ;;  %v1030_v0 = vld [vmem:[%s11476_s8 + $0x10] sm:$0xff]  ;;  %v7976_v33 = vld [vmem:[%s11426_s9 + $0x4c] ss:$12 sps:$4 sm:$0xff]  }
  0x23   : > { %924 = vmatprep.mubr.bf16.mxu0 %v758_v19  ;;  %7566 = vmatpush3.bf16.msra.mxu1 %v7967_v27  ;;  %v1136_v32 = vpack.c.bf16 %v1133_v31, %v1132_v30  ;;  %v7969_v37 = vld [vmem:[%s11470_s2] sm:$0xff]   ;;  %s8761_s27 = scalar_lea.vmem %s11475_s1, %s7268_s25  ;;  %v7974_v34 = vld [vmem:[%s11426_s9 + $0x48] ss:$12 sps:$4 sm:$0xff]   ;;  %s11447_s1 = smov 96  }
  0x24   : > { %7275 = vmatpush3.bf16.msra.mxu0 %v7955_v6  ;;  %7567 = vmatprep.subr.bf16.mxu1 %v11453_v26  ;;  %v6941_v40 = vld [vmem:[%s11474_s24] ss:$0 sm:$0xff]  ;;  %v1035_v50 = vld [vmem:[%s8761_s27 + $0x8] sm:$0xff]  ;;  %v1036_v58 = vld [vmem:[%s8761_s27 + $0x10] sm:$0xff] }
  0x25   : > { %7276 = vmatprep.subr.bf16.mxu0 %v7956_v7  ;;  %v1034_v49 = vld [vmem:[%s8761_s27] sm:$0xff]  ;;  %v1037_v59 = vld [vmem:[%s8761_s27 + $0x18] sm:$0xff] }
  0x26   : > { %v1038_v53 = vpack.c.bf16 %v1035_v50, %v1034_v49  ;;  %v1039_v60 = vpack.c.bf16 %v1037_v59, %v1036_v58  ;;  %v6973_v62 = vld [vmem:[%s11474_s24 + $0x3] ss:$0 sm:$0xff] }
  0x27   : > { %7568 = vmatpush3.bf16.msra.mxu1 %v7968_v35  ;;  %v7970_v38 = vld [vmem:[%s11473_s29 + $0x18] sm:$0xff]   ;;  %v7971_v55 = vld [vmem:[%s11473_s29 + $0x10] sm:$0xff]   ;;  %v7972_v56 = vld [vmem:[%s11473_s29 + $0x8] sm:$0xff]  }
  0x28   : > { %7277 = vmatpush3.bf16.msra.mxu0 %v7957_v9  ;;  %7569 = vmatprep.subr.bf16.mxu1 %v11453_v26  ;;  %v7973_v57 = vld [vmem:[%s11473_s29] sm:$0xff]   ;;  %v7977_v35 = vld [vmem:[%s11426_s9 + $0x50] ss:$12 sps:$4 sm:$0xff]  }
  0x29   : > { %7278 = vmatprep.subr.bf16.mxu0 %v7958_v10  ;;  %v1032_v1 = vld [vmem:[%s11476_s8 + $0x20] sm:$0xff] }
  0x2b   : > { %7570 = vmatpush3.bf16.msra.mxu1 %v7969_v37  ;;  %v7978_v37 = vld [vmem:[%s11426_s9 + $0x30] ss:$12 sps:$4 sm:$0xff]  }
  0x2c   : > { %7279 = vmatpush3.bf16.msra.mxu0 %v7959_v12  ;;  %7575 = vmatprep.subr.bf16.mxu1 %v7970_v38  ;;  %v1031_v12 = vld [vmem:[%s11476_s8 + $0x18] sm:$0xff] }
  0x2d   : > { %7280 = vmatprep.subr.bf16.mxu0 %v7960_v13  ;;  %v1033_v13 = vld [vmem:[%s11476_s8 + $0x28] sm:$0xff] }
  0x30   : > { %7281 = vmatpush3.bf16.msra.mxu0 %v7961_v15 }
  0x31   : > { %7282 = vmatprep.subr.bf16.mxu0 %v7962_v17 }
  0x34   : > { %7283 = vmatpush3.bf16.msra.mxu0 %v7963_v20 }
  0x35   : > { %7284 = vmatprep.subr.bf16.mxu0 %v7964_v21 }
  0x38   : > { %7285 = vmatpush3.bf16.msra.mxu0 %v7965_v22 }
  0x39   : > { %7909 = vmatprep.subr.msk.bf16.mxu0 %vm1151_vm0, %v1138_v28 }
  0x3b   : > { %925 = vmatmul.mubr.bf16.vlgmr.msra.gmra.mxu0 %v757_v24 }
  0x3c   : > { %7588 = vmatpush3.bf16.msra.mxu0 %v1153_v29  ;;  %7589 = vmatprep.mubr.msk.bf16.mxu0 %vm1144_vm1, %v1136_v32 }
  0x3d   : > { %7593 = vmatprep.subr.bf16.mxu0 %v11453_v26 }
  0x43   : > { %7590 = vmatmul.mubr.msk.bf16.vlgmr.msra.gmra.mxu0 %vm1144_vm1, %v1137_v36  ;;  %v7980_v36 = vld [vmem:[%s11426_s9 + $0x34] ss:$12 sps:$4 sm:$0xff]  }
  0x44   : > { %7601 = vmatprep.mubr.msk.bf16.mxu0 %vm8523_vm2, %v11453_v26  ;;  %7594 = vmatpush3.bf16.msra.mxu0 %v7977_v35 }
  0x45   : > { %7595 = vmatprep.subr.bf16.mxu0 %v11453_v26 }
  0xfb   : > { %v7286_v39 = vpop.f32.mrf.mxu0 }
  0xfd   : > { %v7287_v41 = vpop.f32.mrf.mxu0 }
  0xfe   : > { %v7288_v42 = vadd.f32 %v7287_v41, %v7286_v39  ;;  %v7984_v39 = vld [vmem:[%s11426_s9 + $0x1c] ss:$12 sps:$4 sm:$0xff]   ;;  %v7985_v41 = vld [vmem:[%s11426_s9 + $0x20] ss:$12 sps:$4 sm:$0xff]  }
  0xff   : > { %v7289_v43 = vpop.f32.mrf.mxu0 }
 0x100   : > { %v927_v44 = vadd.f32 %v7288_v42, %v6941_v40  ;;  %v7982_v40 = vld [vmem:[%s11426_s9 + $0x18] ss:$12 sps:$4 sm:$0xff]   ;;  %v7986_v43 = vld [vmem:[%s11426_s9] ss:$12 sps:$4 sm:$0xff]  }
 0x101   : > { %v7290_v45 = vpop.f32.mrf.mxu0  ;;  %v7988_v42 = vld [vmem:[%s11426_s9 + $0x4] ss:$12 sps:$4 sm:$0xff]  }
 0x102   : > { %v6958_v46 = vmul.f32 -1.442695, %v927_v44  ;;  %v11455_v45 = vmov 0  }
 0x103   : > { %v7591_v61 = vpop.f32.mrf.mxu0 }
 0x104   : > { %8102 = vpow2.f32 %v6958_v46  ;;  %v1198_v63 = vadd.f32 %v7591_v61, %v6973_v62  ;;  %v6959_v46 = vld [vmem:[%s11474_s24 + $0x1] ss:$0 sm:$0xff] }
 0x105   : > { %v1189_v2 = vpop.f32.mrf.mxu0 }
 0x106   : > { %v1206_v3 = vadd.f32 %v1198_v63, %v1030_v0  ;;  %v1190_v4 = vadd.f32 %v6973_v62, %v1189_v2 }
 0x107   : > { %v7592_v6 = vpop.f32.mrf.mxu0 }
 0x108   : > { %v1214_v7 = vadd.f32 %v1206_v3, %v1032_v1  ;;  %1222 = vst.msk [vmem:[#allocation2 + $0x40] sm:$0xff] %vm977_vm3, %v1206_v3  ;;  %v1204_v9 = vadd.f32 %v1190_v4, %v1030_v0  ;;  %v1201_v10 = vadd.f32 %v7592_v6, %v6973_v62 }
 0x109   : > { %v1192_v14 = vpop.f32.mrf.mxu0 }
 0x10a   : > { %1216 = vst.msk [vmem:[#allocation2 + $0x20] sm:$0xff] %vm977_vm3, %v1214_v7  ;;  %1212 = vst.msk [vmem:[#allocation2 + $0x10] sm:$0xff] %vm977_vm3, %v1204_v9  ;;  %v1224_v15 = vadd.f32 %v1204_v9, %v1032_v1  ;;  %v1207_v16 = vadd.f32 %v1201_v10, %v1031_v12  ;;  %v1193_v17 = vadd.f32 %v6973_v62, %v1192_v14  ;;  %v1029_v1 = vld [vmem:[%s11476_s8 + $0x8] sm:$0xff] }
 0x10c   : > { %1226 = vst.msk [vmem:[#allocation2 + $0x50] sm:$0xff] %vm977_vm3, %v1224_v15  ;;  %v1215_v19 = vadd.f32 %v1207_v16, %v1033_v13  ;;  %1223 = vst.msk [vmem:[#allocation2 + $0x48] sm:$0xff] %vm977_vm3, %v1207_v16  ;;  %v1205_v20 = vadd.f32 %v1193_v17, %v1031_v12 }
 0x10e   : > { %1217 = vst.msk [vmem:[#allocation2 + $0x28] sm:$0xff] %vm977_vm3, %v1215_v19  ;;  %1213 = vst.msk [vmem:[#allocation2 + $0x18] sm:$0xff] %vm977_vm3, %v1205_v20  ;;  %v1225_v21 = vadd.f32 %v1205_v20, %v1033_v13 }
 0x110   : > { %1227 = vst.msk [vmem:[#allocation2 + $0x58] sm:$0xff] %vm977_vm3, %v1225_v21 }
 0x111   : > { %v8103_v47 = vpop.eup %8102  ;;  %v8802_v22 = vld [vmem:[#allocation2 + $0x10] sm:$0xff]  ;;  %v8808_v25 = vld [vmem:[#allocation2 + $0x20] sm:$0xff] }
 0x112   : > { %v935_v48 = vadd.f32 1.0, %v8103_v47  ;;  %v1492_v23 = vsel %vm977_vm3, %v8802_v22, 0.0  ;;  %v1498_v28 = vsel %vm977_vm3, %v8808_v25, 0.0  ;;  %v1524_v30 = vmul.f32 %v8802_v22, %v8802_v22 }
 0x113   : > { %1493 = vadd.xlane.f32.xlu0 %v1492_v23  ;;  %v1526_v13 = vmul.f32 %v8808_v25, %v8808_v25 }
 0x114   : > { %8104 = vrcp.f32 %v935_v48  ;;  %v1540_v32 = vsel %vm977_vm3, %v1524_v30, 0.0 }
 0x115   : > { %v8806_v24 = vld [vmem:[#allocation2 + $0x18] sm:$0xff]  ;;  %v8891_v20 = vld [vmem:[#allocation2 + $0x28] sm:$0xff] }
 0x116   : > { %v1495_v27 = vsel %vm977_vm3, %v8806_v24, 0.0  ;;  %v1525_v29 = vmul.f32 %v8806_v24, %v8806_v24  ;;  %v1527_v30 = vmul.f32 %v8891_v20, %v8891_v20 }
 0x117   : > { %1496 = vadd.xlane.f32.xlu1 %v1495_v27  ;;  %1499 = vadd.xlane.f32.xlu0 %v1498_v28  ;;  %v1546_v27 = vsel %vm977_vm3, %v1526_v13, 0.0 }
 0x118   : > { %v1543_v31 = vsel %vm977_vm3, %v1525_v29, 0.0  ;;  %v1501_v29 = vsel %vm977_vm3, %v8891_v20, 0.0 }
 0x11b   : > { %1544 = vadd.xlane.f32.xlu1 %v1543_v31  ;;  %1541 = vadd.xlane.f32.xlu0 %v1540_v32 }
 0x121   : > { %v8105_v51 = vpop.eup %8104 }
 0x122   : > { %v938_v52 = vmul.f32 %v8105_v51, %v927_v44  ;;  %v7989_v44 = vld [vmem:[%s11426_s9 + $0x8] ss:$12 sps:$4 sm:$0xff]  }
 0x124   : > { %v939_v54 = vpack.c.bf16 %v938_v52, %v938_v52 }
 0x126   : > { %7572 = vmatmul.mubr.msk.bf16.vlgmr.msra.gmra.mxu1 %vm977_vm3, %v939_v54  ;;  %v6966_v54 = vld [vmem:[%s11474_s24 + $0x2] ss:$0 sm:$0xff] }
 0x127   : > { %7576 = vmatpush3.bf16.msra.mxu1 %v7970_v38  ;;  %7583 = vmatprep.mubr.msk.bf16.mxu1 %vm977_vm3, %v1038_v53  ;;  %v7981_v38 = vld [vmem:[%s11426_s9 + $0x38] ss:$12 sps:$4 sm:$0xff]  }
 0x128   : > { %7577 = vmatprep.subr.bf16.mxu1 %v7971_v55  ;;  %7596 = vmatpush3.bf16.msra.mxu0 %v7981_v38 }
 0x129   : > { %7597 = vmatprep.subr.bf16.mxu0 %v11453_v26 }
 0x12b   : > { %7578 = vmatpush3.bf16.msra.mxu1 %v7971_v55 }
 0x12c   : > { %7579 = vmatprep.subr.bf16.mxu1 %v7972_v56  ;;  %7598 = vmatpush3.bf16.msra.mxu0 %v7985_v41 }
 0x12d   : > { %7599 = vmatprep.subr.bf16.mxu0 %v11453_v26 }
 0x12f   : > { %7580 = vmatpush3.bf16.msra.mxu1 %v7972_v56 }
 0x130   : > { %7581 = vmatprep.subr.bf16.mxu1 %v7973_v57  ;;  %7600 = vmatpush3.bf16.msra.mxu0 %v7989_v44 }
 0x133   : > { %7582 = vmatpush3.bf16.msra.mxu1 %v7973_v57  ;;  %v1028_v57 = vld [vmem:[%s11476_s8] sm:$0xff] }
 0x134   : > { %1413 = vmatprep.subr.bf16.mxu1 %v7976_v33  ;;  %v1549_v33 = vsel %vm977_vm3, %v1527_v30, 0.0 }
 0x136   : > { %7584 = vmatmul.mubr.msk.bf16.vlgmr.msra.gmra.mxu1 %vm977_vm3, %v1039_v60 }
 0x137   : > { %1414 = vmatpush1.bf16.msra.mxu1 %v7974_v34  ;;  %1437 = vmatprep.mubr.bf16.mxu1 %v11455_v45 }
 0x138   : > { %1415 = vmatprep.subr.bf16.mxu1 %v7980_v36  ;;  %v8916_v36 = vld [vmem:[#allocation2 + $0x40] sm:$0xff] }
 0x13b   : > { %1416 = vmatpush1.bf16.msra.mxu1 %v7978_v37 }
 0x13c   : > { %1417 = vmatprep.subr.bf16.mxu1 %v7984_v39  ;;  %v1510_v39 = vsel %vm977_vm3, %v8916_v36, 0.0 }
 0x13f   : > { %1418 = vmatpush1.bf16.msra.mxu1 %v7982_v40  ;;  %v1530_v40 = vmul.f32 %v8916_v36, %v8916_v36 }
 0x140   : > { %1419 = vmatprep.subr.bf16.mxu1 %v7988_v42  ;;  %v8927_v42 = vld [vmem:[#allocation2 + $0x48] sm:$0xff] }
 0x141   : > { %v1513_v44 = vsel %vm977_vm3, %v8927_v42, 0.0 }
 0x143   : > { %1420 = vmatpush1.bf16.msra.mxu1 %v7986_v43  ;;  %v1558_v43 = vsel %vm977_vm3, %v1530_v40, 0.0 }
 0x1e6   : > { %v1015_v47 = vpop.f32.mrf.mxu1 }
 0x1e7   : > { %v1016_v48 = vadd.f32 %v6959_v46, %v1015_v47  ;;  %v1531_v46 = vmul.f32 %v8927_v42, %v8927_v42 }
 0x1e8   : > { %v7573_v49 = vpop.f32.mrf.mxu1 }
 0x1e9   : > { %v6965_v50 = vmul.f32 -1.442695, %v1016_v48  ;;  %v1561_v47 = vsel %vm977_vm3, %v1531_v46, 0.0 }
 0x1ea   : > { %v1018_v51 = vpop.f32.mrf.mxu1 }
 0x1eb   : > { %8106 = vpow2.f32 %v6965_v50  ;;  %v8939_v50 = vld [vmem:[#allocation2 + $0x58] sm:$0xff] }
 0x1ec   : > { %v7574_v52 = vpop.f32.mrf.mxu1  ;;  %v1519_v51 = vsel %vm977_vm3, %v8939_v50, 0.0 }
 0x1f6   : > { %v7585_v53 = vpop.f32.mrf.mxu1 }
 0x1f7   : > { %v1126_v55 = vadd.f32 %v7585_v53, %v6966_v54 }
 0x1f8   : > { %v8107_v56 = vpop.eup %8106  ;;  %v1117_v58 = vpop.f32.mrf.mxu1 }
 0x1f9   : > { %v1024_v59 = vadd.f32 1.0, %v8107_v56  ;;  %v1218_v60 = vadd.f32 %v1126_v55, %v1028_v57  ;;  %v1118_v61 = vadd.f32 %v6966_v54, %v1117_v58  ;;  %v7990_v56 = vld [vmem:[%s11428_s11 + $0x30] ss:$8 sps:$4 sm:$0xff]   ;;  %v7995_v58 = vld [vmem:[%s11428_s11 + $0x24] ss:$8 sps:$4 sm:$0xff]  }
 0x1fa   : > { %v7586_v62 = vpop.f32.mrf.mxu1 }
 0x1fb   : > { %8108 = vrcp.f32 %v1024_v59  ;;  %1220 = vst.msk [vmem:[#allocation2 + $0x30] sm:$0xff] %vm977_vm3, %v1218_v60  ;;  %v1208_v63 = vadd.f32 %v1118_v61, %v1028_v57  ;;  %v1129_v0 = vadd.f32 %v7586_v62, %v6966_v54  ;;  %v7992_v57 = vld [vmem:[%s11428_s11 + $0x34] ss:$8 sps:$4 sm:$0xff]   ;;  %v7993_v59 = vld [vmem:[%s11428_s11 + $0x20] ss:$8 sps:$4 sm:$0xff]   ;;  %v11457_v62 = vsub.s32 2, %v8682_v8 }
 0x1fc   : > { %v1120_v2 = vpop.f32.mrf.mxu1  ;;  %1795 = vmatprep.subr.bf16.mxu1 %v7992_v57  ;;  %v7998_v60 = vld [vmem:[%s11428_s11 + $0x14] ss:$8 sps:$4 sm:$0xff]   ;;  %v7996_v61 = vld [vmem:[%s11428_s11 + $0x10] ss:$8 sps:$4 sm:$0xff]  }
 0x1fd   : > { %1210 = vst.msk [vmem:[#allocation2] sm:$0xff] %vm977_vm3, %v1208_v63  ;;  %v1219_v3 = vadd.f32 %v1129_v0, %v1029_v1  ;;  %v1121_v4 = vadd.f32 %v6966_v54, %v1120_v2  ;;  %v1533_v54 = vmul.f32 %v8939_v50, %v8939_v50  ;;  %v7999_v63 = vld [vmem:[%s11428_s11] ss:$8 sps:$4 sm:$0xff]   ;;  %v8001_v0 = vld [vmem:[%s11428_s11 + $0x4] ss:$8 sps:$4 sm:$0xff]  }
 0x1ff   : > { %1221 = vst.msk [vmem:[#allocation2 + $0x38] sm:$0xff] %vm977_vm3, %v1219_v3  ;;  %v1209_v6 = vadd.f32 %v1121_v4, %v1029_v1  ;;  %v1567_v55 = vsel %vm977_vm3, %v1533_v54, 0.0  ;;  %v1321_v1 = vld [vmem:[%s11427_s10] sm:$0x7] }
 0x200   : > { %v1326_v2 = vrot.slane %v1321_v1, %v8711_v18  ;;  %v1334_v3 = vrot.slane %v1321_v1, %v11457_v62 }
 0x201   : > { %1211 = vst.msk [vmem:[#allocation2 + $0x8] sm:$0xff] %vm977_vm3, %v1209_v6 }
 0x202   : > { %v8897_v28 = vld [vmem:[#allocation2 + $0x30] sm:$0xff] }
 0x203   : > { %v1504_v31 = vsel %vm977_vm3, %v8897_v28, 0.0  ;;  %v1528_v32 = vmul.f32 %v8897_v28, %v8897_v28 }
 0x204   : > { %v8876_v7 = vld [vmem:[#allocation2] sm:$0xff] }
 0x205   : > { %v1486_v9 = vsel %vm977_vm3, %v8876_v7, 0.0  ;;  %v1522_v10 = vmul.f32 %v8876_v7, %v8876_v7  ;;  %v1552_v35 = vsel %vm977_vm3, %v1528_v32, 0.0 }
 0x206   : > { %1487 = vadd.xlane.f32.xlu0 %v1486_v9  ;;  %v8913_v34 = vld [vmem:[#allocation2 + $0x38] sm:$0xff]  ;;  %v1330_v9 = vrot.slane %v1321_v1, %v8695_v11 }
 0x207   : > { %v1534_v12 = vsel %vm977_vm3, %v1522_v10, 0.0  ;;  %v1507_v37 = vsel %vm977_vm3, %v8913_v34, 0.0  ;;  %v1529_v38 = vmul.f32 %v8913_v34, %v8913_v34 }
 0x208   : > { %v8109_v14 = vpop.eup %8108  ;;  %1535 = vadd.xlane.f32.xlu1 %v1534_v12  ;;  %v8885_v15 = vld [vmem:[#allocation2 + $0x8] sm:$0xff] }
 0x209   : > { %v1027_v16 = vmul.f32 %v8109_v14, %v1016_v48  ;;  %v1489_v17 = vsel %vm977_vm3, %v8885_v15, 0.0  ;;  %v1523_v19 = vmul.f32 %v8885_v15, %v8885_v15  ;;  %v1555_v41 = vsel %vm977_vm3, %v1529_v38, 0.0  ;;  %v8935_v48 = vld [vmem:[#allocation2 + $0x50] sm:$0xff] }
 0x20a   : > { %1490 = vadd.xlane.f32.xlu0 %v1489_v17  ;;  %v1516_v49 = vsel %vm977_vm3, %v8935_v48, 0.0  ;;  %v1532_v52 = vmul.f32 %v8935_v48, %v8935_v48 }
 0x20b   : > { %v8893_v21 = vpack.c.bf16 %v1027_v16, %v1027_v16  ;;  %v1537_v23 = vsel %vm977_vm3, %v1523_v19, 0.0 }
 0x20c   : > { %1538 = vadd.xlane.f32.xlu1 %v1537_v23  ;;  %v1564_v53 = vsel %vm977_vm3, %v1532_v52, 0.0 }
 0x20d   : > { %11477 = vst [vmem:[#allocation3_spill] sm:$0xff] %v8893_v21  ;;  %6988 = vmatmul.mubr.msk.bf16.vlgmr.msra.gmra.mxu1 %vm977_vm3, %v8893_v21  ;;  %7602 = vmatmul.mubr.msk.bf16.vlgmr.msra.gmra.mxu0 %vm977_vm3, %v8893_v21 }
 0x20e   : > { %1547 = vadd.xlane.f32.xlu0 %v1546_v27  ;;  %1819 = vmatprep.mubr.bf16.mxu1 %v11455_v45 }
 0x20f   : > { %1796 = vmatpush1.bf16.msra.mxu1 %v7990_v56 }
 0x210   : > { %1502 = vadd.xlane.f32.xlu1 %v1501_v29  ;;  %1797 = vmatprep.subr.bf16.mxu1 %v7995_v58 }
 0x212   : > { %1505 = vadd.xlane.f32.xlu0 %v1504_v31  ;;  %v1497_v31 = vpop.xlane.xlu1 %1496 }
 0x213   : > { %1798 = vmatpush1.bf16.msra.mxu1 %v7993_v59  ;;  %v8994_v52 = vmul.f32 0.015625, %v1497_v31 }
 0x214   : > { %1550 = vadd.xlane.f32.xlu1 %v1549_v33  ;;  %1799 = vmatprep.subr.bf16.mxu1 %v7998_v60 }
 0x215   : > { %v1597_v59 = vmul.f32 %v8994_v52, %v8994_v52 }
 0x216   : > { %1553 = vadd.xlane.f32.xlu0 %v1552_v35  ;;  %v1545_v32 = vpop.xlane.xlu1 %1544  ;;  %v1494_v35 = vpop.xlane.xlu0 %1493 }
 0x217   : > { %1800 = vmatpush1.bf16.msra.mxu1 %v7996_v61  ;;  %v1585_v60 = vmul.f32 0.015625, %v1545_v32 }
 0x218   : > { %1508 = vadd.xlane.f32.xlu1 %v1507_v37  ;;  %1801 = vmatprep.subr.bf16.mxu1 %v8001_v0 }
 0x21a   : > { %1511 = vadd.xlane.f32.xlu0 %v1510_v39  ;;  %v1500_v38 = vpop.xlane.xlu0 %1499 }
 0x21b   : > { %1802 = vmatpush1.bf16.msra.mxu1 %v7999_v63 }
 0x21c   : > { %1556 = vadd.xlane.f32.xlu1 %v1555_v41 }
 0x21e   : > { %1559 = vadd.xlane.f32.xlu0 %v1558_v43  ;;  %v1542_v40 = vpop.xlane.xlu0 %1541 }
 0x21f   : > { %v1584_v63 = vmul.f32 0.015625, %v1542_v40 }
 0x220   : > { %1514 = vadd.xlane.f32.xlu1 %v1513_v44 }
 0x224   : > { %1562 = vadd.xlane.f32.xlu1 %v1561_v47 }
 0x228   : > { %1517 = vadd.xlane.f32.xlu1 %v1516_v49 }
 0x22c   : > { %1520 = vadd.xlane.f32.xlu1 %v1519_v51 }
 0x230   : > { %1565 = vadd.xlane.f32.xlu1 %v1564_v53  ;;  %v8996_v53 = vmul.f32 0.015625, %v1494_v35 }
 0x232   : > { %v1596_v61 = vmul.f32 %v8996_v53, %v8996_v53 }
 0x234   : > { %1568 = vadd.xlane.f32.xlu1 %v1567_v55 }
 0x28f   : > { %v1488_v43 = vpop.xlane.xlu0 %1487 }
 0x290   : > { %v8990_v47 = vmul.f32 0.015625, %v1488_v43 }
 0x291   : > { %v1536_v33 = vpop.xlane.xlu1 %1535 }
 0x292   : > { %v1594_v54 = vmul.f32 %v8990_v47, %v8990_v47  ;;  %v1582_v55 = vmul.f32 0.015625, %v1536_v33 }
 0x293   : > { %v1491_v46 = vpop.xlane.xlu0 %1490 }
 0x294   : > { %v8992_v49 = vmul.f32 0.015625, %v1491_v46  ;;  %v1606_v0 = vsub.f32 %v1582_v55, %v1594_v54 }
 0x295   : > { %v1539_v37 = vpop.xlane.xlu1 %1538 }
 0x296   : > { %v1595_v56 = vmul.f32 %v8992_v49, %v8992_v49  ;;  %v1583_v57 = vmul.f32 0.015625, %v1539_v37 }
 0x297   : > { %v1548_v58 = vpop.xlane.xlu0 %1547 }
 0x299   : > { %v1503_v39 = vpop.xlane.xlu1 %1502 }
 0x29d   : > { %v1551_v41 = vpop.xlane.xlu1 %1550 }
 0x29e   : > { %v1587_v32 = vmul.f32 0.015625, %v1551_v41 }
 0x2a1   : > { %v1509_v44 = vpop.xlane.xlu1 %1508 }
 0x2a2   : > { %v9016_v40 = vmul.f32 0.015625, %v1509_v44 }
 0x2a4   : > { %v1601_v41 = vmul.f32 %v9016_v40, %v9016_v40 }
 0x2a5   : > { %v1557_v51 = vpop.xlane.xlu1 %1556 }
 0x2a9   : > { %v1515_v1 = vpop.xlane.xlu1 %1514 }
 0x2cd   : > { %v1439_v4 = vpop.f32.mrf.mxu1  ;;  %v1480_v6 = vpop.f32.mrf.mxu0 }
 0x2ce   : > { %v8981_v10 = vadd.f32 %v1439_v4, %v1326_v2  ;;  %v8983_v12 = vadd.f32 %v1480_v6, %v1334_v3  ;;  %v1607_v2 = vsub.f32 %v1583_v57, %v1595_v56  ;;  %v1609_v3 = vsub.f32 %v1585_v60, %v1597_v59  ;;  %v1506_v4 = vpop.xlane.xlu0 %1505 }
 0x2cf   : > { %v1441_v13 = vpop.f32.mrf.mxu1  ;;  %v7603_v14 = vpop.f32.mrf.mxu0  ;;  %v1608_v6 = vsub.f32 %v1584_v63, %v1596_v61  ;;  %v9014_v37 = vmul.f32 0.015625, %v1506_v4  ;;  %v1589_v57 = vmul.f32 0.015625, %v1557_v51  ;;  %v1621_v4 = vsub.f32 %v8806_v24, %v8994_v52 }
 0x2d0   : > { %v1666_v16 = vadd.f32 1.0, %v8981_v10  ;;  %v8986_v17 = vadd.f32 %v1441_v13, %v1330_v9  ;;  %v1630_v9 = vadd.f32 1e-06, %v1606_v0  ;;  %v1631_v13 = vadd.f32 1e-06, %v1607_v2 }
 0x2d1   : > { %v1443_v19 = vpop.f32.mrf.mxu1  ;;  %v1483_v23 = vpop.f32.mrf.mxu0  ;;  %v9006_v14 = vmul.f32 0.015625, %v1500_v38  ;;  %v1600_v54 = vmul.f32 %v9014_v37, %v9014_v37  ;;  %v1613_v61 = vsub.f32 %v1589_v57, %v1601_v41  ;;  %v1618_v0 = vsub.f32 %v8876_v7, %v8990_v47 }
 0x2d2   : > { %v1670_v27 = vrot.slane %v1666_v16, %v8711_v18  ;;  %v1563_v16 = vpop.xlane.xlu1 %1562  ;;  %v1633_v19 = vadd.f32 1e-06, %v1609_v3  ;;  %v9008_v23 = vmul.f32 0.015625, %v1503_v39  ;;  %8110 = vrsqrt.f32 %v1630_v9  ;;  %v1554_v33 = vpop.xlane.xlu0 %1553 }
 0x2d3   : > { %v1444_v29 = vpop.f32.mrf.mxu1  ;;  %v7604_v30 = vpop.f32.mrf.mxu0  ;;  %8112 = vrsqrt.f32 %v1631_v13  ;;  %v1588_v55 = vmul.f32 0.015625, %v1554_v33  ;;  %v1620_v3 = vsub.f32 %v8802_v22, %v8996_v53  ;;  %v1619_v51 = vsub.f32 %v8885_v15, %v8992_v49 }
 0x2d4   : > { %1672 = vrot.lane.b32.xlu0 %v1670_v27, %s11451_s0  ;;  %v1598_v27 = vmul.f32 %v9006_v14, %v9006_v14  ;;  %v1632_v29 = vadd.f32 1e-06, %v1608_v6  ;;  %v1586_v30 = vmul.f32 0.015625, %v1548_v58  ;;  %v1599_v31 = vmul.f32 %v9008_v23, %v9008_v23 }
 0x2d5   : > { %8114 = vrsqrt.f32 %v1633_v19  ;;  %v1612_v59 = vsub.f32 %v1588_v55, %v1600_v54  ;;  %v9032_v6 = vmul.f32 0.015625, %v1515_v1  ;;  %v1591_v53 = vmul.f32 0.015625, %v1563_v16 }
 0x2d6   : > { %8116 = vrsqrt.f32 %v1632_v29  ;;  %v1610_v35 = vsub.f32 %v1586_v30, %v1598_v27  ;;  %v1518_v38 = vpop.xlane.xlu1 %1517  ;;  %v1611_v39 = vsub.f32 %v1587_v32, %v1599_v31  ;;  %v1512_v43 = vpop.xlane.xlu0 %1511  ;;  %v1637_v30 = vadd.f32 1e-06, %v1613_v61 }
 0x2d7   : > { %v9024_v2 = vmul.f32 0.015625, %v1512_v43  ;;  %v1636_v13 = vadd.f32 1e-06, %v1612_v59  ;;  %v1603_v22 = vmul.f32 %v9032_v6, %v9032_v6  ;;  %v9042_v15 = vrot.slane %v8981_v10, %v8711_v18 }
 0x2d8   : > { %v1634_v46 = vadd.f32 1e-06, %v1610_v35  ;;  %v1635_v56 = vadd.f32 1e-06, %v1611_v39  ;;  %v9048_v43 = vmul.f32 0.015625, %v1518_v38 }
 0x2d9   : > { %v1602_v19 = vmul.f32 %v9024_v2, %v9024_v2  ;;  %v1615_v35 = vsub.f32 %v1591_v53, %v1603_v22 }
 0x2da   : > { %v1521_v58 = vpop.xlane.xlu1 %1520  ;;  %8118 = vrsqrt.f32 %v1634_v46  ;;  %v1560_v63 = vpop.xlane.xlu0 %1559  ;;  %v1604_v57 = vmul.f32 %v9048_v43, %v9048_v43 }
 0x2db   : > { %8120 = vrsqrt.f32 %v1635_v56  ;;  %v1590_v27 = vmul.f32 0.015625, %v1560_v63  ;;  %v9050_v54 = vmul.f32 0.015625, %v1521_v58  ;;  %v1639_v61 = vadd.f32 1e-06, %v1615_v35 }
 0x2dc   : > { %8122 = vrsqrt.f32 %v1636_v13 }
 0x2dd   : > { %v1614_v31 = vsub.f32 %v1590_v27, %v1602_v19  ;;  %8124 = vrsqrt.f32 %v1637_v30  ;;  %v1605_v63 = vmul.f32 %v9050_v54, %v9050_v54  ;;  %v1625_v30 = vsub.f32 %v8913_v34, %v9016_v40 }
 0x2de   : > { %v1566_v7 = vpop.xlane.xlu1 %1565  ;;  %v1626_v34 = vsub.f32 %v8916_v36, %v9024_v2  ;;  %v1628_v36 = vsub.f32 %v8935_v48, %v9048_v43 }
 0x2df   : > { %v8111_v60 = vpop.eup %8110  ;;  %v1638_v41 = vadd.f32 1e-06, %v1614_v31  ;;  %v1592_v59 = vmul.f32 0.015625, %v1566_v7 }
 0x2e0   : > { %v8113_v44 = vpop.eup %8112  ;;  %v1654_v47 = vmul.f32 %v8111_v60, %v1618_v0  ;;  %v1623_v0 = vsub.f32 %v8891_v20, %v9008_v23  ;;  %v1624_v23 = vsub.f32 %v8897_v28, %v9014_v37  ;;  %v1627_v37 = vsub.f32 %v8927_v42, %v9032_v6 }
 0x2e1   : > { %v1655_v24 = vmul.f32 %v8113_v44, %v1619_v51  ;;  %v1622_v44 = vsub.f32 %v8808_v25, %v9006_v14  ;;  %8126 = vrsqrt.f32 %v1638_v41  ;;  %v1616_v51 = vsub.f32 %v1592_v59, %v1604_v57 }
 0x2e2   : > { %v8115_v9 = vpop.eup %8114  ;;  %v1569_v46 = vpop.xlane.xlu1 %1568  ;;  %8128 = vrsqrt.f32 %v1639_v61  ;;  %v1629_v42 = vsub.f32 %v8939_v50, %v9050_v54  ;;  %v1717_v54 = vld [vmem:[%s11429_s12] sm:$0x3] }
 0x2e3   : > { %v8117_v29 = vpop.eup %8116  ;;  %v1657_v33 = vmul.f32 %v8115_v9, %v1621_v4  ;;  %v1593_v38 = vmul.f32 0.015625, %v1569_v46 }
 0x2e4   : > { %v1656_v32 = vmul.f32 %v8117_v29, %v1620_v3  ;;  %v1640_v29 = vadd.f32 1e-06, %v1616_v51 }
 0x2e5   : > { %v1617_v9 = vsub.f32 %v1593_v38, %v1605_v63 }
 0x2e6   : > { %8130 = vrsqrt.f32 %v1640_v29 }
 0x2e7   : > { %v8119_v60 = vpop.eup %8118  ;;  %v1641_v14 = vadd.f32 1e-06, %v1617_v9 }
 0x2e8   : > { %v8121_v58 = vpop.eup %8120  ;;  %v1658_v13 = vmul.f32 %v8119_v60, %v1622_v44 }
 0x2e9   : > { %v1659_v19 = vmul.f32 %v8121_v58, %v1623_v0  ;;  %v8123_v25 = vpop.eup %8122  ;;  %8132 = vrsqrt.f32 %v1641_v14  ;;  %v1722_v58 = vrot.slane %v1717_v54, %v8711_v18 }
 0x2ea   : > { %v8125_v20 = vpop.eup %8124 }
 0x346   : > { %v9038_v52 = vpop.permute.xlu0 %1672 }
 0x347   : > { %v1675_v49 = vmul.f32 %v9038_v52, %v1654_v47  ;;  %v1676_v1 = vmul.f32 %v9038_v52, %v1655_v24  ;;  %v1677_v55 = vmul.f32 %v9038_v52, %v1656_v32  ;;  %v1678_v56 = vmul.f32 %v9038_v52, %v1657_v33  ;;  %v8127_v33 = vpop.eup %8126 }
 0x348   : > { %v1679_v7 = vmul.f32 %v9038_v52, %v1658_v13  ;;  %v1680_v47 = vmul.f32 %v9038_v52, %v1659_v19  ;;  %v1660_v24 = vmul.f32 %v8123_v25, %v1624_v23  ;;  %v8129_v28 = vpop.eup %8128 }
 0x349   : > { %v1691_v39 = vadd.f32 %v9042_v15, %v1675_v49  ;;  %v1692_v16 = vadd.f32 %v9042_v15, %v1676_v1  ;;  %v1693_v3 = vadd.f32 %v9042_v15, %v1677_v55  ;;  %v1694_v4 = vadd.f32 %v9042_v15, %v1678_v56  ;;  %v8131_v56 = vpop.eup %8130 }
 0x34a   : > { %v1695_v22 = vadd.f32 %v9042_v15, %v1679_v7  ;;  %v1696_v53 = vadd.f32 %v9042_v15, %v1680_v47  ;;  %v1661_v49 = vmul.f32 %v8125_v20, %v1625_v30  ;;  %v1681_v31 = vmul.f32 %v9038_v52, %v1660_v24  ;;  %v8133_v41 = vpop.eup %8132 }
 0x34b   : > { %v1703_v10 = vpack.c.bf16 %v1692_v16, %v1691_v39  ;;  %v1704_v27 = vpack.c.bf16 %v1694_v4, %v1693_v3  ;;  %v1662_v39 = vmul.f32 %v8127_v33, %v1626_v34  ;;  %v1663_v16 = vmul.f32 %v8129_v28, %v1627_v37 }
 0x34c   : > { %v1705_v1 = vpack.c.bf16 %v1696_v53, %v1695_v22  ;;  %v1682_v32 = vmul.f32 %v9038_v52, %v1661_v49  ;;  %v1697_v40 = vadd.f32 %v9042_v15, %v1681_v31  ;;  %v1664_v57 = vmul.f32 %v8131_v56, %v1628_v36 }
 0x34d   : > { %6998 = vmatmul.mubr.msk.bf16.vlgmr.msra.gmra.mxu1 %vm977_vm3, %v1703_v10  ;;  %v1683_v10 = vmul.f32 %v9038_v52, %v1662_v39  ;;  %v1684_v55 = vmul.f32 %v9038_v52, %v1663_v16  ;;  %v1665_v59 = vmul.f32 %v8133_v41, %v1629_v42  ;;  %v1726_v16 = vrot.slane %v1717_v54, %v8695_v11 }
 0x34e   : > { %1829 = vmatprep.mubr.bf16.mxu1 %v11455_v45  ;;  %v1698_v35 = vadd.f32 %v9042_v15, %v1682_v32  ;;  %v1685_v61 = vmul.f32 %v9038_v52, %v1664_v57 }
 0x34f   : > { %v1699_v2 = vadd.f32 %v9042_v15, %v1683_v10  ;;  %v1700_v6 = vadd.f32 %v9042_v15, %v1684_v55  ;;  %v1686_v63 = vmul.f32 %v9038_v52, %v1665_v59 }
 0x350   : > { %v1706_v46 = vpack.c.bf16 %v1698_v35, %v1697_v40  ;;  %v1701_v48 = vadd.f32 %v9042_v15, %v1685_v61 }
 0x351   : > { %v1707_v60 = vpack.c.bf16 %v1700_v6, %v1699_v2  ;;  %v1702_v43 = vadd.f32 %v9042_v15, %v1686_v63 }
 0x353   : > { %v1708_v50 = vpack.c.bf16 %v1702_v43, %v1701_v48 }
 0x355   : > { %6999 = vmatmul.mubr.msk.bf16.gmra.mxu1 %vm977_vm3, %v1704_v27 }
 0x356   : > { %1839 = vmatprep.mubr.bf16.mxu1 %v11455_v45 }
 0x35d   : > { %7000 = vmatmul.mubr.msk.bf16.gmra.mxu1 %vm977_vm3, %v1705_v1 }
 0x35e   : > { %1849 = vmatprep.mubr.bf16.mxu1 %v11455_v45 }
 0x365   : > { %7001 = vmatmul.mubr.msk.bf16.gmra.mxu1 %vm977_vm3, %v1706_v46 }
 0x366   : > { %1859 = vmatprep.mubr.bf16.mxu1 %v11455_v45 }
 0x36d   : > { %7002 = vmatmul.mubr.msk.bf16.gmra.mxu1 %vm977_vm3, %v1707_v60 }
 0x36e   : > { %1869 = vmatprep.mubr.bf16.mxu1 %v11455_v45 }
 0x375   : > { %7003 = vmatmul.mubr.msk.bf16.gmra.mxu1 %vm977_vm3, %v1708_v50 }
 0x40d   : > { %v1821_v38 = vpop.f32.mrf.mxu1 }
 0x40e   : > { %v1822_v0 = vadd.f32 %v1821_v38, %v1722_v58 }
 0x40f   : > { %v9107_v44 = vpop.f32.mrf.mxu1 }
 0x411   : > { %v1825_v52 = vpop.f32.mrf.mxu1 }
 0x412   : > { %v1826_v3 = vadd.f32 %v1825_v52, %v1722_v58 }
 0x413   : > { %v9109_v4 = vpop.f32.mrf.mxu1 }
 0x414   : > { %v9111_v51 = vpack.c.bf16 %v1826_v3, %v1822_v0  ;;  %v1828_v3 = vadd.f32 %v9109_v4, %v1726_v16 }
 0x415   : > { %v1831_v15 = vpop.f32.mrf.mxu1 }
 0x416   : > { %7617 = vmatprep.mubr.msk.bf16.mxu0 %vm1904_vm4, %v9111_v51  ;;  %v1832_v57 = vadd.f32 %v1831_v15, %v1722_v58 }
 0x417   : > { %v9115_v9 = vpop.f32.mrf.mxu1 }
 0x418   : > { %v1834_v0 = vadd.f32 %v9115_v9, %v1726_v16 }
 0x419   : > { %v1835_v13 = vpop.f32.mrf.mxu1 }
 0x41a   : > { %v1836_v55 = vadd.f32 %v1835_v13, %v1722_v58  ;;  %v1824_v13 = vadd.f32 %v9107_v44, %v1726_v16 }
 0x41b   : > { %v1837_v19 = vpop.f32.mrf.mxu1 }
 0x41c   : > { %v9134_v61 = vpack.c.bf16 %v1836_v55, %v1832_v57  ;;  %v9170_v9 = vpack.c.bf16 %v1828_v3, %v1824_v13 }
 0x41d   : > { %v1841_v27 = vpop.f32.mrf.mxu1 }
 0x41e   : > { %v1842_v35 = vadd.f32 %v1841_v27, %v1722_v58 }
 0x41f   : > { %v1843_v7 = vpop.f32.mrf.mxu1 }
 0x420   : > { %v1844_v38 = vadd.f32 %v1843_v7, %v1726_v16 }
 0x421   : > { %v1845_v47 = vpop.f32.mrf.mxu1 }
 0x422   : > { %v1846_v34 = vadd.f32 %v1845_v47, %v1722_v58 }
 0x423   : > { %v1847_v29 = vpop.f32.mrf.mxu1 }
 0x424   : > { %v9126_v56 = vpack.c.bf16 %v1846_v34, %v1842_v35  ;;  %v1848_v50 = vadd.f32 %v1847_v29, %v1726_v16 }
 0x425   : > { %v1851_v25 = vpop.f32.mrf.mxu1 }
 0x426   : > { %v1852_v28 = vadd.f32 %v1851_v25, %v1722_v58  ;;  %v9151_v52 = vpack.c.bf16 %v1848_v50, %v1844_v38 }
 0x427   : > { %v1853_v14 = vpop.f32.mrf.mxu1 }
 0x428   : > { %v1854_v43 = vadd.f32 %v1853_v14, %v1726_v16 }
 0x429   : > { %v1855_v20 = vpop.f32.mrf.mxu1 }
 0x42a   : > { %v1856_v31 = vadd.f32 %v1855_v20, %v1722_v58 }
 0x42b   : > { %v1857_v23 = vpop.f32.mrf.mxu1 }
 0x42c   : > { %v9121_v40 = vpack.c.bf16 %v1856_v31, %v1852_v28  ;;  %v1858_v63 = vadd.f32 %v1857_v23, %v1726_v16 }
 0x42d   : > { %v1861_v30 = vpop.f32.mrf.mxu1 }
 0x42e   : > { %v1862_v24 = vadd.f32 %v1861_v30, %v1722_v58  ;;  %v9143_v54 = vpack.c.bf16 %v1858_v63, %v1854_v43 }
 0x42f   : > { %v1863_v22 = vpop.f32.mrf.mxu1 }
 0x430   : > { %v1864_v59 = vadd.f32 %v1863_v22, %v1726_v16 }
 0x431   : > { %v1865_v53 = vpop.f32.mrf.mxu1 }
 0x432   : > { %v1866_v49 = vadd.f32 %v1865_v53, %v1722_v58 }
 0x433   : > { %v1867_v1 = vpop.f32.mrf.mxu1 }
 0x434   : > { %v9117_v32 = vpack.c.bf16 %v1866_v49, %v1862_v24  ;;  %v1868_v36 = vadd.f32 %v1867_v1, %v1726_v16 }
 0x435   : > { %v1871_v33 = vpop.f32.mrf.mxu1 }
 0x436   : > { %1900 = vrot.lane.b32.xlu0 %v9117_v32, %s11451_s0  ;;  %v1872_v46 = vadd.f32 %v1871_v33, %v1722_v58  ;;  %v9136_v48 = vpack.c.bf16 %v1868_v36, %v1864_v59 }
 0x437   : > { %v1873_v37 = vpop.f32.mrf.mxu1 }
 0x438   : > { %v1874_v42 = vadd.f32 %v1873_v37, %v1726_v16 }
 0x439   : > { %v1875_v39 = vpop.f32.mrf.mxu1 }
 0x43a   : > { %v1876_v10 = vadd.f32 %v1875_v39, %v1722_v58  ;;  %1898 = vrot.lane.b32.xlu0 %v9121_v40, %s11451_s0  ;;  %v1838_v58 = vadd.f32 %v1837_v19, %v1726_v16 }
 0x43b   : > { %v1877_v41 = vpop.f32.mrf.mxu1 }
 0x43c   : > { %v9128_v2 = vpack.c.bf16 %v1876_v10, %v1872_v46  ;;  %v1878_v6 = vadd.f32 %v1877_v41, %v1726_v16  ;;  %v9161_v15 = vpack.c.bf16 %v1838_v58, %v1834_v0  ;;  %v8529_v41 = vmov -1e+30  }
 0x43e   : > { %v2190_v60 = vpack.c.bf16 %v1878_v6, %v1874_v42  ;;  %1902 = vrot.lane.b32.xlu1 %v9128_v2, %s11451_s0  ;;  %1896 = vrot.lane.b32.xlu0 %v9126_v56, %s11451_s0 }
 0x440   : > { %7629 = vmatprep.subr.bf16.mxu1 %v2190_v60 }
 0x441   : > { %7630 = vmatpush3.bf16.msra.mxu1 %v2190_v60 }
 0x442   : > { %7631 = vmatprep.subr.bf16.mxu1 %v9136_v48  ;;  %1894 = vrot.lane.b32.xlu1 %v9134_v61, %s11451_s0 }
 0x443   : > { %1892 = vrot.lane.b32.xlu0 %v9111_v51, %s11451_s0 }
 0x445   : > { %7632 = vmatpush3.bf16.msra.mxu1 %v9136_v48 }
 0x446   : > { %7633 = vmatprep.subr.bf16.mxu1 %v9143_v54  ;;  %2322 = vrot.lane.b32.xlu1 %v9128_v2, %s11449_s6 }
 0x447   : > { %2320 = vrot.lane.b32.xlu0 %v9117_v32, %s11449_s6 }
 0x449   : > { %7634 = vmatpush3.bf16.msra.mxu1 %v9143_v54 }
 0x44a   : > { %7635 = vmatprep.subr.bf16.mxu1 %v9151_v52  ;;  %2318 = vrot.lane.b32.xlu1 %v9121_v40, %s11449_s6 }
 0x44b   : > { %2316 = vrot.lane.b32.xlu0 %v9126_v56, %s11449_s6 }
 0x44d   : > { %7636 = vmatpush3.bf16.msra.mxu1 %v9151_v52 }
 0x44e   : > { %7637 = vmatprep.subr.bf16.mxu1 %v9161_v15  ;;  %2314 = vrot.lane.b32.xlu1 %v9134_v61, %s11449_s6 }
 0x44f   : > { %2312 = vrot.lane.b32.xlu0 %v9111_v51, %s11449_s6  ;;  %s11482_s6 = smov 32  }
 0x451   : > { %7638 = vmatpush3.bf16.msra.mxu1 %v9161_v15 }
 0x452   : > { %7639 = vmatprep.subr.bf16.mxu1 %v9170_v9  ;;  %2300 = vrot.lane.b32.xlu1 %v9111_v51, %s11447_s1 }
 0x453   : > { %2302 = vrot.lane.b32.xlu0 %v9134_v61, %s11447_s1 }
 0x455   : > { %7640 = vmatpush3.bf16.msra.mxu1 %v9170_v9 }
 0x456   : > { %2304 = vrot.lane.b32.xlu1 %v9126_v56, %s11447_s1 }
 0x457   : > { %2306 = vrot.lane.b32.xlu0 %v9121_v40, %s11447_s1 }
 0x45a   : > { %2308 = vrot.lane.b32.xlu1 %v9117_v32, %s11447_s1 }
 0x45b   : > { %2310 = vrot.lane.b32.xlu0 %v9128_v2, %s11447_s1 }
 0x45e   : > { %2619 = vrot.lane.b32.xlu1 %v2190_v60, %s11447_s1 }
 0x4a8   : > { %v1901_v51 = vpop.permute.xlu0 %1900 }
 0x4a9   : > { %v1936_v7 = vsel %vm1904_vm4, %v1901_v51, 0 }
 0x4ac   : > { %v1899_v47 = vpop.permute.xlu0 %1898 }
 0x4ad   : > { %v1933_v14 = vsel %vm1904_vm4, %v1899_v47, 0 }
 0x4b0   : > { %v1903_v44 = vpop.permute.xlu1 %1902  ;;  %v1897_v20 = vpop.permute.xlu0 %1896 }
 0x4b1   : > { %7910 = vmatprep.subr.msk.bf16.mxu0 %vm1904_vm4, %v1903_v44  ;;  %v1939_v4 = vsel %vm1904_vm4, %v1903_v44, 0  ;;  %v1930_v22 = vsel %vm1904_vm4, %v1897_v20, 0 }
 0x4b2   : > { %7606 = vmatpush3.bf16.xpose.msra.mxu0 %v1939_v4 }
 0x4b3   : > { %7911 = vmatprep.subr.msk.bf16.mxu0 %vm1904_vm4, %v1901_v51 }
 0x4b4   : > { %v1895_v19 = vpop.permute.xlu1 %1894 }
 0x4b5   : > { %v1927_v49 = vsel %vm1904_vm4, %v1895_v19, 0  ;;  %v1893_v1 = vpop.permute.xlu0 %1892 }
 0x4b6   : > { %v1924_v31 = vsel %vm1904_vm4, %v1893_v1, 0 }
 0x4b8   : > { %v2323_v27 = vpop.permute.xlu1 %2322 }
 0x4b9   : > { %v2358_v33 = vsel %vm1904_vm4, %v2323_v27, 0  ;;  %v2321_v28 = vpop.permute.xlu0 %2320 }
 0x4ba   : > { %7608 = vmatpush3.bf16.xpose.msra.mxu0 %v1936_v7  ;;  %v2355_v34 = vsel %vm1904_vm4, %v2321_v28, 0 }
 0x4bb   : > { %7912 = vmatprep.subr.msk.bf16.mxu0 %vm1904_vm4, %v1899_v47 }
 0x4bc   : > { %v2319_v29 = vpop.permute.xlu1 %2318 }
 0x4bd   : > { %v2352_v37 = vsel %vm1904_vm4, %v2319_v29, 0  ;;  %v2317_v35 = vpop.permute.xlu0 %2316 }
 0x4c0   : > { %v2315_v25 = vpop.permute.xlu1 %2314 }
 0x4c1   : > { %v2313_v39 = vpop.permute.xlu0 %2312 }
 0x4c2   : > { %7610 = vmatpush3.bf16.xpose.msra.mxu0 %v1933_v14  ;;  %v2343_v16 = vsel %vm1904_vm4, %v2313_v39, 0 }
 0x4c3   : > { %7913 = vmatprep.subr.msk.bf16.mxu0 %vm1904_vm4, %v1897_v20 }
 0x4c4   : > { %v2301_v23 = vpop.permute.xlu1 %2300 }
 0x4c5   : > { %v2303_v46 = vpop.permute.xlu0 %2302 }
 0x4c8   : > { %v2305_v30 = vpop.permute.xlu1 %2304 }
 0x4c9   : > { %v2307_v10 = vpop.permute.xlu0 %2306 }
 0x4ca   : > { %7612 = vmatpush3.bf16.xpose.msra.mxu0 %v1930_v22 }
 0x4cb   : > { %7914 = vmatprep.subr.msk.bf16.mxu0 %vm1904_vm4, %v1895_v19 }
 0x4cc   : > { %v2309_v53 = vpop.permute.xlu1 %2308 }
 0x4cd   : > { %v2311_v55 = vpop.permute.xlu0 %2310 }
 0x4d0   : > { %v9197_v24 = vpop.permute.xlu1 %2619 }
 0x4d1   : > { %7677 = vmatprep.subr.bf16.mxu1 %v9197_v24 }
 0x4d2   : > { %7614 = vmatpush3.bf16.xpose.msra.mxu0 %v1927_v49 }
 0x4d3   : > { %7915 = vmatprep.subr.msk.bf16.mxu0 %vm1904_vm4, %v1893_v1 }
 0x4da   : > { %7616 = vmatpush3.bf16.xpose.msra.mxu0 %v1924_v31 }
 0x4db   : > { %7916 = vmatprep.subr.msk.bf16.mxu0 %vm1904_vm4, %v2323_v27 }
 0x4e1   : > { %7618 = vmatmul.mubr.msk.bf16.vlgmr.msra.gmra.mxu0 %vm1904_vm4, %v9134_v61 }
 0x4e2   : > { %7621 = vmatprep.mubr.msk.bf16.mxu0 %vm1904_vm4, %v9126_v56  ;;  %7654 = vmatpush3.bf16.xpose.msra.mxu0 %v2358_v33  ;;  %v1254_v56 = vand.u32 127, %v747_v5 }
 0x4e3   : > { %7917 = vmatprep.subr.msk.bf16.mxu0 %vm1904_vm4, %v2321_v28 }
 0x4e4   : > { %vm1267_vm5 = vcmp.lt.s32.totalorder %v1254_v56, 48 }
 0x4e5   : > { %vm1268_vm7 = vmxor %vm8528_vm6, %vm1267_vm5 }
 0x4e6   : > { %vm1280_vm8 = vmxor %vm1268_vm7, %vm8528_vm6 }
 0x4e7   : > { %v9232_v36 = vsel %vm1280_vm8, 0.0, %v8529_v41  ;;  %vm1286_vm10 = vmxor %vm1267_vm5, %vm8528_vm6 }
 0x4e8   : > { %v9247_v0 = vsel %vm1286_vm10, 0.0, %v8529_v41 }
 0x4e9   : > { %7622 = vmatmul.mubr.msk.bf16.gmra.mxu0 %vm1904_vm4, %v9121_v40  ;;  %v2349_v40 = vsel %vm1904_vm4, %v2317_v35, 0 }
 0x4ea   : > { %7625 = vmatprep.mubr.msk.bf16.mxu0 %vm1904_vm4, %v9117_v32  ;;  %7656 = vmatpush3.bf16.xpose.msra.mxu0 %v2355_v34  ;;  %v2346_v32 = vsel %vm1904_vm4, %v2315_v25, 0 }
 0x4eb   : > { %7918 = vmatprep.subr.msk.bf16.mxu0 %vm1904_vm4, %v2319_v29 }
 0x4f1   : > { %7626 = vmatmul.mubr.msk.bf16.gmra.mxu0 %vm1904_vm4, %v9128_v2 }
 0x4f2   : > { %7658 = vmatpush3.bf16.xpose.msra.mxu0 %v2352_v37  ;;  %7665 = vmatprep.mubr.msk.bf16.mxu0 %vm1904_vm4, %v2301_v23 }
 0x4f3   : > { %7919 = vmatprep.subr.msk.bf16.mxu0 %vm1904_vm4, %v2317_v35 }
 0x4fa   : > { %7660 = vmatpush3.bf16.xpose.msra.mxu0 %v2349_v40 }
 0x4fb   : > { %7920 = vmatprep.subr.msk.bf16.mxu0 %vm1904_vm4, %v2315_v25 }
 0x502   : > { %7662 = vmatpush3.bf16.xpose.msra.mxu0 %v2346_v32 }
 0x503   : > { %7921 = vmatprep.subr.msk.bf16.mxu0 %vm1904_vm4, %v2313_v39 }
 0x50a   : > { %7664 = vmatpush3.bf16.xpose.msra.mxu0 %v2343_v16 }
 0x511   : > { %7666 = vmatmul.mubr.msk.bf16.vlgmr.msra.gmra.mxu0 %vm1904_vm4, %v2303_v46 }
 0x512   : > { %7669 = vmatprep.mubr.msk.bf16.mxu0 %vm1904_vm4, %v2305_v30 }
 0x519   : > { %7670 = vmatmul.mubr.msk.bf16.gmra.mxu0 %vm1904_vm4, %v2307_v10 }
 0x51a   : > { %7673 = vmatprep.mubr.msk.bf16.mxu0 %vm1904_vm4, %v2309_v53 }
 0x521   : > { %7674 = vmatmul.mubr.msk.bf16.gmra.mxu0 %vm1904_vm4, %v2311_v55 }
 0x5a1   : > { %v7619_v42 = vpop.f32.mrf.mxu0 }
 0x5a2   : > { %v2024_v2 = vmul.f32 0.17677669, %v7619_v42 }
 0x5a3   : > { %v1975_v6 = vpop.f32.mrf.mxu0 }
 0x5a4   : > { %v2022_v57 = vmul.f32 0.17677669, %v1975_v6  ;;  %v9235_v59 = vadd.f32 %v2024_v2, %v9232_v36 }
 0x5a5   : > { %v7620_v60 = vpop.f32.mrf.mxu0 }
 0x5a6   : > { %v2025_v61 = vmul.f32 0.17677669, %v7620_v60  ;;  %v2053_v5 = vsel %vm2046_vm9, %v9235_v59, -inf  ;;  %v9240_v63 = vadd.f32 %v2022_v57, %v9232_v36 }
 0x5a7   : > { %2054 = vmax.xlane.f32.xlu0 %v2053_v5  ;;  %v1978_v43 = vpop.f32.mrf.mxu0 }
 0x5a8   : > { %v2023_v50 = vmul.f32 0.17677669, %v1978_v43  ;;  %v2047_v38 = vsel %vm2046_vm9, %v9240_v63, -inf  ;;  %v9245_v58 = vadd.f32 %v2025_v61, %v9232_v36 }
 0x5a9   : > { %2048 = vmax.xlane.f32.xlu1 %v2047_v38  ;;  %v7623_v3 = vpop.f32.mrf.mxu0 }
 0x5aa   : > { %v2028_v13 = vmul.f32 0.17677669, %v7623_v3  ;;  %v2056_v44 = vsel %vm2046_vm9, %v9245_v58, -inf  ;;  %v9252_v4 = vadd.f32 %v2023_v50, %v9232_v36 }
 0x5ab   : > { %2057 = vmax.xlane.f32.xlu0 %v2056_v44  ;;  %v1991_v51 = vpop.f32.mrf.mxu0 }
 0x5ac   : > { %v2026_v19 = vmul.f32 0.17677669, %v1991_v51  ;;  %v9255_v27 = vadd.f32 %v2028_v13, %v9247_v0  ;;  %v2050_v29 = vsel %vm2046_vm9, %v9252_v4, -inf }
 0x5ad   : > { %v7624_v7 = vpop.f32.mrf.mxu0 }
 0x5ae   : > { %v2029_v47 = vmul.f32 0.17677669, %v7624_v7  ;;  %v2065_v25 = vsel %vm2046_vm9, %v9255_v27, -inf  ;;  %v9262_v14 = vadd.f32 %v2026_v19, %v9232_v36 }
 0x5af   : > { %2051 = vmax.xlane.f32.xlu0 %v2050_v29  ;;  %2066 = vmax.xlane.f32.xlu1 %v2065_v25  ;;  %v1994_v20 = vpop.f32.mrf.mxu0 }
 0x5b0   : > { %v2027_v23 = vmul.f32 0.17677669, %v1994_v20  ;;  %v9265_v30 = vadd.f32 %v2029_v47, %v9247_v0  ;;  %v2059_v49 = vsel %vm2046_vm9, %v9262_v14, -inf }
 0x5b1   : > { %v7627_v22 = vpop.f32.mrf.mxu0 }
 0x5b2   : > { %v2032_v53 = vmul.f32 0.17677669, %v7627_v22  ;;  %v2068_v1 = vsel %vm2046_vm9, %v9265_v30, -inf  ;;  %v9272_v31 = vadd.f32 %v2027_v23, %v9232_v36 }
 0x5b3   : > { %2060 = vmax.xlane.f32.xlu1 %v2059_v49  ;;  %2069 = vmax.xlane.f32.xlu0 %v2068_v1  ;;  %v2007_v33 = vpop.f32.mrf.mxu0 }
 0x5b4   : > { %v2030_v28 = vmul.f32 0.17677669, %v2007_v33  ;;  %v9275_v34 = vadd.f32 %v2032_v53, %v9247_v0  ;;  %v2062_v40 = vsel %vm2046_vm9, %v9272_v31, -inf }
 0x5b5   : > { %v7628_v37 = vpop.f32.mrf.mxu0 }
 0x5b6   : > { %v2033_v35 = vmul.f32 0.17677669, %v7628_v37  ;;  %v2077_v32 = vsel %vm2046_vm9, %v9275_v34, -inf  ;;  %v9282_v39 = vadd.f32 %v2030_v28, %v9247_v0 }
 0x5b7   : > { %2063 = vmax.xlane.f32.xlu0 %v2062_v40  ;;  %2078 = vmax.xlane.f32.xlu1 %v2077_v32  ;;  %v2010_v16 = vpop.f32.mrf.mxu0 }
 0x5b8   : > { %v2031_v46 = vmul.f32 0.17677669, %v2010_v16  ;;  %v9285_v10 = vadd.f32 %v2033_v35, %v9247_v0  ;;  %v2071_v55 = vsel %vm2046_vm9, %v9282_v39, -inf }
 0x5ba   : > { %v2080_v56 = vsel %vm2046_vm9, %v9285_v10, -inf  ;;  %v9292_v41 = vadd.f32 %v2031_v46, %v9247_v0 }
 0x5bb   : > { %2072 = vmax.xlane.f32.xlu1 %v2071_v55  ;;  %2081 = vmax.xlane.f32.xlu0 %v2080_v56 }
 0x5bc   : > { %v2074_v42 = vsel %vm2046_vm9, %v9292_v41, -inf }
 0x5bf   : > { %2075 = vmax.xlane.f32.xlu0 %v2074_v42 }
 0x5d1   : > { %v7667_v2 = vpop.f32.mrf.mxu0 }
 0x5d2   : > { %v2443_v6 = vmul.f32 0.17677669, %v7667_v2 }
 0x5d3   : > { %v2394_v57 = vpop.f32.mrf.mxu0 }
 0x5d4   : > { %v2441_v60 = vmul.f32 0.17677669, %v2394_v57  ;;  %v9297_v61 = vadd.f32 %v2443_v6, %v9232_v36 }
 0x5d5   : > { %v7668_v5 = vpop.f32.mrf.mxu0 }
 0x5d6   : > { %v2444_v43 = vmul.f32 0.17677669, %v7668_v5  ;;  %v2471_v50 = vsel %vm2046_vm9, %v9297_v61, -inf  ;;  %v9302_v38 = vadd.f32 %v2441_v60, %v9232_v36 }
 0x5d7   : > { %2472 = vmax.xlane.f32.xlu1 %v2471_v50  ;;  %v2397_v3 = vpop.f32.mrf.mxu0 }
 0x5d8   : > { %v2442_v13 = vmul.f32 0.17677669, %v2397_v3  ;;  %v9305_v44 = vadd.f32 %v2444_v43, %v9232_v36  ;;  %v2465_v51 = vsel %vm2046_vm9, %v9302_v38, -inf }
 0x5d9   : > { %v7671_v29 = vpop.f32.mrf.mxu0 }
 0x5da   : > { %v2474_v19 = vsel %vm2046_vm9, %v9305_v44, -inf  ;;  %v9312_v7 = vadd.f32 %v2442_v13, %v9232_v36  ;;  %v2447_v22 = vmul.f32 0.17677669, %v7671_v29 }
 0x5db   : > { %2466 = vmax.xlane.f32.xlu1 %v2465_v51  ;;  %2475 = vmax.xlane.f32.xlu0 %v2474_v19  ;;  %v2410_v25 = vpop.f32.mrf.mxu0 }
 0x5dc   : > { %v2468_v47 = vsel %vm2046_vm9, %v9312_v7, -inf  ;;  %v2445_v49 = vmul.f32 0.17677669, %v2410_v25  ;;  %v9321_v33 = vadd.f32 %v2447_v22, %v9247_v0 }
 0x5dd   : > { %v7672_v20 = vpop.f32.mrf.mxu0 }
 0x5de   : > { %v2448_v1 = vmul.f32 0.17677669, %v7672_v20  ;;  %v9324_v35 = vadd.f32 %v2445_v49, %v9232_v36 }
 0x5df   : > { %2469 = vmax.xlane.f32.xlu0 %v2468_v47  ;;  %v2413_v23 = vpop.f32.mrf.mxu0 }
 0x5e0   : > { %v2446_v37 = vmul.f32 0.17677669, %v2413_v23  ;;  %v9329_v40 = vadd.f32 %v2448_v1, %v9247_v0  ;;  %v2477_v16 = vsel %vm2046_vm9, %v9324_v35, -inf }
 0x5e1   : > { %v7675_v53 = vpop.f32.mrf.mxu0 }
 0x5e2   : > { %v9334_v46 = vadd.f32 %v2446_v37, %v9232_v36  ;;  %v2486_v42 = vsel %vm2046_vm9, %v9329_v40, -inf }
 0x5e3   : > { %v2426_v28 = vpop.f32.mrf.mxu0 }
 0x5e4   : > { %v2449_v55 = vmul.f32 0.17677669, %v2426_v28  ;;  %v2480_v57 = vsel %vm2046_vm9, %v9334_v46, -inf }
 0x5e5   : > { %v7676_v32 = vpop.f32.mrf.mxu0 }
 0x5e6   : > { %v2452_v56 = vmul.f32 0.17677669, %v7676_v32  ;;  %v9346_v43 = vadd.f32 %v2449_v55, %v9247_v0 }
 0x5e7   : > { %v2429_v6 = vpop.f32.mrf.mxu0 }
 0x5e8   : > { %v2450_v60 = vmul.f32 0.17677669, %v2429_v6  ;;  %v9349_v50 = vadd.f32 %v2452_v56, %v9247_v0  ;;  %v2489_v3 = vsel %vm2046_vm9, %v9346_v43, -inf }
 0x5ea   : > { %v2498_v13 = vsel %vm2046_vm9, %v9349_v50, -inf  ;;  %v9356_v51 = vadd.f32 %v2450_v60, %v9247_v0 }
 0x5ec   : > { %2615 = vrot.lane.b32.xlu1 %v9143_v54, %s11447_s1  ;;  %v2451_v54 = vmul.f32 0.17677669, %v7675_v53  ;;  %v2492_v19 = vsel %vm2046_vm9, %v9356_v51, -inf }
 0x5ee   : > { %v9339_v2 = vadd.f32 %v2451_v54, %v9247_v0 }
 0x5f0   : > { %v2495_v5 = vsel %vm2046_vm9, %v9339_v2, -inf }
 0x5f5   : > { %2617 = vrot.lane.b32.xlu0 %v9136_v48, %s11447_s1  ;;  %v2483_v48 = vsel %vm2046_vm9, %v9321_v33, -inf }
 0x610   : > { %2484 = vmax.xlane.f32.xlu1 %v2483_v48 }
 0x614   : > { %2478 = vmax.xlane.f32.xlu1 %v2477_v16  ;;  %2487 = vmax.xlane.f32.xlu0 %v2486_v42 }
 0x618   : > { %2496 = vmax.xlane.f32.xlu1 %v2495_v5  ;;  %2481 = vmax.xlane.f32.xlu0 %v2480_v57 }
 0x61c   : > { %2490 = vmax.xlane.f32.xlu1 %v2489_v3  ;;  %2499 = vmax.xlane.f32.xlu0 %v2498_v13 }
 0x620   : > { %2493 = vmax.xlane.f32.xlu0 %v2492_v19 }
 0x630   : > { %v2055_v47 = vpop.xlane.xlu0 %2054 }
 0x631   : > { %v2085_v29 = vsub.f32 %v9235_v59, %v2055_v47 }
 0x632   : > { %v2049_v25 = vpop.xlane.xlu1 %2048 }
 0x633   : > { %v2099_v20 = vmul.f32 1.442695, %v2085_v29  ;;  %v2083_v23 = vsub.f32 %v9240_v63, %v2049_v25 }
 0x634   : > { %v2058_v22 = vpop.xlane.xlu0 %2057 }
 0x635   : > { %8134 = vpow2.f32 %v2099_v20  ;;  %v2095_v53 = vmul.f32 1.442695, %v2083_v23  ;;  %v2086_v49 = vsub.f32 %v9245_v58, %v2058_v22 }
 0x637   : > { %8136 = vpow2.f32 %v2095_v53  ;;  %v2101_v1 = vmul.f32 1.442695, %v2086_v49 }
 0x638   : > { %v2052_v28 = vpop.xlane.xlu0 %2051  ;;  %v2067_v37 = vpop.xlane.xlu1 %2066 }
 0x639   : > { %8138 = vpow2.f32 %v2101_v1  ;;  %v2084_v54 = vsub.f32 %v9252_v4, %v2052_v28  ;;  %v2089_v48 = vsub.f32 %v9255_v27, %v2067_v37 }
 0x63b   : > { %v2097_v32 = vmul.f32 1.442695, %v2084_v54  ;;  %v2107_v59 = vmul.f32 1.442695, %v2089_v48 }
 0x63c   : > { %v2061_v16 = vpop.xlane.xlu1 %2060  ;;  %v2070_v55 = vpop.xlane.xlu0 %2069 }
 0x63d   : > { %8140 = vpow2.f32 %v2097_v32  ;;  %v2087_v63 = vsub.f32 %v9262_v14, %v2061_v16  ;;  %v2090_v56 = vsub.f32 %v9265_v30, %v2070_v55 }
 0x63e   : > { %8142 = vpow2.f32 %v2107_v59 }
 0x63f   : > { %v2103_v58 = vmul.f32 1.442695, %v2087_v63  ;;  %v2109_v42 = vmul.f32 1.442695, %v2090_v56 }
 0x640   : > { %v2064_v6 = vpop.xlane.xlu0 %2063  ;;  %v2079_v57 = vpop.xlane.xlu1 %2078 }
 0x641   : > { %8144 = vpow2.f32 %v2103_v58  ;;  %v2088_v60 = vsub.f32 %v9272_v31, %v2064_v6  ;;  %v2093_v4 = vsub.f32 %v9275_v34, %v2079_v57 }
 0x642   : > { %v9369_v27 = vpop.eup %8134  ;;  %8146 = vpow2.f32 %v2109_v42 }
 0x643   : > { %v2105_v5 = vmul.f32 1.442695, %v2088_v60  ;;  %v2115_v3 = vmul.f32 1.442695, %v2093_v4  ;;  %v2125_v14 = vsel %vm2046_vm9, %v9369_v27, 0.0 }
 0x644   : > { %v9373_v13 = vpop.eup %8136  ;;  %v2073_v30 = vpop.xlane.xlu1 %2072  ;;  %2126 = vadd.xlane.f32.xlu1 %v2125_v14 }
 0x645   : > { %v2082_v19 = vpop.xlane.xlu0 %2081  ;;  %8148 = vpow2.f32 %v2105_v5  ;;  %v2091_v47 = vsub.f32 %v9282_v39, %v2073_v30  ;;  %v2119_v20 = vsel %vm2046_vm9, %v9373_v13, 0.0 }
 0x646   : > { %v2094_v31 = vsub.f32 %v9285_v10, %v2082_v19  ;;  %v9377_v29 = vpop.eup %8138  ;;  %8150 = vpow2.f32 %v2115_v3 }
 0x647   : > { %v2111_v34 = vmul.f32 1.442695, %v2091_v47  ;;  %v2128_v23 = vsel %vm2046_vm9, %v9377_v29, 0.0 }
 0x648   : > { %v2117_v25 = vmul.f32 1.442695, %v2094_v31  ;;  %2120 = vadd.xlane.f32.xlu1 %v2119_v20  ;;  %2129 = vadd.xlane.f32.xlu0 %v2128_v23 }
 0x649   : > { %v2076_v22 = vpop.xlane.xlu0 %2075  ;;  %8152 = vpow2.f32 %v2111_v34 }
 0x64a   : > { %v2092_v53 = vsub.f32 %v9292_v41, %v2076_v22  ;;  %v9384_v39 = vpop.eup %8140  ;;  %8154 = vpow2.f32 %v2117_v25 }
 0x64b   : > { %v9386_v10 = vpop.eup %8142  ;;  %v2122_v1 = vsel %vm2046_vm9, %v9384_v39, 0.0 }
 0x64c   : > { %v2113_v49 = vmul.f32 1.442695, %v2092_v53  ;;  %v2137_v28 = vsel %vm2046_vm9, %v9386_v10, 0.0  ;;  %2123 = vadd.xlane.f32.xlu0 %v2122_v1 }
 0x64d   : > { %2138 = vadd.xlane.f32.xlu1 %v2137_v28 }
 0x64e   : > { %8156 = vpow2.f32 %v2113_v49  ;;  %v9392_v37 = vpop.eup %8144 }
 0x64f   : > { %v9394_v54 = vpop.eup %8146  ;;  %v2131_v41 = vsel %vm2046_vm9, %v9392_v37, 0.0 }
 0x650   : > { %v2140_v48 = vsel %vm2046_vm9, %v9394_v54, 0.0 }
 0x651   : > { %2132 = vadd.xlane.f32.xlu1 %v2131_v41  ;;  %2141 = vadd.xlane.f32.xlu0 %v2140_v48 }
 0x652   : > { %v9400_v32 = vpop.eup %8148 }
 0x653   : > { %v9402_v59 = vpop.eup %8150  ;;  %v2134_v16 = vsel %vm2046_vm9, %v9400_v32, 0.0 }
 0x654   : > { %v2149_v55 = vsel %vm2046_vm9, %v9402_v59, 0.0 }
 0x655   : > { %2150 = vadd.xlane.f32.xlu1 %v2149_v55  ;;  %2135 = vadd.xlane.f32.xlu0 %v2134_v16 }
 0x656   : > { %v9408_v63 = vpop.eup %8152 }
 0x657   : > { %v9410_v56 = vpop.eup %8154  ;;  %v2143_v58 = vsel %vm2046_vm9, %v9408_v63, 0.0 }
 0x658   : > { %v2152_v42 = vsel %vm2046_vm9, %v9410_v56, 0.0 }
 0x659   : > { %2144 = vadd.xlane.f32.xlu1 %v2143_v58  ;;  %2153 = vadd.xlane.f32.xlu0 %v2152_v42 }
 0x65b   : > { %v9416_v6 = vpop.eup %8156 }
 0x65c   : > { %v2146_v57 = vsel %vm2046_vm9, %v9416_v6, 0.0 }
 0x65d   : > { %2147 = vadd.xlane.f32.xlu0 %v2146_v57 }
 0x660   : > { %v2473_v60 = vpop.xlane.xlu1 %2472 }
 0x661   : > { %v2503_v4 = vsub.f32 %v9297_v61, %v2473_v60 }
 0x663   : > { %v2517_v5 = vmul.f32 1.442695, %v2503_v4 }
 0x664   : > { %v2467_v3 = vpop.xlane.xlu1 %2466  ;;  %v2476_v14 = vpop.xlane.xlu0 %2475 }
 0x665   : > { %8158 = vpow2.f32 %v2517_v5  ;;  %v2501_v30 = vsub.f32 %v9302_v38, %v2467_v3  ;;  %v2504_v19 = vsub.f32 %v9305_v44, %v2476_v14 }
 0x667   : > { %v2513_v47 = vmul.f32 1.442695, %v2501_v30  ;;  %v2519_v31 = vmul.f32 1.442695, %v2504_v19 }
 0x668   : > { %v2470_v34 = vpop.xlane.xlu0 %2469  ;;  %v9440_v1 = vpop.permute.xlu1 %2615 }
 0x669   : > { %8160 = vpow2.f32 %v2513_v47  ;;  %v2502_v25 = vsub.f32 %v9312_v7, %v2470_v34 }
 0x66a   : > { %8162 = vpow2.f32 %v2519_v31 }
 0x66b   : > { %v2515_v20 = vmul.f32 1.442695, %v2502_v25 }
 0x66c   : > { %v9442_v28 = vpop.permute.xlu0 %2617 }
 0x66d   : > { %8164 = vpow2.f32 %v2515_v20 }
 0x672   : > { %v9424_v23 = vpop.eup %8158 }
 0x673   : > { %v2543_v61 = vsel %vm2046_vm9, %v9424_v23, 0.0 }
 0x674   : > { %2544 = vadd.xlane.f32.xlu1 %v2543_v61 }
 0x676   : > { %v9428_v22 = vpop.eup %8160 }
 0x677   : > { %v9430_v38 = vpop.eup %8162  ;;  %v2537_v44 = vsel %vm2046_vm9, %v9428_v22, 0.0 }
 0x678   : > { %2538 = vadd.xlane.f32.xlu1 %v2537_v44  ;;  %v2546_v7 = vsel %vm2046_vm9, %v9430_v38, 0.0 }
 0x679   : > { %2547 = vadd.xlane.f32.xlu0 %v2546_v7 }
 0x67a   : > { %v9436_v53 = vpop.eup %8164 }
 0x67b   : > { %v2540_v49 = vsel %vm2046_vm9, %v9436_v53, 0.0 }
 0x67d   : > { %2541 = vadd.xlane.f32.xlu0 %v2540_v49 }
 0x699   : > { %v2485_v41 = vpop.xlane.xlu1 %2484 }
 0x69a   : > { %v2507_v48 = vsub.f32 %v9321_v33, %v2485_v41 }
 0x69c   : > { %v2525_v16 = vmul.f32 1.442695, %v2507_v48 }
 0x69d   : > { %v2479_v55 = vpop.xlane.xlu1 %2478  ;;  %v2488_v58 = vpop.xlane.xlu0 %2487 }
 0x69e   : > { %8166 = vpow2.f32 %v2525_v16  ;;  %v2505_v42 = vsub.f32 %v9324_v35, %v2479_v55  ;;  %v2508_v57 = vsub.f32 %v9329_v40, %v2488_v58 }
 0x6a0   : > { %v2521_v60 = vmul.f32 1.442695, %v2505_v42  ;;  %v2527_v4 = vmul.f32 1.442695, %v2508_v57 }
 0x6a1   : > { %v2482_v5 = vpop.xlane.xlu0 %2481  ;;  %v2497_v34 = vpop.xlane.xlu1 %2496 }
 0x6a2   : > { %8168 = vpow2.f32 %v2521_v60  ;;  %v2506_v3 = vsub.f32 %v9334_v46, %v2482_v5  ;;  %v2511_v41 = vsub.f32 %v9339_v2, %v2497_v34 }
 0x6a3   : > { %8170 = vpow2.f32 %v2527_v4 }
 0x6a4   : > { %v2523_v14 = vmul.f32 1.442695, %v2506_v3  ;;  %v2533_v55 = vmul.f32 1.442695, %v2511_v41 }
 0x6a5   : > { %v2500_v25 = vpop.xlane.xlu0 %2499  ;;  %v2491_v20 = vpop.xlane.xlu1 %2490 }
 0x6a6   : > { %8172 = vpow2.f32 %v2523_v14  ;;  %v2509_v48 = vsub.f32 %v9346_v43, %v2491_v20 }
 0x6a9   : > { %v2494_v61 = vpop.xlane.xlu0 %2493 }
 0x6aa   : > { %v2510_v16 = vsub.f32 %v9356_v51, %v2494_v61 }
 0x6ab   : > { %v9448_v30 = vpop.eup %8166 }
 0x6ac   : > { %v2555_v33 = vsel %vm2046_vm9, %v9448_v30, 0.0  ;;  %v2531_v42 = vmul.f32 1.442695, %v2510_v16 }
 0x6ad   : > { %2556 = vadd.xlane.f32.xlu0 %v2555_v33 }
 0x6af   : > { %v9452_v19 = vpop.eup %8168 }
 0x6b0   : > { %v2549_v35 = vsel %vm2046_vm9, %v9452_v19, 0.0  ;;  %v9456_v40 = vpop.eup %8170 }
 0x6b1   : > { %2550 = vadd.xlane.f32.xlu1 %v2549_v35  ;;  %v2558_v46 = vsel %vm2046_vm9, %v9456_v40, 0.0 }
 0x6b3   : > { %v9458_v47 = vpop.eup %8172 }
 0x6b4   : > { %v2552_v31 = vsel %vm2046_vm9, %v9458_v47, 0.0 }
 0x6b5   : > { %2559 = vadd.xlane.f32.xlu1 %v2558_v46  ;;  %2553 = vadd.xlane.f32.xlu0 %v2552_v31 }
 0x6c6   : > { %2611 = vrot.lane.b32.xlu1 %v9161_v15, %s11447_s1 }
 0x6ca   : > { %2609 = vrot.lane.b32.xlu1 %v9170_v9, %s11447_s1  ;;  %v2529_v9 = vmul.f32 1.442695, %v2509_v48 }
 0x6cb   : > { %2613 = vrot.lane.b32.xlu0 %v9151_v52, %s11447_s1  ;;  %v2512_v52 = vsub.f32 %v9349_v50, %v2500_v25  ;;  %s11483_s1 = smov 96  }
 0x6cd   : > { %v2127_v44 = vpop.xlane.xlu1 %2126  ;;  %v2535_v2 = vmul.f32 1.442695, %v2512_v52 }
 0x6d1   : > { %v2121_v7 = vpop.xlane.xlu1 %2120  ;;  %v2130_v49 = vpop.xlane.xlu0 %2129 }
 0x6d2   : > { %8174 = vrcp.f32 %v2130_v49 }
 0x6d3   : > { %8176 = vrcp.f32 %v2121_v7 }
 0x6d4   : > { %8178 = vrcp.f32 %v2127_v44 }
 0x6d5   : > { %v2124_v15 = vpop.xlane.xlu0 %2123 }
 0x6d6   : > { %v2139_v58 = vpop.xlane.xlu1 %2138  ;;  %8180 = vrcp.f32 %v2124_v15 }
 0x6d7   : > { %8182 = vpow2.f32 %v2533_v55 }
 0x6d8   : > { %8184 = vpow2.f32 %v2529_v9 }
 0x6d9   : > { %8186 = vpow2.f32 %v2531_v42 }
 0x6da   : > { %v2133_v57 = vpop.xlane.xlu1 %2132  ;;  %v2142_v60 = vpop.xlane.xlu0 %2141 }
 0x6db   : > { %8188 = vrcp.f32 %v2142_v60 }
 0x6dc   : > { %8190 = vrcp.f32 %v2133_v57 }
 0x6dd   : > { %8192 = vrcp.f32 %v2139_v58 }
 0x6de   : > { %v2151_v43 = vpop.xlane.xlu1 %2150  ;;  %v2136_v51 = vpop.xlane.xlu0 %2135 }
 0x6df   : > { %v8175_v4 = vpop.eup %8174  ;;  %8194 = vrcp.f32 %v2136_v51 }
 0x6e0   : > { %v8177_v5 = vpop.eup %8176  ;;  %8196 = vpow2.f32 %v2535_v2  ;;  %v2170_v50 = vmul.f32 %v8175_v4, %v9377_v29 }
 0x6e1   : > { %v8179_v3 = vpop.eup %8178  ;;  %v2167_v46 = vmul.f32 %v8177_v5, %v9373_v13 }
 0x6e2   : > { %v2145_v14 = vpop.xlane.xlu1 %2144  ;;  %v2154_v33 = vpop.xlane.xlu0 %2153  ;;  %v2169_v34 = vmul.f32 %v8179_v3, %v9369_v27 }
 0x6e3   : > { %v8181_v35 = vpop.eup %8180  ;;  %8198 = vrcp.f32 %v2145_v14 }
 0x6e4   : > { %v2168_v31 = vmul.f32 %v8181_v35, %v9384_v39  ;;  %8200 = vrcp.f32 %v2154_v33  ;;  %v9478_v61 = vpop.eup %8182  ;;  %v2180_v44 = vpack.c.bf16 %v2170_v50, %v2169_v34  ;;  %v8003_v50 = vld [vmem:[%s11430_s13] sm:$0xff]  }
 0x6e5   : > { %8202 = vrcp.f32 %v2151_v43  ;;  %v9480_v7 = vpop.eup %8184  ;;  %v2567_v27 = vsel %vm2046_vm9, %v9478_v61, 0.0 }
 0x6e6   : > { %v2148_v25 = vpop.xlane.xlu0 %2147  ;;  %v2179_v20 = vpack.c.bf16 %v2168_v31, %v2167_v46  ;;  %v9483_v29 = vpop.eup %8186  ;;  %v2561_v48 = vsel %vm2046_vm9, %v9480_v7, 0.0 }
 0x6e7   : > { %8204 = vrcp.f32 %v2148_v25 }
 0x6e8   : > { %7641 = vmatprep.mubr.msk.bf16.mxu1 %vm2046_vm9, %v2179_v20  ;;  %v8189_v13 = vpop.eup %8188 }
 0x6e9   : > { %7642 = vmatmul.mubr.msk.bf16.vlgmr.msra.gmra.mxu1 %vm2046_vm9, %v2180_v44  ;;  %v8191_v39 = vpop.eup %8190  ;;  %v2174_v16 = vmul.f32 %v8189_v13, %v9394_v54 }
 0x6ea   : > { %7678 = vmatpush3.bf16.msra.mxu1 %v9197_v24  ;;  %2568 = vadd.xlane.f32.xlu0 %v2567_v27  ;;  %v8193_v49 = vpop.eup %8192  ;;  %v2564_v24 = vsel %vm2046_vm9, %v9483_v29, 0.0  ;;  %v2171_v15 = vmul.f32 %v8191_v39, %v9392_v37 }
 0x6eb   : > { %7679 = vmatprep.subr.bf16.mxu1 %v9442_v28  ;;  %v2173_v9 = vmul.f32 %v8193_v49, %v9386_v10 }
 0x6ec   : > { %v8195_v41 = vpop.eup %8194 }
 0x6ed   : > { %v2172_v55 = vmul.f32 %v8195_v41, %v9400_v32  ;;  %v9498_v58 = vpop.eup %8196  ;;  %v2182_v54 = vpack.c.bf16 %v2174_v16, %v2173_v9 }
 0x6ee   : > { %7680 = vmatpush3.bf16.msra.mxu1 %v9442_v28  ;;  %2562 = vadd.xlane.f32.xlu1 %v2561_v48  ;;  %v2570_v37 = vsel %vm2046_vm9, %v9498_v58, 0.0 }
 0x6ef   : > { %2565 = vadd.xlane.f32.xlu0 %v2564_v24  ;;  %7681 = vmatprep.subr.bf16.mxu1 %v9440_v1  ;;  %v2181_v42 = vpack.c.bf16 %v2172_v55, %v2171_v15 }
 0x6f0   : > { %v8199_v52 = vpop.eup %8198 }
 0x6f1   : > { %v8201_v57 = vpop.eup %8200  ;;  %7645 = vmatprep.mubr.msk.bf16.mxu1 %vm2046_vm9, %v2181_v42  ;;  %v2175_v60 = vmul.f32 %v8199_v52, %v9408_v63 }
 0x6f2   : > { %7682 = vmatpush3.bf16.msra.mxu1 %v9440_v1  ;;  %v8203_v28 = vpop.eup %8202  ;;  %v2178_v2 = vmul.f32 %v8201_v57, %v9410_v56 }
 0x6f3   : > { %7646 = vmatmul.mubr.msk.bf16.gmra.mxu1 %vm2046_vm9, %v2182_v54  ;;  %2571 = vadd.xlane.f32.xlu0 %v2570_v37  ;;  %v2177_v51 = vmul.f32 %v8203_v28, %v9402_v59  ;;  %v8002_v59 = vld [vmem:[%s11430_s13 + $0x8] sm:$0xff]  }
 0x6f4   : > { %v8205_v32 = vpop.eup %8204  ;;  %7717 = vmatprep.subr.bf16.mxu0 %v8002_v59 }
 0x6f5   : > { %v2176_v10 = vmul.f32 %v8205_v32, %v9416_v6  ;;  %v2184_v1 = vpack.c.bf16 %v2178_v2, %v2177_v51  ;;  %7718 = vmatpush3.bf16.msra.mxu0 %v8002_v59  ;;  %v8004_v51 = vld [vmem:[%s11430_s13 + $0x18] sm:$0xff]  }
 0x6f6   : > { %7719 = vmatprep.subr.bf16.mxu0 %v8003_v50 }
 0x6f7   : > { %v2183_v43 = vpack.c.bf16 %v2176_v10, %v2175_v60 }
 0x6f9   : > { %7649 = vmatprep.mubr.msk.bf16.mxu1 %vm2046_vm9, %v2183_v43  ;;  %7720 = vmatpush3.bf16.msra.mxu0 %v8003_v50 }
 0x6fb   : > { %7650 = vmatmul.mubr.msk.bf16.gmra.mxu1 %vm2046_vm9, %v2184_v1 }
 0x6fd   : > { %v2545_v4 = vpop.xlane.xlu1 %2544 }
 0x701   : > { %v2539_v5 = vpop.xlane.xlu1 %2538 }
 0x702   : > { %v2548_v3 = vpop.xlane.xlu0 %2547  ;;  %8206 = vrcp.f32 %v2539_v5 }
 0x706   : > { %v2542_v14 = vpop.xlane.xlu0 %2541 }
 0x707   : > { %8208 = vrcp.f32 %v2542_v14 }
 0x708   : > { %8210 = vrcp.f32 %v2548_v3 }
 0x709   : > { %8212 = vrcp.f32 %v2545_v4 }
 0x70f   : > { %v8207_v33 = vpop.eup %8206 }
 0x710   : > { %v2585_v6 = vmul.f32 %v8207_v33, %v9428_v22 }
 0x714   : > { %v8209_v63 = vpop.eup %8208 }
 0x715   : > { %v2586_v56 = vmul.f32 %v8209_v63, %v9436_v53  ;;  %v8211_v20 = vpop.eup %8210 }
 0x716   : > { %v8213_v44 = vpop.eup %8212  ;;  %v2588_v27 = vmul.f32 %v8211_v20, %v9430_v38 }
 0x717   : > { %v2597_v35 = vpack.c.bf16 %v2586_v56, %v2585_v6  ;;  %v2587_v49 = vmul.f32 %v8213_v44, %v9424_v23 }
 0x719   : > { %7689 = vmatprep.mubr.msk.bf16.mxu1 %vm2046_vm9, %v2597_v35  ;;  %v2598_v48 = vpack.c.bf16 %v2588_v27, %v2587_v49 }
 0x736   : > { %v2557_v22 = vpop.xlane.xlu0 %2556 }
 0x73a   : > { %v2551_v46 = vpop.xlane.xlu1 %2550 }
 0x73b   : > { %8214 = vrcp.f32 %v2551_v46 }
 0x73e   : > { %v2560_v53 = vpop.xlane.xlu1 %2559  ;;  %v2554_v31 = vpop.xlane.xlu0 %2553 }
 0x73f   : > { %8216 = vrcp.f32 %v2554_v31 }
 0x740   : > { %8218 = vrcp.f32 %v2560_v53 }
 0x741   : > { %8220 = vrcp.f32 %v2557_v22 }
 0x742   : > { %v2612_v34 = vpop.permute.xlu1 %2611  ;;  %v2614_v25 = vpop.permute.xlu0 %2613 }
 0x743   : > { %7683 = vmatprep.subr.bf16.mxu1 %v2614_v25 }
 0x744   : > { %7684 = vmatpush3.bf16.msra.mxu1 %v2614_v25 }
 0x745   : > { %7685 = vmatprep.subr.bf16.mxu1 %v2612_v34 }
 0x746   : > { %v2610_v13 = vpop.permute.xlu1 %2609 }
 0x748   : > { %7686 = vmatpush3.bf16.msra.mxu1 %v2612_v34  ;;  %v8215_v39 = vpop.eup %8214 }
 0x749   : > { %7687 = vmatprep.subr.bf16.mxu1 %v2610_v13  ;;  %v2589_v16 = vmul.f32 %v8215_v39, %v9452_v19 }
 0x74c   : > { %v8217_v41 = vpop.eup %8216  ;;  %7688 = vmatpush3.bf16.msra.mxu1 %v2610_v13 }
 0x74d   : > { %v2590_v24 = vmul.f32 %v8217_v41, %v9458_v47  ;;  %v8219_v15 = vpop.eup %8218  ;;  %7701 = vmatprep.subr.bf16.mxu1 %v8004_v51 }
 0x74e   : > { %v8221_v9 = vpop.eup %8220  ;;  %v2592_v38 = vmul.f32 %v8219_v15, %v9456_v40 }
 0x74f   : > { %7690 = vmatmul.mubr.msk.bf16.vlgmr.msra.gmra.mxu1 %vm2046_vm9, %v2598_v48  ;;  %v2599_v55 = vpack.c.bf16 %v2590_v24, %v2589_v16  ;;  %v2591_v42 = vmul.f32 %v8221_v9, %v9448_v30 }
 0x750   : > { %7702 = vmatpush3.bf16.msra.mxu1 %v8004_v51 }
 0x751   : > { %7693 = vmatprep.mubr.msk.bf16.mxu1 %vm2046_vm9, %v2599_v55  ;;  %v2600_v52 = vpack.c.bf16 %v2592_v38, %v2591_v42 }
 0x757   : > { %7694 = vmatmul.mubr.msk.bf16.gmra.mxu1 %vm2046_vm9, %v2600_v52 }
 0x773   : > { %v2569_v23 = vpop.xlane.xlu0 %2568 }
 0x777   : > { %v2563_v54 = vpop.xlane.xlu1 %2562 }
 0x778   : > { %8222 = vrcp.f32 %v2563_v54  ;;  %v2566_v19 = vpop.xlane.xlu0 %2565 }
 0x779   : > { %8224 = vrcp.f32 %v2566_v19 }
 0x77a   : > { %8226 = vrcp.f32 %v2569_v23 }
 0x77c   : > { %v2572_v47 = vpop.xlane.xlu0 %2571 }
 0x77d   : > { %8228 = vrcp.f32 %v2572_v47  ;;  %v9559_v47 = vld [vmem:[%s11431_s14] ss:$0 sm:$0xff] }
 0x785   : > { %v8223_v57 = vpop.eup %8222 }
 0x786   : > { %v8225_v37 = vpop.eup %8224  ;;  %v2593_v28 = vmul.f32 %v8223_v57, %v9480_v7  ;;  %v8005_v7 = vld [vmem:[%s11430_s13 + $0x10] sm:$0xff]  }
 0x787   : > { %v2594_v32 = vmul.f32 %v8225_v37, %v9483_v29  ;;  %v8227_v40 = vpop.eup %8226  ;;  %7703 = vmatprep.subr.bf16.mxu1 %v8005_v7 }
 0x788   : > { %v2595_v10 = vmul.f32 %v8227_v40, %v9478_v61  ;;  %7704 = vmatpush3.bf16.msra.mxu1 %v8005_v7 }
 0x789   : > { %v2601_v60 = vpack.c.bf16 %v2594_v32, %v2593_v28  ;;  %v9563_v32 = vrot.slane %v8986_v17, %v8711_v18 }
 0x78a   : > { %v8229_v30 = vpop.eup %8228 }
 0x78b   : > { %7697 = vmatprep.mubr.msk.bf16.mxu1 %vm2046_vm9, %v2601_v60  ;;  %v2596_v2 = vmul.f32 %v8229_v30, %v9498_v58 }
 0x78d   : > { %v2602_v43 = vpack.c.bf16 %v2596_v2, %v2595_v10 }
 0x78f   : > { %7698 = vmatmul.mubr.msk.bf16.gmra.mxu1 %vm2046_vm9, %v2602_v43 }
 0x7a9   : > { %v7643_v29 = vpop.f32.mrf.mxu1 }
 0x7ab   : > { %v2243_v1 = vpop.f32.mrf.mxu1 }
 0x7ad   : > { %v7644_v61 = vpop.f32.mrf.mxu1 }
 0x7ae   : > { %v2291_v5 = vpack.c.bf16 %v7644_v61, %v7643_v29  ;;  %v8502_v29 = vld [vmem:[#allocation2 + $0x10] sm:$0xff] }
 0x7af   : > { %v2246_v4 = vpop.f32.mrf.mxu1 }
 0x7b0   : > { %v2290_v58 = vpack.c.bf16 %v2246_v4, %v2243_v1 }
 0x7b2   : > { %7721 = vmatprep.mubr.msk.bf16.mxu0 %vm1904_vm4, %v2290_v58 }
 0x7b3   : > { %v7647_v3 = vpop.f32.mrf.mxu1  ;;  %7722 = vmatmul.mubr.msk.bf16.vlgmr.msra.gmra.mxu0 %vm1904_vm4, %v2291_v5 }
 0x7b5   : > { %v2259_v14 = vpop.f32.mrf.mxu1 }
 0x7b7   : > { %v7648_v33 = vpop.f32.mrf.mxu1 }
 0x7b8   : > { %v2293_v56 = vpack.c.bf16 %v7648_v33, %v7647_v3 }
 0x7b9   : > { %v2262_v63 = vpop.f32.mrf.mxu1 }
 0x7ba   : > { %v2292_v6 = vpack.c.bf16 %v2262_v63, %v2259_v14  ;;  %v8503_v63 = vld [vmem:[#allocation2] sm:$0xff] }
 0x7bb   : > { %v7651_v35 = vpop.f32.mrf.mxu1 }
 0x7bc   : > { %7725 = vmatprep.mubr.msk.bf16.mxu0 %vm1904_vm4, %v2292_v6 }
 0x7bd   : > { %v2275_v59 = vpop.f32.mrf.mxu1  ;;  %7726 = vmatmul.mubr.msk.bf16.gmra.mxu0 %vm1904_vm4, %v2293_v56 }
 0x7bf   : > { %v7652_v50 = vpop.f32.mrf.mxu1 }
 0x7c0   : > { %v2295_v53 = vpack.c.bf16 %v7652_v50, %v7651_v35 }
 0x7c1   : > { %v2278_v46 = vpop.f32.mrf.mxu1 }
 0x7c2   : > { %v2294_v22 = vpack.c.bf16 %v2278_v46, %v2275_v59  ;;  %v8504_v59 = vld [vmem:[#allocation2 + $0x18] sm:$0xff] }
 0x7c4   : > { %7729 = vmatprep.mubr.msk.bf16.mxu0 %vm1904_vm4, %v2294_v22 }
 0x7c5   : > { %7730 = vmatmul.mubr.msk.bf16.gmra.mxu0 %vm1904_vm4, %v2295_v53 }
 0x80f   : > { %v7691_v31 = vpop.f32.mrf.mxu1 }
 0x811   : > { %v2679_v34 = vpop.f32.mrf.mxu1 }
 0x813   : > { %v7692_v25 = vpop.f32.mrf.mxu1 }
 0x814   : > { %v2727_v13 = vpack.c.bf16 %v7692_v25, %v7691_v31 }
 0x815   : > { %v2682_v20 = vpop.f32.mrf.mxu1 }
 0x816   : > { %v2726_v44 = vpack.c.bf16 %v2682_v20, %v2679_v34  ;;  %v8505_v20 = vld [vmem:[#allocation2 + $0x8] sm:$0xff] }
 0x817   : > { %v7695_v27 = vpop.f32.mrf.mxu1 }
 0x818   : > { %7705 = vmatprep.mubr.msk.bf16.mxu1 %vm1904_vm4, %v2726_v44 }
 0x819   : > { %v2695_v39 = vpop.f32.mrf.mxu1  ;;  %7706 = vmatmul.mubr.msk.bf16.vlgmr.msra.gmra.mxu1 %vm1904_vm4, %v2727_v13 }
 0x81b   : > { %v7696_v49 = vpop.f32.mrf.mxu1 }
 0x81c   : > { %v2729_v16 = vpack.c.bf16 %v7696_v49, %v7695_v27 }
 0x81d   : > { %v2698_v41 = vpop.f32.mrf.mxu1 }
 0x81e   : > { %v2728_v48 = vpack.c.bf16 %v2698_v41, %v2695_v39 }
 0x820   : > { %7709 = vmatprep.mubr.msk.bf16.mxu1 %vm1904_vm4, %v2728_v48 }
 0x821   : > { %7710 = vmatmul.mubr.msk.bf16.gmra.mxu1 %vm1904_vm4, %v2729_v16 }
 0x84f   : > { %v7699_v24 = vpop.f32.mrf.mxu1 }
 0x851   : > { %v2711_v15 = vpop.f32.mrf.mxu1 }
 0x853   : > { %v7700_v55 = vpop.f32.mrf.mxu1 }
 0x854   : > { %v2731_v42 = vpack.c.bf16 %v7700_v55, %v7699_v24 }
 0x855   : > { %v2714_v9 = vpop.f32.mrf.mxu1 }
 0x856   : > { %v2730_v38 = vpack.c.bf16 %v2714_v9, %v2711_v15 }
 0x858   : > { %7713 = vmatprep.mubr.msk.bf16.mxu1 %vm1904_vm4, %v2730_v38 }
 0x859   : > { %7714 = vmatmul.mubr.msk.bf16.gmra.mxu1 %vm1904_vm4, %v2731_v42 }
 0x85a   : > { %3334 = vmatprep.mubr.bf16.mxu1 %v11455_v45 }
 0x873   : > { %v7723_v52 = vpop.f32.mrf.mxu0 }
 0x875   : > { %v2911_v23 = vpop.f32.mrf.mxu0 }
 0x877   : > { %v7724_v54 = vpop.f32.mrf.mxu0 }
 0x879   : > { %v2914_v57 = vpop.f32.mrf.mxu0 }
 0x87d   : > { %v7727_v10 = vpop.f32.mrf.mxu0 }
 0x87f   : > { %v2927_v5 = vpop.f32.mrf.mxu0 }
 0x881   : > { %v7728_v53 = vpop.f32.mrf.mxu0 }
 0x883   : > { %v2930_v41 = vpop.f32.mrf.mxu0 }
 0x8d9   : > { %v7707_v19 = vpop.f32.mrf.mxu1 }
 0x8da   : > { %v2920_v37 = vadd.f32 %v7723_v52, %v7707_v19  ;;  %v8506_v52 = vld [vmem:[#allocation2 + $0x30] sm:$0xff] }
 0x8db   : > { %v2800_v28 = vpop.f32.mrf.mxu1 }
 0x8dc   : > { %v2967_v40 = vadd.f32 %v9559_v47, %v2920_v37  ;;  %v2912_v60 = vadd.f32 %v2911_v23, %v2800_v28 }
 0x8dd   : > { %v7708_v30 = vpop.f32.mrf.mxu1 }
 0x8de   : > { %v2983_v2 = vmul.f32 %v9563_v32, %v2967_v40  ;;  %v2965_v43 = vadd.f32 %v9559_v47, %v2912_v60  ;;  %v2923_v51 = vadd.f32 %v7724_v54, %v7708_v30  ;;  %v8507_v60 = vld [vmem:[#allocation2 + $0x20] sm:$0xff] }
 0x8df   : > { %v2803_v7 = vpop.f32.mrf.mxu1 }
 0x8e0   : > { %v9568_v1 = vadd.f32 %v8502_v29, %v2983_v2  ;;  %v2981_v61 = vmul.f32 %v9563_v32, %v2965_v43  ;;  %v2968_v4 = vadd.f32 %v9559_v47, %v2923_v51  ;;  %v2915_v17 = vadd.f32 %v2914_v57, %v2803_v7  ;;  %v8509_v29 = vld [vmem:[#allocation2 + $0x28] sm:$0xff] }
 0x8e1   : > { %v7711_v58 = vpop.f32.mrf.mxu1 }
 0x8e2   : > { %v2984_v3 = vmul.f32 %v9563_v32, %v2968_v4  ;;  %v2966_v14 = vadd.f32 %v9559_v47, %v2915_v17  ;;  %v2936_v33 = vadd.f32 %v7727_v10, %v7711_v58  ;;  %v9574_v6 = vadd.f32 %v8503_v63, %v2981_v61  ;;  %v8508_v10 = vld [vmem:[#allocation2 + $0x38] sm:$0xff] }
 0x8e3   : > { %v3011_v56 = vsel %vm977_vm3, %v9568_v1, 0.0  ;;  %v2816_v35 = vpop.f32.mrf.mxu1  ;;  %v3043_v25 = vmul.f32 %v9568_v1, %v9568_v1 }
 0x8e4   : > { %v9578_v50 = vadd.f32 %v8504_v59, %v2984_v3  ;;  %v2982_v46 = vmul.f32 %v9563_v32, %v2966_v14  ;;  %3012 = vadd.xlane.f32.xlu1 %v3011_v56  ;;  %v2971_v31 = vadd.f32 %v9559_v47, %v2936_v33  ;;  %v2928_v34 = vadd.f32 %v2927_v5, %v2816_v35 }
 0x8e5   : > { %v7712_v22 = vpop.f32.mrf.mxu1  ;;  %v3005_v27 = vsel %vm977_vm3, %v9574_v6, 0.0  ;;  %v3059_v24 = vsel %vm977_vm3, %v3043_v25, 0.0  ;;  %v3041_v15 = vmul.f32 %v9574_v6, %v9574_v6  ;;  %v8009_v25 = vld [vmem:[%s11432_s15 + $0x20] ss:$8 sps:$4 sm:$0xff]  }
 0x8e6   : > { %v9584_v44 = vadd.f32 %v8505_v20, %v2982_v46  ;;  %v2939_v13 = vadd.f32 %v7728_v53, %v7712_v22  ;;  %v3014_v39 = vsel %vm977_vm3, %v9578_v50, 0.0  ;;  %v2987_v48 = vmul.f32 %v9563_v32, %v2971_v31  ;;  %v7731_v46 = vpop.f32.mrf.mxu0  ;;  %v8006_v22 = vld [vmem:[%s11432_s15 + $0x30] ss:$8 sps:$4 sm:$0xff]   ;;  %v8008_v53 = vld [vmem:[%s11432_s15 + $0x34] ss:$8 sps:$4 sm:$0xff]  }
 0x8e7   : > { %3015 = vadd.xlane.f32.xlu0 %v3014_v39  ;;  %v2819_v49 = vpop.f32.mrf.mxu1  ;;  %v2969_v16 = vadd.f32 %v9559_v47, %v2928_v34  ;;  %v3044_v42 = vmul.f32 %v9578_v50, %v9578_v50  ;;  %v3053_v19 = vsel %vm977_vm3, %v3041_v15, 0.0  ;;  %v8011_v31 = vld [vmem:[%s11432_s15 + $0x24] ss:$8 sps:$4 sm:$0xff]   ;;  %3310 = vmatprep.subr.bf16.mxu1 %v8008_v53 }
 0x8e8   : > { %3006 = vadd.xlane.f32.xlu1 %v3005_v27  ;;  %v2972_v55 = vadd.f32 %v9559_v47, %v2939_v13  ;;  %v2931_v9 = vadd.f32 %v2930_v41, %v2819_v49  ;;  %v3008_v38 = vsel %vm977_vm3, %v9584_v44, 0.0  ;;  %v9600_v23 = vadd.f32 %v8506_v52, %v2987_v48  ;;  %v2943_v34 = vpop.f32.mrf.mxu0  ;;  %3311 = vmatpush1.bf16.msra.mxu1 %v8006_v22  ;;  %v8015_v22 = vld [vmem:[%s11432_s15] ss:$8 sps:$4 sm:$0xff]   ;;  %v8017_v53 = vld [vmem:[%s11432_s15 + $0x4] ss:$8 sps:$4 sm:$0xff]  }
 0x8e9   : > { %v2985_v54 = vmul.f32 %v9563_v32, %v2969_v16  ;;  %v3062_v28 = vsel %vm977_vm3, %v3044_v42, 0.0  ;;  %v3042_v40 = vmul.f32 %v9584_v44, %v9584_v44  ;;  %3312 = vmatprep.subr.bf16.mxu1 %v8011_v31  ;;  %v8020_v31 = vld [vmem:[%s11426_s9 + $0xac] ss:$12 sps:$4 sm:$0xff]  }
 0x8ea   : > { %v2988_v57 = vmul.f32 %v9563_v32, %v2972_v55  ;;  %v2970_v37 = vadd.f32 %v9559_v47, %v2931_v9  ;;  %v3023_v7 = vsel %vm977_vm3, %v9600_v23, 0.0  ;;  %v3047_v58 = vmul.f32 %v9600_v23, %v9600_v23  ;;  %v7732_v27 = vpop.f32.mrf.mxu0 }
 0x8eb   : > { %3009 = vadd.xlane.f32.xlu0 %v3008_v38  ;;  %v9609_v30 = vadd.f32 %v8507_v60, %v2985_v54  ;;  %v3056_v51 = vsel %vm977_vm3, %v3042_v40, 0.0  ;;  %v8510_v38 = vld [vmem:[#allocation2 + $0x50] sm:$0xff] }
 0x8ec   : > { %3060 = vadd.xlane.f32.xlu1 %v3059_v24  ;;  %v9611_v2 = vadd.f32 %v8508_v10, %v2988_v57  ;;  %v2986_v43 = vmul.f32 %v9563_v32, %v2970_v37  ;;  %v3071_v5 = vsel %vm977_vm3, %v3047_v58, 0.0  ;;  %3313 = vmatpush1.bf16.msra.mxu1 %v8009_v25  ;;  %v2946_v55 = vpop.f32.mrf.mxu0  ;;  %v8511_v57 = vld [vmem:[#allocation2 + $0x40] sm:$0xff]  ;;  %v8512_v10 = vld [vmem:[#allocation2 + $0x58] sm:$0xff] }
 0x8ed   : > { %v3017_v4 = vsel %vm977_vm3, %v9609_v30, 0.0  ;;  %v3045_v14 = vmul.f32 %v9609_v30, %v9609_v30 }
 0x8ee   : > { %v9617_v61 = vadd.f32 %v8509_v29, %v2986_v43  ;;  %v3026_v17 = vsel %vm977_vm3, %v9611_v2, 0.0  ;;  %v3048_v33 = vmul.f32 %v9611_v2, %v9611_v2 }
 0x8ef   : > { %3063 = vadd.xlane.f32.xlu0 %v3062_v28  ;;  %v3065_v63 = vsel %vm977_vm3, %v3045_v14, 0.0 }
 0x8f0   : > { %3054 = vadd.xlane.f32.xlu1 %v3053_v19  ;;  %v3020_v3 = vsel %vm977_vm3, %v9617_v61, 0.0  ;;  %v3074_v56 = vsel %vm977_vm3, %v3048_v33, 0.0  ;;  %v3046_v35 = vmul.f32 %v9617_v61, %v9617_v61 }
 0x8f2   : > { %v3068_v59 = vsel %vm977_vm3, %v3046_v35, 0.0 }
 0x8f3   : > { %3057 = vadd.xlane.f32.xlu0 %v3056_v51 }
 0x8f4   : > { %3024 = vadd.xlane.f32.xlu1 %v3023_v7 }
 0x8f7   : > { %3027 = vadd.xlane.f32.xlu0 %v3026_v17 }
 0x8f8   : > { %3018 = vadd.xlane.f32.xlu1 %v3017_v4  ;;  %v8513_v4 = vld [vmem:[#allocation2 + $0x48] sm:$0xff] }
 0x8fb   : > { %3021 = vadd.xlane.f32.xlu0 %v3020_v3 }
 0x8fc   : > { %3072 = vadd.xlane.f32.xlu1 %v3071_v5 }
 0x8ff   : > { %3075 = vadd.xlane.f32.xlu0 %v3074_v56  ;;  %v8014_v56 = vld [vmem:[%s11432_s15 + $0x14] ss:$8 sps:$4 sm:$0xff]  }
 0x900   : > { %3066 = vadd.xlane.f32.xlu1 %v3065_v63  ;;  %v8012_v63 = vld [vmem:[%s11432_s15 + $0x10] ss:$8 sps:$4 sm:$0xff]   ;;  %3314 = vmatprep.subr.bf16.mxu1 %v8014_v56 }
 0x901   : > { %3315 = vmatpush1.bf16.msra.mxu1 %v8012_v63 }
 0x902   : > { %3316 = vmatprep.subr.bf16.mxu1 %v8017_v53 }
 0x903   : > { %3069 = vadd.xlane.f32.xlu0 %v3068_v59 }
 0x905   : > { %3317 = vmatpush1.bf16.msra.mxu1 %v8015_v22 }
 0x906   : > { %4070 = vmatprep.subr.bf16.mxu1 %v8020_v31 }
 0x919   : > { %v7715_v20 = vpop.f32.mrf.mxu1 }
 0x91a   : > { %v2952_v13 = vadd.f32 %v7731_v46, %v7715_v20 }
 0x91b   : > { %v2832_v39 = vpop.f32.mrf.mxu1 }
 0x91c   : > { %v2975_v49 = vadd.f32 %v9559_v47, %v2952_v13  ;;  %v2944_v41 = vadd.f32 %v2943_v34, %v2832_v39 }
 0x91d   : > { %v7716_v48 = vpop.f32.mrf.mxu1 }
 0x91e   : > { %v2991_v16 = vmul.f32 %v9563_v32, %v2975_v49  ;;  %v2973_v24 = vadd.f32 %v9559_v47, %v2944_v41  ;;  %v2955_v15 = vadd.f32 %v7732_v27, %v7716_v48 }
 0x91f   : > { %v2835_v9 = vpop.f32.mrf.mxu1 }
 0x920   : > { %v9652_v42 = vadd.f32 %v8510_v38, %v2991_v16  ;;  %v2989_v52 = vmul.f32 %v9563_v32, %v2973_v24  ;;  %v2976_v54 = vadd.f32 %v9559_v47, %v2955_v15  ;;  %v2947_v19 = vadd.f32 %v2946_v55, %v2835_v9 }
 0x922   : > { %v9656_v37 = vadd.f32 %v8511_v57, %v2989_v52  ;;  %v2992_v28 = vmul.f32 %v9563_v32, %v2976_v54  ;;  %v2974_v40 = vadd.f32 %v9559_v47, %v2947_v19  ;;  %v3035_v60 = vsel %vm977_vm3, %v9652_v42, 0.0 }
 0x923   : > { %3036 = vadd.xlane.f32.xlu0 %v3035_v60  ;;  %v3051_v33 = vmul.f32 %v9652_v42, %v9652_v42 }
 0x924   : > { %v9662_v43 = vadd.f32 %v8512_v10, %v2992_v28  ;;  %v2990_v51 = vmul.f32 %v9563_v32, %v2974_v40  ;;  %v3029_v7 = vsel %vm977_vm3, %v9656_v37, 0.0  ;;  %v3049_v29 = vmul.f32 %v9656_v37, %v9656_v37 }
 0x925   : > { %3030 = vadd.xlane.f32.xlu1 %v3029_v7  ;;  %v3083_v35 = vsel %vm977_vm3, %v3051_v33, 0.0 }
 0x926   : > { %v9669_v17 = vadd.f32 %v8513_v4, %v2990_v51  ;;  %v3038_v47 = vsel %vm977_vm3, %v9662_v43, 0.0  ;;  %v3077_v58 = vsel %vm977_vm3, %v3049_v29, 0.0  ;;  %v3052_v59 = vmul.f32 %v9662_v43, %v9662_v43 }
 0x927   : > { %3039 = vadd.xlane.f32.xlu0 %v3038_v47 }
 0x928   : > { %v3032_v5 = vsel %vm977_vm3, %v9669_v17, 0.0  ;;  %v3050_v3 = vmul.f32 %v9669_v17, %v9669_v17  ;;  %v3086_v46 = vsel %vm977_vm3, %v3052_v59, 0.0 }
 0x929   : > { %3078 = vadd.xlane.f32.xlu1 %v3077_v58 }
 0x92a   : > { %v3080_v14 = vsel %vm977_vm3, %v3050_v3, 0.0 }
 0x92b   : > { %3033 = vadd.xlane.f32.xlu0 %v3032_v5 }
 0x92f   : > { %3081 = vadd.xlane.f32.xlu0 %v3080_v14 }
 0x933   : > { %3084 = vadd.xlane.f32.xlu0 %v3083_v35 }
 0x937   : > { %3087 = vadd.xlane.f32.xlu0 %v3086_v46 }
 0x93a   : > { %3203 = vrot.lane.b32.xlu1 %v9563_v32, %s11451_s0  ;;  %s11481_s0 = smov 64  }
 0x96d   : > { %v3013_v34 = vpop.xlane.xlu1 %3012 }
 0x96e   : > { %v9702_v19 = vmul.f32 0.015625, %v3013_v34 }
 0x970   : > { %v3016_v25 = vpop.xlane.xlu0 %3015  ;;  %v3115_v29 = vmul.f32 %v9702_v19, %v9702_v19 }
 0x971   : > { %v3007_v20 = vpop.xlane.xlu1 %3006  ;;  %v9704_v28 = vmul.f32 0.015625, %v3016_v25 }
 0x972   : > { %v3089_v24 = vmul.f32 0.015625, %v3007_v20 }
 0x973   : > { %v3116_v47 = vmul.f32 %v9704_v28, %v9704_v28 }
 0x974   : > { %v3010_v13 = vpop.xlane.xlu0 %3009  ;;  %v3113_v52 = vmul.f32 %v3089_v24, %v3089_v24 }
 0x975   : > { %v3061_v27 = vpop.xlane.xlu1 %3060  ;;  %v3090_v15 = vmul.f32 0.015625, %v3010_v13 }
 0x976   : > { %v3103_v10 = vmul.f32 0.015625, %v3061_v27 }
 0x977   : > { %v3114_v54 = vmul.f32 %v3090_v15, %v3090_v15 }
 0x978   : > { %v3064_v39 = vpop.xlane.xlu0 %3063  ;;  %v3127_v5 = vsub.f32 %v3103_v10, %v3115_v29 }
 0x979   : > { %v3055_v49 = vpop.xlane.xlu1 %3054  ;;  %v3104_v7 = vmul.f32 0.015625, %v3064_v39 }
 0x97a   : > { %v3101_v55 = vmul.f32 0.015625, %v3055_v49  ;;  %v3151_v35 = vadd.f32 1e-06, %v3127_v5 }
 0x97b   : > { %v3128_v3 = vsub.f32 %v3104_v7, %v3116_v47 }
 0x97c   : > { %v3058_v41 = vpop.xlane.xlu0 %3057  ;;  %v3125_v57 = vsub.f32 %v3101_v55, %v3113_v52 }
 0x97d   : > { %v3025_v48 = vpop.xlane.xlu1 %3024  ;;  %v3102_v38 = vmul.f32 0.015625, %v3058_v41  ;;  %v3152_v46 = vadd.f32 1e-06, %v3128_v3 }
 0x97e   : > { %v3149_v4 = vadd.f32 1e-06, %v3125_v57  ;;  %v9718_v20 = vmul.f32 0.015625, %v3025_v48  ;;  %v3185_v57 = vadd.f32 1.0, %v8983_v12  ;;  %v3137_v48 = vsub.f32 %v9574_v6, %v3089_v24 }
 0x97f   : > { %v3126_v40 = vsub.f32 %v3102_v38, %v3114_v54 }
 0x980   : > { %v3028_v16 = vpop.xlane.xlu0 %3027  ;;  %8230 = vrsqrt.f32 %v3149_v4  ;;  %v3119_v55 = vmul.f32 %v9718_v20, %v9718_v20  ;;  %v9732_v47 = vrot.slane %v3185_v57, %v8711_v18 }
 0x981   : > { %v3019_v32 = vpop.xlane.xlu1 %3018  ;;  %v3150_v58 = vadd.f32 1e-06, %v3126_v40  ;;  %v9720_v13 = vmul.f32 0.015625, %v3028_v16  ;;  %v3138_v40 = vsub.f32 %v9584_v44, %v3090_v15  ;;  %v3139_v15 = vsub.f32 %v9568_v1, %v9702_v19 }
 0x982   : > { %v9710_v33 = vmul.f32 0.015625, %v3019_v32 }
 0x983   : > { %8232 = vrsqrt.f32 %v3150_v58  ;;  %v3120_v38 = vmul.f32 %v9720_v13, %v9720_v13 }
 0x984   : > { %v3022_v9 = vpop.xlane.xlu0 %3021  ;;  %v3117_v53 = vmul.f32 %v9710_v33, %v9710_v33  ;;  %8234 = vrsqrt.f32 %v3151_v35 }
 0x985   : > { %v3073_v60 = vpop.xlane.xlu1 %3072  ;;  %v9712_v56 = vmul.f32 0.015625, %v3022_v9  ;;  %8236 = vrsqrt.f32 %v3152_v46  ;;  %v3140_v46 = vsub.f32 %v9578_v50, %v9704_v28 }
 0x986   : > { %v3107_v27 = vmul.f32 0.015625, %v3073_v60 }
 0x987   : > { %v3118_v31 = vmul.f32 %v9712_v56, %v9712_v56 }
 0x988   : > { %v3076_v51 = vpop.xlane.xlu0 %3075  ;;  %v3131_v16 = vsub.f32 %v3107_v27, %v3119_v55  ;;  %v8018_v55 = vld [vmem:[%s11426_s9 + $0xa8] ss:$12 sps:$4 sm:$0xff]  }
 0x989   : > { %v3067_v14 = vpop.xlane.xlu1 %3066  ;;  %v3108_v49 = vmul.f32 0.015625, %v3076_v51 }
 0x98a   : > { %v3105_v59 = vmul.f32 0.015625, %v3067_v14  ;;  %v3155_v58 = vadd.f32 1e-06, %v3131_v16 }
 0x98b   : > { %v3132_v60 = vsub.f32 %v3108_v49, %v3120_v38 }
 0x98c   : > { %v3070_v63 = vpop.xlane.xlu0 %3069  ;;  %v3129_v34 = vsub.f32 %v3105_v59, %v3117_v53 }
 0x98d   : > { %v3106_v22 = vmul.f32 0.015625, %v3070_v63  ;;  %v8231_v9 = vpop.eup %8230  ;;  %v3156_v3 = vadd.f32 1e-06, %v3132_v60 }
 0x98e   : > { %v3153_v39 = vadd.f32 1e-06, %v3129_v34  ;;  %v3173_v51 = vmul.f32 %v8231_v9, %v3137_v48 }
 0x98f   : > { %v3130_v25 = vsub.f32 %v3106_v22, %v3118_v31 }
 0x990   : > { %v8233_v54 = vpop.eup %8232  ;;  %8238 = vrsqrt.f32 %v3153_v39  ;;  %v3190_v35 = vmul.f32 %v9732_v47, %v3173_v51 }
 0x991   : > { %v3154_v41 = vadd.f32 1e-06, %v3130_v25  ;;  %v3174_v7 = vmul.f32 %v8233_v54, %v3138_v40  ;;  %v8235_v5 = vpop.eup %8234 }
 0x992   : > { %v8237_v63 = vpop.eup %8236  ;;  %v3175_v25 = vmul.f32 %v8235_v5, %v3139_v15  ;;  %v8021_v5 = vld [vmem:[%s11426_s9 + $0x90] ss:$12 sps:$4 sm:$0xff]  }
 0x993   : > { %8240 = vrsqrt.f32 %v3154_v41  ;;  %v3191_v22 = vmul.f32 %v9732_v47, %v3174_v7  ;;  %v3176_v49 = vmul.f32 %v8237_v63, %v3140_v46 }
 0x994   : > { %8242 = vrsqrt.f32 %v3155_v58  ;;  %v3192_v40 = vmul.f32 %v9732_v47, %v3175_v25  ;;  %v8029_v25 = vld [vmem:[%s11426_s9 + $0x64] ss:$12 sps:$4 sm:$0xff]  }
 0x995   : > { %8244 = vrsqrt.f32 %v3156_v3  ;;  %v3193_v60 = vmul.f32 %v9732_v47, %v3176_v49  ;;  %v3142_v3 = vsub.f32 %v9617_v61, %v9712_v56 }
 0x99d   : > { %v8239_v57 = vpop.eup %8238 }
 0x9a0   : > { %v8241_v51 = vpop.eup %8240 }
 0x9a1   : > { %v3178_v46 = vmul.f32 %v8241_v51, %v3142_v3 }
 0x9ac   : > { %v3037_v32 = vpop.xlane.xlu0 %3036 }
 0x9ad   : > { %v9753_v9 = vmul.f32 0.015625, %v3037_v32  ;;  %v3141_v32 = vsub.f32 %v9609_v30, %v9710_v33 }
 0x9ae   : > { %v3031_v52 = vpop.xlane.xlu1 %3030 }
 0x9af   : > { %v9729_v29 = vmul.f32 0.015625, %v3031_v52  ;;  %v8023_v52 = vld [vmem:[%s11426_s9 + $0x94] ss:$12 sps:$4 sm:$0xff]  }
 0x9b0   : > { %v3040_v10 = vpop.xlane.xlu0 %3039 }
 0x9b1   : > { %v3121_v53 = vmul.f32 %v9729_v29, %v9729_v29  ;;  %v9763_v7 = vmul.f32 0.015625, %v3040_v10  ;;  %v8026_v10 = vld [vmem:[%s11426_s9 + $0x7c] ss:$12 sps:$4 sm:$0xff]  }
 0x9b2   : > { %v3079_v4 = vpop.xlane.xlu1 %3078 }
 0x9b3   : > { %v3109_v14 = vmul.f32 0.015625, %v3079_v4  ;;  %v3124_v56 = vmul.f32 %v9763_v7, %v9763_v7 }
 0x9b4   : > { %v3034_v24 = vpop.xlane.xlu0 %3033 }
 0x9b5   : > { %v9737_v59 = vmul.f32 0.015625, %v3034_v24  ;;  %v3133_v19 = vsub.f32 %v3109_v14, %v3121_v53  ;;  %v3123_v14 = vmul.f32 %v9753_v9, %v9753_v9  ;;  %v8024_v53 = vld [vmem:[%s11426_s9 + $0x78] ss:$12 sps:$4 sm:$0xff]  }
 0x9b6   : > { %v9744_v31 = vpop.permute.xlu1 %3203 }
 0x9b7   : > { %v3206_v34 = vadd.f32 %v9744_v31, %v3190_v35  ;;  %v3207_v39 = vadd.f32 %v9744_v31, %v3191_v22  ;;  %v3122_v28 = vmul.f32 %v9737_v59, %v9737_v59  ;;  %v3157_v48 = vadd.f32 1e-06, %v3133_v19 }
 0x9b8   : > { %v3082_v27 = vpop.xlane.xlu0 %3081  ;;  %v3208_v24 = vadd.f32 %v9744_v31, %v3192_v40  ;;  %v3209_v33 = vadd.f32 %v9744_v31, %v3193_v60  ;;  %v3177_v35 = vmul.f32 %v8239_v57, %v3141_v32 }
 0x9b9   : > { %v3110_v41 = vmul.f32 0.015625, %v3082_v27  ;;  %v3218_v38 = vpack.c.bf16 %v3207_v39, %v3206_v34  ;;  %v8243_v27 = vpop.eup %8242 }
 0x9ba   : > { %v3219_v34 = vpack.c.bf16 %v3209_v33, %v3208_v24  ;;  %v3194_v49 = vmul.f32 %v9732_v47, %v3177_v35 }
 0x9bb   : > { %v3134_v54 = vsub.f32 %v3110_v41, %v3122_v28  ;;  %7053 = vmatmul.mubr.msk.bf16.vlgmr.msra.gmra.mxu1 %vm977_vm3, %v3218_v38  ;;  %v3195_v28 = vmul.f32 %v9732_v47, %v3178_v46  ;;  %v8245_v41 = vpop.eup %8244  ;;  %v8027_v38 = vld [vmem:[%s11426_s9 + $0x60] ss:$12 sps:$4 sm:$0xff]  }
 0x9bc   : > { %v3085_v16 = vpop.xlane.xlu0 %3084  ;;  %3344 = vmatprep.mubr.bf16.mxu1 %v11455_v45  ;;  %4071 = vmatpush1.bf16.msra.mxu1 %v8018_v55  ;;  %v3210_v57 = vadd.f32 %v9744_v31, %v3194_v49  ;;  %v8033_v49 = vld [vmem:[%s11426_s9 + $0x68] ss:$12 sps:$4 sm:$0xff]  }
 0x9bd   : > { %v3158_v4 = vadd.f32 1e-06, %v3134_v54  ;;  %v3111_v58 = vmul.f32 0.015625, %v3085_v16  ;;  %4072 = vmatprep.subr.bf16.mxu1 %v8023_v52  ;;  %v3143_v52 = vsub.f32 %v9600_v23, %v9718_v20  ;;  %v3144_v54 = vsub.f32 %v9611_v2, %v9720_v13 }
 0x9be   : > { %v3146_v20 = vsub.f32 %v9669_v17, %v9737_v59 }
 0x9bf   : > { %8246 = vrsqrt.f32 %v3158_v4  ;;  %v3135_v63 = vsub.f32 %v3111_v58, %v3123_v14  ;;  %v3179_v16 = vmul.f32 %v8243_v27, %v3143_v52  ;;  %v3180_v40 = vmul.f32 %v8245_v41, %v3144_v54  ;;  %v8035_v41 = vld [vmem:[%s11434_s17 + $0x38] sm:$0xff]   ;;  %v8038_v52 = vld [vmem:[%s11434_s17 + $0x68] sm:$0xff]  }
 0x9c0   : > { %8248 = vrsqrt.f32 %v3157_v48  ;;  %v3088_v15 = vpop.xlane.xlu0 %3087  ;;  %4073 = vmatpush1.bf16.msra.mxu1 %v8021_v5  ;;  %v3211_v48 = vadd.f32 %v9744_v31, %v3195_v28  ;;  %v3145_v58 = vsub.f32 %v9656_v37, %v9729_v29  ;;  %v3147_v29 = vsub.f32 %v9652_v42, %v9753_v9  ;;  %v8034_v28 = vld [vmem:[%s11434_s17 + $0x78] sm:$0xff]   ;;  %v8039_v54 = vld [vmem:[%s11434_s17 + $0x28] sm:$0xff]  }
 0x9c1   : > { %v3112_v22 = vmul.f32 0.015625, %v3088_v15  ;;  %4074 = vmatprep.subr.bf16.mxu1 %v8026_v10  ;;  %v3159_v39 = vadd.f32 1e-06, %v3135_v63  ;;  %v3196_v13 = vmul.f32 %v9732_v47, %v3179_v16  ;;  %v3197_v32 = vmul.f32 %v9732_v47, %v3180_v40  ;;  %7375 = vmatprep.subr.bf16.mxu0 %v8034_v28  ;;  %v8042_v16 = vld [vmem:[%s11434_s17 + $0x58] sm:$0xff]  }
 0x9c2   : > { %v3220_v60 = vpack.c.bf16 %v3211_v48, %v3210_v57  ;;  %v3148_v63 = vsub.f32 %v9662_v43, %v9763_v7  ;;  %7376 = vmatpush3.bf16.msra.mxu0 %v8035_v41  ;;  %v8040_v57 = vld [vmem:[%s11434_s17 + $0x60] sm:$0xff]   ;;  %v8043_v40 = vld [vmem:[%s11434_s17 + $0x18] sm:$0xff]  }
 0x9c3   : > { %v3136_v19 = vsub.f32 %v3112_v22, %v3124_v56  ;;  %7054 = vmatmul.mubr.msk.bf16.gmra.mxu1 %vm977_vm3, %v3219_v34  ;;  %v3212_v5 = vadd.f32 %v9744_v31, %v3196_v13  ;;  %v3213_v3 = vadd.f32 %v9744_v31, %v3197_v32  ;;  %v8041_v48 = vld [vmem:[%s11434_s17 + $0x20] sm:$0xff]   ;;  %v8047_v13 = vld [vmem:[%s11434_s17 + $0x8] sm:$0xff]  }
 0x9c4   : > { %3354 = vmatprep.mubr.bf16.mxu1 %v11455_v45  ;;  %4075 = vmatpush1.bf16.msra.mxu1 %v8024_v53  ;;  %v8048_v32 = vld [vmem:[%s11434_s17 + $0x40] sm:$0xff]  }
 0x9c5   : > { %v3160_v55 = vadd.f32 1e-06, %v3136_v19  ;;  %4076 = vmatprep.subr.bf16.mxu1 %v8029_v25  ;;  %v3221_v33 = vpack.c.bf16 %v3213_v3, %v3212_v5 }
 0x9c7   : > { %8250 = vrsqrt.f32 %v3160_v55  ;;  %v8036_v55 = vld [vmem:[%s11434_s17 + $0x70] sm:$0xff]  }
 0x9c8   : > { %8252 = vrsqrt.f32 %v3159_v39  ;;  %4077 = vmatpush1.bf16.msra.mxu1 %v8027_v38  ;;  %v8030_v39 = vld [vmem:[%s11426_s9 + $0xb0] ss:$12 sps:$4 sm:$0xff]   ;;  %7377 = vmatprep.subr.bf16.mxu0 %v8036_v55 }
 0x9c9   : > { %7733 = vmatprep.subr.bf16.mxu1 %v11453_v26  ;;  %v8037_v38 = vld [vmem:[%s11434_s17 + $0x30] sm:$0xff]  }
 0x9ca   : > { %7378 = vmatpush3.bf16.msra.mxu0 %v8037_v38 }
 0x9cb   : > { %7055 = vmatmul.mubr.msk.bf16.gmra.mxu1 %vm977_vm3, %v3220_v60  ;;  %7379 = vmatprep.subr.bf16.mxu0 %v8038_v52  ;;  %v8044_v60 = vld [vmem:[%s11434_s17 + $0x50] sm:$0xff]  }
 0x9cc   : > { %v8247_v51 = vpop.eup %8246  ;;  %3364 = vmatprep.mubr.bf16.mxu1 %v11455_v45 }
 0x9cd   : > { %v8249_v4 = vpop.eup %8248  ;;  %v3182_v14 = vmul.f32 %v8247_v51, %v3146_v20  ;;  %v8045_v51 = vld [vmem:[%s11434_s17 + $0x10] sm:$0xff]   ;;  %v8046_v20 = vld [vmem:[%s11434_s17 + $0x48] sm:$0xff]  }
 0x9ce   : > { %v3181_v24 = vmul.f32 %v8249_v4, %v3145_v58  ;;  %7380 = vmatpush3.bf16.msra.mxu0 %v8039_v54  ;;  %v8049_v4 = vld [vmem:[%s11434_s17] sm:$0xff]  }
 0x9cf   : > { %v3199_v59 = vmul.f32 %v9732_v47, %v3182_v14  ;;  %7381 = vmatprep.subr.bf16.mxu0 %v8040_v57  ;;  %v3232_v58 = vld [vmem:[%s11433_s16] sm:$0x3] }
 0x9d0   : > { %v3198_v15 = vmul.f32 %v9732_v47, %v3181_v24  ;;  %v9901_v5 = vrot.slane %v3232_v58, %v8711_v18  ;;  %v9904_v3 = vrot.slane %v3232_v58, %v8695_v11 }
 0x9d1   : > { %v3215_v46 = vadd.f32 %v9744_v31, %v3199_v59 }
 0x9d2   : > { %v3214_v22 = vadd.f32 %v9744_v31, %v3198_v15  ;;  %7382 = vmatpush3.bf16.msra.mxu0 %v8041_v48 }
 0x9d3   : > { %7056 = vmatmul.mubr.msk.bf16.gmra.mxu1 %vm977_vm3, %v3221_v33  ;;  %7383 = vmatprep.subr.bf16.mxu0 %v8042_v16 }
 0x9d4   : > { %v8251_v10 = vpop.eup %8250  ;;  %3374 = vmatprep.mubr.bf16.mxu1 %v11455_v45  ;;  %v3222_v34 = vpack.c.bf16 %v3215_v46, %v3214_v22 }
 0x9d5   : > { %v8253_v35 = vpop.eup %8252  ;;  %v3184_v56 = vmul.f32 %v8251_v10, %v3148_v63 }
 0x9d6   : > { %v3183_v53 = vmul.f32 %v8253_v35, %v3147_v29  ;;  %7384 = vmatpush3.bf16.msra.mxu0 %v8043_v40 }
 0x9d7   : > { %v3201_v25 = vmul.f32 %v9732_v47, %v3184_v56  ;;  %7385 = vmatprep.subr.bf16.mxu0 %v8044_v60 }
 0x9d8   : > { %v3200_v7 = vmul.f32 %v9732_v47, %v3183_v53  ;;  %v8031_v47 = vld [vmem:[%s11426_s9 + $0x98] ss:$12 sps:$4 sm:$0xff]  }
 0x9d9   : > { %v3217_v19 = vadd.f32 %v9744_v31, %v3201_v25 }
 0x9da   : > { %v3216_v27 = vadd.f32 %v9744_v31, %v3200_v7  ;;  %v8032_v31 = vld [vmem:[%s11426_s9 + $0x80] ss:$12 sps:$4 sm:$0xff]   ;;  %7386 = vmatpush3.bf16.msra.mxu0 %v8045_v51 }
 0x9db   : > { %7057 = vmatmul.mubr.msk.bf16.gmra.mxu1 %vm977_vm3, %v3222_v34  ;;  %7387 = vmatprep.subr.bf16.mxu0 %v8046_v20 }
 0x9dc   : > { %3384 = vmatprep.mubr.bf16.mxu1 %v11455_v45  ;;  %v3223_v9 = vpack.c.bf16 %v3217_v19, %v3216_v27 }
 0x9de   : > { %7388 = vmatpush3.bf16.msra.mxu0 %v8047_v13 }
 0x9df   : > { %7389 = vmatprep.subr.bf16.mxu0 %v8048_v32 }
 0x9e2   : > { %7390 = vmatpush3.bf16.msra.mxu0 %v8049_v4 }
 0x9e3   : > { %7058 = vmatmul.mubr.msk.bf16.gmra.mxu1 %vm977_vm3, %v3223_v9 }
 0x9e4   : > { %4094 = vmatprep.mubr.bf16.mxu1 %v11455_v45 }
 0x9eb   : > { %7105 = vmatmul.mubr.msk.bf16.vlgmr.msra.gmra.mxu1 %vm977_vm3, %v8893_v21 }
 0x9ec   : > { %7734 = vmatpush3.bf16.msra.mxu1 %v8030_v39  ;;  %7741 = vmatprep.mubr.msk.bf16.mxu1 %vm8523_vm2, %v11453_v26 }
 0x9ed   : > { %7735 = vmatprep.subr.bf16.mxu1 %v11453_v26 }
 0x9f0   : > { %7736 = vmatpush3.bf16.msra.mxu1 %v8031_v47 }
 0x9f1   : > { %7737 = vmatprep.subr.bf16.mxu1 %v11453_v26 }
 0x9f4   : > { %7738 = vmatpush3.bf16.msra.mxu1 %v8032_v31 }
 0x9f5   : > { %7739 = vmatprep.subr.bf16.mxu1 %v11453_v26 }
 0x9f8   : > { %7740 = vmatpush3.bf16.msra.mxu1 %v8033_v49 }
 0x9fb   : > { %7742 = vmatmul.mubr.msk.bf16.vlgmr.msra.gmra.mxu1 %vm977_vm3, %v8893_v21 }
 0xa7b   : > { %v3336_v14 = vpop.f32.mrf.mxu1 }
 0xa7c   : > { %v9907_v24 = vadd.f32 %v3336_v14, %v9901_v5 }
 0xa7d   : > { %v3338_v33 = vpop.f32.mrf.mxu1 }
 0xa7e   : > { %v3419_v59 = vmul.f32 0.044715, %v9907_v24  ;;  %v9911_v10 = vadd.f32 %v3338_v33, %v9904_v3 }
 0xa7f   : > { %v3340_v63 = vpop.f32.mrf.mxu1 }
 0xa80   : > { %v3443_v15 = vmul.f32 %v3419_v59, %v9907_v24  ;;  %v3420_v35 = vmul.f32 0.044715, %v9911_v10  ;;  %v9916_v29 = vadd.f32 %v3340_v63, %v9901_v5 }
 0xa81   : > { %v3342_v46 = vpop.f32.mrf.mxu1 }
 0xa82   : > { %v3467_v56 = vmul.f32 %v3443_v15, %v9907_v24  ;;  %v3444_v22 = vmul.f32 %v3420_v35, %v9911_v10  ;;  %v3421_v53 = vmul.f32 0.044715, %v9916_v29  ;;  %v9922_v34 = vadd.f32 %v3342_v46, %v9904_v3 }
 0xa83   : > { %v3346_v25 = vpop.f32.mrf.mxu1 }
 0xa84   : > { %v3491_v7 = vadd.f32 %v3467_v56, %v9907_v24  ;;  %v3468_v19 = vmul.f32 %v3444_v22, %v9911_v10  ;;  %v3445_v27 = vmul.f32 %v3421_v53, %v9916_v29  ;;  %v9928_v9 = vadd.f32 %v3346_v25, %v9901_v5 }
 0xa85   : > { %v3422_v39 = vmul.f32 0.044715, %v9922_v34  ;;  %v3348_v47 = vpop.f32.mrf.mxu1 }
 0xa86   : > { %v3515_v31 = vmul.f32 0.7978846, %v3491_v7  ;;  %v3469_v49 = vmul.f32 %v3445_v27, %v9916_v29  ;;  %v3423_v28 = vmul.f32 0.044715, %v9928_v9  ;;  %v9934_v41 = vadd.f32 %v3348_v47, %v9904_v3 }
 0xa87   : > { %v3446_v55 = vmul.f32 %v3422_v39, %v9922_v34  ;;  %v3350_v38 = vpop.f32.mrf.mxu1  ;;  %v3492_v52 = vadd.f32 %v3468_v19, %v9911_v10 }
 0xa88   : > { %v3493_v54 = vadd.f32 %v3469_v49, %v9916_v29  ;;  %v3447_v57 = vmul.f32 %v3423_v28, %v9928_v9  ;;  %v3424_v48 = vmul.f32 0.044715, %v9934_v41  ;;  %8254 = vtanh.f32 %v3515_v31 }
 0xa89   : > { %v3470_v16 = vmul.f32 %v3446_v55, %v9922_v34  ;;  %v9943_v40 = vadd.f32 %v3350_v38, %v9901_v5  ;;  %v3352_v60 = vpop.f32.mrf.mxu1  ;;  %v3516_v51 = vmul.f32 0.7978846, %v3492_v52 }
 0xa8a   : > { %v3517_v20 = vmul.f32 0.7978846, %v3493_v54  ;;  %v3471_v13 = vmul.f32 %v3447_v57, %v9928_v9  ;;  %v3448_v32 = vmul.f32 %v3424_v48, %v9934_v41  ;;  %v9948_v4 = vadd.f32 %v3352_v60, %v9904_v3 }
 0xa8b   : > { %v3425_v58 = vmul.f32 0.044715, %v9943_v40  ;;  %v3356_v14 = vpop.f32.mrf.mxu1  ;;  %v3494_v33 = vadd.f32 %v3470_v16, %v9922_v34  ;;  %8256 = vtanh.f32 %v3516_v51 }
 0xa8c   : > { %8258 = vtanh.f32 %v3517_v20  ;;  %v3472_v59 = vmul.f32 %v3448_v32, %v9934_v41  ;;  %v3426_v63 = vmul.f32 0.044715, %v9948_v4  ;;  %v9955_v15 = vadd.f32 %v3356_v14, %v9901_v5 }
 0xa8d   : > { %v3449_v35 = vmul.f32 %v3425_v58, %v9943_v40  ;;  %v3358_v46 = vpop.f32.mrf.mxu1  ;;  %v3518_v56 = vmul.f32 0.7978846, %v3494_v33  ;;  %v3495_v22 = vadd.f32 %v3471_v13, %v9928_v9  ;;  %v9986_v33 = vld [vmem:[%s11427_s10 + $0x3] sm:$0x7] }
 0xa8e   : > { %v3450_v53 = vmul.f32 %v3426_v63, %v9948_v4  ;;  %v3427_v25 = vmul.f32 0.044715, %v9955_v15  ;;  %v9962_v7 = vadd.f32 %v3358_v46, %v9904_v3  ;;  %v3496_v19 = vadd.f32 %v3472_v59, %v9934_v41 }
 0xa8f   : > { %v3473_v27 = vmul.f32 %v3449_v35, %v9943_v40  ;;  %v3360_v39 = vpop.f32.mrf.mxu1  ;;  %8260 = vtanh.f32 %v3518_v56  ;;  %v3519_v47 = vmul.f32 0.7978846, %v3495_v22  ;;  %v3395_v56 = vmul.f32 0.5, %v9907_v24 }
 0xa90   : > { %v3474_v31 = vmul.f32 %v3450_v53, %v9948_v4  ;;  %v3451_v49 = vmul.f32 %v3427_v25, %v9955_v15  ;;  %v3428_v28 = vmul.f32 0.044715, %v9962_v7  ;;  %v9970_v55 = vadd.f32 %v3360_v39, %v9901_v5 }
 0xa91   : > { %v3362_v38 = vpop.f32.mrf.mxu1  ;;  %v3520_v52 = vmul.f32 0.7978846, %v3496_v19  ;;  %v3497_v54 = vadd.f32 %v3473_v27, %v9943_v40  ;;  %8262 = vtanh.f32 %v3519_v47  ;;  %v3396_v39 = vmul.f32 0.5, %v9911_v10 }
 0xa92   : > { %v3452_v57 = vmul.f32 %v3428_v28, %v9962_v7  ;;  %v3429_v48 = vmul.f32 0.044715, %v9970_v55  ;;  %v9976_v16 = vadd.f32 %v3362_v38, %v9904_v3  ;;  %v3498_v51 = vadd.f32 %v3474_v31, %v9948_v4 }
 0xa93   : > { %v3366_v60 = vpop.f32.mrf.mxu1  ;;  %8264 = vtanh.f32 %v3520_v52  ;;  %v3521_v20 = vmul.f32 0.7978846, %v3497_v54  ;;  %v3475_v13 = vmul.f32 %v3451_v49, %v9955_v15  ;;  %v3397_v49 = vmul.f32 0.5, %v9916_v29 }
 0xa94   : > { %v3476_v32 = vmul.f32 %v3452_v57, %v9962_v7  ;;  %v3453_v58 = vmul.f32 %v3429_v48, %v9970_v55  ;;  %v3430_v14 = vmul.f32 0.044715, %v9976_v16  ;;  %v3522_v63 = vmul.f32 0.7978846, %v3498_v51 }
 0xa95   : > { %v3368_v59 = vpop.f32.mrf.mxu1  ;;  %8266 = vtanh.f32 %v3521_v20  ;;  %v8255_v46 = vpop.eup %8254  ;;  %v9993_v53 = vadd.f32 %v3366_v60, %v9901_v5  ;;  %v3499_v38 = vadd.f32 %v3475_v13, %v9955_v15  ;;  %v3398_v48 = vmul.f32 0.5, %v9922_v34 }
 0xa96   : > { %v3454_v22 = vmul.f32 %v3430_v14, %v9976_v16  ;;  %v9996_v25 = vadd.f32 %v3368_v59, %v9904_v3  ;;  %v3477_v19 = vmul.f32 %v3453_v58, %v9970_v55  ;;  %8268 = vtanh.f32 %v3522_v63 }
 0xa97   : > { %v3370_v27 = vpop.f32.mrf.mxu1  ;;  %v3500_v47 = vadd.f32 %v3476_v32, %v9962_v7  ;;  %v10010_v10 = vmul.f32 0.5, %v9928_v9  ;;  %v3431_v51 = vmul.f32 0.044715, %v9993_v53  ;;  %v10017_v32 = vmul.f32 0.5, %v9934_v41 }
 0xa98   : > { %v8257_v31 = vpop.eup %8256  ;;  %v3478_v24 = vmul.f32 %v3454_v22, %v9976_v16  ;;  %v3432_v28 = vmul.f32 0.044715, %v9996_v25  ;;  %v10006_v54 = vadd.f32 %v3370_v27, %v9901_v5  ;;  %v3501_v34 = vadd.f32 %v3477_v19, %v9970_v55 }
 0xa99   : > { %v8259_v52 = vpop.eup %8258  ;;  %v3372_v57 = vpop.f32.mrf.mxu1  ;;  %v3524_v60 = vmul.f32 0.7978846, %v3500_v47  ;;  %v3564_v20 = vadd.f32 1.0, %v8257_v31  ;;  %v3563_v22 = vadd.f32 1.0, %v8255_v46  ;;  %v3523_v27 = vmul.f32 0.7978846, %v3499_v38 }
 0xa9a   : > { %v10014_v29 = vadd.f32 %v3372_v57, %v9904_v3  ;;  %v3565_v58 = vadd.f32 1.0, %v8259_v52  ;;  %v3502_v14 = vadd.f32 %v3478_v24, %v9976_v16  ;;  %v3456_v9 = vmul.f32 %v3432_v28, %v9996_v25 }
 0xa9b   : > { %v3376_v13 = vpop.f32.mrf.mxu1  ;;  %8270 = vtanh.f32 %v3524_v60  ;;  %v3433_v47 = vmul.f32 0.044715, %v10006_v54  ;;  %v3588_v26 = vmul.f32 %v3564_v20, %v3396_v39  ;;  %v3402_v60 = vmul.f32 0.5, %v9948_v4 }
 0xa9c   : > { %v8261_v59 = vpop.eup %8260  ;;  %v3434_v63 = vmul.f32 0.044715, %v10014_v29  ;;  %v10025_v31 = vadd.f32 %v3376_v13, %v9901_v5  ;;  %v3526_v52 = vmul.f32 0.7978846, %v3502_v14  ;;  %v3589_v24 = vmul.f32 %v3565_v58, %v3397_v49 }
 0xa9d   : > { %v3378_v41 = vpop.f32.mrf.mxu1  ;;  %v3566_v57 = vadd.f32 1.0, %v8261_v59  ;;  %v3401_v19 = vmul.f32 0.5, %v9943_v40  ;;  %v3525_v38 = vmul.f32 0.7978846, %v3501_v34  ;;  %v3455_v13 = vmul.f32 %v3431_v51, %v9993_v53 }
 0xa9e   : > { %v8263_v45 = vpop.eup %8262  ;;  %v3458_v28 = vmul.f32 %v3434_v63, %v10014_v29  ;;  %8272 = vtanh.f32 %v3526_v52  ;;  %v3480_v21 = vmul.f32 %v3456_v9, %v9996_v25  ;;  %v10033_v14 = vadd.f32 %v3378_v41, %v9904_v3 }
 0xa9f   : > { %v3380_v62 = vpop.f32.mrf.mxu1  ;;  %v3590_v46 = vmul.f32 %v3566_v57, %v3398_v48  ;;  %v3587_v39 = vmul.f32 %v3563_v22, %v3395_v56  ;;  %v3457_v4 = vmul.f32 %v3433_v47, %v10006_v54  ;;  %v3435_v40 = vmul.f32 0.044715, %v10025_v31 }
 0xaa0   : > { %v8265_v35 = vpop.eup %8264  ;;  %8274 = vtanh.f32 %v3523_v27  ;;  %v3567_v59 = vadd.f32 1.0, %v8263_v45  ;;  %v10041_v51 = vmul.f32 0.5, %v9955_v15  ;;  %v3482_v9 = vmul.f32 %v3458_v28, %v10014_v29 }
 0xaa1   : > { %v3382_v49 = vpop.f32.mrf.mxu1  ;;  %v3612_v20 = vpack.c.bf16 %v3590_v46, %v3588_v26  ;;  %v3611_v34 = vpack.c.bf16 %v3589_v24, %v3587_v39  ;;  %v3568_v63 = vadd.f32 1.0, %v8265_v35  ;;  %8276 = vtanh.f32 %v3525_v38 }
 0xaa2   : > { %v8267_v58 = vpop.eup %8266  ;;  %v10038_v48 = vadd.f32 %v3382_v49, %v9904_v3  ;;  %v3479_v26 = vmul.f32 %v3455_v13, %v9993_v53  ;;  %v3436_v27 = vmul.f32 0.044715, %v10033_v14  ;;  %v10047_v41 = vadd.f32 %v3380_v62, %v9901_v5 }
 0xaa3   : > { %3790 = vmatprep.mubr.bf16.mxu0 %v3612_v20  ;;  %v3386_v56 = vpop.f32.mrf.mxu1  ;;  %v3569_v22 = vadd.f32 1.0, %v8267_v58  ;;  %v8269_v47 = vpop.eup %8268  ;;  %v3481_v15 = vmul.f32 %v3457_v4, %v10006_v54  ;;  %v3459_v57 = vmul.f32 %v3435_v40, %v10025_v31  ;;  %v3504_v24 = vadd.f32 %v3480_v21, %v9996_v25 }
 0xaa4   : > { %v10050_v45 = vadd.f32 %v3386_v56, %v9901_v5  ;;  %3791 = vmatmul.mubr.bf16.vlgmr.msra.gmra.mxu0 %v3611_v34  ;;  %v3570_v35 = vadd.f32 1.0, %v8269_v47  ;;  %v3438_v28 = vmul.f32 0.044715, %v10038_v48  ;;  %v3591_v62 = vmul.f32 %v3567_v59, %v10010_v10 }
 0xaa5   : > { %v3388_v52 = vpop.f32.mrf.mxu1  ;;  %v3593_v38 = vmul.f32 %v3569_v22, %v3401_v19  ;;  %v3592_v39 = vmul.f32 %v3568_v63, %v10017_v32  ;;  %v3506_v4 = vadd.f32 %v3482_v9, %v10014_v29  ;;  %v3528_v20 = vmul.f32 0.7978846, %v3504_v24 }
 0xaa6   : > { %v10057_v46 = vadd.f32 %v3388_v52, %v9904_v3  ;;  %v3594_v49 = vmul.f32 %v3570_v35, %v3402_v60  ;;  %v3460_v58 = vmul.f32 %v3436_v27, %v10033_v14  ;;  %v3437_v21 = vmul.f32 0.044715, %v10047_v41 }
 0xaa7   : > { %v3390_v13 = vpop.f32.mrf.mxu1  ;;  %v3439_v34 = vmul.f32 0.044715, %v10050_v45  ;;  %v3530_v22 = vmul.f32 0.7978846, %v3506_v4  ;;  %8278 = vtanh.f32 %v3528_v20  ;;  %v3462_v32 = vmul.f32 %v3438_v28, %v10038_v48 }
 0xaa8   : > { %v8271_v40 = vpop.eup %8270  ;;  %v10066_v56 = vadd.f32 %v3390_v13, %v9901_v5  ;;  %v3440_v10 = vmul.f32 0.044715, %v10057_v46  ;;  %v3614_v59 = vpack.c.bf16 %v3594_v49, %v3592_v39  ;;  %v3613_v9 = vpack.c.bf16 %v3593_v38, %v3591_v62 }
 0xaa9   : > { %v3392_v19 = vpop.f32.mrf.mxu1  ;;  %v3572_v63 = vadd.f32 1.0, %v8271_v40  ;;  %v3483_v47 = vmul.f32 %v3459_v57, %v10025_v31  ;;  %v3404_v5 = vmul.f32 0.5, %v9962_v7  ;;  %v3406_v52 = vmul.f32 0.5, %v9976_v16 }
 0xaaa   : > { %v10071_v60 = vadd.f32 %v3392_v19, %v9904_v3  ;;  %3798 = vmatprep.mubr.bf16.mxu0 %v3614_v59  ;;  %8280 = vtanh.f32 %v3530_v22  ;;  %v3461_v24 = vmul.f32 %v3437_v21, %v10047_v41  ;;  %v3463_v28 = vmul.f32 %v3439_v34, %v10050_v45 }
 0xaab   : > { %v10074_v27 = vpop.f32.mrf.mxu1  ;;  %v8273_v35 = vpop.eup %8272  ;;  %v3441_v3 = vmul.f32 0.044715, %v10066_v56  ;;  %v3464_v57 = vmul.f32 %v3440_v10, %v10057_v46  ;;  %v3503_v39 = vadd.f32 %v3479_v26, %v9993_v53  ;;  %v3505_v7 = vadd.f32 %v3481_v15, %v10006_v54 }
 0xaac   : > { %v3442_v62 = vmul.f32 0.044715, %v10071_v60  ;;  %3799 = vmatmul.mubr.bf16.gmra.mxu0 %v3613_v9  ;;  %v3574_v13 = vadd.f32 1.0, %v8273_v35  ;;  %v3484_v49 = vmul.f32 %v3460_v58, %v10033_v14  ;;  %v3486_v4 = vmul.f32 %v3462_v32, %v10038_v48 }
 0xaad   : > { %v4098_v38 = vpop.f32.mrf.mxu1  ;;  %v8275_v16 = vpop.eup %8274  ;;  %v3596_v40 = vmul.f32 %v3572_v63, %v3404_v5  ;;  %v11478_v21 = vrot.slane %v9986_v33, %v8695_v11  ;;  %v3527_v22 = vmul.f32 0.7978846, %v3503_v39  ;;  %v3485_v15 = vmul.f32 %v3461_v24, %v10047_v41 }
 0xaae   : > { %v3466_v20 = vmul.f32 %v3442_v62, %v10071_v60  ;;  %v3598_v19 = vmul.f32 %v3574_v13, %v3406_v52  ;;  %v3571_v59 = vadd.f32 1.0, %v8275_v16  ;;  %v8277_v26 = vpop.eup %8276  ;;  %v3465_v9 = vmul.f32 %v3441_v3, %v10066_v56 }
 0xaaf   : > { %v10091_v34 = vadd.f32 %v4098_v38, %v11478_v21  ;;  %v4100_v10 = vpop.f32.mrf.mxu1  ;;  %v3405_v58 = vmul.f32 0.5, %v9970_v55  ;;  %v3529_v32 = vmul.f32 0.7978846, %v3505_v7  ;;  %v3487_v35 = vmul.f32 %v3463_v28, %v10050_v45 }
 0xab0   : > { %v3488_v63 = vmul.f32 %v3464_v57, %v10057_v46  ;;  %v3616_v62 = vpack.c.bf16 %v3598_v19, %v3596_v40  ;;  %v3573_v38 = vadd.f32 1.0, %v8277_v26  ;;  %v3490_v21 = vmul.f32 %v3466_v20, %v10071_v60 }
 0xab1   : > { %v4101_v5 = vpop.f32.mrf.mxu1  ;;  %8282 = vtanh.f32 %v3527_v22  ;;  %v3508_v52 = vadd.f32 %v3484_v49, %v10033_v14  ;;  %v3510_v13 = vadd.f32 %v3486_v4, %v10038_v48  ;;  %v3595_v24 = vmul.f32 %v3571_v59, %v10041_v51 }
 0xab2   : > { %3806 = vmatprep.mubr.bf16.mxu0 %v3616_v62  ;;  %v3597_v3 = vmul.f32 %v3573_v38, %v3405_v58  ;;  %8284 = vtanh.f32 %v3529_v32  ;;  %v3507_v55 = vadd.f32 %v3483_v47, %v10025_v31  ;;  %v3489_v28 = vmul.f32 %v3465_v9, %v10066_v56 }
 0xab3   : > { %v3532_v57 = vmul.f32 0.7978846, %v3508_v52  ;;  %v3534_v39 = vmul.f32 0.7978846, %v3510_v13  ;;  %v3509_v7 = vadd.f32 %v3485_v15, %v10047_v41  ;;  %v3512_v40 = vadd.f32 %v3488_v63, %v10057_v46 }
 0xab4   : > { %v3615_v16 = vpack.c.bf16 %v3597_v3, %v3595_v24  ;;  %v3531_v20 = vmul.f32 0.7978846, %v3507_v55  ;;  %v8279_v49 = vpop.eup %8278  ;;  %v3514_v10 = vadd.f32 %v3490_v21, %v10071_v60  ;;  %v11479_v19 = vsub.s32 2, %v8682_v8 }
 0xab5   : > { %8286 = vtanh.f32 %v3532_v57  ;;  %v3533_v4 = vmul.f32 0.7978846, %v3509_v7  ;;  %v3576_v51 = vadd.f32 1.0, %v8279_v49  ;;  %v3536_v59 = vmul.f32 0.7978846, %v3512_v40 }
 0xab6   : > { %3807 = vmatmul.mubr.bf16.gmra.mxu0 %v3615_v16  ;;  %v3994_v47 = vrot.slane %v9986_v33, %v11479_v19  ;;  %8288 = vtanh.f32 %v3534_v39  ;;  %v3538_v26 = vmul.f32 0.7978846, %v3514_v10  ;;  %v3511_v15 = vadd.f32 %v3487_v35, %v10050_v45 }
 0xab7   : > { %v8281_v22 = vpop.eup %8280  ;;  %8290 = vtanh.f32 %v3531_v20  ;;  %v3513_v9 = vadd.f32 %v3489_v28, %v10066_v56  ;;  %v3408_v58 = vmul.f32 0.5, %v9996_v25  ;;  %v3410_v32 = vmul.f32 0.5, %v10014_v29 }
 0xab8   : > { %v3578_v63 = vadd.f32 1.0, %v8281_v22  ;;  %8292 = vtanh.f32 %v3533_v4  ;;  %v3535_v21 = vmul.f32 0.7978846, %v3511_v15  ;;  %v3407_v55 = vmul.f32 0.5, %v9993_v53 }
 0xab9   : > { %8294 = vtanh.f32 %v3536_v59  ;;  %v3537_v5 = vmul.f32 0.7978846, %v3513_v9  ;;  %v3600_v8 = vmul.f32 %v3576_v51, %v3408_v58  ;;  %v3409_v28 = vmul.f32 0.5, %v10006_v54 }
 0xaba   : > { %v3602_v62 = vmul.f32 %v3578_v63, %v3410_v32  ;;  %8296 = vtanh.f32 %v3538_v26  ;;  %v3412_v51 = vmul.f32 0.5, %v10033_v14  ;;  %v3414_v19 = vmul.f32 0.5, %v10038_v48 }
 0xabb   : > { %v4137_v38 = vpop.f32.mrf.mxu1  ;;  %8298 = vtanh.f32 %v3537_v5  ;;  %v3413_v22 = vmul.f32 0.5, %v10047_v41  ;;  %v3411_v32 = vmul.f32 0.5, %v10025_v31  ;;  %v3416_v63 = vmul.f32 0.5, %v10057_v46 }
 0xabc   : > { %v10114_v52 = vadd.f32 %v4137_v38, %v3994_v47  ;;  %v3618_v13 = vpack.c.bf16 %v3602_v62, %v3600_v8  ;;  %8300 = vtanh.f32 %v3535_v21  ;;  %v3418_v48 = vmul.f32 0.5, %v10071_v60 }
 0xabd   : > { %v7743_v24 = vpop.f32.mrf.mxu1  ;;  %v3417_v31 = vmul.f32 0.5, %v10066_v56  ;;  %v3415_v46 = vmul.f32 0.5, %v10050_v45 }
 0xabe   : > { %v8283_v35 = vpop.eup %8282  ;;  %3814 = vmatprep.mubr.bf16.mxu0 %v3618_v13 }
 0xabf   : > { %v4140_v3 = vpop.f32.mrf.mxu1  ;;  %v8285_v25 = vpop.eup %8284  ;;  %v3575_v29 = vadd.f32 1.0, %v8283_v35 }
 0xac0   : > { %v3577_v57 = vadd.f32 1.0, %v8285_v25 }
 0xac1   : > { %v7744_v39 = vpop.f32.mrf.mxu1  ;;  %v3599_v16 = vmul.f32 %v3575_v29, %v3407_v55 }
 0xac2   : > { %v8287_v7 = vpop.eup %8286  ;;  %v3601_v20 = vmul.f32 %v3577_v57, %v3409_v28  ;;  %v11480_v57 = vmov 0  }
 0xac3   : > { %v8289_v40 = vpop.eup %8288  ;;  %v3580_v49 = vadd.f32 1.0, %v8287_v7  ;;  %v7059_v7 = vld [vmem:[%s11435_s18] ss:$0 sm:$0xff] }
 0xac4   : > { %v8291_v4 = vpop.eup %8290  ;;  %v3617_v10 = vpack.c.bf16 %v3601_v20, %v3599_v16  ;;  %v3582_v47 = vadd.f32 1.0, %v8289_v40 }
 0xac5   : > { %v8293_v59 = vpop.eup %8292  ;;  %v3604_v54 = vmul.f32 %v3580_v49, %v3412_v51  ;;  %v3579_v15 = vadd.f32 1.0, %v8291_v4 }
 0xac6   : > { %v8295_v53 = vpop.eup %8294  ;;  %3815 = vmatmul.mubr.bf16.gmra.mxu0 %v3617_v10  ;;  %v3606_v26 = vmul.f32 %v3582_v47, %v3414_v19  ;;  %v3581_v9 = vadd.f32 1.0, %v8293_v59 }
 0xac7   : > { %v8297_v58 = vpop.eup %8296  ;;  %v3584_v5 = vadd.f32 1.0, %v8295_v53  ;;  %v3603_v41 = vmul.f32 %v3579_v15, %v3411_v32 }
 0xac8   : > { %v3620_v8 = vpack.c.bf16 %v3606_v26, %v3604_v54  ;;  %v3605_v14 = vmul.f32 %v3581_v9, %v3413_v22  ;;  %v3586_v62 = vadd.f32 1.0, %v8297_v58  ;;  %v8299_v38 = vpop.eup %8298 }
 0xac9   : > { %v3608_v21 = vmul.f32 %v3584_v5, %v3416_v63  ;;  %v8301_v24 = vpop.eup %8300  ;;  %v3585_v25 = vadd.f32 1.0, %v8299_v38 }
 0xaca   : > { %3822 = vmatprep.mubr.bf16.mxu0 %v3620_v8  ;;  %v3610_v13 = vmul.f32 %v3586_v62, %v3418_v48  ;;  %v3619_v35 = vpack.c.bf16 %v3605_v14, %v3603_v41  ;;  %v3583_v29 = vadd.f32 1.0, %v8301_v24 }
 0xacb   : > { %v3609_v55 = vmul.f32 %v3585_v25, %v3417_v31 }
 0xacc   : > { %v3622_v3 = vpack.c.bf16 %v3610_v13, %v3608_v21  ;;  %v3607_v28 = vmul.f32 %v3583_v29, %v3415_v46 }
 0xace   : > { %3823 = vmatmul.mubr.bf16.gmra.mxu0 %v3619_v35  ;;  %v3621_v60 = vpack.c.bf16 %v3609_v55, %v3607_v28 }
 0xacf   : > { %3830 = vmatprep.mubr.bf16.mxu0 %v3622_v3 }
 0xad6   : > { %3831 = vmatmul.mubr.bf16.gmra.mxu0 %v3621_v60 }
 0xad7   : > { %4478 = vmatprep.mubr.bf16.mxu0 %v11480_v57 }
 0xb64   : > { %v7391_v39 = vpop.f32.mrf.mxu0 }
 0xb66   : > { %v7392_v16 = vpop.f32.mrf.mxu0 }
 0xb67   : > { %v7393_v20 = vadd.f32 %v7392_v16, %v7391_v39 }
 0xb68   : > { %v7394_v40 = vpop.f32.mrf.mxu0 }
 0xb69   : > { %v3793_v49 = vadd.f32 %v7393_v20, %v7059_v7 }
 0xb6a   : > { %v7395_v56 = vpop.f32.mrf.mxu0 }
 0xb6b   : > { %v7396_v4 = vadd.f32 %v7395_v56, %v7394_v40  ;;  %3855 = vrot.lane.b32.xlu1 %v3793_v49, %s11481_s0 }
 0xb6c   : > { %v7397_v45 = vpop.f32.mrf.mxu0 }
 0xb6d   : > { %v3796_v10 = vadd.f32 %v7396_v4, %v7059_v7 }
 0xb6e   : > { %v7398_v51 = vpop.f32.mrf.mxu0 }
 0xb6f   : > { %v7399_v19 = vadd.f32 %v7398_v51, %v7397_v45  ;;  %3857 = vrot.lane.b32.xlu0 %v3796_v10, %s11481_s0  ;;  %v3842_v45 = vrot.slane %v8983_v12, %v8711_v18 }
 0xb70   : > { %v7400_v47 = vpop.f32.mrf.mxu0 }
 0xb71   : > { %v3801_v59 = vadd.f32 %v7399_v19, %v7059_v7 }
 0xb72   : > { %v7401_v22 = vpop.f32.mrf.mxu0 }
 0xb73   : > { %v7402_v53 = vadd.f32 %v7401_v22, %v7400_v47  ;;  %3859 = vrot.lane.b32.xlu1 %v3801_v59, %s11481_s0 }
 0xb75   : > { %v3804_v54 = vadd.f32 %v7402_v53, %v7059_v7 }
 0xb76   : > { %v7403_v26 = vpop.f32.mrf.mxu0 }
 0xb77   : > { %3861 = vrot.lane.b32.xlu1 %v3804_v54, %s11481_s0 }
 0xb78   : > { %v7404_v15 = vpop.f32.mrf.mxu0 }
 0xb79   : > { %v7405_v9 = vadd.f32 %v7404_v15, %v7403_v26 }
 0xb7a   : > { %v7406_v58 = vpop.f32.mrf.mxu0 }
 0xb7b   : > { %v3809_v32 = vadd.f32 %v7405_v9, %v7059_v7 }
 0xb7c   : > { %v7407_v63 = vpop.f32.mrf.mxu0 }
 0xb7d   : > { %v7408_v5 = vadd.f32 %v7407_v63, %v7406_v58  ;;  %3863 = vrot.lane.b32.xlu1 %v3809_v32, %s11481_s0 }
 0xb7f   : > { %v3812_v8 = vadd.f32 %v7408_v5, %v7059_v7 }
 0xb81   : > { %3865 = vrot.lane.b32.xlu1 %v3812_v8, %s11481_s0 }
 0xb86   : > { %v7409_v14 = vpop.f32.mrf.mxu0 }
 0xb88   : > { %v7410_v48 = vpop.f32.mrf.mxu0 }
 0xb89   : > { %v7411_v62 = vadd.f32 %v7410_v48, %v7409_v14 }
 0xb8a   : > { %v7412_v38 = vpop.f32.mrf.mxu0 }
 0xb8b   : > { %v3817_v41 = vadd.f32 %v7411_v62, %v7059_v7 }
 0xb8c   : > { %v7413_v21 = vpop.f32.mrf.mxu0 }
 0xb8d   : > { %v7414_v13 = vadd.f32 %v7413_v21, %v7412_v38  ;;  %3867 = vrot.lane.b32.xlu1 %v3817_v41, %s11481_s0 }
 0xb8e   : > { %v7415_v24 = vpop.f32.mrf.mxu0 }
 0xb8f   : > { %v3820_v35 = vadd.f32 %v7414_v13, %v7059_v7 }
 0xb90   : > { %v7416_v3 = vpop.f32.mrf.mxu0 }
 0xb91   : > { %v7417_v25 = vadd.f32 %v7416_v3, %v7415_v24  ;;  %3869 = vrot.lane.b32.xlu1 %v3820_v35, %s11481_s0 }
 0xb92   : > { %v7418_v31 = vpop.f32.mrf.mxu0 }
 0xb93   : > { %v3825_v29 = vadd.f32 %v7417_v25, %v7059_v7 }
 0xb94   : > { %v7419_v46 = vpop.f32.mrf.mxu0 }
 0xb95   : > { %v7420_v55 = vadd.f32 %v7419_v46, %v7418_v31  ;;  %3871 = vrot.lane.b32.xlu0 %v3825_v29, %s11481_s0 }
 0xb96   : > { %v7421_v28 = vpop.f32.mrf.mxu0 }
 0xb97   : > { %v3828_v60 = vadd.f32 %v7420_v55, %v7059_v7 }
 0xb98   : > { %v7422_v39 = vpop.f32.mrf.mxu0 }
 0xb99   : > { %v7423_v16 = vadd.f32 %v7422_v39, %v7421_v28  ;;  %3873 = vrot.lane.b32.xlu1 %v3828_v60, %s11481_s0 }
 0xb9a   : > { %v7424_v20 = vpop.f32.mrf.mxu0 }
 0xb9b   : > { %v3833_v40 = vadd.f32 %v7423_v16, %v7059_v7 }
 0xb9c   : > { %v7425_v49 = vpop.f32.mrf.mxu0 }
 0xb9d   : > { %v7426_v56 = vadd.f32 %v7425_v49, %v7424_v20  ;;  %3875 = vrot.lane.b32.xlu0 %v3833_v40, %s11481_s0  ;;  %v8050_v49 = vld [vmem:[%s11428_s11 + $0x70] ss:$8 sps:$4 sm:$0xff]  }
 0xb9f   : > { %v3836_v4 = vadd.f32 %v7426_v56, %v7059_v7 }
 0xba1   : > { %3877 = vrot.lane.b32.xlu1 %v3836_v4, %s11481_s0 }
 0xbdd   : > { %v3856_v10 = vpop.permute.xlu1 %3855 }
 0xbde   : > { %v3891_v51 = vmul.f32 %v3856_v10, %v3842_v45 }
 0xbe0   : > { %3915 = vrot.lane.b32.xlu0 %v3891_v51, %s11481_s0 }
 0xbe1   : > { %v3858_v19 = vpop.permute.xlu0 %3857 }
 0xbe2   : > { %v3892_v47 = vmul.f32 %v3858_v19, %v3842_v45 }
 0xbe4   : > { %3917 = vrot.lane.b32.xlu1 %v3892_v47, %s11481_s0 }
 0xbe5   : > { %v3860_v59 = vpop.permute.xlu1 %3859 }
 0xbe6   : > { %v3893_v22 = vmul.f32 %v3860_v59, %v3842_v45 }
 0xbe8   : > { %3919 = vrot.lane.b32.xlu0 %v3893_v22, %s11481_s0 }
 0xbe9   : > { %v3862_v53 = vpop.permute.xlu1 %3861 }
 0xbea   : > { %v3894_v54 = vmul.f32 %v3862_v53, %v3842_v45 }
 0xbec   : > { %3921 = vrot.lane.b32.xlu1 %v3894_v54, %s11481_s0 }
 0xbef   : > { %v3864_v7 = vpop.permute.xlu1 %3863 }
 0xbf0   : > { %v3895_v26 = vmul.f32 %v3864_v7, %v3842_v45 }
 0xbf2   : > { %3923 = vrot.lane.b32.xlu0 %v3895_v26, %s11481_s0 }
 0xbf3   : > { %v3866_v12 = vpop.permute.xlu1 %3865 }
 0xbf4   : > { %v3896_v15 = vmul.f32 %v3866_v12, %v3842_v45 }
 0xbf6   : > { %3925 = vrot.lane.b32.xlu1 %v3896_v15, %s11481_s0 }
 0xbff   : > { %v3868_v9 = vpop.permute.xlu1 %3867 }
 0xc00   : > { %v3897_v58 = vmul.f32 %v3868_v9, %v3842_v45 }
 0xc02   : > { %3927 = vrot.lane.b32.xlu0 %v3897_v58, %s11481_s0 }
 0xc03   : > { %v3870_v32 = vpop.permute.xlu1 %3869 }
 0xc04   : > { %v3898_v63 = vmul.f32 %v3870_v32, %v3842_v45 }
 0xc06   : > { %3929 = vrot.lane.b32.xlu1 %v3898_v63, %s11481_s0  ;;  %v8053_v63 = vld [vmem:[%s11428_s11 + $0x60] ss:$8 sps:$4 sm:$0xff]  }
 0xc07   : > { %v3872_v5 = vpop.permute.xlu0 %3871 }
 0xc08   : > { %v3899_v8 = vmul.f32 %v3872_v5, %v3842_v45  ;;  %v8055_v5 = vld [vmem:[%s11428_s11 + $0x64] ss:$8 sps:$4 sm:$0xff]  }
 0xc0a   : > { %3931 = vrot.lane.b32.xlu0 %v3899_v8, %s11481_s0 }
 0xc0b   : > { %v3874_v14 = vpop.permute.xlu1 %3873 }
 0xc0c   : > { %v3900_v48 = vmul.f32 %v3874_v14, %v3842_v45 }
 0xc0e   : > { %3933 = vrot.lane.b32.xlu1 %v3900_v48, %s11481_s0 }
 0xc0f   : > { %v3876_v62 = vpop.permute.xlu0 %3875 }
 0xc10   : > { %v3901_v38 = vmul.f32 %v3876_v62, %v3842_v45 }
 0xc12   : > { %3935 = vrot.lane.b32.xlu0 %v3901_v38, %s11481_s0 }
 0xc13   : > { %v3878_v41 = vpop.permute.xlu1 %3877 }
 0xc14   : > { %v3902_v21 = vmul.f32 %v3878_v41, %v3842_v45  ;;  %v8056_v41 = vld [vmem:[%s11428_s11 + $0x50] ss:$8 sps:$4 sm:$0xff]  }
 0xc16   : > { %3937 = vrot.lane.b32.xlu1 %v3902_v21, %s11481_s0 }
 0xc52   : > { %v3916_v13 = vpop.permute.xlu0 %3915 }
 0xc53   : > { %v10157_v24 = vadd.f32 %v3916_v13, %v9574_v6 }
 0xc55   : > { %v4143_v35 = vsel %vm977_vm3, %v10157_v24, 0.0  ;;  %v4179_v3 = vmul.f32 %v10157_v24, %v10157_v24 }
 0xc56   : > { %v3918_v25 = vpop.permute.xlu1 %3917  ;;  %4144 = vadd.xlane.f32.xlu0 %v4143_v35 }
 0xc57   : > { %v10164_v31 = vadd.f32 %v3918_v25, %v9584_v44  ;;  %v4191_v46 = vsel %vm977_vm3, %v4179_v3, 0.0 }
 0xc59   : > { %v4146_v29 = vsel %vm977_vm3, %v10164_v31, 0.0  ;;  %v4180_v6 = vmul.f32 %v10164_v31, %v10164_v31 }
 0xc5a   : > { %4147 = vadd.xlane.f32.xlu1 %v4146_v29  ;;  %4192 = vadd.xlane.f32.xlu0 %v4191_v46  ;;  %v3920_v55 = vpop.permute.xlu0 %3919 }
 0xc5b   : > { %v10172_v28 = vadd.f32 %v3920_v55, %v9568_v1  ;;  %v4194_v60 = vsel %vm977_vm3, %v4180_v6, 0.0  ;;  %v3986_v55 = vrot.slane %v9986_v33, %v8711_v18 }
 0xc5d   : > { %v4149_v20 = vsel %vm977_vm3, %v10172_v28, 0.0  ;;  %v4181_v1 = vmul.f32 %v10172_v28, %v10172_v28 }
 0xc5e   : > { %v3922_v39 = vpop.permute.xlu1 %3921  ;;  %4195 = vadd.xlane.f32.xlu0 %v4194_v60 }
 0xc5f   : > { %v10176_v44 = vadd.f32 %v3922_v39, %v9578_v50  ;;  %v8052_v50 = vld [vmem:[%s11428_s11 + $0x74] ss:$8 sps:$4 sm:$0xff]   ;;  %v4197_v45 = vsel %vm977_vm3, %v4181_v1, 0.0 }
 0xc60   : > { %4454 = vmatprep.subr.bf16.mxu0 %v8052_v50 }
 0xc61   : > { %v4152_v16 = vsel %vm977_vm3, %v10176_v44, 0.0  ;;  %v4182_v40 = vmul.f32 %v10176_v44, %v10176_v44  ;;  %4455 = vmatpush1.bf16.msra.mxu0 %v8050_v49 }
 0xc62   : > { %4153 = vadd.xlane.f32.xlu1 %v4152_v16  ;;  %4150 = vadd.xlane.f32.xlu0 %v4149_v20  ;;  %v10268_v16 = vadd.f32 %v10074_v27, %v3986_v55  ;;  %v8059_v20 = vld [vmem:[%s11428_s11 + $0x40] ss:$8 sps:$4 sm:$0xff]  }
 0xc63   : > { %v4200_v4 = vsel %vm977_vm3, %v4182_v40, 0.0  ;;  %4456 = vmatprep.subr.bf16.mxu0 %v8055_v5  ;;  %v8061_v40 = vld [vmem:[%s11428_s11 + $0x44] ss:$8 sps:$4 sm:$0xff]  }
 0xc64   : > { %v3924_v56 = vpop.permute.xlu0 %3923  ;;  %v4323_v27 = vadd.f32 1.0, %v10268_v16 }
 0xc65   : > { %v10195_v10 = vadd.f32 %v3924_v56, %v9609_v30  ;;  %4457 = vmatpush1.bf16.msra.mxu0 %v8053_v63 }
 0xc66   : > { %4201 = vadd.xlane.f32.xlu1 %v4200_v4  ;;  %4198 = vadd.xlane.f32.xlu0 %v4197_v45  ;;  %v4327_v49 = vrot.slane %v4323_v27, %v8711_v18 }
 0xc67   : > { %v4155_v19 = vsel %vm977_vm3, %v10195_v10, 0.0  ;;  %v4183_v47 = vmul.f32 %v10195_v10, %v10195_v10 }
 0xc68   : > { %v3926_v51 = vpop.permute.xlu1 %3925 }
 0xc69   : > { %v10202_v59 = vadd.f32 %v3926_v51, %v9617_v61  ;;  %v4203_v53 = vsel %vm977_vm3, %v4183_v47, 0.0 }
 0xc6a   : > { %4156 = vadd.xlane.f32.xlu0 %v4155_v19 }
 0xc6b   : > { %v4158_v22 = vsel %vm977_vm3, %v10202_v59, 0.0  ;;  %v4184_v30 = vmul.f32 %v10202_v59, %v10202_v59 }
 0xc6c   : > { %4159 = vadd.xlane.f32.xlu1 %v4158_v22 }
 0xc6d   : > { %v4206_v54 = vsel %vm977_vm3, %v4184_v30, 0.0 }
 0xc6e   : > { %4204 = vadd.xlane.f32.xlu0 %v4203_v53 }
 0xc70   : > { %4207 = vadd.xlane.f32.xlu1 %v4206_v54 }
 0xc74   : > { %v3928_v7 = vpop.permute.xlu0 %3927 }
 0xc75   : > { %v10211_v26 = vadd.f32 %v3928_v7, %v9600_v23 }
 0xc77   : > { %v4161_v61 = vsel %vm977_vm3, %v10211_v26, 0.0  ;;  %v4185_v12 = vmul.f32 %v10211_v26, %v10211_v26 }
 0xc78   : > { %v3930_v15 = vpop.permute.xlu1 %3929  ;;  %4162 = vadd.xlane.f32.xlu0 %v4161_v61 }
 0xc79   : > { %v10218_v9 = vadd.f32 %v3930_v15, %v9611_v2  ;;  %v4209_v23 = vsel %vm977_vm3, %v4185_v12, 0.0 }
 0xc7b   : > { %v4164_v58 = vsel %vm977_vm3, %v10218_v9, 0.0  ;;  %v4186_v32 = vmul.f32 %v10218_v9, %v10218_v9 }
 0xc7c   : > { %4165 = vadd.xlane.f32.xlu1 %v4164_v58  ;;  %v3932_v8 = vpop.permute.xlu0 %3931  ;;  %4210 = vadd.xlane.f32.xlu0 %v4209_v23 }
 0xc7d   : > { %v10232_v2 = vadd.f32 %v3932_v8, %v9656_v37  ;;  %v4212_v14 = vsel %vm977_vm3, %v4186_v32, 0.0  ;;  %v8058_v37 = vld [vmem:[%s11428_s11 + $0x54] ss:$8 sps:$4 sm:$0xff]  }
 0xc7e   : > { %4458 = vmatprep.subr.bf16.mxu0 %v8058_v37 }
 0xc7f   : > { %v4167_v48 = vsel %vm977_vm3, %v10232_v2, 0.0  ;;  %v4187_v62 = vmul.f32 %v10232_v2, %v10232_v2  ;;  %4459 = vmatpush1.bf16.msra.mxu0 %v8056_v41 }
 0xc80   : > { %4213 = vadd.xlane.f32.xlu1 %v4212_v14  ;;  %v3934_v38 = vpop.permute.xlu1 %3933  ;;  %4168 = vadd.xlane.f32.xlu0 %v4167_v48 }
 0xc81   : > { %v10246_v21 = vadd.f32 %v3934_v38, %v9669_v17  ;;  %v4215_v3 = vsel %vm977_vm3, %v4187_v62, 0.0  ;;  %4460 = vmatprep.subr.bf16.mxu0 %v8061_v40 }
 0xc83   : > { %v4170_v13 = vsel %vm977_vm3, %v10246_v21, 0.0  ;;  %v4188_v35 = vmul.f32 %v10246_v21, %v10246_v21  ;;  %4461 = vmatpush1.bf16.msra.mxu0 %v8059_v20 }
 0xc84   : > { %4171 = vadd.xlane.f32.xlu1 %v4170_v13  ;;  %v3936_v25 = vpop.permute.xlu0 %3935  ;;  %4216 = vadd.xlane.f32.xlu0 %v4215_v3 }
 0xc85   : > { %v10254_v29 = vadd.f32 %v3936_v25, %v9652_v42  ;;  %v4218_v46 = vsel %vm977_vm3, %v4188_v35, 0.0 }
 0xc87   : > { %v4173_v17 = vsel %vm977_vm3, %v10254_v29, 0.0  ;;  %v4189_v6 = vmul.f32 %v10254_v29, %v10254_v29 }
 0xc88   : > { %4219 = vadd.xlane.f32.xlu1 %v4218_v46  ;;  %v3938_v60 = vpop.permute.xlu1 %3937 }
 0xc89   : > { %v10264_v39 = vadd.f32 %v3938_v60, %v9662_v43  ;;  %v4221_v42 = vsel %vm977_vm3, %v4189_v6, 0.0 }
 0xc8b   : > { %v4176_v33 = vsel %vm977_vm3, %v10264_v39, 0.0  ;;  %v4190_v43 = vmul.f32 %v10264_v39, %v10264_v39 }
 0xc8c   : > { %4174 = vadd.xlane.f32.xlu1 %v4173_v17 }
 0xc8d   : > { %v4224_v1 = vsel %vm977_vm3, %v4190_v43, 0.0 }
 0xc90   : > { %4222 = vadd.xlane.f32.xlu1 %v4221_v42 }
 0xc94   : > { %4177 = vadd.xlane.f32.xlu1 %v4176_v33 }
 0xc98   : > { %4225 = vadd.xlane.f32.xlu1 %v4224_v1 }
 0xc9a   : > { %4329 = vrot.lane.b32.xlu0 %v4327_v49, %s11481_s0 }
 0xcdf   : > { %v4145_v50 = vpop.xlane.xlu0 %4144 }
 0xce0   : > { %v10284_v30 = vmul.f32 0.015625, %v4145_v50 }
 0xce2   : > { %v4251_v12 = vmul.f32 %v10284_v30, %v10284_v30 }
 0xce3   : > { %v4193_v56 = vpop.xlane.xlu0 %4192  ;;  %v4148_v4 = vpop.xlane.xlu1 %4147 }
 0xce4   : > { %v10286_v53 = vmul.f32 0.015625, %v4148_v4  ;;  %v4239_v54 = vmul.f32 0.015625, %v4193_v56 }
 0xce6   : > { %v4252_v32 = vmul.f32 %v10286_v53, %v10286_v53  ;;  %v4263_v63 = vsub.f32 %v4239_v54, %v4251_v12 }
 0xce7   : > { %v4196_v45 = vpop.xlane.xlu0 %4195 }
 0xce8   : > { %v4240_v61 = vmul.f32 0.015625, %v4196_v45  ;;  %v4287_v13 = vadd.f32 1e-06, %v4263_v63 }
 0xcea   : > { %v4264_v8 = vsub.f32 %v4240_v61, %v4252_v32  ;;  %8302 = vrsqrt.f32 %v4287_v13 }
 0xceb   : > { %v4154_v51 = vpop.xlane.xlu1 %4153  ;;  %v4151_v19 = vpop.xlane.xlu0 %4150 }
 0xcec   : > { %v10290_v15 = vmul.f32 0.015625, %v4151_v19  ;;  %v10294_v23 = vmul.f32 0.015625, %v4154_v51  ;;  %v4288_v25 = vadd.f32 1e-06, %v4264_v8 }
 0xcee   : > { %v4253_v48 = vmul.f32 %v10290_v15, %v10290_v15  ;;  %v4254_v38 = vmul.f32 %v10294_v23, %v10294_v23  ;;  %8304 = vrsqrt.f32 %v4288_v25  ;;  %v10328_v25 = vrot.slane %v10268_v16, %v8711_v18 }
 0xcef   : > { %v4199_v47 = vpop.xlane.xlu0 %4198  ;;  %v4202_v22 = vpop.xlane.xlu1 %4201 }
 0xcf0   : > { %v4241_v5 = vmul.f32 0.015625, %v4199_v47  ;;  %v4242_v14 = vmul.f32 0.015625, %v4202_v22 }
 0xcf2   : > { %v4265_v35 = vsub.f32 %v4241_v5, %v4253_v48  ;;  %v4266_v46 = vsub.f32 %v4242_v14, %v4254_v38  ;;  %v4275_v5 = vsub.f32 %v10157_v24, %v10284_v30  ;;  %v4276_v48 = vsub.f32 %v10164_v31, %v10286_v53 }
 0xcf3   : > { %v4157_v7 = vpop.xlane.xlu0 %4156  ;;  %v4277_v53 = vsub.f32 %v10172_v28, %v10290_v15 }
 0xcf4   : > { %v10300_v41 = vmul.f32 0.015625, %v4157_v7  ;;  %v4289_v60 = vadd.f32 1e-06, %v4265_v35  ;;  %v4290_v20 = vadd.f32 1e-06, %v4266_v46 }
 0xcf5   : > { %v4160_v58 = vpop.xlane.xlu1 %4159 }
 0xcf6   : > { %v10302_v3 = vmul.f32 0.015625, %v4160_v58  ;;  %v4255_v55 = vmul.f32 %v10300_v41, %v10300_v41  ;;  %8306 = vrsqrt.f32 %v4289_v60 }
 0xcf7   : > { %v4205_v62 = vpop.xlane.xlu0 %4204  ;;  %8308 = vrsqrt.f32 %v4290_v20  ;;  %v8303_v12 = vpop.eup %8302 }
 0xcf8   : > { %v4243_v17 = vmul.f32 0.015625, %v4205_v62  ;;  %v4256_v42 = vmul.f32 %v10302_v3, %v10302_v3  ;;  %v4311_v46 = vmul.f32 %v8303_v12, %v4275_v5  ;;  %v4280_v12 = vsub.f32 %v10202_v59, %v10302_v3 }
 0xcf9   : > { %v4208_v37 = vpop.xlane.xlu1 %4207 }
 0xcfa   : > { %v4244_v6 = vmul.f32 0.015625, %v4208_v37  ;;  %v4267_v40 = vsub.f32 %v4243_v17, %v4255_v55 }
 0xcfb   : > { %v8305_v63 = vpop.eup %8304 }
 0xcfc   : > { %v4268_v33 = vsub.f32 %v4244_v6, %v4256_v42  ;;  %v4291_v1 = vadd.f32 1e-06, %v4267_v40  ;;  %v4312_v17 = vmul.f32 %v8305_v63, %v4276_v48  ;;  %v4278_v6 = vsub.f32 %v10176_v44, %v10294_v23 }
 0xcfe   : > { %v4292_v49 = vadd.f32 1e-06, %v4268_v33  ;;  %8310 = vrsqrt.f32 %v4291_v1 }
 0xd00   : > { %8312 = vrsqrt.f32 %v4292_v49 }
 0xd01   : > { %v4163_v43 = vpop.xlane.xlu0 %4162 }
 0xd02   : > { %v10308_v27 = vmul.f32 0.015625, %v4163_v43 }
 0xd03   : > { %v8307_v35 = vpop.eup %8306 }
 0xd04   : > { %v4257_v45 = vmul.f32 %v10308_v27, %v10308_v27  ;;  %v8309_v30 = vpop.eup %8308  ;;  %v4313_v43 = vmul.f32 %v8307_v35, %v4277_v53  ;;  %v4281_v53 = vsub.f32 %v10211_v26, %v10308_v27 }
 0xd05   : > { %v4166_v50 = vpop.xlane.xlu1 %4165  ;;  %v4211_v56 = vpop.xlane.xlu0 %4210  ;;  %v4314_v15 = vmul.f32 %v8309_v30, %v4278_v6 }
 0xd06   : > { %v10310_v4 = vmul.f32 0.015625, %v4166_v50  ;;  %v4245_v51 = vmul.f32 0.015625, %v4211_v56 }
 0xd08   : > { %v4269_v19 = vsub.f32 %v4245_v51, %v4257_v45  ;;  %v4258_v54 = vmul.f32 %v10310_v4, %v10310_v4  ;;  %v4282_v6 = vsub.f32 %v10218_v9, %v10310_v4 }
 0xd09   : > { %v4214_v47 = vpop.xlane.xlu1 %4213  ;;  %v4169_v22 = vpop.xlane.xlu0 %4168 }
 0xd0a   : > { %v4246_v7 = vmul.f32 0.015625, %v4214_v47  ;;  %v10316_v61 = vmul.f32 0.015625, %v4169_v22  ;;  %v4293_v32 = vadd.f32 1e-06, %v4269_v19 }
 0xd0b   : > { %v8311_v50 = vpop.eup %8310 }
 0xd0c   : > { %v4270_v58 = vsub.f32 %v4246_v7, %v4258_v54  ;;  %v4259_v13 = vmul.f32 %v10316_v61, %v10316_v61  ;;  %8314 = vrsqrt.f32 %v4293_v32 }
 0xd0d   : > { %v4172_v8 = vpop.xlane.xlu1 %4171  ;;  %v4217_v14 = vpop.xlane.xlu0 %4216 }
 0xd0e   : > { %v4294_v62 = vadd.f32 1e-06, %v4270_v58  ;;  %v10322_v38 = vmul.f32 0.015625, %v4172_v8  ;;  %v4247_v37 = vmul.f32 0.015625, %v4217_v14  ;;  %v8313_v19 = vpop.eup %8312  ;;  %v4279_v58 = vsub.f32 %v10195_v10, %v10300_v41 }
 0xd0f   : > { %v4316_v8 = vmul.f32 %v8313_v19, %v4280_v12 }
 0xd10   : > { %8316 = vrsqrt.f32 %v4294_v62  ;;  %v4271_v60 = vsub.f32 %v4247_v37, %v4259_v13  ;;  %v4260_v20 = vmul.f32 %v10322_v38, %v10322_v38  ;;  %v4315_v5 = vmul.f32 %v8311_v50, %v4279_v58 }
 0xd11   : > { %v4220_v55 = vpop.xlane.xlu1 %4219  ;;  %v10334_v42 = vpop.permute.xlu0 %4329 }
 0xd12   : > { %v4248_v16 = vmul.f32 0.015625, %v4220_v55  ;;  %v4332_v40 = vmul.f32 %v10334_v42, %v4311_v46  ;;  %v4333_v33 = vmul.f32 %v10334_v42, %v4312_v17  ;;  %v4295_v56 = vadd.f32 1e-06, %v4271_v60 }
 0xd13   : > { %v4334_v51 = vmul.f32 %v10334_v42, %v4313_v43  ;;  %v4335_v7 = vmul.f32 %v10334_v42, %v4314_v15  ;;  %v4336_v13 = vmul.f32 %v10334_v42, %v4315_v5  ;;  %v4337_v35 = vmul.f32 %v10334_v42, %v4316_v8 }
 0xd14   : > { %v4272_v1 = vsub.f32 %v4248_v16, %v4260_v20  ;;  %v4348_v23 = vadd.f32 %v10328_v25, %v4332_v40  ;;  %v4349_v49 = vadd.f32 %v10328_v25, %v4333_v33  ;;  %8318 = vrsqrt.f32 %v4295_v56 }
 0xd15   : > { %v4175_v45 = vpop.xlane.xlu1 %4174  ;;  %v4350_v63 = vadd.f32 %v10328_v25, %v4334_v51  ;;  %v4351_v3 = vadd.f32 %v10328_v25, %v4335_v7  ;;  %v4352_v20 = vadd.f32 %v10328_v25, %v4336_v13  ;;  %v4353_v16 = vadd.f32 %v10328_v25, %v4337_v35 }
 0xd16   : > { %v4296_v47 = vadd.f32 1e-06, %v4272_v1  ;;  %v10343_v22 = vmul.f32 0.015625, %v4175_v45  ;;  %v4360_v54 = vpack.c.bf16 %v4349_v49, %v4348_v23  ;;  %v4284_v45 = vsub.f32 %v10246_v21, %v10322_v38 }
 0xd17   : > { %v4361_v30 = vpack.c.bf16 %v4351_v3, %v4350_v63  ;;  %v4362_v15 = vpack.c.bf16 %v4353_v16, %v4352_v20  ;;  %v4283_v51 = vsub.f32 %v10232_v2, %v10316_v61 }
 0xd18   : > { %7124 = vmatmul.mubr.msk.bf16.vlgmr.msra.gmra.mxu0 %vm977_vm3, %v4360_v54  ;;  %8320 = vrsqrt.f32 %v4296_v47  ;;  %v4261_v14 = vmul.f32 %v10343_v22, %v10343_v22  ;;  %v4285_v61 = vsub.f32 %v10254_v29, %v10343_v22 }
 0xd19   : > { %v4223_v32 = vpop.xlane.xlu1 %4222  ;;  %4488 = vmatprep.mubr.bf16.mxu0 %v11480_v57  ;;  %v8315_v37 = vpop.eup %8314 }
 0xd1a   : > { %v4249_v48 = vmul.f32 0.015625, %v4223_v32  ;;  %v4317_v43 = vmul.f32 %v8315_v37, %v4281_v53 }
 0xd1c   : > { %v4273_v62 = vsub.f32 %v4249_v48, %v4261_v14  ;;  %v4338_v27 = vmul.f32 %v10334_v42, %v4317_v43 }
 0xd1d   : > { %v4178_v41 = vpop.xlane.xlu1 %4177  ;;  %v8317_v46 = vpop.eup %8316 }
 0xd1e   : > { %v4238_v17 = vmul.f32 0.015625, %v4178_v41  ;;  %v4297_v55 = vadd.f32 1e-06, %v4273_v62  ;;  %v4318_v1 = vmul.f32 %v8317_v46, %v4282_v6  ;;  %v4354_v19 = vadd.f32 %v10328_v25, %v4338_v27  ;;  %v7115_v46 = vld [vmem:[%s11429_s12 + $0x2] sm:$0x3] }
 0xd20   : > { %7125 = vmatmul.mubr.msk.bf16.gmra.mxu0 %vm977_vm3, %v4361_v30  ;;  %v4262_v40 = vmul.f32 %v4238_v17, %v4238_v17  ;;  %8322 = vrsqrt.f32 %v4297_v55  ;;  %v4339_v50 = vmul.f32 %v10334_v42, %v4318_v1  ;;  %v4286_v8 = vsub.f32 %v10264_v39, %v4238_v17 }
 0xd21   : > { %v4226_v60 = vpop.xlane.xlu1 %4225  ;;  %4498 = vmatprep.mubr.bf16.mxu0 %v11480_v57  ;;  %v8319_v4 = vpop.eup %8318  ;;  %v4381_v30 = vrot.slane %v7115_v46, %v8711_v18 }
 0xd22   : > { %v4250_v33 = vmul.f32 0.015625, %v4226_v60  ;;  %v4355_v47 = vadd.f32 %v10328_v25, %v4339_v50  ;;  %v4319_v54 = vmul.f32 %v8319_v4, %v4283_v51 }
 0xd24   : > { %v4274_v23 = vsub.f32 %v4250_v33, %v4262_v40  ;;  %v4363_v12 = vpack.c.bf16 %v4355_v47, %v4354_v19  ;;  %v4340_v58 = vmul.f32 %v10334_v42, %v4319_v54 }
 0xd25   : > { %v8321_v56 = vpop.eup %8320 }
 0xd26   : > { %v4298_v49 = vadd.f32 1e-06, %v4274_v23  ;;  %v4320_v7 = vmul.f32 %v8321_v56, %v4284_v45  ;;  %v4356_v63 = vadd.f32 %v10328_v25, %v4340_v58 }
 0xd28   : > { %8324 = vrsqrt.f32 %v4298_v49  ;;  %7126 = vmatmul.mubr.msk.bf16.gmra.mxu0 %vm977_vm3, %v4362_v15  ;;  %v4341_v32 = vmul.f32 %v10334_v42, %v4320_v7 }
 0xd29   : > { %4508 = vmatprep.mubr.bf16.mxu0 %v11480_v57 }
 0xd2a   : > { %v4357_v5 = vadd.f32 %v10328_v25, %v4341_v32 }
 0xd2c   : > { %v4364_v3 = vpack.c.bf16 %v4357_v5, %v4356_v63 }
 0xd2d   : > { %v8323_v38 = vpop.eup %8322 }
 0xd2e   : > { %v4321_v14 = vmul.f32 %v8323_v38, %v4285_v61 }
 0xd30   : > { %7127 = vmatmul.mubr.msk.bf16.gmra.mxu0 %vm977_vm3, %v4363_v12  ;;  %v4342_v37 = vmul.f32 %v10334_v42, %v4321_v14  ;;  %v4385_v14 = vrot.slane %v7115_v46, %v8695_v11 }
 0xd31   : > { %4518 = vmatprep.mubr.bf16.mxu0 %v11480_v57 }
 0xd32   : > { %v4358_v13 = vadd.f32 %v10328_v25, %v4342_v37 }
 0xd35   : > { %v8325_v48 = vpop.eup %8324 }
 0xd36   : > { %v4322_v62 = vmul.f32 %v8325_v48, %v4286_v8 }
 0xd38   : > { %7128 = vmatmul.mubr.msk.bf16.gmra.mxu0 %vm977_vm3, %v4364_v3  ;;  %v4343_v41 = vmul.f32 %v10334_v42, %v4322_v62 }
 0xd39   : > { %4528 = vmatprep.mubr.bf16.mxu0 %v11480_v57 }
 0xd3a   : > { %v4359_v22 = vadd.f32 %v10328_v25, %v4343_v41 }
 0xd3c   : > { %v4365_v35 = vpack.c.bf16 %v4359_v22, %v4358_v13 }
 0xd40   : > { %7129 = vmatmul.mubr.msk.bf16.gmra.mxu0 %vm977_vm3, %v4365_v35 }
 0xdd8   : > { %v4480_v17 = vpop.f32.mrf.mxu0 }
 0xdd9   : > { %v4481_v42 = vadd.f32 %v4480_v17, %v4381_v30 }
 0xdda   : > { %v10396_v6 = vpop.f32.mrf.mxu0 }
 0xddc   : > { %v4484_v53 = vpop.f32.mrf.mxu0 }
 0xddd   : > { %v4485_v55 = vadd.f32 %v4484_v53, %v4381_v30 }
 0xdde   : > { %v10398_v60 = vpop.f32.mrf.mxu0 }
 0xddf   : > { %v10400_v20 = vpack.c.bf16 %v4485_v55, %v4481_v42 }
 0xde0   : > { %v4490_v25 = vpop.f32.mrf.mxu0 }
 0xde1   : > { %7757 = vmatprep.mubr.msk.bf16.mxu1 %vm1904_vm4, %v10400_v20  ;;  %v4491_v53 = vadd.f32 %v4490_v25, %v4381_v30 }
 0xde2   : > { %v4492_v16 = vpop.f32.mrf.mxu0 }
 0xde4   : > { %v4494_v40 = vpop.f32.mrf.mxu0 }
 0xde5   : > { %v4495_v62 = vadd.f32 %v4494_v40, %v4381_v30 }
 0xde6   : > { %v4496_v33 = vpop.f32.mrf.mxu0 }
 0xde7   : > { %v10421_v46 = vpack.c.bf16 %v4495_v62, %v4491_v53 }
 0xde8   : > { %v4500_v43 = vpop.f32.mrf.mxu0 }
 0xde9   : > { %v4501_v5 = vadd.f32 %v4500_v43, %v4381_v30 }
 0xdea   : > { %v4502_v1 = vpop.f32.mrf.mxu0 }
 0xdec   : > { %v4504_v23 = vpop.f32.mrf.mxu0 }
 0xded   : > { %v4505_v38 = vadd.f32 %v4504_v23, %v4381_v30 }
 0xdee   : > { %v4506_v4 = vpop.f32.mrf.mxu0 }
 0xdef   : > { %v10413_v37 = vpack.c.bf16 %v4505_v38, %v4501_v5 }
 0xdf0   : > { %v4510_v49 = vpop.f32.mrf.mxu0 }
 0xdf1   : > { %v4511_v32 = vadd.f32 %v4510_v49, %v4381_v30  ;;  %v4503_v49 = vadd.f32 %v4502_v1, %v4385_v14  ;;  %v4487_v1 = vadd.f32 %v10398_v60, %v4385_v14 }
 0xdf2   : > { %v4512_v15 = vpop.f32.mrf.mxu0 }
 0xdf3   : > { %v4513_v23 = vadd.f32 %v4512_v15, %v4385_v14  ;;  %v4497_v15 = vadd.f32 %v4496_v33, %v4385_v14  ;;  %v4483_v33 = vadd.f32 %v10396_v6, %v4385_v14 }
 0xdf4   : > { %v4514_v27 = vpop.f32.mrf.mxu0 }
 0xdf5   : > { %v4515_v7 = vadd.f32 %v4514_v27, %v4381_v30 }
 0xdf6   : > { %v4516_v50 = vpop.f32.mrf.mxu0 }
 0xdf7   : > { %v10408_v63 = vpack.c.bf16 %v4515_v7, %v4511_v32  ;;  %v4517_v40 = vadd.f32 %v4516_v50, %v4385_v14  ;;  %v4493_v50 = vadd.f32 %v4492_v16, %v4385_v14  ;;  %v10456_v16 = vpack.c.bf16 %v4487_v1, %v4483_v33 }
 0xdf8   : > { %v4520_v56 = vpop.f32.mrf.mxu0 }
 0xdf9   : > { %v4521_v19 = vadd.f32 %v4520_v56, %v4381_v30  ;;  %v10430_v25 = vpack.c.bf16 %v4517_v40, %v4513_v23 }
 0xdfa   : > { %v4522_v45 = vpop.f32.mrf.mxu0 }
 0xdfb   : > { %v4523_v42 = vadd.f32 %v4522_v45, %v4385_v14 }
 0xdfc   : > { %v4524_v51 = vpop.f32.mrf.mxu0 }
 0xdfd   : > { %v4525_v47 = vadd.f32 %v4524_v51, %v4381_v30 }
 0xdfe   : > { %v4526_v54 = vpop.f32.mrf.mxu0 }
 0xdff   : > { %v10404_v12 = vpack.c.bf16 %v4525_v47, %v4521_v19  ;;  %v4527_v22 = vadd.f32 %v4526_v54, %v4385_v14 }
 0xe00   : > { %v4530_v58 = vpop.f32.mrf.mxu0 }
 0xe01   : > { %4559 = vrot.lane.b32.xlu0 %v10404_v12, %s11481_s0  ;;  %v4531_v48 = vadd.f32 %v4530_v58, %v4381_v30  ;;  %v10423_v43 = vpack.c.bf16 %v4527_v22, %v4523_v42 }
 0xe02   : > { %v4532_v61 = vpop.f32.mrf.mxu0 }
 0xe03   : > { %v4533_v13 = vadd.f32 %v4532_v61, %v4385_v14 }
 0xe04   : > { %v4534_v8 = vpop.f32.mrf.mxu0 }
 0xe05   : > { %v4535_v3 = vadd.f32 %v4534_v8, %v4381_v30  ;;  %4557 = vrot.lane.b32.xlu0 %v10408_v63, %s11481_s0  ;;  %v4507_v30 = vadd.f32 %v4506_v4, %v4385_v14  ;;  %v10447_v4 = vpack.c.bf16 %v4497_v15, %v4493_v50 }
 0xe06   : > { %v4536_v41 = vpop.f32.mrf.mxu0 }
 0xe07   : > { %v10415_v35 = vpack.c.bf16 %v4535_v3, %v4531_v48  ;;  %v4537_v17 = vadd.f32 %v4536_v41, %v4385_v14  ;;  %v10438_v27 = vpack.c.bf16 %v4507_v30, %v4503_v49 }
 0xe09   : > { %v4847_v55 = vpack.c.bf16 %v4537_v17, %v4533_v13  ;;  %4561 = vrot.lane.b32.xlu1 %v10415_v35, %s11481_s0  ;;  %4555 = vrot.lane.b32.xlu0 %v10413_v37, %s11481_s0 }
 0xe0b   : > { %7769 = vmatprep.subr.bf16.mxu0 %v4847_v55 }
 0xe0c   : > { %7770 = vmatpush3.bf16.msra.mxu0 %v4847_v55 }
 0xe0d   : > { %7771 = vmatprep.subr.bf16.mxu0 %v10423_v43  ;;  %4553 = vrot.lane.b32.xlu1 %v10421_v46, %s11481_s0 }
 0xe0e   : > { %4551 = vrot.lane.b32.xlu0 %v10400_v20, %s11481_s0 }
 0xe10   : > { %7772 = vmatpush3.bf16.msra.mxu0 %v10423_v43 }
 0xe11   : > { %7773 = vmatprep.subr.bf16.mxu0 %v10430_v25  ;;  %4980 = vrot.lane.b32.xlu1 %v10415_v35, %s11482_s6 }
 0xe12   : > { %4978 = vrot.lane.b32.xlu0 %v10404_v12, %s11482_s6 }
 0xe14   : > { %7774 = vmatpush3.bf16.msra.mxu0 %v10430_v25 }
 0xe15   : > { %7775 = vmatprep.subr.bf16.mxu0 %v10438_v27  ;;  %4976 = vrot.lane.b32.xlu1 %v10408_v63, %s11482_s6 }
 0xe16   : > { %4974 = vrot.lane.b32.xlu0 %v10413_v37, %s11482_s6 }
 0xe18   : > { %7776 = vmatpush3.bf16.msra.mxu0 %v10438_v27 }
 0xe19   : > { %7777 = vmatprep.subr.bf16.mxu0 %v10447_v4  ;;  %4972 = vrot.lane.b32.xlu1 %v10421_v46, %s11482_s6 }
 0xe1a   : > { %4970 = vrot.lane.b32.xlu0 %v10400_v20, %s11482_s6 }
 0xe1c   : > { %7778 = vmatpush3.bf16.msra.mxu0 %v10447_v4 }
 0xe1d   : > { %7779 = vmatprep.subr.bf16.mxu0 %v10456_v16  ;;  %4958 = vrot.lane.b32.xlu1 %v10400_v20, %s11483_s1 }
 0xe1e   : > { %4960 = vrot.lane.b32.xlu0 %v10421_v46, %s11483_s1 }
 0xe20   : > { %7780 = vmatpush3.bf16.msra.mxu0 %v10456_v16 }
 0xe21   : > { %4962 = vrot.lane.b32.xlu1 %v10413_v37, %s11483_s1 }
 0xe22   : > { %4964 = vrot.lane.b32.xlu0 %v10408_v63, %s11483_s1 }
 0xe25   : > { %4966 = vrot.lane.b32.xlu1 %v10404_v12, %s11483_s1 }
 0xe26   : > { %4968 = vrot.lane.b32.xlu0 %v10415_v35, %s11483_s1 }
 0xe29   : > { %5277 = vrot.lane.b32.xlu1 %v4847_v55, %s11483_s1 }
 0xe73   : > { %v4560_v20 = vpop.permute.xlu0 %4559 }
 0xe74   : > { %v4594_v51 = vsel %vm1904_vm4, %v4560_v20, 0 }
 0xe77   : > { %v4558_v19 = vpop.permute.xlu0 %4557 }
 0xe78   : > { %v4591_v7 = vsel %vm1904_vm4, %v4558_v19, 0 }
 0xe7b   : > { %v4562_v6 = vpop.permute.xlu1 %4561  ;;  %v4556_v58 = vpop.permute.xlu0 %4555 }
 0xe7c   : > { %7922 = vmatprep.subr.msk.bf16.mxu1 %vm1904_vm4, %v4562_v6  ;;  %v4597_v60 = vsel %vm1904_vm4, %v4562_v6, 0  ;;  %v4588_v61 = vsel %vm1904_vm4, %v4556_v58, 0 }
 0xe7d   : > { %7746 = vmatpush3.bf16.xpose.msra.mxu1 %v4597_v60 }
 0xe7e   : > { %7923 = vmatprep.subr.msk.bf16.mxu1 %vm1904_vm4, %v4560_v20 }
 0xe7f   : > { %v4554_v56 = vpop.permute.xlu1 %4553 }
 0xe80   : > { %v4585_v14 = vsel %vm1904_vm4, %v4554_v56, 0  ;;  %v4552_v48 = vpop.permute.xlu0 %4551 }
 0xe81   : > { %v4582_v3 = vsel %vm1904_vm4, %v4552_v48, 0 }
 0xe83   : > { %v4981_v45 = vpop.permute.xlu1 %4980 }
 0xe84   : > { %v5016_v62 = vsel %vm1904_vm4, %v4981_v45, 0  ;;  %v4979_v41 = vpop.permute.xlu0 %4978 }
 0xe85   : > { %7748 = vmatpush3.bf16.xpose.msra.mxu1 %v4594_v51  ;;  %v5013_v22 = vsel %vm1904_vm4, %v4979_v41, 0 }
 0xe86   : > { %7924 = vmatprep.subr.msk.bf16.mxu1 %vm1904_vm4, %v4558_v19 }
 0xe87   : > { %v4977_v47 = vpop.permute.xlu1 %4976 }
 0xe88   : > { %v5010_v13 = vsel %vm1904_vm4, %v4977_v47, 0 }
 0xe8b   : > { %v4973_v54 = vpop.permute.xlu1 %4972 }
 0xe8d   : > { %7750 = vmatpush3.bf16.xpose.msra.mxu1 %v4591_v7 }
 0xe8e   : > { %7925 = vmatprep.subr.msk.bf16.mxu1 %vm1904_vm4, %v4556_v58 }
 0xe8f   : > { %v4959_v32 = vpop.permute.xlu1 %4958 }
 0xe93   : > { %v4963_v38 = vpop.permute.xlu1 %4962 }
 0xe95   : > { %7752 = vmatpush3.bf16.xpose.msra.mxu1 %v4588_v61 }
 0xe96   : > { %7926 = vmatprep.subr.msk.bf16.mxu1 %vm1904_vm4, %v4554_v56 }
 0xe97   : > { %v4967_v5 = vpop.permute.xlu1 %4966 }
 0xe9b   : > { %v10483_v8 = vpop.permute.xlu1 %5277 }
 0xe9c   : > { %7817 = vmatprep.subr.bf16.mxu0 %v10483_v8 }
 0xe9d   : > { %7754 = vmatpush3.bf16.xpose.msra.mxu1 %v4585_v14 }
 0xe9e   : > { %7927 = vmatprep.subr.msk.bf16.mxu1 %vm1904_vm4, %v4552_v48 }
 0xea5   : > { %7756 = vmatpush3.bf16.xpose.msra.mxu1 %v4582_v3 }
 0xea6   : > { %7928 = vmatprep.subr.msk.bf16.mxu1 %vm1904_vm4, %v4981_v45 }
 0xeac   : > { %7758 = vmatmul.mubr.msk.bf16.vlgmr.msra.gmra.mxu1 %vm1904_vm4, %v10421_v46 }
 0xead   : > { %7761 = vmatprep.mubr.msk.bf16.mxu1 %vm1904_vm4, %v10413_v37  ;;  %7794 = vmatpush3.bf16.xpose.msra.mxu1 %v5016_v62  ;;  %v4975_v37 = vpop.permute.xlu0 %4974 }
 0xeae   : > { %7929 = vmatprep.subr.msk.bf16.mxu1 %vm1904_vm4, %v4979_v41 }
 0xeb1   : > { %v4971_v17 = vpop.permute.xlu0 %4970 }
 0xeb2   : > { %v5001_v53 = vsel %vm1904_vm4, %v4971_v17, 0 }
 0xeb4   : > { %7762 = vmatmul.mubr.msk.bf16.gmra.mxu1 %vm1904_vm4, %v10408_v63  ;;  %v5007_v63 = vsel %vm1904_vm4, %v4975_v37, 0 }
 0xeb5   : > { %7765 = vmatprep.mubr.msk.bf16.mxu1 %vm1904_vm4, %v10404_v12  ;;  %7796 = vmatpush3.bf16.xpose.msra.mxu1 %v5013_v22  ;;  %v5004_v12 = vsel %vm1904_vm4, %v4973_v54, 0 }
 0xeb6   : > { %7930 = vmatprep.subr.msk.bf16.mxu1 %vm1904_vm4, %v4977_v47 }
 0xebc   : > { %7766 = vmatmul.mubr.msk.bf16.gmra.mxu1 %vm1904_vm4, %v10415_v35  ;;  %v4961_v35 = vpop.permute.xlu0 %4960 }
 0xebd   : > { %7798 = vmatpush3.bf16.xpose.msra.mxu1 %v5010_v13  ;;  %7805 = vmatprep.mubr.msk.bf16.mxu1 %vm1904_vm4, %v4959_v32 }
 0xebe   : > { %7931 = vmatprep.subr.msk.bf16.mxu1 %vm1904_vm4, %v4975_v37 }
 0xec0   : > { %v4965_v42 = vpop.permute.xlu0 %4964 }
 0xec4   : > { %v4969_v55 = vpop.permute.xlu0 %4968 }
 0xec5   : > { %7800 = vmatpush3.bf16.xpose.msra.mxu1 %v5007_v63 }
 0xec6   : > { %7932 = vmatprep.subr.msk.bf16.mxu1 %vm1904_vm4, %v4973_v54 }
 0xecd   : > { %7802 = vmatpush3.bf16.xpose.msra.mxu1 %v5004_v12 }
 0xece   : > { %7933 = vmatprep.subr.msk.bf16.mxu1 %vm1904_vm4, %v4971_v17 }
 0xed5   : > { %7804 = vmatpush3.bf16.xpose.msra.mxu1 %v5001_v53 }
 0xedc   : > { %7806 = vmatmul.mubr.msk.bf16.vlgmr.msra.gmra.mxu1 %vm1904_vm4, %v4961_v35 }
 0xedd   : > { %7809 = vmatprep.mubr.msk.bf16.mxu1 %vm1904_vm4, %v4963_v38 }
 0xee4   : > { %7810 = vmatmul.mubr.msk.bf16.gmra.mxu1 %vm1904_vm4, %v4965_v42 }
 0xee5   : > { %7813 = vmatprep.mubr.msk.bf16.mxu1 %vm1904_vm4, %v4967_v5 }
 0xeec   : > { %7814 = vmatmul.mubr.msk.bf16.gmra.mxu1 %vm1904_vm4, %v4969_v55 }
 0xf6c   : > { %v7759_v46 = vpop.f32.mrf.mxu1 }
 0xf6d   : > { %v4682_v40 = vmul.f32 0.17677669, %v7759_v46 }
 0xf6e   : > { %v4633_v23 = vpop.f32.mrf.mxu1 }
 0xf6f   : > { %v10518_v30 = vadd.f32 %v4682_v40, %v9232_v36  ;;  %v4680_v49 = vmul.f32 0.17677669, %v4633_v23 }
 0xf70   : > { %v7760_v15 = vpop.f32.mrf.mxu1 }
 0xf71   : > { %v10521_v50 = vadd.f32 %v4680_v49, %v9232_v36  ;;  %v4683_v1 = vmul.f32 0.17677669, %v7760_v15  ;;  %v4710_v33 = vsel %vm2046_vm9, %v10518_v30, -inf }
 0xf72   : > { %4711 = vmax.xlane.f32.xlu0 %v4710_v33  ;;  %v4636_v6 = vpop.f32.mrf.mxu1 }
 0xf73   : > { %v10526_v60 = vadd.f32 %v4683_v1, %v9232_v36  ;;  %v4681_v20 = vmul.f32 0.17677669, %v4636_v6  ;;  %v4704_v56 = vsel %vm2046_vm9, %v10521_v50, -inf }
 0xf74   : > { %4705 = vmax.xlane.f32.xlu1 %v4704_v56  ;;  %v7763_v45 = vpop.f32.mrf.mxu1 }
 0xf75   : > { %v10531_v51 = vadd.f32 %v4681_v20, %v9232_v36  ;;  %v4686_v19 = vmul.f32 0.17677669, %v7763_v45  ;;  %v4713_v47 = vsel %vm2046_vm9, %v10526_v60, -inf }
 0xf76   : > { %4714 = vmax.xlane.f32.xlu0 %v4713_v47  ;;  %v4649_v54 = vpop.f32.mrf.mxu1 }
 0xf77   : > { %v10536_v7 = vadd.f32 %v4686_v19, %v9247_v0  ;;  %v4684_v58 = vmul.f32 0.17677669, %v4649_v54  ;;  %v4707_v5 = vsel %vm2046_vm9, %v10531_v51, -inf }
 0xf78   : > { %v7764_v32 = vpop.f32.mrf.mxu1 }
 0xf79   : > { %v10539_v38 = vadd.f32 %v4684_v58, %v9232_v36  ;;  %v4687_v61 = vmul.f32 0.17677669, %v7764_v32  ;;  %v4722_v14 = vsel %vm2046_vm9, %v10536_v7, -inf }
 0xf7a   : > { %4708 = vmax.xlane.f32.xlu0 %v4707_v5  ;;  %4723 = vmax.xlane.f32.xlu1 %v4722_v14  ;;  %v4652_v48 = vpop.f32.mrf.mxu1 }
 0xf7b   : > { %v10546_v3 = vadd.f32 %v4687_v61, %v9247_v0  ;;  %v4685_v62 = vmul.f32 0.17677669, %v4652_v48  ;;  %v4716_v37 = vsel %vm2046_vm9, %v10539_v38, -inf }
 0xf7c   : > { %v7767_v41 = vpop.f32.mrf.mxu1 }
 0xf7d   : > { %v10549_v22 = vadd.f32 %v4685_v62, %v9232_v36  ;;  %v4690_v13 = vmul.f32 0.17677669, %v7767_v41  ;;  %v4725_v63 = vsel %vm2046_vm9, %v10546_v3, -inf }
 0xf7e   : > { %4717 = vmax.xlane.f32.xlu1 %v4716_v37  ;;  %4726 = vmax.xlane.f32.xlu0 %v4725_v63  ;;  %v4665_v12 = vpop.f32.mrf.mxu1 }
 0xf7f   : > { %v10556_v17 = vadd.f32 %v4690_v13, %v9247_v0  ;;  %v4688_v53 = vmul.f32 0.17677669, %v4665_v12  ;;  %v4719_v46 = vsel %vm2046_vm9, %v10549_v22, -inf }
 0xf80   : > { %v7768_v35 = vpop.f32.mrf.mxu1 }
 0xf81   : > { %v10559_v42 = vadd.f32 %v4688_v53, %v9247_v0  ;;  %v4691_v55 = vmul.f32 0.17677669, %v7768_v35  ;;  %v4734_v40 = vsel %vm2046_vm9, %v10556_v17, -inf }
 0xf82   : > { %4720 = vmax.xlane.f32.xlu0 %v4719_v46  ;;  %4735 = vmax.xlane.f32.xlu1 %v4734_v40  ;;  %v4668_v23 = vpop.f32.mrf.mxu1 }
 0xf83   : > { %v10566_v49 = vadd.f32 %v4691_v55, %v9247_v0  ;;  %v4689_v15 = vmul.f32 0.17677669, %v4668_v23  ;;  %v4728_v33 = vsel %vm2046_vm9, %v10559_v42, -inf }
 0xf85   : > { %v10569_v1 = vadd.f32 %v4689_v15, %v9247_v0  ;;  %v4737_v6 = vsel %vm2046_vm9, %v10566_v49, -inf }
 0xf86   : > { %4729 = vmax.xlane.f32.xlu1 %v4728_v33  ;;  %4738 = vmax.xlane.f32.xlu0 %v4737_v6 }
 0xf87   : > { %v4731_v20 = vsel %vm2046_vm9, %v10569_v1, -inf }
 0xf8a   : > { %4732 = vmax.xlane.f32.xlu0 %v4731_v20 }
 0xf9c   : > { %v7807_v56 = vpop.f32.mrf.mxu1 }
 0xf9d   : > { %v5101_v45 = vmul.f32 0.17677669, %v7807_v56 }
 0xf9e   : > { %v5052_v19 = vpop.f32.mrf.mxu1 }
 0xf9f   : > { %v10578_v47 = vadd.f32 %v5101_v45, %v9232_v36  ;;  %v5099_v54 = vmul.f32 0.17677669, %v5052_v19 }
 0xfa0   : > { %v7808_v58 = vpop.f32.mrf.mxu1 }
 0xfa1   : > { %v10581_v32 = vadd.f32 %v5099_v54, %v9232_v36  ;;  %v5102_v61 = vmul.f32 0.17677669, %v7808_v58  ;;  %v5129_v5 = vsel %vm2046_vm9, %v10578_v47, -inf }
 0xfa2   : > { %5130 = vmax.xlane.f32.xlu1 %v5129_v5  ;;  %v5055_v14 = vpop.f32.mrf.mxu1 }
 0xfa3   : > { %v10586_v48 = vadd.f32 %v5102_v61, %v9232_v36  ;;  %v5100_v62 = vmul.f32 0.17677669, %v5055_v14  ;;  %v5123_v63 = vsel %vm2046_vm9, %v10581_v32, -inf }
 0xfa4   : > { %v7811_v41 = vpop.f32.mrf.mxu1 }
 0xfa5   : > { %v10589_v13 = vadd.f32 %v5100_v62, %v9232_v36  ;;  %v5105_v37 = vmul.f32 0.17677669, %v7811_v41  ;;  %v5132_v12 = vsel %vm2046_vm9, %v10586_v48, -inf }
 0xfa6   : > { %5124 = vmax.xlane.f32.xlu1 %v5123_v63  ;;  %v5068_v53 = vpop.f32.mrf.mxu1  ;;  %5133 = vmax.xlane.f32.xlu0 %v5132_v12 }
 0xfa7   : > { %v10596_v35 = vadd.f32 %v5105_v37, %v9247_v0  ;;  %v5103_v55 = vmul.f32 0.17677669, %v5068_v53  ;;  %v5126_v33 = vsel %vm2046_vm9, %v10589_v13, -inf }
 0xfa8   : > { %v7812_v46 = vpop.f32.mrf.mxu1 }
 0xfa9   : > { %v10599_v40 = vadd.f32 %v5103_v55, %v9232_v36  ;;  %v5106_v23 = vmul.f32 0.17677669, %v7812_v46  ;;  %v5141_v15 = vsel %vm2046_vm9, %v10596_v35, -inf }
 0xfaa   : > { %5142 = vmax.xlane.f32.xlu1 %v5141_v15  ;;  %v5071_v6 = vpop.f32.mrf.mxu1  ;;  %5127 = vmax.xlane.f32.xlu0 %v5126_v33 }
 0xfab   : > { %v10606_v20 = vadd.f32 %v5106_v23, %v9247_v0  ;;  %v5104_v56 = vmul.f32 0.17677669, %v5071_v6  ;;  %v5135_v19 = vsel %vm2046_vm9, %v10599_v40, -inf }
 0xfad   : > { %v10609_v45 = vadd.f32 %v5104_v56, %v9232_v36  ;;  %v5144_v54 = vsel %vm2046_vm9, %v10606_v20, -inf }
 0xfae   : > { %5136 = vmax.xlane.f32.xlu1 %v5135_v19  ;;  %5145 = vmax.xlane.f32.xlu0 %v5144_v54 }
 0xfaf   : > { %v5138_v58 = vsel %vm2046_vm9, %v10609_v45, -inf }
 0xfb2   : > { %5139 = vmax.xlane.f32.xlu0 %v5138_v58 }
 0xfbf   : > { %5273 = vrot.lane.b32.xlu1 %v10430_v25, %s11483_s1 }
 0xfc8   : > { %5275 = vrot.lane.b32.xlu0 %v10423_v43, %s11483_s1 }
 0xffb   : > { %v4712_v36 = vpop.xlane.xlu0 %4711 }
 0xffc   : > { %v4742_v61 = vsub.f32 %v10518_v30, %v4712_v36 }
 0xffd   : > { %v4706_v5 = vpop.xlane.xlu1 %4705 }
 0xffe   : > { %v4756_v14 = vmul.f32 1.442695, %v4742_v61  ;;  %v4740_v62 = vsub.f32 %v10521_v50, %v4706_v5 }
 0xfff   : > { %v4715_v41 = vpop.xlane.xlu0 %4714 }
0x1000   : > { %8326 = vpow2.f32 %v4756_v14  ;;  %v4752_v37 = vmul.f32 1.442695, %v4740_v62  ;;  %v4743_v63 = vsub.f32 %v10526_v60, %v4715_v41 }
0x1002   : > { %8328 = vpow2.f32 %v4752_v37  ;;  %v4758_v12 = vmul.f32 1.442695, %v4743_v63 }
0x1003   : > { %v4709_v53 = vpop.xlane.xlu0 %4708  ;;  %v4724_v55 = vpop.xlane.xlu1 %4723 }
0x1004   : > { %8330 = vpow2.f32 %v4758_v12  ;;  %v4741_v25 = vsub.f32 %v10531_v51, %v4709_v53  ;;  %v4746_v43 = vsub.f32 %v10536_v7, %v4724_v55 }
0x1006   : > { %v4754_v46 = vmul.f32 1.442695, %v4741_v25  ;;  %v4764_v30 = vmul.f32 1.442695, %v4746_v43 }
0x1007   : > { %v4718_v23 = vpop.xlane.xlu1 %4717  ;;  %v4727_v15 = vpop.xlane.xlu0 %4726 }
0x1008   : > { %8332 = vpow2.f32 %v4754_v46  ;;  %v4744_v50 = vsub.f32 %v10539_v38, %v4718_v23  ;;  %v4747_v33 = vsub.f32 %v10546_v3, %v4727_v15 }
0x1009   : > { %8334 = vpow2.f32 %v4764_v30 }
0x100a   : > { %v4760_v60 = vmul.f32 1.442695, %v4744_v50  ;;  %v4766_v6 = vmul.f32 1.442695, %v4747_v33 }
0x100b   : > { %v4721_v56 = vpop.xlane.xlu0 %4720  ;;  %v4736_v19 = vpop.xlane.xlu1 %4735 }
0x100c   : > { %8336 = vpow2.f32 %v4760_v60  ;;  %v4745_v54 = vsub.f32 %v10549_v22, %v4721_v56  ;;  %v4750_v51 = vsub.f32 %v10556_v17, %v4736_v19 }
0x100d   : > { %v10630_v7 = vpop.eup %8326  ;;  %8338 = vpow2.f32 %v4766_v6 }
0x100e   : > { %v4762_v58 = vmul.f32 1.442695, %v4745_v54  ;;  %v4772_v36 = vmul.f32 1.442695, %v4750_v51  ;;  %v4782_v38 = vsel %vm2046_vm9, %v10630_v7, 0.0 }
0x100f   : > { %v10634_v61 = vpop.eup %8328  ;;  %v4730_v3 = vpop.xlane.xlu1 %4729  ;;  %4783 = vadd.xlane.f32.xlu1 %v4782_v38 }
0x1010   : > { %v4739_v5 = vpop.xlane.xlu0 %4738  ;;  %8340 = vpow2.f32 %v4762_v58  ;;  %v4748_v14 = vsub.f32 %v10559_v42, %v4730_v3  ;;  %v4776_v37 = vsel %vm2046_vm9, %v10634_v61, 0.0 }
0x1011   : > { %v4751_v22 = vsub.f32 %v10566_v49, %v4739_v5  ;;  %v10638_v62 = vpop.eup %8330  ;;  %8342 = vpow2.f32 %v4772_v36 }
0x1012   : > { %v4768_v17 = vmul.f32 1.442695, %v4748_v14  ;;  %v4785_v63 = vsel %vm2046_vm9, %v10638_v62, 0.0 }
0x1013   : > { %v4774_v41 = vmul.f32 1.442695, %v4751_v22  ;;  %4777 = vadd.xlane.f32.xlu1 %v4776_v37  ;;  %4786 = vadd.xlane.f32.xlu0 %v4785_v63 }
0x1014   : > { %v4733_v12 = vpop.xlane.xlu0 %4732  ;;  %8344 = vpow2.f32 %v4768_v17 }
0x1015   : > { %v4749_v53 = vsub.f32 %v10569_v1, %v4733_v12  ;;  %v10645_v42 = vpop.eup %8332  ;;  %8346 = vpow2.f32 %v4774_v41 }
0x1016   : > { %v10647_v49 = vpop.eup %8334  ;;  %v4779_v25 = vsel %vm2046_vm9, %v10645_v42, 0.0 }
0x1017   : > { %v4770_v55 = vmul.f32 1.442695, %v4749_v53  ;;  %v4794_v43 = vsel %vm2046_vm9, %v10647_v49, 0.0  ;;  %4780 = vadd.xlane.f32.xlu0 %v4779_v25 }
0x1018   : > { %4795 = vadd.xlane.f32.xlu1 %v4794_v43 }
0x1019   : > { %8348 = vpow2.f32 %v4770_v55  ;;  %v10653_v46 = vpop.eup %8336 }
0x101a   : > { %v10655_v30 = vpop.eup %8338  ;;  %v4788_v1 = vsel %vm2046_vm9, %v10653_v46, 0.0 }
0x101b   : > { %v4797_v23 = vsel %vm2046_vm9, %v10655_v30, 0.0 }
0x101c   : > { %4789 = vadd.xlane.f32.xlu1 %v4788_v1  ;;  %4798 = vadd.xlane.f32.xlu0 %v4797_v23 }
0x101d   : > { %v10661_v15 = vpop.eup %8340 }
0x101e   : > { %v10663_v50 = vpop.eup %8342  ;;  %v4791_v33 = vsel %vm2046_vm9, %v10661_v15, 0.0 }
0x101f   : > { %v4806_v60 = vsel %vm2046_vm9, %v10663_v50, 0.0 }
0x1020   : > { %4807 = vadd.xlane.f32.xlu1 %v4806_v60  ;;  %4792 = vadd.xlane.f32.xlu0 %v4791_v33 }
0x1021   : > { %v10669_v6 = vpop.eup %8344 }
0x1022   : > { %v10671_v56 = vpop.eup %8346  ;;  %v4800_v19 = vsel %vm2046_vm9, %v10669_v6, 0.0 }
0x1023   : > { %v4809_v54 = vsel %vm2046_vm9, %v10671_v56, 0.0 }
0x1024   : > { %4801 = vadd.xlane.f32.xlu1 %v4800_v19  ;;  %4810 = vadd.xlane.f32.xlu0 %v4809_v54 }
0x1026   : > { %v10677_v51 = vpop.eup %8348 }
0x1027   : > { %v4803_v58 = vsel %vm2046_vm9, %v10677_v51, 0.0 }
0x1028   : > { %4804 = vadd.xlane.f32.xlu0 %v4803_v58 }
0x102b   : > { %v5131_v36 = vpop.xlane.xlu1 %5130 }
0x102c   : > { %v5161_v38 = vsub.f32 %v10578_v47, %v5131_v36 }
0x102e   : > { %v5175_v3 = vmul.f32 1.442695, %v5161_v38 }
0x102f   : > { %v5125_v5 = vpop.xlane.xlu1 %5124  ;;  %v5134_v14 = vpop.xlane.xlu0 %5133 }
0x1030   : > { %8350 = vpow2.f32 %v5175_v3  ;;  %v5159_v22 = vsub.f32 %v10581_v32, %v5125_v5  ;;  %v5162_v17 = vsub.f32 %v10586_v48, %v5134_v14 }
0x1032   : > { %v5171_v41 = vmul.f32 1.442695, %v5159_v22  ;;  %v5177_v37 = vmul.f32 1.442695, %v5162_v17 }
0x1033   : > { %v5143_v63 = vpop.xlane.xlu1 %5142  ;;  %v5128_v12 = vpop.xlane.xlu0 %5127 }
0x1034   : > { %8352 = vpow2.f32 %v5171_v41  ;;  %v5165_v53 = vsub.f32 %v10596_v35, %v5143_v63  ;;  %v5160_v55 = vsub.f32 %v10589_v13, %v5128_v12  ;;  %v7815_v12 = vpop.f32.mrf.mxu1 }
0x1035   : > { %8354 = vpow2.f32 %v5177_v37 }
0x1036   : > { %v5173_v25 = vmul.f32 1.442695, %v5160_v55  ;;  %v5183_v47 = vmul.f32 1.442695, %v5165_v53  ;;  %v5084_v53 = vpop.f32.mrf.mxu1 }
0x1037   : > { %v5137_v43 = vpop.xlane.xlu1 %5136  ;;  %v5146_v1 = vpop.xlane.xlu0 %5145 }
0x1038   : > { %v5163_v23 = vsub.f32 %v10599_v40, %v5137_v43  ;;  %v5166_v32 = vsub.f32 %v10606_v20, %v5146_v1  ;;  %8356 = vpow2.f32 %v5173_v25  ;;  %v7816_v55 = vpop.f32.mrf.mxu1  ;;  %v5107_v43 = vmul.f32 0.17677669, %v5084_v53 }
0x1039   : > { %8358 = vpow2.f32 %v5183_v47  ;;  %v5109_v1 = vmul.f32 0.17677669, %v7815_v12 }
0x103a   : > { %v5179_v48 = vmul.f32 1.442695, %v5163_v23  ;;  %v5185_v33 = vmul.f32 1.442695, %v5166_v32  ;;  %v5087_v25 = vpop.f32.mrf.mxu1  ;;  %v10731_v32 = vadd.f32 %v5107_v43, %v9247_v0 }
0x103b   : > { %v5140_v60 = vpop.xlane.xlu0 %5139  ;;  %v5108_v47 = vmul.f32 0.17677669, %v5087_v25 }
0x103c   : > { %8360 = vpow2.f32 %v5179_v48  ;;  %v5164_v19 = vsub.f32 %v10609_v45, %v5140_v60  ;;  %v5147_v48 = vsel %vm2046_vm9, %v10731_v32, -inf }
0x103d   : > { %v10689_v35 = vpop.eup %8350  ;;  %8362 = vpow2.f32 %v5185_v33  ;;  %v10728_v23 = vadd.f32 %v5108_v47, %v9247_v0 }
0x103e   : > { %v5181_v13 = vmul.f32 1.442695, %v5164_v19  ;;  %v5201_v54 = vsel %vm2046_vm9, %v10689_v35, 0.0 }
0x103f   : > { %5202 = vadd.xlane.f32.xlu1 %v5201_v54  ;;  %v5276_v54 = vpop.permute.xlu0 %5275 }
0x1040   : > { %8364 = vpow2.f32 %v5181_v13  ;;  %v5274_v13 = vpop.permute.xlu1 %5273 }
0x1041   : > { %v10693_v40 = vpop.eup %8352 }
0x1042   : > { %v10695_v20 = vpop.eup %8354  ;;  %v5195_v58 = vsel %vm2046_vm9, %v10693_v40, 0.0 }
0x1043   : > { %5196 = vadd.xlane.f32.xlu1 %v5195_v58  ;;  %v5204_v45 = vsel %vm2046_vm9, %v10695_v20, 0.0 }
0x1044   : > { %5205 = vadd.xlane.f32.xlu0 %v5204_v45 }
0x1045   : > { %v10701_v36 = vpop.eup %8356 }
0x1046   : > { %v5198_v38 = vsel %vm2046_vm9, %v10701_v36, 0.0  ;;  %v10705_v3 = vpop.eup %8358 }
0x1047   : > { %v5213_v17 = vsel %vm2046_vm9, %v10705_v3, 0.0 }
0x1048   : > { %5199 = vadd.xlane.f32.xlu0 %v5198_v38 }
0x1049   : > { %v10707_v5 = vpop.eup %8360 }
0x104a   : > { %v5207_v14 = vsel %vm2046_vm9, %v10707_v5, 0.0  ;;  %v10711_v22 = vpop.eup %8362 }
0x104b   : > { %5208 = vadd.xlane.f32.xlu1 %v5207_v14  ;;  %v5216_v37 = vsel %vm2046_vm9, %v10711_v22, 0.0 }
0x104c   : > { %5214 = vadd.xlane.f32.xlu0 %v5213_v17 }
0x104d   : > { %v10715_v41 = vpop.eup %8364 }
0x104e   : > { %v5210_v63 = vsel %vm2046_vm9, %v10715_v41, 0.0 }
0x104f   : > { %5217 = vadd.xlane.f32.xlu1 %v5216_v37 }
0x1050   : > { %5211 = vadd.xlane.f32.xlu0 %v5210_v63 }
0x1060   : > { %5269 = vrot.lane.b32.xlu1 %v10447_v4, %s11483_s1  ;;  %v10734_v4 = vadd.f32 %v5109_v1, %v9247_v0 }
0x1062   : > { %v5153_v60 = vsel %vm2046_vm9, %v10734_v4, -inf }
0x1064   : > { %5267 = vrot.lane.b32.xlu1 %v10456_v16, %s11483_s1  ;;  %v5110_v16 = vmul.f32 0.17677669, %v7816_v55 }
0x1066   : > { %5271 = vrot.lane.b32.xlu0 %v10438_v27, %s11483_s1  ;;  %v5150_v27 = vsel %vm2046_vm9, %v10728_v23, -inf  ;;  %v10741_v33 = vadd.f32 %v5110_v16, %v9247_v0 }
0x1068   : > { %v5156_v19 = vsel %vm2046_vm9, %v10741_v33, -inf }
0x1085   : > { %5151 = vmax.xlane.f32.xlu0 %v5150_v27 }
0x1088   : > { %5148 = vmax.xlane.f32.xlu1 %v5147_v48 }
0x1089   : > { %5154 = vmax.xlane.f32.xlu0 %v5153_v60 }
0x108d   : > { %5157 = vmax.xlane.f32.xlu0 %v5156_v19 }
0x1098   : > { %v4784_v58 = vpop.xlane.xlu1 %4783 }
0x109c   : > { %v4778_v45 = vpop.xlane.xlu1 %4777  ;;  %v4787_v38 = vpop.xlane.xlu0 %4786 }
0x109d   : > { %8366 = vrcp.f32 %v4787_v38 }
0x109e   : > { %8368 = vrcp.f32 %v4778_v45 }
0x109f   : > { %8370 = vrcp.f32 %v4784_v58 }
0x10a0   : > { %v4781_v14 = vpop.xlane.xlu0 %4780 }
0x10a1   : > { %v4796_v0 = vpop.xlane.xlu1 %4795  ;;  %8372 = vrcp.f32 %v4781_v14 }
0x10a5   : > { %v4790_v17 = vpop.xlane.xlu1 %4789  ;;  %v4799_v37 = vpop.xlane.xlu0 %4798 }
0x10a6   : > { %8374 = vrcp.f32 %v4799_v37 }
0x10a7   : > { %8376 = vrcp.f32 %v4790_v17 }
0x10a8   : > { %8378 = vrcp.f32 %v4796_v0 }
0x10a9   : > { %v4808_v63 = vpop.xlane.xlu1 %4807  ;;  %v4793_v12 = vpop.xlane.xlu0 %4792 }
0x10aa   : > { %v8367_v53 = vpop.eup %8366  ;;  %8380 = vrcp.f32 %v4793_v12 }
0x10ab   : > { %v8369_v55 = vpop.eup %8368  ;;  %v4827_v16 = vmul.f32 %v8367_v53, %v10638_v62 }
0x10ac   : > { %v8371_v25 = vpop.eup %8370  ;;  %v4824_v27 = vmul.f32 %v8369_v55, %v10634_v61 }
0x10ad   : > { %v4802_v47 = vpop.xlane.xlu1 %4801  ;;  %v4811_v43 = vpop.xlane.xlu0 %4810  ;;  %v4826_v60 = vmul.f32 %v8371_v25, %v10630_v7 }
0x10ae   : > { %v8373_v1 = vpop.eup %8372  ;;  %8382 = vrcp.f32 %v4802_v47 }
0x10af   : > { %v4825_v48 = vmul.f32 %v8373_v1, %v10645_v42  ;;  %8384 = vrcp.f32 %v4811_v43  ;;  %v4837_v45 = vpack.c.bf16 %v4827_v16, %v4826_v60 }
0x10b0   : > { %8386 = vrcp.f32 %v4808_v63 }
0x10b1   : > { %v4805_v19 = vpop.xlane.xlu0 %4804  ;;  %v4836_v58 = vpack.c.bf16 %v4825_v48, %v4824_v27 }
0x10b2   : > { %8388 = vrcp.f32 %v4805_v19 }
0x10b3   : > { %7781 = vmatprep.mubr.msk.bf16.mxu0 %vm2046_vm9, %v4836_v58  ;;  %v8375_v38 = vpop.eup %8374 }
0x10b4   : > { %7782 = vmatmul.mubr.msk.bf16.vlgmr.msra.gmra.mxu0 %vm2046_vm9, %v4837_v45  ;;  %v8377_v62 = vpop.eup %8376  ;;  %v4831_v42 = vmul.f32 %v8375_v38, %v10655_v30 }
0x10b5   : > { %7818 = vmatpush3.bf16.msra.mxu0 %v10483_v8  ;;  %v8379_v61 = vpop.eup %8378  ;;  %v4828_v7 = vmul.f32 %v8377_v62, %v10653_v46 }
0x10b6   : > { %7819 = vmatprep.subr.bf16.mxu0 %v5276_v54  ;;  %v4830_v17 = vmul.f32 %v8379_v61, %v10647_v49 }
0x10b7   : > { %v8381_v14 = vpop.eup %8380 }
0x10b8   : > { %v4829_v0 = vmul.f32 %v8381_v14, %v10661_v15  ;;  %v4839_v12 = vpack.c.bf16 %v4831_v42, %v4830_v17 }
0x10b9   : > { %7820 = vmatpush3.bf16.msra.mxu0 %v5276_v54 }
0x10ba   : > { %7821 = vmatprep.subr.bf16.mxu0 %v5274_v13  ;;  %v4838_v37 = vpack.c.bf16 %v4829_v0, %v4828_v7 }
0x10bb   : > { %v8383_v63 = vpop.eup %8382 }
0x10bc   : > { %v8385_v53 = vpop.eup %8384  ;;  %7785 = vmatprep.mubr.msk.bf16.mxu0 %vm2046_vm9, %v4838_v37  ;;  %v4832_v30 = vmul.f32 %v8383_v63, %v10669_v6 }
0x10bd   : > { %7822 = vmatpush3.bf16.msra.mxu0 %v5274_v13  ;;  %v8387_v8 = vpop.eup %8386  ;;  %v4835_v15 = vmul.f32 %v8385_v53, %v10671_v56 }
0x10be   : > { %7786 = vmatmul.mubr.msk.bf16.gmra.mxu0 %vm2046_vm9, %v4839_v12  ;;  %v4834_v49 = vmul.f32 %v8387_v8, %v10663_v50 }
0x10bf   : > { %v8389_v55 = vpop.eup %8388 }
0x10c0   : > { %v4833_v46 = vmul.f32 %v8389_v55, %v10677_v51  ;;  %v4841_v25 = vpack.c.bf16 %v4835_v15, %v4834_v49 }
0x10c2   : > { %v4840_v54 = vpack.c.bf16 %v4833_v46, %v4832_v30 }
0x10c4   : > { %7789 = vmatprep.mubr.msk.bf16.mxu0 %vm2046_vm9, %v4840_v54 }
0x10c6   : > { %7790 = vmatmul.mubr.msk.bf16.gmra.mxu0 %vm2046_vm9, %v4841_v25 }
0x10c8   : > { %v5203_v47 = vpop.xlane.xlu1 %5202 }
0x10cc   : > { %v5197_v13 = vpop.xlane.xlu1 %5196 }
0x10cd   : > { %v5206_v43 = vpop.xlane.xlu0 %5205  ;;  %8390 = vrcp.f32 %v5197_v13 }
0x10d1   : > { %v5200_v1 = vpop.xlane.xlu0 %5199 }
0x10d2   : > { %8392 = vrcp.f32 %v5200_v1 }
0x10d3   : > { %8394 = vrcp.f32 %v5206_v43 }
0x10d4   : > { %v5209_v6 = vpop.xlane.xlu1 %5208  ;;  %8396 = vrcp.f32 %v5203_v47 }
0x10d5   : > { %v5215_v16 = vpop.xlane.xlu0 %5214  ;;  %8398 = vrcp.f32 %v5209_v6 }
0x10d8   : > { %v5218_v56 = vpop.xlane.xlu1 %5217 }
0x10d9   : > { %v5212_v51 = vpop.xlane.xlu0 %5211 }
0x10da   : > { %8400 = vrcp.f32 %v5212_v51  ;;  %v8391_v50 = vpop.eup %8390  ;;  %v8065_v51 = vld [vmem:[%s11430_s13 + $0x30] sm:$0xff]  }
0x10db   : > { %8402 = vrcp.f32 %v5218_v56  ;;  %v5243_v19 = vmul.f32 %v8391_v50, %v10693_v40 }
0x10dc   : > { %v5270_v27 = vpop.permute.xlu1 %5269  ;;  %8404 = vrcp.f32 %v5215_v16 }
0x10dd   : > { %v5272_v48 = vpop.permute.xlu0 %5271 }
0x10de   : > { %7823 = vmatprep.subr.bf16.mxu0 %v5272_v48 }
0x10df   : > { %v8393_v60 = vpop.eup %8392  ;;  %7824 = vmatpush3.bf16.msra.mxu0 %v5272_v48 }
0x10e0   : > { %7825 = vmatprep.subr.bf16.mxu0 %v5270_v27  ;;  %v5244_v58 = vmul.f32 %v8393_v60, %v10701_v36  ;;  %v8395_v45 = vpop.eup %8394  ;;  %v5268_v61 = vpop.permute.xlu1 %5267 }
0x10e1   : > { %v8397_v62 = vpop.eup %8396  ;;  %v5246_v14 = vmul.f32 %v8395_v45, %v10695_v20 }
0x10e2   : > { %v5255_v38 = vpack.c.bf16 %v5244_v58, %v5243_v19  ;;  %v8399_v42 = vpop.eup %8398  ;;  %v5245_v7 = vmul.f32 %v8397_v62, %v10689_v35  ;;  %v8062_v35 = vld [vmem:[%s11430_s13 + $0x28] sm:$0xff]  }
0x10e3   : > { %7826 = vmatpush3.bf16.msra.mxu0 %v5270_v27  ;;  %v5247_v40 = vmul.f32 %v8399_v42, %v10707_v5  ;;  %7857 = vmatprep.subr.bf16.mxu1 %v8062_v35  ;;  %v8063_v5 = vld [vmem:[%s11430_s13 + $0x20] sm:$0xff]  }
0x10e4   : > { %7827 = vmatprep.subr.bf16.mxu0 %v5268_v61  ;;  %7829 = vmatprep.mubr.msk.bf16.mxu0 %vm2046_vm9, %v5255_v38  ;;  %v5256_v17 = vpack.c.bf16 %v5246_v14, %v5245_v7 }
0x10e5   : > { %7858 = vmatpush3.bf16.msra.mxu1 %v8062_v35 }
0x10e6   : > { %7859 = vmatprep.subr.bf16.mxu1 %v8063_v5 }
0x10e7   : > { %v8401_v0 = vpop.eup %8400  ;;  %7828 = vmatpush3.bf16.msra.mxu0 %v5268_v61 }
0x10e8   : > { %v5248_v36 = vmul.f32 %v8401_v0, %v10715_v41  ;;  %v8403_v37 = vpop.eup %8402 }
0x10e9   : > { %v8405_v12 = vpop.eup %8404  ;;  %v5250_v20 = vmul.f32 %v8403_v37, %v10711_v22  ;;  %7860 = vmatpush3.bf16.msra.mxu1 %v8063_v5 }
0x10ea   : > { %7830 = vmatmul.mubr.msk.bf16.vlgmr.msra.gmra.mxu0 %vm2046_vm9, %v5256_v17  ;;  %v5257_v63 = vpack.c.bf16 %v5248_v36, %v5247_v40  ;;  %v5249_v53 = vmul.f32 %v8405_v12, %v10705_v3 }
0x10ec   : > { %7833 = vmatprep.mubr.msk.bf16.mxu0 %vm2046_vm9, %v5257_v63  ;;  %v5258_v8 = vpack.c.bf16 %v5250_v20, %v5249_v53 }
0x10f2   : > { %7834 = vmatmul.mubr.msk.bf16.gmra.mxu0 %vm2046_vm9, %v5258_v8 }
0x110e   : > { %v5152_v41 = vpop.xlane.xlu0 %5151 }
0x110f   : > { %v5168_v22 = vsub.f32 %v10728_v23, %v5152_v41 }
0x1111   : > { %v5189_v55 = vmul.f32 1.442695, %v5168_v22  ;;  %v5149_v3 = vpop.xlane.xlu1 %5148 }
0x1112   : > { %v5167_v30 = vsub.f32 %v10731_v32, %v5149_v3  ;;  %v5155_v46 = vpop.xlane.xlu0 %5154 }
0x1113   : > { %8406 = vpow2.f32 %v5189_v55  ;;  %v5169_v15 = vsub.f32 %v10734_v4, %v5155_v46 }
0x1114   : > { %v5187_v54 = vmul.f32 1.442695, %v5167_v30 }
0x1115   : > { %v5191_v49 = vmul.f32 1.442695, %v5169_v15 }
0x1116   : > { %8408 = vpow2.f32 %v5187_v54  ;;  %v5158_v25 = vpop.xlane.xlu0 %5157 }
0x1117   : > { %v5170_v47 = vsub.f32 %v10741_v33, %v5158_v25  ;;  %8410 = vpow2.f32 %v5191_v49  ;;  %v8064_v33 = vld [vmem:[%s11430_s13 + $0x38] sm:$0xff]  }
0x1118   : > { %7841 = vmatprep.subr.bf16.mxu0 %v8064_v33 }
0x1119   : > { %v5193_v13 = vmul.f32 1.442695, %v5170_v47  ;;  %7842 = vmatpush3.bf16.msra.mxu0 %v8064_v33 }
0x111a   : > { %7843 = vmatprep.subr.bf16.mxu0 %v8065_v51 }
0x111b   : > { %8412 = vpow2.f32 %v5193_v13 }
0x111d   : > { %7844 = vmatpush3.bf16.msra.mxu0 %v8065_v51 }
0x1120   : > { %v8407_v43 = vpop.eup %8406 }
0x1121   : > { %v5222_v23 = vsel %vm2046_vm9, %v8407_v43, 0.0 }
0x1122   : > { %5223 = vadd.xlane.f32.xlu0 %v5222_v23 }
0x1123   : > { %v8409_v1 = vpop.eup %8408 }
0x1124   : > { %v5219_v32 = vsel %vm2046_vm9, %v8409_v1, 0.0  ;;  %v8411_v6 = vpop.eup %8410 }
0x1125   : > { %5220 = vadd.xlane.f32.xlu1 %v5219_v32  ;;  %v5225_v4 = vsel %vm2046_vm9, %v8411_v6, 0.0 }
0x1128   : > { %v8413_v16 = vpop.eup %8412 }
0x1129   : > { %5226 = vadd.xlane.f32.xlu1 %v5225_v4  ;;  %v5228_v56 = vsel %vm2046_vm9, %v8413_v16, 0.0 }
0x112a   : > { %5229 = vadd.xlane.f32.xlu0 %v5228_v56 }
0x1174   : > { %v7783_v50 = vpop.f32.mrf.mxu0 }
0x1176   : > { %v4900_v27 = vpop.f32.mrf.mxu0 }
0x1178   : > { %v7784_v48 = vpop.f32.mrf.mxu0 }
0x1179   : > { %v4948_v58 = vpack.c.bf16 %v7784_v48, %v7783_v50 }
0x117a   : > { %v4903_v60 = vpop.f32.mrf.mxu0 }
0x117b   : > { %v4947_v19 = vpack.c.bf16 %v4903_v60, %v4900_v27 }
0x117d   : > { %7861 = vmatprep.mubr.msk.bf16.mxu1 %vm1904_vm4, %v4947_v19 }
0x117e   : > { %v7787_v45 = vpop.f32.mrf.mxu0  ;;  %7862 = vmatmul.mubr.msk.bf16.vlgmr.msra.gmra.mxu1 %vm1904_vm4, %v4948_v58 }
0x1180   : > { %v4916_v38 = vpop.f32.mrf.mxu0 }
0x1182   : > { %v7788_v62 = vpop.f32.mrf.mxu0 }
0x1183   : > { %v4950_v42 = vpack.c.bf16 %v7788_v62, %v7787_v45  ;;  %v10813_v62 = vld [vmem:[%s11431_s14 + $0x1] ss:$0 sm:$0xff] }
0x1184   : > { %v4919_v61 = vpop.f32.mrf.mxu0 }
0x1185   : > { %v4949_v14 = vpack.c.bf16 %v4919_v61, %v4916_v38 }
0x1186   : > { %v7791_v7 = vpop.f32.mrf.mxu0 }
0x1187   : > { %7865 = vmatprep.mubr.msk.bf16.mxu1 %vm1904_vm4, %v4949_v14 }
0x1188   : > { %v4932_v0 = vpop.f32.mrf.mxu0  ;;  %7866 = vmatmul.mubr.msk.bf16.gmra.mxu1 %vm1904_vm4, %v4950_v42  ;;  %v10819_v42 = vrot.slane %v10091_v34, %v8711_v18 }
0x118a   : > { %v7792_v17 = vpop.f32.mrf.mxu0 }
0x118b   : > { %v4952_v37 = vpack.c.bf16 %v7792_v17, %v7791_v7 }
0x118c   : > { %v4935_v40 = vpop.f32.mrf.mxu0 }
0x118d   : > { %v4951_v36 = vpack.c.bf16 %v4935_v40, %v4932_v0 }
0x118f   : > { %7869 = vmatprep.mubr.msk.bf16.mxu1 %vm1904_vm4, %v4951_v36 }
0x1190   : > { %7870 = vmatmul.mubr.msk.bf16.gmra.mxu1 %vm1904_vm4, %v4952_v37 }
0x11aa   : > { %v7831_v12 = vpop.f32.mrf.mxu0 }
0x11ab   : > { %v5224_v63 = vpop.xlane.xlu0 %5223 }
0x11ac   : > { %8414 = vrcp.f32 %v5224_v63  ;;  %v5337_v53 = vpop.f32.mrf.mxu0 }
0x11ae   : > { %v5221_v20 = vpop.xlane.xlu1 %5220  ;;  %v7832_v5 = vpop.f32.mrf.mxu0 }
0x11af   : > { %8416 = vrcp.f32 %v5221_v20  ;;  %v5385_v33 = vpack.c.bf16 %v7832_v5, %v7831_v12 }
0x11b0   : > { %v5340_v22 = vpop.f32.mrf.mxu0 }
0x11b1   : > { %v5384_v32 = vpack.c.bf16 %v5340_v22, %v5337_v53 }
0x11b2   : > { %v5227_v8 = vpop.xlane.xlu1 %5226  ;;  %v7835_v46 = vpop.f32.mrf.mxu0 }
0x11b3   : > { %8418 = vrcp.f32 %v5227_v8  ;;  %v5230_v35 = vpop.xlane.xlu0 %5229 }
0x11b4   : > { %8420 = vrcp.f32 %v5230_v35  ;;  %v5353_v47 = vpop.f32.mrf.mxu0 }
0x11b6   : > { %v7836_v4 = vpop.f32.mrf.mxu0 }
0x11b8   : > { %v5356_v56 = vpop.f32.mrf.mxu0 }
0x11b9   : > { %v8415_v41 = vpop.eup %8414 }
0x11ba   : > { %v5252_v30 = vmul.f32 %v8415_v41, %v8407_v43  ;;  %v5387_v43 = vpack.c.bf16 %v7836_v4, %v7835_v46 }
0x11bc   : > { %v8417_v55 = vpop.eup %8416 }
0x11bd   : > { %v5251_v3 = vmul.f32 %v8417_v55, %v8409_v1  ;;  %v5386_v1 = vpack.c.bf16 %v5356_v56, %v5353_v47 }
0x11bf   : > { %v5259_v15 = vpack.c.bf16 %v5252_v30, %v5251_v3 }
0x11c0   : > { %v8419_v54 = vpop.eup %8418 }
0x11c1   : > { %v8421_v49 = vpop.eup %8420  ;;  %7837 = vmatprep.mubr.msk.bf16.mxu0 %vm2046_vm9, %v5259_v15  ;;  %v5253_v25 = vmul.f32 %v8419_v54, %v8411_v6 }
0x11c2   : > { %v5254_v13 = vmul.f32 %v8421_v49, %v8413_v16 }
0x11c4   : > { %v5260_v23 = vpack.c.bf16 %v5254_v13, %v5253_v25 }
0x11c6   : > { %7838 = vmatmul.mubr.msk.bf16.gmra.mxu0 %vm2046_vm9, %v5260_v23 }
0x11c7   : > { %7845 = vmatprep.mubr.msk.bf16.mxu0 %vm1904_vm4, %v5384_v32 }
0x11ce   : > { %7846 = vmatmul.mubr.msk.bf16.vlgmr.msra.gmra.mxu0 %vm1904_vm4, %v5385_v33 }
0x11cf   : > { %7849 = vmatprep.mubr.msk.bf16.mxu0 %vm1904_vm4, %v5386_v1 }
0x11d6   : > { %7850 = vmatmul.mubr.msk.bf16.gmra.mxu0 %vm1904_vm4, %v5387_v43 }
0x123e   : > { %v7863_v6 = vpop.f32.mrf.mxu1 }
0x1240   : > { %v5569_v51 = vpop.f32.mrf.mxu1 }
0x1242   : > { %v7864_v27 = vpop.f32.mrf.mxu1 }
0x1244   : > { %v5572_v19 = vpop.f32.mrf.mxu1 }
0x1248   : > { %v7867_v7 = vpop.f32.mrf.mxu1 }
0x124a   : > { %v5585_v12 = vpop.f32.mrf.mxu1 }
0x124c   : > { %v7868_v30 = vpop.f32.mrf.mxu1 }
0x124e   : > { %v5588_v23 = vpop.f32.mrf.mxu1 }
0x1286   : > { %v7839_v16 = vpop.f32.mrf.mxu0 }
0x1288   : > { %v5369_v50 = vpop.f32.mrf.mxu0 }
0x128a   : > { %v7840_v48 = vpop.f32.mrf.mxu0 }
0x128b   : > { %v5389_v45 = vpack.c.bf16 %v7840_v48, %v7839_v16 }
0x128c   : > { %v5372_v60 = vpop.f32.mrf.mxu0 }
0x128d   : > { %v5388_v58 = vpack.c.bf16 %v5372_v60, %v5369_v50 }
0x128e   : > { %v7847_v38 = vpop.f32.mrf.mxu0 }
0x128f   : > { %v5578_v61 = vadd.f32 %v7863_v6, %v7847_v38  ;;  %7853 = vmatprep.mubr.msk.bf16.mxu0 %vm1904_vm4, %v5388_v58 }
0x1290   : > { %v5458_v14 = vpop.f32.mrf.mxu0  ;;  %7854 = vmatmul.mubr.msk.bf16.gmra.mxu0 %vm1904_vm4, %v5389_v45 }
0x1291   : > { %v5626_v0 = vadd.f32 %v10813_v62, %v5578_v61  ;;  %v5570_v17 = vadd.f32 %v5569_v51, %v5458_v14  ;;  %5995 = vmatprep.mubr.bf16.mxu0 %v11480_v57 }
0x1292   : > { %v7848_v40 = vpop.f32.mrf.mxu0 }
0x1293   : > { %v5642_v36 = vmul.f32 %v10819_v42, %v5626_v0  ;;  %v5624_v37 = vadd.f32 %v10813_v62, %v5570_v17  ;;  %v5581_v34 = vadd.f32 %v7864_v27, %v7848_v40 }
0x1294   : > { %v5461_v63 = vpop.f32.mrf.mxu0 }
0x1295   : > { %v5640_v20 = vmul.f32 %v10819_v42, %v5624_v37  ;;  %v5573_v53 = vadd.f32 %v5572_v19, %v5461_v63  ;;  %v10827_v8 = vadd.f32 %v5642_v36, %v10172_v28  ;;  %v5627_v15 = vadd.f32 %v10813_v62, %v5581_v34 }
0x1296   : > { %v7851_v35 = vpop.f32.mrf.mxu0 }
0x1297   : > { %v5625_v5 = vadd.f32 %v10813_v62, %v5573_v53  ;;  %v10831_v41 = vadd.f32 %v5640_v20, %v10157_v24  ;;  %v5594_v22 = vadd.f32 %v7867_v7, %v7851_v35  ;;  %v5670_v55 = vsel %vm977_vm3, %v10827_v8, 0.0 }
0x1298   : > { %v5474_v3 = vpop.f32.mrf.mxu0  ;;  %5671 = vadd.xlane.f32.xlu1 %v5670_v55  ;;  %v5643_v32 = vmul.f32 %v10819_v42, %v5627_v15  ;;  %v5702_v6 = vmul.f32 %v10827_v8, %v10827_v8  ;;  %v8069_v55 = vld [vmem:[%s11432_s15 + $0x60] ss:$8 sps:$4 sm:$0xff]  }
0x1299   : > { %v5641_v46 = vmul.f32 %v10819_v42, %v5625_v5  ;;  %v5630_v49 = vadd.f32 %v10813_v62, %v5594_v22  ;;  %v5586_v25 = vadd.f32 %v5585_v12, %v5474_v3  ;;  %v5664_v24 = vsel %vm977_vm3, %v10831_v41, 0.0  ;;  %v8066_v5 = vld [vmem:[%s11432_s15 + $0x70] ss:$8 sps:$4 sm:$0xff]   ;;  %v8071_v22 = vld [vmem:[%s11432_s15 + $0x64] ss:$8 sps:$4 sm:$0xff]  }
0x129a   : > { %v7852_v28 = vpop.f32.mrf.mxu0  ;;  %v5700_v13 = vmul.f32 %v10831_v41, %v10831_v41  ;;  %v10858_v50 = vadd.f32 %v5643_v32, %v10176_v44  ;;  %v5718_v60 = vsel %vm977_vm3, %v5702_v6, 0.0  ;;  %v8074_v3 = vld [vmem:[%s11432_s15 + $0x54] ss:$8 sps:$4 sm:$0xff]   ;;  %v8075_v15 = vld [vmem:[%s11432_s15 + $0x40] ss:$8 sps:$4 sm:$0xff]  }
0x129b   : > { %v10838_v54 = vadd.f32 %v5641_v46, %v10164_v31  ;;  %v5646_v33 = vmul.f32 %v10819_v42, %v5630_v49  ;;  %v5628_v1 = vadd.f32 %v10813_v62, %v5586_v25  ;;  %v5597_v19 = vadd.f32 %v7868_v30, %v7852_v28  ;;  %v8072_v30 = vld [vmem:[%s11432_s15 + $0x50] ss:$8 sps:$4 sm:$0xff]   ;;  %v8077_v46 = vld [vmem:[%s11432_s15 + $0x44] ss:$8 sps:$4 sm:$0xff]  }
0x129c   : > { %v5477_v47 = vpop.f32.mrf.mxu0  ;;  %5665 = vadd.xlane.f32.xlu1 %v5664_v24  ;;  %v5712_v43 = vsel %vm977_vm3, %v5700_v13, 0.0  ;;  %v5673_v45 = vsel %vm977_vm3, %v10858_v50, 0.0  ;;  %v5703_v38 = vmul.f32 %v10858_v50, %v10858_v50  ;;  %v11484_v28 = vmov 0.0  }
0x129d   : > { %v5589_v4 = vadd.f32 %v5588_v23, %v5477_v47  ;;  %v5667_v56 = vsel %vm977_vm3, %v10838_v54, 0.0  ;;  %v5701_v31 = vmul.f32 %v10838_v54, %v10838_v54  ;;  %v10861_v27 = vadd.f32 %v5646_v33, %v10211_v26 }
0x129e   : > { %5668 = vadd.xlane.f32.xlu0 %v5667_v56  ;;  %v5644_v48 = vmul.f32 %v10819_v42, %v5628_v1  ;;  %v5631_v61 = vadd.f32 %v10813_v62, %v5597_v19  ;;  %v5721_v14 = vsel %vm977_vm3, %v5703_v38, 0.0 }
0x129f   : > { %v5629_v51 = vadd.f32 %v10813_v62, %v5589_v4  ;;  %v5715_v16 = vsel %vm977_vm3, %v5701_v31, 0.0  ;;  %v5682_v44 = vsel %vm977_vm3, %v10861_v27, 0.0  ;;  %v5706_v37 = vmul.f32 %v10861_v27, %v10861_v27 }
0x12a0   : > { %5713 = vadd.xlane.f32.xlu1 %v5712_v43  ;;  %v10873_v26 = vadd.f32 %v5644_v48, %v10195_v10  ;;  %v5647_v40 = vmul.f32 %v10819_v42, %v5631_v61 }
0x12a1   : > { %v5645_v58 = vmul.f32 %v10819_v42, %v5629_v51  ;;  %v5730_v20 = vsel %vm977_vm3, %v5706_v37, 0.0 }
0x12a2   : > { %5716 = vadd.xlane.f32.xlu0 %v5715_v16  ;;  %v5676_v0 = vsel %vm977_vm3, %v10873_v26, 0.0  ;;  %v5704_v17 = vmul.f32 %v10873_v26, %v10873_v26  ;;  %v10893_v63 = vadd.f32 %v5647_v40, %v10218_v9  ;;  %v8068_v9 = vld [vmem:[%s11432_s15 + $0x74] ss:$8 sps:$4 sm:$0xff]  }
0x12a3   : > { %v10878_v7 = vadd.f32 %v5645_v58, %v10202_v59  ;;  %5971 = vmatprep.subr.bf16.mxu0 %v8068_v9 }
0x12a4   : > { %5719 = vadd.xlane.f32.xlu1 %v5718_v60  ;;  %v5724_v59 = vsel %vm977_vm3, %v5704_v17, 0.0  ;;  %v5685_v53 = vsel %vm977_vm3, %v10893_v63, 0.0  ;;  %v5707_v34 = vmul.f32 %v10893_v63, %v10893_v63  ;;  %5972 = vmatpush1.bf16.msra.mxu0 %v8066_v5 }
0x12a5   : > { %v5679_v10 = vsel %vm977_vm3, %v10878_v7, 0.0  ;;  %v5705_v36 = vmul.f32 %v10878_v7, %v10878_v7  ;;  %5973 = vmatprep.subr.bf16.mxu0 %v8071_v22 }
0x12a6   : > { %5674 = vadd.xlane.f32.xlu0 %v5673_v45  ;;  %v5733_v35 = vsel %vm977_vm3, %v5707_v34, 0.0 }
0x12a7   : > { %v5727_v12 = vsel %vm977_vm3, %v5705_v36, 0.0 }
0x12a8   : > { %5683 = vadd.xlane.f32.xlu1 %v5682_v44  ;;  %5974 = vmatpush1.bf16.msra.mxu0 %v8069_v55 }
0x12a9   : > { %5975 = vmatprep.subr.bf16.mxu0 %v8074_v3 }
0x12aa   : > { %5722 = vadd.xlane.f32.xlu0 %v5721_v14 }
0x12ac   : > { %5677 = vadd.xlane.f32.xlu1 %v5676_v0  ;;  %5976 = vmatpush1.bf16.msra.mxu0 %v8072_v30 }
0x12ad   : > { %5977 = vmatprep.subr.bf16.mxu0 %v8077_v46 }
0x12ae   : > { %5680 = vadd.xlane.f32.xlu0 %v5679_v10 }
0x12b0   : > { %5725 = vadd.xlane.f32.xlu1 %v5724_v59  ;;  %5978 = vmatpush1.bf16.msra.mxu0 %v8075_v15 }
0x12b1   : > { %7873 = vmatprep.subr.bf16.mxu0 %v11484_v28 }
0x12b2   : > { %5728 = vadd.xlane.f32.xlu0 %v5727_v12 }
0x12b4   : > { %5731 = vadd.xlane.f32.xlu1 %v5730_v20  ;;  %v5844_v20 = vadd.f32 1.0, %v10114_v52 }
0x12b6   : > { %5686 = vadd.xlane.f32.xlu0 %v5685_v53  ;;  %v10946_v15 = vrot.slane %v5844_v20, %v8711_v18 }
0x12ba   : > { %5734 = vadd.xlane.f32.xlu0 %v5733_v35 }
0x12c5   : > { %5862 = vrot.lane.b32.xlu1 %v10819_v42, %s11481_s0 }
0x1321   : > { %v5672_v49 = vpop.xlane.xlu1 %5671 }
0x1322   : > { %v10929_v32 = vmul.f32 0.015625, %v5672_v49 }
0x1324   : > { %v5774_v51 = vmul.f32 %v10929_v32, %v10929_v32 }
0x1325   : > { %v5666_v25 = vpop.xlane.xlu1 %5665 }
0x1326   : > { %v5748_v24 = vmul.f32 0.015625, %v5666_v25 }
0x1327   : > { %v5669_v47 = vpop.xlane.xlu0 %5668 }
0x1328   : > { %v5749_v13 = vmul.f32 0.015625, %v5669_v47  ;;  %v5772_v4 = vmul.f32 %v5748_v24, %v5748_v24  ;;  %v5796_v22 = vsub.f32 %v10831_v41, %v5748_v24 }
0x1329   : > { %v5714_v23 = vpop.xlane.xlu1 %5713 }
0x132a   : > { %v5760_v56 = vmul.f32 0.015625, %v5714_v23  ;;  %v5773_v33 = vmul.f32 %v5749_v13, %v5749_v13  ;;  %v5797_v49 = vsub.f32 %v10838_v54, %v5749_v13 }
0x132b   : > { %v5717_v31 = vpop.xlane.xlu0 %5716 }
0x132c   : > { %v5784_v1 = vsub.f32 %v5760_v56, %v5772_v4  ;;  %v5761_v43 = vmul.f32 0.015625, %v5717_v31 }
0x132d   : > { %v5720_v6 = vpop.xlane.xlu1 %5719 }
0x132e   : > { %v5808_v16 = vadd.f32 1e-06, %v5784_v1  ;;  %v5785_v48 = vsub.f32 %v5761_v43, %v5773_v33  ;;  %v5762_v60 = vmul.f32 0.015625, %v5720_v6 }
0x132f   : > { %v5675_v19 = vpop.xlane.xlu0 %5674 }
0x1330   : > { %8422 = vrsqrt.f32 %v5808_v16  ;;  %v5809_v58 = vadd.f32 1e-06, %v5785_v48  ;;  %v5786_v45 = vsub.f32 %v5762_v60, %v5774_v51  ;;  %v5751_v38 = vmul.f32 0.015625, %v5675_v19 }
0x1331   : > { %v5684_v44 = vpop.xlane.xlu1 %5683  ;;  %v5798_v16 = vsub.f32 %v10827_v8, %v10929_v32 }
0x1332   : > { %8424 = vrsqrt.f32 %v5809_v58  ;;  %v5810_v61 = vadd.f32 1e-06, %v5786_v45  ;;  %v5775_v0 = vmul.f32 %v5751_v38, %v5751_v38  ;;  %v10940_v9 = vmul.f32 0.015625, %v5684_v44 }
0x1333   : > { %v5723_v14 = vpop.xlane.xlu0 %5722  ;;  %v5799_v8 = vsub.f32 %v10858_v50, %v5751_v38 }
0x1334   : > { %8426 = vrsqrt.f32 %v5810_v61  ;;  %v5763_v17 = vmul.f32 0.015625, %v5723_v14  ;;  %v5778_v24 = vmul.f32 %v10940_v9, %v10940_v9 }
0x1335   : > { %v5678_v40 = vpop.xlane.xlu1 %5677 }
0x1336   : > { %v5787_v10 = vsub.f32 %v5763_v17, %v5775_v0  ;;  %v10933_v36 = vmul.f32 0.015625, %v5678_v40 }
0x1337   : > { %v5681_v59 = vpop.xlane.xlu0 %5680 }
0x1338   : > { %v5811_v37 = vadd.f32 1e-06, %v5787_v10  ;;  %v10935_v12 = vmul.f32 0.015625, %v5681_v59  ;;  %v5776_v34 = vmul.f32 %v10933_v36, %v10933_v36 }
0x1339   : > { %v5726_v53 = vpop.xlane.xlu1 %5725 }
0x133a   : > { %8428 = vrsqrt.f32 %v5811_v37  ;;  %v5764_v35 = vmul.f32 0.015625, %v5726_v53  ;;  %v5777_v55 = vmul.f32 %v10935_v12, %v10935_v12  ;;  %v7871_v53 = vpop.f32.mrf.mxu1 }
0x133b   : > { %v5729_v5 = vpop.xlane.xlu0 %5728 }
0x133c   : > { %v5788_v3 = vsub.f32 %v5764_v35, %v5776_v34  ;;  %v5765_v30 = vmul.f32 0.015625, %v5729_v5  ;;  %v5800_v35 = vsub.f32 %v10873_v26, %v10933_v36  ;;  %v5802_v36 = vsub.f32 %v10861_v27, %v10940_v9 }
0x133d   : > { %v8423_v46 = vpop.eup %8422  ;;  %v5732_v25 = vpop.xlane.xlu1 %5731 }
0x133e   : > { %v5832_v47 = vmul.f32 %v8423_v46, %v5796_v22  ;;  %v5812_v23 = vadd.f32 1e-06, %v5788_v3  ;;  %v5789_v4 = vsub.f32 %v5765_v30, %v5777_v55  ;;  %v5766_v56 = vmul.f32 0.015625, %v5732_v25  ;;  %v5601_v22 = vpop.f32.mrf.mxu1 }
0x133f   : > { %v8425_v31 = vpop.eup %8424  ;;  %v5687_v33 = vpop.xlane.xlu0 %5686  ;;  %v5801_v55 = vsub.f32 %v10878_v7, %v10935_v12 }
0x1340   : > { %v5849_v1 = vmul.f32 %v10946_v15, %v5832_v47  ;;  %v5833_v43 = vmul.f32 %v8425_v31, %v5797_v49  ;;  %8430 = vrsqrt.f32 %v5812_v23  ;;  %v5813_v6 = vadd.f32 1e-06, %v5789_v4  ;;  %v7872_v26 = vpop.f32.mrf.mxu1 }
0x1341   : > { %v8427_v51 = vpop.eup %8426  ;;  %v5790_v13 = vsub.f32 %v5766_v56, %v5778_v24  ;;  %v10954_v48 = vmul.f32 0.015625, %v5687_v33  ;;  %v10956_v60 = vpop.permute.xlu1 %5862 }
0x1342   : > { %v5850_v19 = vmul.f32 %v10946_v15, %v5833_v43  ;;  %8432 = vrsqrt.f32 %v5813_v6  ;;  %v5834_v58 = vmul.f32 %v8427_v51, %v5798_v16  ;;  %v5865_v0 = vadd.f32 %v10956_v60, %v5849_v1  ;;  %v5604_v16 = vpop.f32.mrf.mxu1 }
0x1343   : > { %v5814_v45 = vadd.f32 1e-06, %v5790_v13  ;;  %v5735_v44 = vpop.xlane.xlu0 %5734  ;;  %v5779_v61 = vmul.f32 %v10954_v48, %v10954_v48  ;;  %v5803_v13 = vsub.f32 %v10893_v63, %v10954_v48 }
0x1344   : > { %v5767_v14 = vmul.f32 0.015625, %v5735_v44  ;;  %v5866_v17 = vadd.f32 %v10956_v60, %v5850_v19  ;;  %v5851_v20 = vmul.f32 %v10946_v15, %v5834_v58 }
0x1345   : > { %8434 = vrsqrt.f32 %v5814_v45 }
0x1346   : > { %v5791_v32 = vsub.f32 %v5767_v14, %v5779_v61  ;;  %v5877_v40 = vpack.c.bf16 %v5866_v17, %v5865_v0  ;;  %v5867_v50 = vadd.f32 %v10956_v60, %v5851_v20 }
0x1347   : > { %v8429_v10 = vpop.eup %8428 }
0x1348   : > { %v5835_v59 = vmul.f32 %v8429_v10, %v5799_v8  ;;  %v5815_v37 = vadd.f32 1e-06, %v5791_v32  ;;  %7197 = vmatmul.mubr.msk.bf16.vlgmr.msra.gmra.mxu0 %vm977_vm3, %v5877_v40 }
0x1349   : > { %6005 = vmatprep.mubr.bf16.mxu0 %v11480_v57 }
0x134a   : > { %8436 = vrsqrt.f32 %v5815_v37  ;;  %v5852_v34 = vmul.f32 %v10946_v15, %v5835_v59 }
0x134c   : > { %v5868_v38 = vadd.f32 %v10956_v60, %v5852_v34 }
0x134d   : > { %v8431_v5 = vpop.eup %8430 }
0x134e   : > { %v5836_v3 = vmul.f32 %v8431_v5, %v5800_v35  ;;  %v5878_v30 = vpack.c.bf16 %v5868_v38, %v5867_v50 }
0x134f   : > { %v8433_v46 = vpop.eup %8432 }
0x1350   : > { %v7855_v49 = vpop.f32.mrf.mxu0  ;;  %v5837_v25 = vmul.f32 %v8433_v46, %v5801_v55  ;;  %7198 = vmatmul.mubr.msk.bf16.gmra.mxu0 %vm977_vm3, %v5878_v30  ;;  %v5853_v23 = vmul.f32 %v10946_v15, %v5836_v3  ;;  %v8078_v30 = vld [vmem:[%s11434_s17 + $0xf8] sm:$0xff]  }
0x1351   : > { %v5610_v47 = vadd.f32 %v7871_v53, %v7855_v49  ;;  %6015 = vmatprep.mubr.bf16.mxu0 %v11480_v57  ;;  %v8079_v46 = vld [vmem:[%s11434_s17 + $0xb8] sm:$0xff]   ;;  %7496 = vmatprep.subr.bf16.mxu1 %v8078_v30 }
0x1352   : > { %v5490_v4 = vpop.f32.mrf.mxu0  ;;  %v8435_v56 = vpop.eup %8434  ;;  %v5854_v31 = vmul.f32 %v10946_v15, %v5837_v25  ;;  %v5869_v1 = vadd.f32 %v10956_v60, %v5853_v23  ;;  %7497 = vmatpush3.bf16.msra.mxu1 %v8079_v46  ;;  %v8080_v49 = vld [vmem:[%s11436_s19 + $0x18] sm:$0xff]   ;;  %v8081_v25 = vld [vmem:[%s11434_s17 + $0xf0] sm:$0xff]  }
0x1353   : > { %v5634_v7 = vadd.f32 %v10813_v62, %v5610_v47  ;;  %v5602_v12 = vadd.f32 %v5601_v22, %v5490_v4  ;;  %v5838_v24 = vmul.f32 %v8435_v56, %v5802_v36  ;;  %7874 = vmatpush3.bf16.msra.mxu0 %v8080_v49  ;;  %v8082_v47 = vld [vmem:[%s11434_s17 + $0xb0] sm:$0xff]   ;;  %7498 = vmatprep.subr.bf16.mxu1 %v8081_v25  ;;  %v8085_v36 = vld [vmem:[%s11434_s17 + $0xa8] sm:$0xff]   ;;  %v8087_v56 = vld [vmem:[%s11434_s17 + $0xe0] sm:$0xff]  }
0x1354   : > { %v7856_v33 = vpop.f32.mrf.mxu0  ;;  %v5870_v9 = vadd.f32 %v10956_v60, %v5854_v31  ;;  %7875 = vmatprep.subr.bf16.mxu0 %v11484_v28  ;;  %v8083_v23 = vld [vmem:[%s11436_s19 + $0x10] sm:$0xff]   ;;  %v8086_v4 = vld [vmem:[%s11436_s19 + $0x8] sm:$0xff]   ;;  %v8090_v31 = vld [vmem:[%s11434_s17 + $0xd8] sm:$0xff]  }
0x1355   : > { %v5650_v43 = vmul.f32 %v10819_v42, %v5634_v7  ;;  %v5632_v6 = vadd.f32 %v10813_v62, %v5602_v12  ;;  %v5613_v51 = vadd.f32 %v7872_v26, %v7856_v33  ;;  %v5855_v32 = vmul.f32 %v10946_v15, %v5838_v24  ;;  %v8084_v26 = vld [vmem:[%s11434_s17 + $0xe8] sm:$0xff]   ;;  %v8088_v7 = vld [vmem:[%s11434_s17 + $0xa0] sm:$0xff]   ;;  %v8091_v24 = vld [vmem:[%s11434_s17 + $0x98] sm:$0xff]  }
0x1356   : > { %v5493_v19 = vpop.f32.mrf.mxu0  ;;  %v5879_v61 = vpack.c.bf16 %v5870_v9, %v5869_v1  ;;  %7499 = vmatpush3.bf16.msra.mxu1 %v8082_v47  ;;  %v8089_v12 = vld [vmem:[%s11436_s19] sm:$0xff]   ;;  %v8092_v33 = vld [vmem:[%s11434_s17 + $0xd0] sm:$0xff]  }
0x1357   : > { %v5648_v58 = vmul.f32 %v10819_v42, %v5632_v6  ;;  %v5635_v45 = vadd.f32 %v10813_v62, %v5613_v51  ;;  %v5605_v44 = vadd.f32 %v5604_v16, %v5493_v19  ;;  %v8437_v14 = vpop.eup %8436  ;;  %v10990_v0 = vadd.f32 %v5650_v43, %v10254_v29  ;;  %7876 = vmatpush3.bf16.msra.mxu0 %v8083_v23  ;;  %v8093_v1 = vld [vmem:[%s11434_s17 + $0x90] sm:$0xff]   ;;  %v8094_v43 = vld [vmem:[%s11434_s17 + $0xc8] sm:$0xff]   ;;  %v8096_v51 = vld [vmem:[%s11434_s17 + $0xc0] sm:$0xff]  }
0x1358   : > { %v5839_v17 = vmul.f32 %v8437_v14, %v5803_v13  ;;  %7199 = vmatmul.mubr.msk.bf16.gmra.mxu0 %vm977_vm3, %v5879_v61  ;;  %v5871_v37 = vadd.f32 %v10956_v60, %v5855_v32  ;;  %7500 = vmatprep.subr.bf16.mxu1 %v8084_v26  ;;  %v8095_v6 = vld [vmem:[%s11434_s17 + $0x88] sm:$0xff]   ;;  %v8097_v9 = vld [vmem:[%s11434_s17 + $0x80] sm:$0xff]  }
0x1359   : > { %v10994_v8 = vadd.f32 %v5648_v58, %v10232_v2  ;;  %v5651_v48 = vmul.f32 %v10819_v42, %v5635_v45  ;;  %v5694_v40 = vsel %vm977_vm3, %v10990_v0, 0.0  ;;  %6025 = vmatprep.mubr.bf16.mxu0 %v11480_v57  ;;  %v5633_v10 = vadd.f32 %v10813_v62, %v5605_v44  ;;  %7877 = vmatprep.subr.bf16.mxu0 %v11484_v28 }
0x135a   : > { %5695 = vadd.xlane.f32.xlu1 %v5694_v40  ;;  %v5856_v59 = vmul.f32 %v10946_v15, %v5839_v17  ;;  %v5710_v22 = vmul.f32 %v10990_v0, %v10990_v0  ;;  %7501 = vmatpush3.bf16.msra.mxu1 %v8085_v36 }
0x135b   : > { %v5688_v29 = vsel %vm977_vm3, %v10994_v8, 0.0  ;;  %v5708_v2 = vmul.f32 %v10994_v8, %v10994_v8  ;;  %v5649_v53 = vmul.f32 %v10819_v42, %v5633_v10  ;;  %v11012_v62 = vadd.f32 %v5651_v48, %v10264_v39  ;;  %7878 = vmatpush3.bf16.msra.mxu0 %v8086_v4  ;;  %7502 = vmatprep.subr.bf16.mxu1 %v8087_v56 }
0x135c   : > { %5689 = vadd.xlane.f32.xlu0 %v5688_v29  ;;  %v5872_v20 = vadd.f32 %v10956_v60, %v5856_v59  ;;  %v5742_v55 = vsel %vm977_vm3, %v5710_v22, 0.0  ;;  %7879 = vmatprep.subr.bf16.mxu0 %v11484_v28 }
0x135d   : > { %v5736_v35 = vsel %vm977_vm3, %v5708_v2, 0.0  ;;  %v5697_v50 = vsel %vm977_vm3, %v11012_v62, 0.0  ;;  %v11019_v38 = vadd.f32 %v5649_v53, %v10246_v21  ;;  %v5711_v21 = vmul.f32 %v11012_v62, %v11012_v62 }
0x135e   : > { %v5880_v34 = vpack.c.bf16 %v5872_v20, %v5871_v37  ;;  %7503 = vmatpush3.bf16.msra.mxu1 %v8088_v7 }
0x135f   : > { %v5691_v42 = vsel %vm977_vm3, %v11019_v38, 0.0  ;;  %v5709_v5 = vmul.f32 %v11019_v38, %v11019_v38  ;;  %v5745_v3 = vsel %vm977_vm3, %v5711_v21, 0.0  ;;  %7880 = vmatpush3.bf16.msra.mxu0 %v8089_v12  ;;  %7504 = vmatprep.subr.bf16.mxu1 %v8090_v31 }
0x1360   : > { %5737 = vadd.xlane.f32.xlu0 %v5736_v35  ;;  %7200 = vmatmul.mubr.msk.bf16.gmra.mxu0 %vm977_vm3, %v5880_v34 }
0x1361   : > { %6035 = vmatprep.mubr.bf16.mxu0 %v11480_v57  ;;  %v5739_v39 = vsel %vm977_vm3, %v5709_v5, 0.0  ;;  %7885 = vmatprep.subr.bf16.mxu0 %v11484_v28 }
0x1362   : > { %7505 = vmatpush3.bf16.msra.mxu1 %v8091_v24 }
0x1363   : > { %7506 = vmatprep.subr.bf16.mxu1 %v8092_v33 }
0x1364   : > { %5698 = vadd.xlane.f32.xlu0 %v5697_v50 }
0x1366   : > { %7507 = vmatpush3.bf16.msra.mxu1 %v8093_v1 }
0x1367   : > { %7508 = vmatprep.subr.bf16.mxu1 %v8094_v43 }
0x1368   : > { %5692 = vadd.xlane.f32.xlu0 %v5691_v42 }
0x136a   : > { %7509 = vmatpush3.bf16.msra.mxu1 %v8095_v6 }
0x136b   : > { %7510 = vmatprep.subr.bf16.mxu1 %v8096_v51 }
0x136c   : > { %5740 = vadd.xlane.f32.xlu0 %v5739_v39 }
0x136e   : > { %7511 = vmatpush3.bf16.msra.mxu1 %v8097_v9 }
0x136f   : > { %7897 = vmatprep.subr.bf16.mxu1 %v11484_v28 }
0x1370   : > { %5743 = vadd.xlane.f32.xlu0 %v5742_v55 }
0x1374   : > { %5746 = vadd.xlane.f32.xlu0 %v5745_v3  ;;  %v7188_v3 = vld [vmem:[%s11433_s16 + $0x2] sm:$0x3] }
0x1375   : > { %v11102_v49 = vrot.slane %v7188_v3, %v8711_v18  ;;  %v11106_v23 = vrot.slane %v7188_v3, %v8695_v11 }
0x13e3   : > { %v5696_v32 = vpop.xlane.xlu1 %5695 }
0x13e4   : > { %v5758_v10 = vmul.f32 0.015625, %v5696_v32 }
0x13e5   : > { %v5690_v16 = vpop.xlane.xlu0 %5689 }
0x13e6   : > { %v5756_v13 = vmul.f32 0.015625, %v5690_v16  ;;  %v5782_v20 = vmul.f32 %v5758_v10, %v5758_v10 }
0x13e8   : > { %v5780_v45 = vmul.f32 %v5756_v13, %v5756_v13  ;;  %v5804_v46 = vsub.f32 %v10994_v8, %v5756_v13  ;;  %v5806_v8 = vsub.f32 %v10990_v0, %v5758_v10 }
0x13e9   : > { %v5738_v19 = vpop.xlane.xlu0 %5737 }
0x13ea   : > { %v5768_v58 = vmul.f32 0.015625, %v5738_v19 }
0x13ec   : > { %v5792_v61 = vsub.f32 %v5768_v58, %v5780_v45 }
0x13ed   : > { %v5699_v44 = vpop.xlane.xlu0 %5698 }
0x13ee   : > { %v5816_v48 = vadd.f32 1e-06, %v5792_v61  ;;  %v5759_v53 = vmul.f32 0.015625, %v5699_v44 }
0x13f0   : > { %8438 = vrsqrt.f32 %v5816_v48  ;;  %v5783_v5 = vmul.f32 %v5759_v53, %v5759_v53  ;;  %v5807_v13 = vsub.f32 %v11012_v62, %v5759_v53 }
0x13f1   : > { %v5693_v14 = vpop.xlane.xlu0 %5692 }
0x13f2   : > { %v5757_v17 = vmul.f32 0.015625, %v5693_v14 }
0x13f4   : > { %v5781_v29 = vmul.f32 %v5757_v17, %v5757_v17  ;;  %v5805_v47 = vsub.f32 %v11019_v38, %v5757_v17 }
0x13f5   : > { %v5741_v40 = vpop.xlane.xlu0 %5740 }
0x13f6   : > { %v5769_v59 = vmul.f32 0.015625, %v5741_v40 }
0x13f8   : > { %v5793_v2 = vsub.f32 %v5769_v59, %v5781_v29 }
0x13f9   : > { %v5744_v37 = vpop.xlane.xlu0 %5743 }
0x13fa   : > { %v5817_v34 = vadd.f32 1e-06, %v5793_v2  ;;  %v5770_v35 = vmul.f32 0.015625, %v5744_v37 }
0x13fc   : > { %8440 = vrsqrt.f32 %v5817_v34  ;;  %v5794_v50 = vsub.f32 %v5770_v35, %v5782_v20 }
0x13fd   : > { %v5747_v42 = vpop.xlane.xlu0 %5746  ;;  %v8439_v30 = vpop.eup %8438 }
0x13fe   : > { %v5818_v39 = vadd.f32 1e-06, %v5794_v50  ;;  %v5771_v22 = vmul.f32 0.015625, %v5747_v42  ;;  %v5840_v25 = vmul.f32 %v8439_v30, %v5804_v46 }
0x1400   : > { %8442 = vrsqrt.f32 %v5818_v39  ;;  %v5795_v55 = vsub.f32 %v5771_v22, %v5783_v5  ;;  %v5857_v12 = vmul.f32 %v10946_v15, %v5840_v25 }
0x1402   : > { %v5819_v21 = vadd.f32 1e-06, %v5795_v55  ;;  %v5873_v0 = vadd.f32 %v10956_v60, %v5857_v12 }
0x1404   : > { %8444 = vrsqrt.f32 %v5819_v21 }
0x1408   : > { %v5997_v36 = vpop.f32.mrf.mxu0 }
0x1409   : > { %v8441_v26 = vpop.eup %8440  ;;  %v11109_v56 = vadd.f32 %v5997_v36, %v11102_v49 }
0x140a   : > { %v5841_v4 = vmul.f32 %v8441_v26, %v5805_v47  ;;  %v5999_v7 = vpop.f32.mrf.mxu0 }
0x140b   : > { %v6080_v31 = vmul.f32 0.044715, %v11109_v56  ;;  %v11115_v24 = vadd.f32 %v5999_v7, %v11106_v23 }
0x140c   : > { %v5858_v38 = vmul.f32 %v10946_v15, %v5841_v4  ;;  %v6001_v33 = vpop.f32.mrf.mxu0 }
0x140d   : > { %v8443_v11 = vpop.eup %8442  ;;  %v6104_v43 = vmul.f32 %v6080_v31, %v11109_v56  ;;  %v6081_v6 = vmul.f32 0.044715, %v11115_v24  ;;  %v11121_v51 = vadd.f32 %v6001_v33, %v11102_v49 }
0x140e   : > { %v5842_v1 = vmul.f32 %v8443_v11, %v5806_v8  ;;  %v6003_v9 = vpop.f32.mrf.mxu0  ;;  %v5874_v16 = vadd.f32 %v10956_v60, %v5858_v38 }
0x140f   : > { %v6128_v19 = vmul.f32 %v6104_v43, %v11109_v56  ;;  %v6105_v58 = vmul.f32 %v6081_v6, %v11115_v24  ;;  %v6082_v45 = vmul.f32 0.044715, %v11121_v51  ;;  %v11130_v61 = vadd.f32 %v6003_v9, %v11106_v23 }
0x1410   : > { %v6007_v14 = vpop.f32.mrf.mxu0  ;;  %v5881_v17 = vpack.c.bf16 %v5874_v16, %v5873_v0  ;;  %v5859_v32 = vmul.f32 %v10946_v15, %v5842_v1 }
0x1411   : > { %v8445_v44 = vpop.eup %8444  ;;  %v6152_v40 = vadd.f32 %v6128_v19, %v11109_v56  ;;  %v6129_v10 = vmul.f32 %v6105_v58, %v11115_v24  ;;  %v6106_v62 = vmul.f32 %v6082_v45, %v11121_v51  ;;  %v6083_v29 = vmul.f32 0.044715, %v11130_v61 }
0x1412   : > { %v5843_v48 = vmul.f32 %v8445_v44, %v5807_v13  ;;  %v11138_v59 = vadd.f32 %v6007_v14, %v11102_v49  ;;  %v6009_v2 = vpop.f32.mrf.mxu0  ;;  %7201 = vmatmul.mubr.msk.bf16.gmra.mxu0 %vm977_vm3, %v5881_v17  ;;  %v5875_v5 = vadd.f32 %v10956_v60, %v5859_v32 }
0x1413   : > { %v6176_v37 = vmul.f32 0.7978846, %v6152_v40  ;;  %v6130_v20 = vmul.f32 %v6106_v62, %v11121_v51  ;;  %v11143_v53 = vadd.f32 %v6009_v2, %v11106_v23  ;;  %6045 = vmatprep.mubr.bf16.mxu0 %v11480_v57  ;;  %v6107_v35 = vmul.f32 %v6083_v29, %v11130_v61 }
0x1414   : > { %v5860_v34 = vmul.f32 %v10946_v15, %v5843_v48  ;;  %v6084_v50 = vmul.f32 0.044715, %v11138_v59  ;;  %v6011_v42 = vpop.f32.mrf.mxu0  ;;  %v6153_v39 = vadd.f32 %v6129_v10, %v11115_v24 }
0x1415   : > { %8446 = vtanh.f32 %v6176_v37  ;;  %v6154_v22 = vadd.f32 %v6130_v20, %v11121_v51  ;;  %v6085_v55 = vmul.f32 0.044715, %v11143_v53  ;;  %v11154_v21 = vadd.f32 %v6011_v42, %v11102_v49 }
0x1416   : > { %v6131_v57 = vmul.f32 %v6107_v35, %v11130_v61  ;;  %v6108_v15 = vmul.f32 %v6084_v50, %v11138_v59  ;;  %v6013_v3 = vpop.f32.mrf.mxu0  ;;  %v5876_v30 = vadd.f32 %v10956_v60, %v5860_v34  ;;  %v6177_v46 = vmul.f32 0.7978846, %v6153_v39 }
0x1417   : > { %v6178_v25 = vmul.f32 0.7978846, %v6154_v22  ;;  %v6109_v47 = vmul.f32 %v6085_v55, %v11143_v53  ;;  %v6086_v26 = vmul.f32 0.044715, %v11154_v21  ;;  %v11162_v36 = vadd.f32 %v6013_v3, %v11106_v23 }
0x1418   : > { %v6132_v4 = vmul.f32 %v6108_v15, %v11138_v59  ;;  %v6017_v7 = vpop.f32.mrf.mxu0  ;;  %v5882_v12 = vpack.c.bf16 %v5876_v30, %v5875_v5  ;;  %v6155_v8 = vadd.f32 %v6131_v57, %v11130_v61  ;;  %8448 = vtanh.f32 %v6177_v46  ;;  %v11485_v57 = vld [vmem:[#allocation3_spill] sm:$0xff] }
0x1419   : > { %8450 = vtanh.f32 %v6178_v25  ;;  %v6133_v31 = vmul.f32 %v6109_v47, %v11143_v53  ;;  %v6110_v60 = vmul.f32 %v6086_v26, %v11154_v21  ;;  %v6087_v38 = vmul.f32 0.044715, %v11162_v36 }
0x141a   : > { %v6156_v11 = vadd.f32 %v6132_v4, %v11138_v59  ;;  %v11171_v33 = vadd.f32 %v6017_v7, %v11102_v49  ;;  %v6019_v1 = vpop.f32.mrf.mxu0  ;;  %7202 = vmatmul.mubr.msk.bf16.gmra.mxu0 %vm977_vm3, %v5882_v12  ;;  %v6179_v43 = vmul.f32 0.7978846, %v6155_v8  ;;  %v6056_v25 = vmul.f32 0.5, %v11109_v56 }
0x141b   : > { %v6134_v6 = vmul.f32 %v6110_v60, %v11154_v21  ;;  %v6111_v9 = vmul.f32 %v6087_v38, %v11162_v36  ;;  %v11177_v0 = vadd.f32 %v6019_v1, %v11106_v23  ;;  %7881 = vmatprep.mubr.msk.bf16.mxu0 %vm8523_vm2, %v11484_v28  ;;  %v6157_v58 = vadd.f32 %v6133_v31, %v11143_v53 }
0x141c   : > { %v6180_v16 = vmul.f32 0.7978846, %v6156_v11  ;;  %v6088_v13 = vmul.f32 0.044715, %v11171_v33  ;;  %v6021_v19 = vpop.f32.mrf.mxu0  ;;  %8452 = vtanh.f32 %v6179_v43  ;;  %v6057_v4 = vmul.f32 0.5, %v11115_v24 }
0x141d   : > { %v6158_v45 = vadd.f32 %v6134_v6, %v11154_v21  ;;  %v6135_v44 = vmul.f32 %v6111_v9, %v11162_v36  ;;  %v6089_v14 = vmul.f32 0.044715, %v11177_v0  ;;  %v11187_v17 = vadd.f32 %v6021_v19, %v11102_v49 }
0x141e   : > { %8454 = vtanh.f32 %v6180_v16  ;;  %v6112_v32 = vmul.f32 %v6088_v13, %v11171_v33  ;;  %v6023_v48 = vpop.f32.mrf.mxu0  ;;  %v6181_v40 = vmul.f32 0.7978846, %v6157_v58  ;;  %v6058_v11 = vmul.f32 0.5, %v11121_v51 }
0x141f   : > { %v6182_v10 = vmul.f32 0.7978846, %v6158_v45  ;;  %v6113_v62 = vmul.f32 %v6089_v14, %v11177_v0  ;;  %v6090_v29 = vmul.f32 0.044715, %v11187_v17  ;;  %v11193_v2 = vadd.f32 %v6023_v48, %v11106_v23 }
0x1420   : > { %v6136_v37 = vmul.f32 %v6112_v32, %v11171_v33  ;;  %v6027_v20 = vpop.f32.mrf.mxu0  ;;  %v6159_v34 = vadd.f32 %v6135_v44, %v11162_v36  ;;  %8456 = vtanh.f32 %v6181_v40  ;;  %v6059_v48 = vmul.f32 0.5, %v11130_v61 }
0x1421   : > { %8458 = vtanh.f32 %v6182_v10  ;;  %v6114_v35 = vmul.f32 %v6090_v29, %v11187_v17  ;;  %v6091_v50 = vmul.f32 0.044715, %v11193_v2  ;;  %v6137_v39 = vmul.f32 %v6113_v62, %v11177_v0 }
0x1422   : > { %v8447_v42 = vpop.eup %8446  ;;  %v6160_v5 = vadd.f32 %v6136_v37, %v11171_v33  ;;  %v11202_v22 = vadd.f32 %v6027_v20, %v11102_v49  ;;  %v6029_v55 = vpop.f32.mrf.mxu0  ;;  %7882 = vmatmul.mubr.msk.bf16.vlgmr.msra.gmra.mxu0 %vm977_vm3, %v11485_v57  ;;  %v6183_v15 = vmul.f32 0.7978846, %v6159_v34 }
0x1423   : > { %v6138_v3 = vmul.f32 %v6114_v35, %v11187_v17  ;;  %v6115_v30 = vmul.f32 %v6091_v50, %v11193_v2  ;;  %v11209_v46 = vadd.f32 %v6029_v55, %v11106_v23  ;;  %7893 = vmatprep.mubr.msk.bf16.mxu0 %vm8523_vm2, %v11484_v28  ;;  %v6161_v24 = vadd.f32 %v6137_v39, %v11177_v0 }
0x1424   : > { %v6092_v47 = vmul.f32 0.044715, %v11202_v22  ;;  %v6031_v26 = vpop.f32.mrf.mxu0  ;;  %8460 = vtanh.f32 %v6183_v15  ;;  %v6184_v12 = vmul.f32 0.7978846, %v6160_v5  ;;  %v6224_v14 = vadd.f32 1.0, %v8447_v42 }
0x1425   : > { %v8449_v7 = vpop.eup %8448  ;;  %v6162_v8 = vadd.f32 %v6138_v3, %v11187_v17  ;;  %v6139_v31 = vmul.f32 %v6115_v30, %v11193_v2  ;;  %v6093_v60 = vmul.f32 0.044715, %v11209_v46  ;;  %v11222_v56 = vadd.f32 %v6031_v26, %v11102_v49 }
0x1426   : > { %v8451_v38 = vpop.eup %8450  ;;  %v6116_v1 = vmul.f32 %v6092_v47, %v11202_v22  ;;  %v6033_v43 = vpop.f32.mrf.mxu0  ;;  %v6225_v13 = vadd.f32 1.0, %v8449_v7  ;;  %8462 = vtanh.f32 %v6184_v12  ;;  %v6185_v62 = vmul.f32 0.7978846, %v6161_v24 }
0x1427   : > { %v6226_v6 = vadd.f32 1.0, %v8451_v38  ;;  %v6186_v9 = vmul.f32 0.7978846, %v6162_v8  ;;  %v11226_v16 = vadd.f32 %v6033_v43, %v11106_v23  ;;  %v6117_v58 = vmul.f32 %v6093_v60, %v11209_v46 }
0x1428   : > { %v6140_v19 = vmul.f32 %v6116_v1, %v11202_v22  ;;  %v6094_v51 = vmul.f32 0.044715, %v11222_v56  ;;  %v6163_v45 = vadd.f32 %v6139_v31, %v11193_v2  ;;  %v6249_v5 = vmul.f32 %v6225_v13, %v6057_v4 }
0x1429   : > { %v8453_v44 = vpop.eup %8452  ;;  %v6095_v32 = vmul.f32 0.044715, %v11226_v16  ;;  %8464 = vtanh.f32 %v6186_v9  ;;  %v6250_v37 = vmul.f32 %v6226_v6, %v6058_v11  ;;  %v6141_v50 = vmul.f32 %v6117_v58, %v11209_v46 }
0x142a   : > { %v6118_v40 = vmul.f32 %v6094_v51, %v11222_v56  ;;  %v6227_v10 = vadd.f32 1.0, %v8453_v44  ;;  %v6164_v20 = vadd.f32 %v6140_v19, %v11202_v22  ;;  %v6187_v35 = vmul.f32 0.7978846, %v6163_v45 }
0x142b   : > { %v8455_v29 = vpop.eup %8454  ;;  %v6119_v34 = vmul.f32 %v6095_v32, %v11226_v16  ;;  %v6248_v61 = vmul.f32 %v6224_v14, %v6056_v25  ;;  %8466 = vtanh.f32 %v6185_v62  ;;  %v6165_v31 = vadd.f32 %v6141_v50, %v11209_v46 }
0x142c   : > { %v6142_v42 = vmul.f32 %v6118_v40, %v11222_v56  ;;  %v6251_v39 = vmul.f32 %v6227_v10, %v6059_v48  ;;  %v6188_v26 = vmul.f32 0.7978846, %v6164_v20  ;;  %8468 = vtanh.f32 %v6187_v35 }
0x142d   : > { %v8457_v55 = vpop.eup %8456  ;;  %v6143_v57 = vmul.f32 %v6119_v34, %v11226_v16  ;;  %v6272_v47 = vpack.c.bf16 %v6250_v37, %v6248_v61  ;;  %v6061_v25 = vmul.f32 0.5, %v11143_v53  ;;  %v6063_v38 = vmul.f32 0.5, %v11162_v36 }
0x142e   : > { %v8459_v15 = vpop.eup %8458  ;;  %v6166_v3 = vadd.f32 %v6142_v42, %v11222_v56  ;;  %v6273_v30 = vpack.c.bf16 %v6251_v39, %v6249_v5  ;;  %v6229_v8 = vadd.f32 1.0, %v8457_v55  ;;  %v6062_v11 = vmul.f32 0.5, %v11154_v21 }
0x142f   : > { %v6230_v7 = vadd.f32 1.0, %v8459_v15  ;;  %v6167_v4 = vadd.f32 %v6143_v57, %v11226_v16  ;;  %v6228_v1 = vadd.f32 1.0, %v8455_v29  ;;  %v6189_v24 = vmul.f32 0.7978846, %v6165_v31 }
0x1430   : > { %v6190_v12 = vmul.f32 0.7978846, %v6166_v3  ;;  %6453 = vmatprep.mubr.bf16.mxu1 %v6273_v30  ;;  %v6060_v9 = vmul.f32 0.5, %v11138_v59  ;;  %v6253_v19 = vmul.f32 %v6229_v8, %v6061_v25  ;;  %v6066_v40 = vmul.f32 0.5, %v11187_v17 }
0x1431   : > { %v8461_v60 = vpop.eup %8460  ;;  %6454 = vmatmul.mubr.bf16.vlgmr.msra.gmra.mxu1 %v6272_v47  ;;  %v6191_v6 = vmul.f32 0.7978846, %v6167_v4  ;;  %v6254_v13 = vmul.f32 %v6230_v7, %v6062_v11  ;;  %v6065_v59 = vmul.f32 0.5, %v11177_v0  ;;  %v6067_v62 = vmul.f32 0.5, %v11193_v2 }
0x1432   : > { %8470 = vtanh.f32 %v6190_v12  ;;  %v6231_v43 = vadd.f32 1.0, %v8461_v60  ;;  %v6252_v51 = vmul.f32 %v6228_v1, %v6060_v9  ;;  %v6064_v37 = vmul.f32 0.5, %v11171_v33 }
0x1433   : > { %8472 = vtanh.f32 %v6188_v26  ;;  %v8463_v45 = vpop.eup %8462  ;;  %v6069_v0 = vmul.f32 0.5, %v11209_v46  ;;  %v6071_v2 = vmul.f32 0.5, %v11226_v16  ;;  %v6070_v33 = vmul.f32 0.5, %v11222_v56 }
0x1434   : > { %v6255_v58 = vmul.f32 %v6231_v43, %v6063_v38  ;;  %8474 = vtanh.f32 %v6189_v24  ;;  %v6274_v36 = vpack.c.bf16 %v6254_v13, %v6252_v51  ;;  %v6232_v10 = vadd.f32 1.0, %v8463_v45 }
0x1435   : > { %8476 = vtanh.f32 %v6191_v6  ;;  %v6068_v7 = vmul.f32 0.5, %v11202_v22 }
0x1436   : > { %v6275_v53 = vpack.c.bf16 %v6255_v58, %v6253_v19  ;;  %v8465_v44 = vpop.eup %8464  ;;  %v6256_v5 = vmul.f32 %v6232_v10, %v6064_v37 }
0x1437   : > { %v6234_v14 = vadd.f32 1.0, %v8465_v44 }
0x1438   : > { %6461 = vmatprep.mubr.bf16.mxu1 %v6275_v53  ;;  %v8467_v21 = vpop.eup %8466 }
0x1439   : > { %6462 = vmatmul.mubr.bf16.gmra.mxu1 %v6274_v36  ;;  %v6233_v32 = vadd.f32 1.0, %v8467_v21  ;;  %v8469_v48 = vpop.eup %8468  ;;  %v6258_v20 = vmul.f32 %v6234_v14, %v6066_v40 }
0x143a   : > { %v6235_v29 = vadd.f32 1.0, %v8469_v48 }
0x143b   : > { %v6257_v35 = vmul.f32 %v6233_v32, %v6065_v59  ;;  %v6276_v57 = vpack.c.bf16 %v6258_v20, %v6256_v5 }
0x143c   : > { %v6259_v50 = vmul.f32 %v6235_v29, %v6067_v62 }
0x143e   : > { %v6277_v55 = vpack.c.bf16 %v6259_v50, %v6257_v35 }
0x143f   : > { %v8471_v34 = vpop.eup %8470 }
0x1440   : > { %v8473_v42 = vpop.eup %8472  ;;  %v6238_v17 = vadd.f32 1.0, %v8471_v34  ;;  %6467 = vmatprep.mubr.bf16.mxu1 %v6277_v55 }
0x1441   : > { %v8475_v39 = vpop.eup %8474  ;;  %6468 = vmatmul.mubr.bf16.gmra.mxu1 %v6276_v57  ;;  %v6236_v30 = vadd.f32 1.0, %v8473_v42 }
0x1442   : > { %v8477_v61 = vpop.eup %8476  ;;  %v6237_v15 = vadd.f32 1.0, %v8475_v39  ;;  %v6262_v12 = vmul.f32 %v6238_v17, %v6070_v33 }
0x1443   : > { %v6239_v3 = vadd.f32 1.0, %v8477_v61  ;;  %v6260_v31 = vmul.f32 %v6236_v30, %v6068_v7 }
0x1444   : > { %v6261_v47 = vmul.f32 %v6237_v15, %v6069_v0 }
0x1445   : > { %v6263_v26 = vmul.f32 %v6239_v3, %v6071_v2  ;;  %v6278_v4 = vpack.c.bf16 %v6262_v12, %v6260_v31 }
0x1447   : > { %v6279_v8 = vpack.c.bf16 %v6263_v26, %v6261_v47 }
0x1449   : > { %6473 = vmatprep.mubr.bf16.mxu1 %v6279_v8 }
0x144a   : > { %6474 = vmatmul.mubr.bf16.gmra.mxu1 %v6278_v4 }
0x14d2   : > { %v6037_v60 = vpop.f32.mrf.mxu0 }
0x14d3   : > { %v11256_v46 = vadd.f32 %v6037_v60, %v11102_v49 }
0x14d4   : > { %v6039_v16 = vpop.f32.mrf.mxu0 }
0x14d5   : > { %v6096_v25 = vmul.f32 0.044715, %v11256_v46  ;;  %v11260_v56 = vadd.f32 %v6039_v16, %v11106_v23 }
0x14d6   : > { %v6041_v38 = vpop.f32.mrf.mxu0 }
0x14d7   : > { %v6120_v11 = vmul.f32 %v6096_v25, %v11256_v46  ;;  %v6097_v22 = vmul.f32 0.044715, %v11260_v56  ;;  %v11265_v1 = vadd.f32 %v6041_v38, %v11102_v49 }
0x14d8   : > { %v6043_v43 = vpop.f32.mrf.mxu0 }
0x14d9   : > { %v6144_v24 = vmul.f32 %v6120_v11, %v11256_v46  ;;  %v6121_v6 = vmul.f32 %v6097_v22, %v11260_v56  ;;  %v6098_v9 = vmul.f32 0.044715, %v11265_v1  ;;  %v11271_v13 = vadd.f32 %v6043_v43, %v11106_v23 }
0x14da   : > { %v6047_v19 = vpop.f32.mrf.mxu0 }
0x14db   : > { %v6168_v58 = vadd.f32 %v6144_v24, %v11256_v46  ;;  %v6145_v51 = vmul.f32 %v6121_v6, %v11260_v56  ;;  %v6122_v45 = vmul.f32 %v6098_v9, %v11265_v1  ;;  %v6099_v53 = vmul.f32 0.044715, %v11271_v13 }
0x14dc   : > { %v11278_v44 = vadd.f32 %v6047_v19, %v11102_v49  ;;  %v6049_v36 = vpop.f32.mrf.mxu0  ;;  %v7236_v19 = vld [vmem:[%s11435_s18 + $0x1] ss:$0 sm:$0xff] }
0x14dd   : > { %v6192_v21 = vmul.f32 0.7978846, %v6168_v58  ;;  %v6146_v14 = vmul.f32 %v6122_v45, %v11265_v1  ;;  %v6123_v32 = vmul.f32 %v6099_v53, %v11271_v13  ;;  %v11283_v48 = vadd.f32 %v6049_v36, %v11106_v23 }
0x14de   : > { %v6100_v40 = vmul.f32 0.044715, %v11278_v44  ;;  %v6051_v10 = vpop.f32.mrf.mxu0  ;;  %v6169_v59 = vadd.f32 %v6145_v51, %v11260_v56  ;;  %v6074_v51 = vmul.f32 0.5, %v11265_v1  ;;  %v6073_v36 = vmul.f32 0.5, %v11260_v56 }
0x14df   : > { %v6170_v62 = vadd.f32 %v6146_v14, %v11265_v1  ;;  %v6147_v29 = vmul.f32 %v6123_v32, %v11271_v13  ;;  %v6101_v37 = vmul.f32 0.044715, %v11283_v48  ;;  %8478 = vtanh.f32 %v6192_v21 }
0x14e0   : > { %v6124_v20 = vmul.f32 %v6100_v40, %v11278_v44  ;;  %v11292_v34 = vadd.f32 %v6051_v10, %v11102_v49  ;;  %v6053_v35 = vpop.f32.mrf.mxu0  ;;  %v6193_v50 = vmul.f32 0.7978846, %v6169_v59  ;;  %v6075_v21 = vmul.f32 0.5, %v11271_v13 }
0x14e1   : > { %v6194_v42 = vmul.f32 0.7978846, %v6170_v62  ;;  %v6125_v5 = vmul.f32 %v6101_v37, %v11283_v48  ;;  %v11296_v39 = vadd.f32 %v6053_v35, %v11106_v23  ;;  %v6171_v55 = vadd.f32 %v6147_v29, %v11271_v13 }
0x14e2   : > { %v6148_v61 = vmul.f32 %v6124_v20, %v11278_v44  ;;  %v6102_v57 = vmul.f32 0.044715, %v11292_v34  ;;  %v11301_v15 = vpop.f32.mrf.mxu0  ;;  %8480 = vtanh.f32 %v6193_v50  ;;  %v6072_v40 = vmul.f32 0.5, %v11256_v46 }
0x14e3   : > { %8482 = vtanh.f32 %v6194_v42  ;;  %v6149_v49 = vmul.f32 %v6125_v5, %v11283_v48  ;;  %v6103_v17 = vmul.f32 0.044715, %v11296_v39  ;;  %v6195_v3 = vmul.f32 0.7978846, %v6171_v55 }
0x14e4   : > { %v6172_v0 = vadd.f32 %v6148_v61, %v11278_v44  ;;  %v6126_v2 = vmul.f32 %v6102_v57, %v11292_v34  ;;  %v7883_v23 = vpop.f32.mrf.mxu0  ;;  %v6077_v46 = vmul.f32 0.5, %v11283_v48 }
0x14e5   : > { %v6127_v33 = vmul.f32 %v6103_v17, %v11296_v39  ;;  %v6173_v30 = vadd.f32 %v6149_v49, %v11283_v48  ;;  %8484 = vtanh.f32 %v6195_v3  ;;  %v6078_v23 = vmul.f32 0.5, %v11292_v34 }
0x14e6   : > { %v6150_v47 = vmul.f32 %v6126_v2, %v11292_v34  ;;  %v6614_v26 = vpop.f32.mrf.mxu0  ;;  %v6196_v7 = vmul.f32 0.7978846, %v6172_v0  ;;  %v6079_v0 = vmul.f32 0.5, %v11296_v39 }
0x14e7   : > { %v6151_v12 = vmul.f32 %v6127_v33, %v11296_v39  ;;  %v6197_v8 = vmul.f32 0.7978846, %v6173_v30  ;;  %v6076_v26 = vmul.f32 0.5, %v11278_v44 }
0x14e8   : > { %v6174_v31 = vadd.f32 %v6150_v47, %v11292_v34  ;;  %v7884_v4 = vpop.f32.mrf.mxu0 }
0x14e9   : > { %v6175_v60 = vadd.f32 %v6151_v12, %v11296_v39  ;;  %8486 = vtanh.f32 %v6197_v8 }
0x14ea   : > { %v6198_v16 = vmul.f32 0.7978846, %v6174_v31  ;;  %8488 = vtanh.f32 %v6196_v7 }
0x14eb   : > { %v6199_v25 = vmul.f32 0.7978846, %v6175_v60 }
0x14ec   : > { %8490 = vtanh.f32 %v6198_v16  ;;  %v8479_v38 = vpop.eup %8478 }
0x14ed   : > { %8492 = vtanh.f32 %v6199_v25  ;;  %v6240_v45 = vadd.f32 1.0, %v8479_v38 }
0x14ef   : > { %v8481_v11 = vpop.eup %8480  ;;  %v6264_v35 = vmul.f32 %v6240_v45, %v6072_v40 }
0x14f0   : > { %v8483_v22 = vpop.eup %8482  ;;  %v6241_v6 = vadd.f32 1.0, %v8481_v11 }
0x14f1   : > { %v7512_v43 = vpop.f32.mrf.mxu1  ;;  %v6242_v24 = vadd.f32 1.0, %v8483_v22 }
0x14f2   : > { %v8485_v9 = vpop.eup %8484  ;;  %v6265_v29 = vmul.f32 %v6241_v6, %v6073_v36  ;;  %v6497_v6 = vrot.slane %v10114_v52, %v8711_v18 }
0x14f3   : > { %v7513_v58 = vpop.f32.mrf.mxu1  ;;  %v6243_v14 = vadd.f32 1.0, %v8485_v9  ;;  %v6266_v10 = vmul.f32 %v6242_v24, %v6074_v51 }
0x14f4   : > { %v7514_v53 = vadd.f32 %v7513_v58, %v7512_v43 }
0x14f5   : > { %v7515_v32 = vpop.f32.mrf.mxu1  ;;  %v6267_v37 = vmul.f32 %v6243_v14, %v6075_v21  ;;  %v6280_v55 = vpack.c.bf16 %v6266_v10, %v6264_v35 }
0x14f6   : > { %v8487_v59 = vpop.eup %8486  ;;  %v6456_v62 = vadd.f32 %v7514_v53, %v7236_v19 }
0x14f7   : > { %v7516_v20 = vpop.f32.mrf.mxu1  ;;  %v8489_v50 = vpop.eup %8488  ;;  %v6281_v1 = vpack.c.bf16 %v6267_v37, %v6265_v29  ;;  %v6245_v13 = vadd.f32 1.0, %v8487_v59 }
0x14f8   : > { %v7517_v42 = vadd.f32 %v7516_v20, %v7515_v32  ;;  %6502 = vrot.lane.b32.xlu0 %v6456_v62, %s11481_s0  ;;  %v6244_v3 = vadd.f32 1.0, %v8489_v50 }
0x14f9   : > { %v8491_v5 = vpop.eup %8490  ;;  %v7518_v56 = vpop.f32.mrf.mxu1  ;;  %6481 = vmatprep.mubr.bf16.mxu1 %v6281_v1  ;;  %v6269_v30 = vmul.f32 %v6245_v13, %v6077_v46 }
0x14fa   : > { %v8493_v61 = vpop.eup %8492  ;;  %v6459_v57 = vadd.f32 %v7517_v42, %v7236_v19  ;;  %v6246_v49 = vadd.f32 1.0, %v8491_v5  ;;  %6482 = vmatmul.mubr.bf16.gmra.mxu1 %v6280_v55  ;;  %v6268_v48 = vmul.f32 %v6244_v3, %v6076_v26  ;;  %v8100_v26 = vld [vmem:[%s11438_s21 + $0x8] sm:$0xff]  }
0x14fb   : > { %v7519_v17 = vpop.f32.mrf.mxu1  ;;  %v6247_v2 = vadd.f32 1.0, %v8493_v61 }
0x14fc   : > { %6504 = vrot.lane.b32.xlu1 %v6459_v57, %s11481_s0  ;;  %v6270_v7 = vmul.f32 %v6246_v49, %v6078_v23  ;;  %v7253_v23 = vld [vmem:[%s11437_s20] ss:$0 sm:$0xff] }
0x14fd   : > { %v7521_v33 = vpop.f32.mrf.mxu1  ;;  %v6271_v47 = vmul.f32 %v6247_v2, %v6079_v0 }
0x14fe   : > { %v6282_v31 = vpack.c.bf16 %v6270_v7, %v6268_v48  ;;  %v8099_v33 = vld [vmem:[%s11438_s21 + $0x10] sm:$0xff]  }
0x14ff   : > { %v7522_v12 = vpop.f32.mrf.mxu1  ;;  %v6283_v8 = vpack.c.bf16 %v6271_v47, %v6269_v30 }
0x1501   : > { %6487 = vmatprep.mubr.bf16.mxu1 %v6283_v8  ;;  %v7524_v4 = vpop.f32.mrf.mxu1 }
0x1502   : > { %6488 = vmatmul.mubr.bf16.gmra.mxu1 %v6282_v31 }
0x1503   : > { %7905 = vmatprep.mubr.msk.bf16.mxu1 %vm8523_vm2, %v11484_v28  ;;  %v7525_v34 = vpop.f32.mrf.mxu1 }
0x1505   : > { %v7527_v39 = vpop.f32.mrf.mxu1 }
0x1507   : > { %v7528_v60 = vpop.f32.mrf.mxu1 }
0x150a   : > { %v7530_v16 = vpop.f32.mrf.mxu1 }
0x150c   : > { %v7531_v25 = vpop.f32.mrf.mxu1 }
0x150d   : > { %v7532_v38 = vadd.f32 %v7531_v25, %v7530_v16 }
0x150e   : > { %v7533_v11 = vpop.f32.mrf.mxu1 }
0x150f   : > { %v6476_v22 = vadd.f32 %v7532_v38, %v7236_v19 }
0x1510   : > { %v7534_v44 = vpop.f32.mrf.mxu1 }
0x1511   : > { %v7535_v43 = vadd.f32 %v7534_v44, %v7533_v11  ;;  %6506 = vrot.lane.b32.xlu0 %v6476_v22, %s11481_s0 }
0x1513   : > { %v6479_v24 = vadd.f32 %v7535_v43, %v7236_v19 }
0x1515   : > { %6508 = vrot.lane.b32.xlu0 %v6479_v24, %s11481_s0 }
0x156a   : > { %v6503_v9 = vpop.permute.xlu0 %6502 }
0x156b   : > { %v6514_v58 = vmul.f32 %v6503_v9, %v6497_v6 }
0x156d   : > { %6522 = vrot.lane.b32.xlu0 %v6514_v58, %s11481_s0 }
0x156e   : > { %v6505_v51 = vpop.permute.xlu1 %6504 }
0x156f   : > { %v6515_v45 = vmul.f32 %v6505_v51, %v6497_v6 }
0x1571   : > { %6524 = vrot.lane.b32.xlu0 %v6515_v45, %s11481_s0 }
0x1583   : > { %v6507_v53 = vpop.permute.xlu0 %6506 }
0x1584   : > { %v6516_v36 = vmul.f32 %v6507_v53, %v6497_v6 }
0x1586   : > { %6526 = vrot.lane.b32.xlu0 %v6516_v36, %s11481_s0 }
0x1587   : > { %v6509_v21 = vpop.permute.xlu0 %6508 }
0x1588   : > { %v6517_v14 = vmul.f32 %v6509_v21, %v6497_v6 }
0x158a   : > { %6528 = vrot.lane.b32.xlu1 %v6517_v14, %s11481_s0 }
0x15ba   : > { %v7536_v19 = vpop.f32.mrf.mxu1 }
0x15bc   : > { %v7537_v32 = vpop.f32.mrf.mxu1 }
0x15be   : > { %v7539_v40 = vpop.f32.mrf.mxu1 }
0x15c0   : > { %v7540_v52 = vpop.f32.mrf.mxu1 }
0x15c2   : > { %v7542_v10 = vpop.f32.mrf.mxu1 }
0x15c4   : > { %v7543_v59 = vpop.f32.mrf.mxu1 }
0x15c6   : > { %v7545_v62 = vpop.f32.mrf.mxu1 }
0x15c8   : > { %v7546_v29 = vpop.f32.mrf.mxu1 }
0x15df   : > { %v6523_v37 = vpop.permute.xlu0 %6522 }
0x15e0   : > { %v11337_v20 = vadd.f32 %v6523_v37, %v10831_v41 }
0x15e2   : > { %v6626_v35 = vsel %vm977_vm3, %v11337_v20, 0.0  ;;  %v6632_v50 = vmul.f32 %v11337_v20, %v11337_v20 }
0x15e3   : > { %6627 = vadd.xlane.f32.xlu0 %v6626_v35  ;;  %v6525_v42 = vpop.permute.xlu0 %6524 }
0x15e4   : > { %v11344_v1 = vadd.f32 %v6525_v42, %v10838_v54  ;;  %v6634_v5 = vsel %vm977_vm3, %v6632_v50, 0.0  ;;  %v8098_v54 = vld [vmem:[%s11438_s21 + $0x18] sm:$0xff]  }
0x15e5   : > { %6635 = vadd.xlane.f32.xlu1 %v6634_v5  ;;  %7898 = vmatpush3.bf16.msra.mxu1 %v8098_v54 }
0x15e6   : > { %v6633_v56 = vmul.f32 %v11344_v1, %v11344_v1  ;;  %v6629_v55 = vsel %vm977_vm3, %v11344_v1, 0.0  ;;  %7886 = vmatpush3.bf16.msra.mxu0 %v8098_v54  ;;  %7899 = vmatprep.subr.bf16.mxu1 %v11484_v28 }
0x15e7   : > { %7887 = vmatprep.subr.bf16.mxu0 %v11484_v28 }
0x15e8   : > { %v6637_v41 = vsel %vm977_vm3, %v6633_v56, 0.0 }
0x15e9   : > { %6638 = vadd.xlane.f32.xlu0 %v6637_v41  ;;  %6630 = vadd.xlane.f32.xlu1 %v6629_v55 }
0x15ea   : > { %7900 = vmatpush3.bf16.msra.mxu1 %v8099_v33  ;;  %7888 = vmatpush3.bf16.msra.mxu0 %v8099_v33 }
0x15eb   : > { %7889 = vmatprep.subr.bf16.mxu0 %v11484_v28  ;;  %7901 = vmatprep.subr.bf16.mxu1 %v11484_v28 }
0x15ee   : > { %7890 = vmatpush3.bf16.msra.mxu0 %v8100_v26  ;;  %7902 = vmatpush3.bf16.msra.mxu1 %v8100_v26 }
0x15ef   : > { %7891 = vmatprep.subr.bf16.mxu0 %v11484_v28  ;;  %7903 = vmatprep.subr.bf16.mxu1 %v11484_v28 }
0x15f8   : > { %v6527_v13 = vpop.permute.xlu0 %6526 }
0x15f9   : > { %v11353_v61 = vadd.f32 %v6527_v13, %v10861_v27 }
0x15fb   : > { %v6763_v57 = vsel %vm977_vm3, %v11353_v61, 0.0  ;;  %v6769_v46 = vmul.f32 %v11353_v61, %v11353_v61 }
0x15fc   : > { %v6529_v49 = vpop.permute.xlu1 %6528  ;;  %6764 = vadd.xlane.f32.xlu0 %v6763_v57 }
0x15fd   : > { %v11364_v17 = vadd.f32 %v6529_v49, %v10893_v63  ;;  %v6771_v27 = vsel %vm977_vm3, %v6769_v46, 0.0  ;;  %v6612_v63 = vadd.f32 %v7253_v23, %v11301_v15  ;;  %v8101_v15 = vld [vmem:[%s11438_s21] sm:$0xff]  }
0x15fe   : > { %6772 = vadd.xlane.f32.xlu1 %v6771_v27  ;;  %7892 = vmatpush3.bf16.msra.mxu0 %v8101_v15 }
0x15ff   : > { %v6766_v0 = vsel %vm977_vm3, %v11364_v17, 0.0  ;;  %v6770_v2 = vmul.f32 %v11364_v17, %v11364_v17  ;;  %v6656_v30 = vadd.f32 1.0, %v6612_v63  ;;  %7904 = vmatpush3.bf16.msra.mxu1 %v8101_v15  ;;  %v6670_v40 = vrot.slane %v6612_v63, %v8711_v18  ;;  %v6749_v63 = vld [vmem:[%s8761_s27 + $0x28] sm:$0xff] }
0x1600   : > { %6767 = vadd.xlane.f32.xlu0 %v6766_v0 }
0x1601   : > { %v6774_v3 = vsel %vm977_vm3, %v6770_v2, 0.0  ;;  %v6660_v47 = vrot.slane %v6656_v30, %v8711_v18  ;;  %v6748_v30 = vld [vmem:[%s8761_s27 + $0x20] sm:$0xff] }
0x1604   : > { %6775 = vadd.xlane.f32.xlu0 %v6774_v3 }
0x160f   : > { %6662 = vrot.lane.b32.xlu1 %v6660_v47, %s11481_s0 }
0x166c   : > { %v6628_v7 = vpop.xlane.xlu0 %6627 }
0x166d   : > { %v6640_v12 = vmul.f32 0.015625, %v6628_v7 }
0x166e   : > { %v6636_v8 = vpop.xlane.xlu1 %6635 }
0x166f   : > { %v6644_v48 = vmul.f32 %v6640_v12, %v6640_v12  ;;  %v6642_v31 = vmul.f32 0.015625, %v6636_v8  ;;  %v6648_v58 = vsub.f32 %v11337_v20, %v6640_v12 }
0x1671   : > { %v6646_v60 = vsub.f32 %v6642_v31, %v6644_v48 }
0x1672   : > { %v6631_v4 = vpop.xlane.xlu1 %6630  ;;  %v6639_v34 = vpop.xlane.xlu0 %6638 }
0x1673   : > { %v6641_v39 = vmul.f32 0.015625, %v6631_v4  ;;  %v6643_v25 = vmul.f32 0.015625, %v6639_v34  ;;  %v6650_v11 = vadd.f32 1e-06, %v6646_v60  ;;  %v6842_v4 = vld [vmem:[%s8761_s27 + $0x30] sm:$0xff] }
0x1675   : > { %v6645_v16 = vmul.f32 %v6641_v39, %v6641_v39  ;;  %v6649_v6 = vsub.f32 %v11344_v1, %v6641_v39 }
0x1677   : > { %v6647_v38 = vsub.f32 %v6643_v25, %v6645_v16 }
0x1679   : > { %v6651_v28 = vadd.f32 1e-06, %v6647_v38  ;;  %v6843_v38 = vld [vmem:[%s8761_s27 + $0x38] sm:$0xff] }
0x167b   : > { %8494 = vrsqrt.f32 %v6651_v28 }
0x167c   : > { %8496 = vrsqrt.f32 %v6650_v11 }
0x1685   : > { %v6765_v22 = vpop.xlane.xlu0 %6764 }
0x1686   : > { %v6777_v43 = vmul.f32 0.015625, %v6765_v22 }
0x1687   : > { %v6773_v9 = vpop.xlane.xlu1 %6772 }
0x1688   : > { %v8495_v44 = vpop.eup %8494  ;;  %v6781_v51 = vmul.f32 %v6777_v43, %v6777_v43  ;;  %v6779_v45 = vmul.f32 0.015625, %v6773_v9  ;;  %v6785_v56 = vsub.f32 %v11353_v61, %v6777_v43  ;;  %v7259_v61 = vld [vmem:[%s11439_s22] ss:$0 sm:$0xff] }
0x1689   : > { %v8497_v24 = vpop.eup %8496  ;;  %v6768_v53 = vpop.xlane.xlu0 %6767  ;;  %v6655_v36 = vmul.f32 %v8495_v44, %v6649_v6 }
0x168a   : > { %v6783_v21 = vsub.f32 %v6779_v45, %v6781_v51  ;;  %v6778_v14 = vmul.f32 0.015625, %v6768_v53  ;;  %v6654_v19 = vmul.f32 %v8497_v24, %v6648_v58 }
0x168b   : > { %v6663_v32 = vpop.permute.xlu1 %6662 }
0x168c   : > { %v6787_v52 = vadd.f32 1e-06, %v6783_v21  ;;  %v6665_v10 = vmul.f32 %v6663_v32, %v6654_v19  ;;  %v6666_v59 = vmul.f32 %v6663_v32, %v6655_v36  ;;  %v6782_v29 = vmul.f32 %v6778_v14, %v6778_v14 }
0x168d   : > { %v6776_v62 = vpop.xlane.xlu0 %6775  ;;  %v6786_v18 = vsub.f32 %v11364_v17, %v6778_v14 }
0x168e   : > { %8498 = vrsqrt.f32 %v6787_v52  ;;  %v6671_v37 = vadd.f32 %v6670_v40, %v6665_v10  ;;  %v6780_v35 = vmul.f32 0.015625, %v6776_v62  ;;  %v6672_v50 = vadd.f32 %v6670_v40, %v6666_v59 }
0x1690   : > { %v6784_v20 = vsub.f32 %v6780_v35, %v6782_v29  ;;  %v6673_v42 = vpack.c.bf16 %v6672_v50, %v6671_v37 }
0x1692   : > { %v6788_v1 = vadd.f32 1e-06, %v6784_v20  ;;  %7894 = vmatmul.mubr.msk.bf16.vlgmr.msra.gmra.mxu0 %vm977_vm3, %v6673_v42 }
0x1694   : > { %8500 = vrsqrt.f32 %v6788_v1 }
0x169b   : > { %v8499_v5 = vpop.eup %8498 }
0x169c   : > { %v6791_v41 = vmul.f32 %v8499_v5, %v6785_v56 }
0x169e   : > { %v6793_v13 = vmul.f32 %v6791_v41, %v6663_v32 }
0x16a0   : > { %v6795_v46 = vadd.f32 %v6793_v13, %v6670_v40 }
0x16a1   : > { %v8501_v55 = vpop.eup %8500 }
0x16a2   : > { %v6792_v54 = vmul.f32 %v8501_v55, %v6786_v18 }
0x16a4   : > { %v6794_v57 = vmul.f32 %v6792_v54, %v6663_v32 }
0x16a6   : > { %v6796_v49 = vadd.f32 %v6794_v57, %v6670_v40 }
0x16a8   : > { %v6797_v27 = vpack.c.bf16 %v6796_v49, %v6795_v46 }
0x16aa   : > { %7906 = vmatmul.mubr.msk.bf16.vlgmr.msra.gmra.mxu1 %vm977_vm3, %v6797_v27 }
0x1752   : > { %v6741_v0 = vpop.f32.mrf.mxu0 }
0x1753   : > { %v6742_v33 = vadd.f32 %v7259_v61, %v6741_v0 }
0x1754   : > { %v7895_v2 = vpop.f32.mrf.mxu0 }
0x1755   : > { %v6750_v26 = vsub.f32 %v6742_v33, %v6748_v30 }
0x1756   : > { %v6744_v23 = vpop.f32.mrf.mxu0 }
0x1757   : > { %v6745_v17 = vadd.f32 %v7259_v61, %v6744_v23  ;;  %v6752_v7 = vmul.f32 %v6750_v26, %v6750_v26 }
0x1758   : > { %v7896_v3 = vpop.f32.mrf.mxu0 }
0x1759   : > { %v6751_v47 = vsub.f32 %v6745_v17, %v6749_v63  ;;  %v6754_v8 = vsel %vm977_vm3, %v6752_v7, 0.0 }
0x175b   : > { %v6753_v15 = vmul.f32 %v6751_v47, %v6751_v47 }
0x175d   : > { %v6755_v12 = vsel %vm977_vm3, %v6753_v15, 0.0 }
0x175e   : > { %v6756_v48 = vadd.f32 %v6755_v12, %v6754_v8 }
0x1760   : > { %v6757_v16 = vrot.slane %v6756_v48, 4 }
0x1762   : > { %v6758_v43 = vadd.f32 %v6757_v16, %v6756_v48 }
0x1764   : > { %v6759_v58 = vrot.slane %v6758_v43, 2 }
0x1766   : > { %v6760_v53 = vadd.f32 %v6759_v58, %v6758_v43 }
0x1768   : > { %v6761_v14 = vrot.slane %v6760_v53, 1 }
0x176a   : > { %v6835_v31 = vpop.f32.mrf.mxu1  ;;  %v6762_v40 = vadd.f32 %v6761_v14, %v6760_v53 }
0x176b   : > { %v6836_v34 = vadd.f32 %v7259_v61, %v6835_v31 }
0x176c   : > { %v7907_v39 = vpop.f32.mrf.mxu1 }
0x176d   : > { %v6844_v60 = vsub.f32 %v6836_v34, %v6842_v4 }
0x176e   : > { %v6838_v25 = vpop.f32.mrf.mxu1 }
0x176f   : > { %v6839_v11 = vadd.f32 %v7259_v61, %v6838_v25  ;;  %v6846_v22 = vmul.f32 %v6844_v60, %v6844_v60 }
0x1770   : > { %v7908_v28 = vpop.f32.mrf.mxu1 }
0x1771   : > { %v6845_v44 = vsub.f32 %v6839_v11, %v6843_v38  ;;  %v6848_v6 = vsel %vm977_vm3, %v6846_v22, 0.0 }
0x1773   : > { %v6847_v24 = vmul.f32 %v6845_v44, %v6845_v44 }
0x1775   : > { %v6849_v9 = vsel %vm977_vm3, %v6847_v24, 0.0 }
0x1776   : > { %v6850_v51 = vadd.f32 %v6849_v9, %v6848_v6 }
0x1778   : > { %v6851_v45 = vrot.slane %v6850_v51, 4 }
0x177a   : > { %v6852_v36 = vadd.f32 %v6851_v45, %v6850_v51 }
0x177c   : > { %v6853_v21 = vrot.slane %v6852_v36, 2 }
0x177e   : > { %v6854_v19 = vadd.f32 %v6853_v21, %v6852_v36 }
0x1780   : > { %v6855_v32 = vrot.slane %v6854_v19, 1 }
0x1782   : > { %v6856_v52 = vadd.f32 %v6855_v32, %v6854_v19 }
0x1784   : > { %v6857_v10 = vadd.f32 %v6856_v52, %v6762_v40 }
0x1786   : > { %6859 = vst.msk [vmem:[%s743_s26] sm:$0x1] %vm6858_vm11, %v6857_v10 }
0x1787 PF: > { %s33_s4 = sadd.s32 1, %s8520_s4  }
0x1788   : > { %p30_p4 = scmp.ge.s32.totalorder %s33_s4, 4  }
0x178a   :  { %32 = sbr.rel (!%p30_p4) target bundleno = 10 (0xa), region = 158 }

</bundles_post_ra>
